<compile_context>
chip_gen: v5e
topology: v5e:2x2
jax: 0.10.0
libtpu: 0.0.40
codegen_flags: <defaults>
</compile_context>

<pallas_src>
import functools

import jax
import jax.numpy as jnp
import numpy as np
from jax.experimental import pallas as pl
from jax.experimental.pallas import tpu as pltpu


_LANES = 128
_SUB = 8
_VMEM_LIMIT = 48 * 1024 * 1024      # explicit scoped-VMEM cap (below v7x's 64 MiB/TC)
_MM_DTYPE = jnp.bfloat16            # full-rate MXU path on v6e/v7x; accumulation stays f32


def _round_up(n, m):
    return ((n + m - 1) // m) * m


def _const_spec(a):
    nd = a.ndim
    return pl.BlockSpec(a.shape, lambda b, _nd=nd: (0,) * _nd)


def _nhwc(a):
    return jnp.transpose(a, (0, 2, 3, 1))


def _nchw(a):
    return jnp.transpose(a, (0, 3, 1, 2))


# ---------------------------------------------------------------------------
# DecoderBlock: conv3x3 -> BN -> ReLU -> conv3x3 -> BN -> ReLU (one fused kernel)
# ---------------------------------------------------------------------------
def _decoder_block_kernel(x_ref, w1_ref, s1_ref, b1_ref, w2_ref, s2_ref, b2_ref,
                          o_ref, xcat_ref, mid_ref, *, wp, w_real, h_real):
    # x_ref:    (1, (H+3)*Wp, Cin)   row-flattened, spatially zero-padded, lane-padded, bf16
    # w1_ref:   (3, 3*Cin, Cmid)     row-tap di stacked on dim 0, col-tap dj packed on K
    # w2_ref:   (3, 3*Cmid, Cout)
    # s*/b*:    (1, C) folded BatchNorm scale/bias (f32)
    # o_ref:    (1, H*Wp, Cout)      wrap-around / pad columns cropped by the wrapper
    # xcat_ref: VMEM (lout+2*Wp, 3*Cin)   3 column-shifted copies of the input
    # mid_ref:  VMEM (lout+2*Wp+8, 3*Cmid) conv1 output restaged (3 shifts) with zero halo
    lout = o_ref.shape[1]
    lin_c = xcat_ref.shape[0]
    cin = x_ref.shape[2]
    cmid = w1_ref.shape[2]
    cout = o_ref.shape[2]
    mid_len = mid_ref.shape[0]

    # ---- stage 3 column-shifted copies so every matmul slice below is 8-aligned ----
    for dj in range(3):
        xcat_ref[:, dj * cin:(dj + 1) * cin] = x_ref[0, dj:dj + lin_c, :]

    # ---- conv1: 3 row-tap matmuls with K = 3*Cin (dj packed on the contraction dim) ----
    acc = jnp.zeros((lout, cmid), jnp.float32)
    for di in range(3):
        acc = acc + jnp.dot(xcat_ref[di * wp:di * wp + lout, :], w1_ref[di],
                            preferred_element_type=jnp.float32)
    h = jnp.maximum(acc * s1_ref[...] + b1_ref[...], 0.0)

    # zero the wrap-around / pad columns (flattened-row artifacts) before they feed conv2
    col = jax.lax.broadcasted_iota(jnp.int32, (h_real, wp, cmid), 1).reshape(lout, cmid)
    h = jnp.where(col < w_real, h, 0.0).astype(mid_ref.dtype)

    # ---- restage conv1 output (3 column shifts) with a zero halo; only the halo strips
    #      are zero-filled each grid step (no full-buffer memset) ----
    mid_ref[0:wp + 8, :] = jnp.zeros((wp + 8, 3 * cmid), mid_ref.dtype)
    mid_ref[lout + wp - 8:mid_len, :] = jnp.zeros((mid_len - (lout + wp - 8), 3 * cmid),
                                                  mid_ref.dtype)
    for dj in range(3):
        start = wp + 1 - dj
        mid_ref[start:start + lout, dj * cmid:(dj + 1) * cmid] = h

    # ---- conv2 + BN + ReLU ----
    acc2 = jnp.zeros((lout, cout), jnp.float32)
    for di in range(3):
        acc2 = acc2 + jnp.dot(mid_ref[di * wp:di * wp + lout, :], w2_ref[di],
                              preferred_element_type=jnp.float32)
    y = jnp.maximum(acc2 * s2_ref[...] + b2_ref[...], 0.0)
    o_ref[...] = y.reshape(1, lout, cout).astype(o_ref.dtype)


def decoder_block_pallas(x_nhwc, w1, s1, b1, w2, s2, b2, out_dtype=_MM_DTYPE):
    """x_nhwc: (N, H, W, Cin). w1/w2: PyTorch OIHW (Cout, Cin, 3, 3). s/b: folded BN (C,)."""
    N, H, W, Cin = x_nhwc.shape
    Cmid, Cout = w1.shape[0], w2.shape[0]
    Cin_p = _round_up(Cin, _LANES)
    Cmid_p = _round_up(Cmid, _LANES)
    Cout_p = _round_up(Cout, _LANES)
    Wp = _round_up(W + 2, _SUB)        # padded flattened-row width (8-aligned row taps)
    lin = (H + 3) * Wp                 # +1 top halo, +2 bottom rows keep flat windows in-bounds
    lout = H * Wp
    lin_c = lout + 2 * Wp              # length of the column-shift staging buffer
    mid_len = lout + 2 * Wp + 8        # conv1-output restage with 8-aligned halo strips

    # zero spatial halo + lane padding, then flatten rows (pure data movement; fused by XLA)
    xp = jnp.pad(x_nhwc, ((0, 0), (1, 2), (1, Wp - W - 1), (0, Cin_p - Cin)))
    xflat = xp.reshape(N, lin, Cin_p).astype(_MM_DTYPE)

    def prep_w(w, cip, cop):
        w = jnp.transpose(w, (2, 3, 1, 0))                       # (3, 3, Cin, Cout)
        w = jnp.pad(w, ((0, 0), (0, 0), (0, cip - w.shape[2]), (0, cop - w.shape[3])))
        return w.reshape(3, 3 * cip, cop).astype(_MM_DTYPE)      # dj packed along K

    def prep_v(v, cp):
        return jnp.pad(v, (0, cp - v.shape[0])).reshape(1, cp).astype(jnp.float32)

    params = [prep_w(w1, Cin_p, Cmid_p), prep_v(s1, Cmid_p), prep_v(b1, Cmid_p),
              prep_w(w2, Cmid_p, Cout_p), prep_v(s2, Cout_p), prep_v(b2, Cout_p)]

    out = pl.pallas_call(
        functools.partial(_decoder_block_kernel, wp=Wp, w_real=W, h_real=H),
        out_shape=jax.ShapeDtypeStruct((N, lout, Cout_p), out_dtype),
        grid_spec=pltpu.PrefetchScalarGridSpec(
            num_scalar_prefetch=0,
            grid=(N,),
            in_specs=[pl.BlockSpec((1, lin, Cin_p), lambda b: (b, 0, 0))]
                     + [_const_spec(p) for p in params],
            out_specs=pl.BlockSpec((1, lout, Cout_p), lambda b: (b, 0, 0)),
            scratch_shapes=[pltpu.VMEM((lin_c, 3 * Cin_p), _MM_DTYPE),
                            pltpu.VMEM((mid_len, 3 * Cmid_p), _MM_DTYPE)],
        ),
        compiler_params=pltpu.CompilerParams(
            dimension_semantics=("parallel",),
            vmem_limit_bytes=_VMEM_LIMIT),
    )(xflat, *params)

    # drop the wrap-around / pad columns and the lane padding
    return out.reshape(N, H, Wp, Cout_p)[:, :, :W, :Cout]


# ---------------------------------------------------------------------------
# Glue ops (per review: cheaper in XLA than as lane-sparse Pallas kernels)
# ---------------------------------------------------------------------------
def _upsample2x_nhwc(x):
    """Nearest x2 upsample as a single broadcast/reshape pass."""
    N, H, W, C = x.shape
    x = jnp.broadcast_to(x[:, :, None, :, None, :], (N, H, 2, W, 2, C))
    return x.reshape(N, 2 * H, 2 * W, C)


def _spatial_attention_jax(x_nhwc, w_conv):
    """SpatialAttention on tiny skips (4x4 / 8x8); exact sigmoid. w_conv: (1, 2, 7, 7)."""
    avg = jnp.mean(x_nhwc, axis=-1, keepdims=True)
    mx = jnp.max(x_nhwc, axis=-1, keepdims=True)
    att_in = jnp.concatenate([avg, mx], axis=-1)
    w_hwio = jnp.transpose(w_conv, (2, 3, 1, 0)).astype(jnp.float32)   # (7,7,2,1)
    att = jax.lax.conv_general_dilated(
        att_in.astype(jnp.float32), w_hwio, (1, 1), ((3, 3), (3, 3)),
        dimension_numbers=("NHWC", "HWIO", "NHWC"),
        precision=jax.lax.Precision.HIGHEST)
    return x_nhwc * jax.nn.sigmoid(att)


# ---------------------------------------------------------------------------
# UnetDecoder forward (Pallas path)
# ---------------------------------------------------------------------------
def unet_decoder_pallas(features_nchw, block_params, sa_params):
    n_feat = len(features_nchw)
    x = _nhwc(features_nchw[-1]).astype(_MM_DTYPE)
    for i in range(len(block_params)):
        x = _upsample2x_nhwc(x)
        if i < n_feat - 1:
            skip = _nhwc(features_nchw[-(i + 2)])
            if sa_params[i] is not None:
                skip = _spatial_attention_jax(skip, sa_params[i])
            x = jnp.concatenate([x, skip.astype(x.dtype)], axis=-1)
        x = decoder_block_pallas(x, *block_params[i])
    return _nchw(x).astype(jnp.float32)


# ---------------------------------------------------------------------------
# Pure-JAX reference (NCHW f32, matches PyTorch semantics with folded eval BN)
# ---------------------------------------------------------------------------
def _conv2d_nchw_ref(x, w, pad):
    return jax.lax.conv_general_dilated(
        x, w, window_strides=(1, 1), padding=((pad, pad), (pad, pad)),
        dimension_numbers=("NCHW", "OIHW", "NCHW"),
        precision=jax.lax.Precision.HIGHEST)


def _decoder_block_ref(x, w1, s1, b1, w2, s2, b2):
    h = _conv2d_nchw_ref(x, w1, 1)
    h = jnp.maximum(h * s1[None, :, None, None] + b1[None, :, None, None], 0.0)
    h = _conv2d_nchw_ref(h, w2, 1)
    return jnp.maximum(h * s2[None, :, None, None] + b2[None, :, None, None], 0.0)


def _spatial_attention_ref(x, w):
    avg = jnp.mean(x, axis=1, keepdims=True)
    mx = jnp.max(x, axis=1, keepdims=True)
    att = _conv2d_nchw_ref(jnp.concatenate([avg, mx], axis=1), w, 3)
    return x * jax.nn.sigmoid(att)


def unet_decoder_ref(features_nchw, block_params, sa_params):
    n_feat = len(features_nchw)
    x = features_nchw[-1]
    for i in range(len(block_params)):
        x = jnp.repeat(jnp.repeat(x, 2, axis=2), 2, axis=3)
        if i < n_feat - 1:
            skip = features_nchw[-(i + 2)]
            if sa_params[i] is not None:
                skip = _spatial_attention_ref(skip, sa_params[i])
            x = jnp.concatenate([x, skip], axis=1)
        x = _decoder_block_ref(x, *block_params[i])
    return x


if __name__ == "__main__":
    key = jax.random.PRNGKey(0)
    keys = iter(jax.random.split(key, 128))

    N = 2
    # Encoder pyramid implied by the DecoderBlock in_channels:
    # 520 = 384 + 136, 304 = 256 + 48, 160 = 128 + 32, 104 = 64 + 40.
    feat_channels = [40, 32, 48, 136, 384]     # shallow -> deep
    feat_hw = [32, 16, 8, 4, 2]                # small spatial sizes
    in_ch = [520, 304, 160, 104, 32]
    out_ch = [256, 128, 64, 32, 16]
    eps = 1e-5                                  # PyTorch BatchNorm2d default

    features = [jax.random.normal(next(keys), (N, c, s, s), jnp.float32)
                for c, s in zip(feat_channels, feat_hw)]

    def conv_w(k, cout, cin, ksz):
        std = (2.0 / (cin * ksz * ksz)) ** 0.5
        return std * jax.random.normal(k, (cout, cin, ksz, ksz), jnp.float32)

    def bn_fold(c):
        gamma = 1.0 + 0.1 * jax.random.normal(next(keys), (c,), jnp.float32)
        beta = 0.1 * jax.random.normal(next(keys), (c,), jnp.float32)
        mean = 0.1 * jax.random.normal(next(keys), (c,), jnp.float32)
        var = jax.random.uniform(next(keys), (c,), jnp.float32, minval=0.5, maxval=1.5)
        scale = gamma / jnp.sqrt(var + eps)
        bias = beta - mean * scale
        return scale, bias

    block_params = []
    for ci, co in zip(in_ch, out_ch):
        w1 = conv_w(next(keys), co, ci, 3)
        s1, b1 = bn_fold(co)
        w2 = conv_w(next(keys), co, co, 3)
        s2, b2 = bn_fold(co)
        block_params.append((w1, s1, b1, w2, s2, b2))

    sa_params = [conv_w(next(keys), 1, 2, 7), conv_w(next(keys), 1, 2, 7),
                 None, None, None]

    out = unet_decoder_pallas(features, block_params, sa_params)
    out = jax.block_until_ready(out)

    ref = unet_decoder_ref(features, block_params, sa_params)
    ref = jax.block_until_ready(ref)

    # bf16 MXU operands across a 5-block chain => ~1e-2 relative error vs the f32 reference.
    np.testing.assert_allclose(np.asarray(out), np.asarray(ref), rtol=5e-2, atol=5e-2)
    assert out.shape == (N, 16, 64, 64)
    print("KERNEL_OK")
</pallas_src>

<mosaic_0001>
module attributes {stable_mosaic.version = 11 : i64} {
  func.func @_decoder_block_kernel(%arg0: i32, %arg1: memref<1x56x640xbf16, #tpu.memory_space<vmem>>, %arg2: memref<3x1920x256xbf16, #tpu.memory_space<vmem>>, %arg3: memref<1x256xf32, #tpu.memory_space<vmem>>, %arg4: memref<1x256xf32, #tpu.memory_space<vmem>>, %arg5: memref<3x768x256xbf16, #tpu.memory_space<vmem>>, %arg6: memref<1x256xf32, #tpu.memory_space<vmem>>, %arg7: memref<1x256xf32, #tpu.memory_space<vmem>>, %arg8: memref<1x32x256xbf16, #tpu.memory_space<vmem>>, %arg9: memref<48x1920xbf16, #tpu.memory_space<vmem>>, %arg10: memref<56x768xbf16, #tpu.memory_space<vmem>>) attributes {dimension_semantics = [#tpu.dimension_semantics<parallel>], iteration_bounds = array<i64: 2>, scalar_prefetch = 0 : i64, scratch_operands = 2 : i64, tpu.core_type = #tpu.core_type<tc>, window_params = [{transform_indices = @transform_0, window_bounds = array<i64: 1, 56, 640>}, {pipeline_mode = #tpu.pipeline_mode<synchronous>, transform_indices = @transform_1, window_bounds = array<i64: 3, 1920, 256>}, {pipeline_mode = #tpu.pipeline_mode<synchronous>, transform_indices = @transform_2, window_bounds = array<i64: 1, 256>}, {pipeline_mode = #tpu.pipeline_mode<synchronous>, transform_indices = @transform_3, window_bounds = array<i64: 1, 256>}, {pipeline_mode = #tpu.pipeline_mode<synchronous>, transform_indices = @transform_4, window_bounds = array<i64: 3, 768, 256>}, {pipeline_mode = #tpu.pipeline_mode<synchronous>, transform_indices = @transform_5, window_bounds = array<i64: 1, 256>}, {pipeline_mode = #tpu.pipeline_mode<synchronous>, transform_indices = @transform_6, window_bounds = array<i64: 1, 256>}, {transform_indices = @transform_7, window_bounds = array<i64: 1, 32, 256>}]} {
    %c0 = arith.constant 0 : index
    %c0_0 = arith.constant 0 : index
    %c0_1 = arith.constant 0 : index
    %0 = vector.load %arg1[%c0, %c0_0, %c0_1] : memref<1x56x640xbf16, #tpu.memory_space<vmem>>, vector<1x48x640xbf16>
    %1 = vector.shape_cast %0 : vector<1x48x640xbf16> to vector<48x640xbf16>
    %c0_2 = arith.constant 0 : index
    %c0_3 = arith.constant 0 : index
    %2 = vector.load %arg9[%c0_2, %c0_3] : memref<48x1920xbf16, #tpu.memory_space<vmem>>, vector<48x640xbf16>
    tpu.vector_store %arg9[%c0_2, %c0_3], %1 {strides = array<i32>} : memref<48x1920xbf16, #tpu.memory_space<vmem>>, vector<48x640xbf16>,
    %c0_4 = arith.constant 0 : index
    %c1 = arith.constant 1 : index
    %c0_5 = arith.constant 0 : index
    %3 = vector.load %arg1[%c0_4, %c1, %c0_5] : memref<1x56x640xbf16, #tpu.memory_space<vmem>>, vector<1x48x640xbf16>
    %4 = vector.shape_cast %3 : vector<1x48x640xbf16> to vector<48x640xbf16>
    %c0_6 = arith.constant 0 : index
    %c640 = arith.constant 640 : index
    %5 = vector.load %arg9[%c0_6, %c640] : memref<48x1920xbf16, #tpu.memory_space<vmem>>, vector<48x640xbf16>
    tpu.vector_store %arg9[%c0_6, %c640], %4 {strides = array<i32>} : memref<48x1920xbf16, #tpu.memory_space<vmem>>, vector<48x640xbf16>,
    %c0_7 = arith.constant 0 : index
    %c2 = arith.constant 2 : index
    %c0_8 = arith.constant 0 : index
    %6 = vector.load %arg1[%c0_7, %c2, %c0_8] : memref<1x56x640xbf16, #tpu.memory_space<vmem>>, vector<1x48x640xbf16>
    %7 = vector.shape_cast %6 : vector<1x48x640xbf16> to vector<48x640xbf16>
    %c0_9 = arith.constant 0 : index
    %c1280 = arith.constant 1280 : index
    %8 = vector.load %arg9[%c0_9, %c1280] : memref<48x1920xbf16, #tpu.memory_space<vmem>>, vector<48x640xbf16>
    tpu.vector_store %arg9[%c0_9, %c1280], %7 {strides = array<i32>} : memref<48x1920xbf16, #tpu.memory_space<vmem>>, vector<48x640xbf16>,
    %cst = arith.constant 0.000000e+00 : f32
    %9 = vector.broadcast %cst : f32 to vector<32x256xf32>
    %c0_10 = arith.constant 0 : index
    %c0_11 = arith.constant 0 : index
    %10 = vector.load %arg9[%c0_10, %c0_11] : memref<48x1920xbf16, #tpu.memory_space<vmem>>, vector<32x1920xbf16>
    %c0_12 = arith.constant 0 : index
    %c0_13 = arith.constant 0 : index
    %c0_14 = arith.constant 0 : index
    %11 = vector.load %arg2[%c0_12, %c0_13, %c0_14] : memref<3x1920x256xbf16, #tpu.memory_space<vmem>>, vector<1x1920x256xbf16>
    %12 = vector.shape_cast %11 : vector<1x1920x256xbf16> to vector<1920x256xbf16>
    %cst_15 = arith.constant dense<0.000000e+00> : vector<32x256xf32>
    %13 = tpu.matmul %10, %12, %cst_15 {dimension_numbers = #tpu.dot_dimension_numbers<[1], [0], [0], [1], [0, 0, 1, 1], [], []>} : vector<32x1920xbf16>, vector<1920x256xbf16>, vector<32x256xf32> -> vector<32x256xf32>
    %14 = arith.addf %9, %13 : vector<32x256xf32>
    %c8 = arith.constant 8 : index
    %c0_16 = arith.constant 0 : index
    %15 = vector.load %arg9[%c8, %c0_16] : memref<48x1920xbf16, #tpu.memory_space<vmem>>, vector<32x1920xbf16>
    %c1_17 = arith.constant 1 : index
    %c0_18 = arith.constant 0 : index
    %c0_19 = arith.constant 0 : index
    %16 = vector.load %arg2[%c1_17, %c0_18, %c0_19] : memref<3x1920x256xbf16, #tpu.memory_space<vmem>>, vector<1x1920x256xbf16>
    %17 = vector.shape_cast %16 : vector<1x1920x256xbf16> to vector<1920x256xbf16>
    %cst_20 = arith.constant dense<0.000000e+00> : vector<32x256xf32>
    %18 = tpu.matmul %15, %17, %cst_20 {dimension_numbers = #tpu.dot_dimension_numbers<[1], [0], [0], [1], [0, 0, 1, 1], [], []>} : vector<32x1920xbf16>, vector<1920x256xbf16>, vector<32x256xf32> -> vector<32x256xf32>
    %19 = arith.addf %14, %18 : vector<32x256xf32>
    %c16 = arith.constant 16 : index
    %c0_21 = arith.constant 0 : index
    %20 = vector.load %arg9[%c16, %c0_21] : memref<48x1920xbf16, #tpu.memory_space<vmem>>, vector<32x1920xbf16>
    %c2_22 = arith.constant 2 : index
    %c0_23 = arith.constant 0 : index
    %c0_24 = arith.constant 0 : index
    %21 = vector.load %arg2[%c2_22, %c0_23, %c0_24] : memref<3x1920x256xbf16, #tpu.memory_space<vmem>>, vector<1x1920x256xbf16>
    %22 = vector.shape_cast %21 : vector<1x1920x256xbf16> to vector<1920x256xbf16>
    %cst_25 = arith.constant dense<0.000000e+00> : vector<32x256xf32>
    %23 = tpu.matmul %20, %22, %cst_25 {dimension_numbers = #tpu.dot_dimension_numbers<[1], [0], [0], [1], [0, 0, 1, 1], [], []>} : vector<32x1920xbf16>, vector<1920x256xbf16>, vector<32x256xf32> -> vector<32x256xf32>
    %24 = arith.addf %19, %23 : vector<32x256xf32>
    %c0_26 = arith.constant 0 : index
    %c0_27 = arith.constant 0 : index
    %25 = vector.load %arg3[%c0_26, %c0_27] : memref<1x256xf32, #tpu.memory_space<vmem>>, vector<1x256xf32>
    %26 = vector.broadcast %25 : vector<1x256xf32> to vector<32x256xf32>
    %27 = arith.mulf %24, %26 : vector<32x256xf32>
    %c0_28 = arith.constant 0 : index
    %c0_29 = arith.constant 0 : index
    %28 = vector.load %arg4[%c0_28, %c0_29] : memref<1x256xf32, #tpu.memory_space<vmem>>, vector<1x256xf32>
    %29 = vector.broadcast %28 : vector<1x256xf32> to vector<32x256xf32>
    %30 = arith.addf %27, %29 : vector<32x256xf32>
    %cst_30 = arith.constant 0.000000e+00 : f32
    %31 = vector.broadcast %cst_30 : f32 to vector<32x256xf32>
    %32 = arith.maximumf %30, %31 : vector<32x256xf32>
    %33 = tpu.iota {dimensions = array<i32: 1>} : vector<4x8x256xi32>
    %34 = vector.shape_cast %33 : vector<4x8x256xi32> to vector<32x256xi32>
    %c4_i32 = arith.constant 4 : i32
    %35 = vector.broadcast %c4_i32 : i32 to vector<32x256xi32>
    %36 = arith.cmpi slt, %34, %35 : vector<32x256xi32>
    %cst_31 = arith.constant 0.000000e+00 : f32
    %37 = vector.broadcast %cst_31 : f32 to vector<32x256xf32>
    %38 = arith.select %36, %32, %37 : vector<32x256xi1>, vector<32x256xf32>
    %39 = arith.truncf %38 : vector<32x256xf32> to vector<32x256xbf16>
    %cst_32 = arith.constant 0.000000e+00 : bf16
    %40 = vector.broadcast %cst_32 : bf16 to vector<16x768xbf16>
    %c0_33 = arith.constant 0 : index
    %c0_34 = arith.constant 0 : index
    %41 = vector.load %arg10[%c0_33, %c0_34] : memref<56x768xbf16, #tpu.memory_space<vmem>>, vector<16x768xbf16>
    tpu.vector_store %arg10[%c0_33, %c0_34], %40 {strides = array<i32>} : memref<56x768xbf16, #tpu.memory_space<vmem>>, vector<16x768xbf16>,
    %cst_35 = arith.constant 0.000000e+00 : bf16
    %42 = vector.broadcast %cst_35 : bf16 to vector<24x768xbf16>
    %c32 = arith.constant 32 : index
    %c0_36 = arith.constant 0 : index
    %43 = vector.load %arg10[%c32, %c0_36] : memref<56x768xbf16, #tpu.memory_space<vmem>>, vector<24x768xbf16>
    tpu.vector_store %arg10[%c32, %c0_36], %42 {strides = array<i32>} : memref<56x768xbf16, #tpu.memory_space<vmem>>, vector<24x768xbf16>,
    %c9 = arith.constant 9 : index
    %c0_37 = arith.constant 0 : index
    %44 = vector.load %arg10[%c9, %c0_37] : memref<56x768xbf16, #tpu.memory_space<vmem>>, vector<32x256xbf16>
    tpu.vector_store %arg10[%c9, %c0_37], %39 {strides = array<i32>} : memref<56x768xbf16, #tpu.memory_space<vmem>>, vector<32x256xbf16>,
    %c8_38 = arith.constant 8 : index
    %c256 = arith.constant 256 : index
    %45 = vector.load %arg10[%c8_38, %c256] : memref<56x768xbf16, #tpu.memory_space<vmem>>, vector<32x256xbf16>
    tpu.vector_store %arg10[%c8_38, %c256], %39 {strides = array<i32>} : memref<56x768xbf16, #tpu.memory_space<vmem>>, vector<32x256xbf16>,
    %c7 = arith.constant 7 : index
    %c512 = arith.constant 512 : index
    %46 = vector.load %arg10[%c7, %c512] : memref<56x768xbf16, #tpu.memory_space<vmem>>, vector<32x256xbf16>
    tpu.vector_store %arg10[%c7, %c512], %39 {strides = array<i32>} : memref<56x768xbf16, #tpu.memory_space<vmem>>, vector<32x256xbf16>,
    %cst_39 = arith.constant 0.000000e+00 : f32
    %47 = vector.broadcast %cst_39 : f32 to vector<32x256xf32>
    %c0_40 = arith.constant 0 : index
    %c0_41 = arith.constant 0 : index
    %48 = vector.load %arg10[%c0_40, %c0_41] : memref<56x768xbf16, #tpu.memory_space<vmem>>, vector<32x768xbf16>
    %c0_42 = arith.constant 0 : index
    %c0_43 = arith.constant 0 : index
    %c0_44 = arith.constant 0 : index
    %49 = vector.load %arg5[%c0_42, %c0_43, %c0_44] : memref<3x768x256xbf16, #tpu.memory_space<vmem>>, vector<1x768x256xbf16>
    %50 = vector.shape_cast %49 : vector<1x768x256xbf16> to vector<768x256xbf16>
    %cst_45 = arith.constant dense<0.000000e+00> : vector<32x256xf32>
    %51 = tpu.matmul %48, %50, %cst_45 {dimension_numbers = #tpu.dot_dimension_numbers<[1], [0], [0], [1], [0, 0, 1, 1], [], []>} : vector<32x768xbf16>, vector<768x256xbf16>, vector<32x256xf32> -> vector<32x256xf32>
    %52 = arith.addf %47, %51 : vector<32x256xf32>
    %c8_46 = arith.constant 8 : index
    %c0_47 = arith.constant 0 : index
    %53 = vector.load %arg10[%c8_46, %c0_47] : memref<56x768xbf16, #tpu.memory_space<vmem>>, vector<32x768xbf16>
    %c1_48 = arith.constant 1 : index
    %c0_49 = arith.constant 0 : index
    %c0_50 = arith.constant 0 : index
    %54 = vector.load %arg5[%c1_48, %c0_49, %c0_50] : memref<3x768x256xbf16, #tpu.memory_space<vmem>>, vector<1x768x256xbf16>
    %55 = vector.shape_cast %54 : vector<1x768x256xbf16> to vector<768x256xbf16>
    %cst_51 = arith.constant dense<0.000000e+00> : vector<32x256xf32>
    %56 = tpu.matmul %53, %55, %cst_51 {dimension_numbers = #tpu.dot_dimension_numbers<[1], [0], [0], [1], [0, 0, 1, 1], [], []>} : vector<32x768xbf16>, vector<768x256xbf16>, vector<32x256xf32> -> vector<32x256xf32>
    %57 = arith.addf %52, %56 : vector<32x256xf32>
    %c16_52 = arith.constant 16 : index
    %c0_53 = arith.constant 0 : index
    %58 = vector.load %arg10[%c16_52, %c0_53] : memref<56x768xbf16, #tpu.memory_space<vmem>>, vector<32x768xbf16>
    %c2_54 = arith.constant 2 : index
    %c0_55 = arith.constant 0 : index
    %c0_56 = arith.constant 0 : index
    %59 = vector.load %arg5[%c2_54, %c0_55, %c0_56] : memref<3x768x256xbf16, #tpu.memory_space<vmem>>, vector<1x768x256xbf16>
    %60 = vector.shape_cast %59 : vector<1x768x256xbf16> to vector<768x256xbf16>
    %cst_57 = arith.constant dense<0.000000e+00> : vector<32x256xf32>
    %61 = tpu.matmul %58, %60, %cst_57 {dimension_numbers = #tpu.dot_dimension_numbers<[1], [0], [0], [1], [0, 0, 1, 1], [], []>} : vector<32x768xbf16>, vector<768x256xbf16>, vector<32x256xf32> -> vector<32x256xf32>
    %62 = arith.addf %57, %61 : vector<32x256xf32>
    %c0_58 = arith.constant 0 : index
    %c0_59 = arith.constant 0 : index
    %63 = vector.load %arg6[%c0_58, %c0_59] : memref<1x256xf32, #tpu.memory_space<vmem>>, vector<1x256xf32>
    %64 = vector.broadcast %63 : vector<1x256xf32> to vector<32x256xf32>
    %65 = arith.mulf %62, %64 : vector<32x256xf32>
    %c0_60 = arith.constant 0 : index
    %c0_61 = arith.constant 0 : index
    %66 = vector.load %arg7[%c0_60, %c0_61] : memref<1x256xf32, #tpu.memory_space<vmem>>, vector<1x256xf32>
    %67 = vector.broadcast %66 : vector<1x256xf32> to vector<32x256xf32>
    %68 = arith.addf %65, %67 : vector<32x256xf32>
    %cst_62 = arith.constant 0.000000e+00 : f32
    %69 = vector.broadcast %cst_62 : f32 to vector<32x256xf32>
    %70 = arith.maximumf %68, %69 : vector<32x256xf32>
    %71 = vector.shape_cast %70 : vector<32x256xf32> to vector<1x32x256xf32>
    %72 = arith.truncf %71 : vector<1x32x256xf32> to vector<1x32x256xbf16>
    %c0_63 = arith.constant 0 : index
    %c0_64 = arith.constant 0 : index
    %c0_65 = arith.constant 0 : index
    %73 = vector.load %arg8[%c0_63, %c0_64, %c0_65] : memref<1x32x256xbf16, #tpu.memory_space<vmem>>, vector<1x32x256xbf16>
    tpu.vector_store %arg8[%c0_63, %c0_64, %c0_65], %72 {strides = array<i32>} : memref<1x32x256xbf16, #tpu.memory_space<vmem>>, vector<1x32x256xbf16>,
    return
  }
  func.func @transform_0(%arg0: i32) -> (i32, i32, i32) {
    %c0_i32 = arith.constant 0 : i32
    %c0_i32_0 = arith.constant 0 : i32
    %c0_i32_1 = arith.constant 0 : i32
    return %arg0, %c0_i32, %c0_i32_0 : i32, i32, i32
  }
  func.func @transform_1(%arg0: i32) -> (i32, i32, i32) {
    %c0_i32 = arith.constant 0 : i32
    %c0_i32_0 = arith.constant 0 : i32
    %c0_i32_1 = arith.constant 0 : i32
    %c0_i32_2 = arith.constant 0 : i32
    return %c0_i32, %c0_i32_0, %c0_i32_1 : i32, i32, i32
  }
  func.func @transform_2(%arg0: i32) -> (i32, i32) {
    %c0_i32 = arith.constant 0 : i32
    %c0_i32_0 = arith.constant 0 : i32
    %c0_i32_1 = arith.constant 0 : i32
    return %c0_i32, %c0_i32_0 : i32, i32
  }
  func.func @transform_3(%arg0: i32) -> (i32, i32) {
    %c0_i32 = arith.constant 0 : i32
    %c0_i32_0 = arith.constant 0 : i32
    %c0_i32_1 = arith.constant 0 : i32
    return %c0_i32, %c0_i32_0 : i32, i32
  }
  func.func @transform_4(%arg0: i32) -> (i32, i32, i32) {
    %c0_i32 = arith.constant 0 : i32
    %c0_i32_0 = arith.constant 0 : i32
    %c0_i32_1 = arith.constant 0 : i32
    %c0_i32_2 = arith.constant 0 : i32
    return %c0_i32, %c0_i32_0, %c0_i32_1 : i32, i32, i32
  }
  func.func @transform_5(%arg0: i32) -> (i32, i32) {
    %c0_i32 = arith.constant 0 : i32
    %c0_i32_0 = arith.constant 0 : i32
    %c0_i32_1 = arith.constant 0 : i32
    return %c0_i32, %c0_i32_0 : i32, i32
  }
  func.func @transform_6(%arg0: i32) -> (i32, i32) {
    %c0_i32 = arith.constant 0 : i32
    %c0_i32_0 = arith.constant 0 : i32
    %c0_i32_1 = arith.constant 0 : i32
    return %c0_i32, %c0_i32_0 : i32, i32
  }
  func.func @transform_7(%arg0: i32) -> (i32, i32, i32) {
    %c0_i32 = arith.constant 0 : i32
    %c0_i32_0 = arith.constant 0 : i32
    %c0_i32_1 = arith.constant 0 : i32
    return %arg0, %c0_i32, %c0_i32_0 : i32, i32, i32
  }
}

</mosaic_0001>

<bundles_post_ra>
// kernel: tpu_custom_call.1
= control target key start
LH: loop header
LB: loop body
LE: loop exit
PB: predicated region body
PF: predicated region fallthrough
CT: control target
= control target key end

     0   :  { %s18464_s0 = inlined_call_operand.hbm [shape: bf16[2,56,640], index: 0, kind: input, shape index: {}]   ;;  %s18465_s1 = inlined_call_operand.hbm [shape: bf16[3,1920,256], index: 1, kind: input, shape index: {}]   ;;  %s18466_s2 = inlined_call_operand.hbm [shape: f32[1,256], index: 2, kind: input, shape index: {}]   ;;  %s18467_s3 = inlined_call_operand.hbm [shape: f32[1,256], index: 3, kind: input, shape index: {}]   ;;  %s18468_s4 = inlined_call_operand.hbm [shape: bf16[3,768,256], index: 4, kind: input, shape index: {}]   ;;  %s18469_s5 = inlined_call_operand.hbm [shape: f32[1,256], index: 5, kind: input, shape index: {}]   ;;  %s18470_s6 = inlined_call_operand.hbm [shape: f32[1,256], index: 6, kind: input, shape index: {}]   ;;  %s18471_s7 = inlined_call_operand.hbm [shape: bf16[2,32,256], index: 7, kind: output, shape index: {}]  }
   0x1   :  { %18553 = sst [smem:[#allocation54_spill]] %s18465_s1 }
   0x2   :  { %18554 = sst [smem:[#allocation55_spill]] %s18466_s2 }
   0x3   :  { %18555 = sst [smem:[#allocation56_spill]] %s18467_s3 }
   0x4   :  { %12 = vsyncpa [#allocation5], 0 }
   0x5   :  { %14 = vsyncpa [#allocation5 + $0x1], 0 }
   0x6   :  { %15 = vsyncpa [#allocation8], 0 }
   0x7   :  { %16 = vsyncpa [#allocation11], 0 }
   0x8   :  { %17 = vsyncpa [#allocation14], 0 }
   0x9   :  { %18 = vsyncpa [#allocation6], 0 }
   0xa   :  { %20 = vsyncpa [#allocation6 + $0x1], 0  ;;  %s16044_s24 = smov 0   ;;  %s16046_s25 = smov 0  }
   0xb   :  { %s16048_s26 = smov 0   ;;  %s16050_s27 = smov 0  }
   0xc LB: > { %s18556_s1 = sld [smem:[#allocation54_spill]]  ;;  %s16068_s8 = sadd.s32 4294967295, %s15989_s27   ;;  %s15989_s27 = sphi %s16050_s27, %s18733_s27   ;;  %s15985_s26 = sphi %s16048_s26, %s18732_s26   ;;  %s15981_s25 = sphi %s16046_s25, %s18731_s25   ;;  %s15977_s24 = sphi %s16044_s24, %s18730_s24  }
   0xd   : > { %p10288_p0 = scmp.ge.s32.totalorder %s15989_s27, 1  ;;  %p47_p1 = scmp.eq.s32.totalorder %s16068_s8, 0 }
   0xe   : > { %p209_p2 = scmp.lt.s32.totalorder %s15989_s27, 3  ;;  %s15991_s10 = smov [#allocation7]  }
   0xf   : > { %s222_s11 = sshll.u32 %s15991_s10, 4  ;;  %s18558_s3 = sld [smem:[#allocation56_spill]]  ;;  %s223_s11 = int_to_ptr.vmem [resolvable:$true] %s222_s11 }
  0x10   : > { %p16073_p3 = pnand %p10288_p0, %p209_p2  ;;  %s273_s18 = sshll.u32 %s18469_s5, 4  ;;  %s274_s18 = int_to_ptr.hbm [resolvable:$true] %s273_s18 }
  0x11   : > { %s15992_s19 = smov [#allocation10]   ;;  %s15993_s21 = smov 128  }
  0x12   : > { %s220_s30 = sshll.u32 %s18556_s1, 4  ;;  %p15611_p4 = pneg %p16073_p3  ;;  %s221_s30 = int_to_ptr.hbm [resolvable:$true] %s220_s30 }
  0x13   : > { %s249_s20 = sshll.u32 %s15992_s19, 4  ;;  %s15994_s22 = smov 8   ;;  %s250_s20 = int_to_ptr.vmem [resolvable:$true] %s249_s20 }
  0x14   : > { %p16085_p6 = pnand %p15611_p4, %p47_p1  ;;  %s18560_s2 = sld [smem:[#allocation55_spill]] }
  0x15   : > { %s247_s14 = sshll.u32 %s18558_s3, 4  ;;  %s15995_s10 = smov [#allocation13]   ;;  %s248_s14 = int_to_ptr.hbm [resolvable:$true] %s247_s14 }
  0x16   : > { %15614 = dma.hbm_to_vmem [thread:$0]  (!%p16085_p6), %s221_s30, 92160, %s223_s11, [#allocation8], %s15993_s21, %s15993_s21, %s15994_s22  }
  0x17   : > { %15620 = dma.hbm_to_vmem [thread:$0]  (!%p16085_p6), %s248_s14, 32, %s250_s20, [#allocation11]  }
  0x18   : > { %s275_s12 = sshll.u32 %s15995_s10, 4  ;;  %s15996_s13 = smov [#allocation9]   ;;  %s276_s12 = int_to_ptr.vmem [resolvable:$true] %s275_s12 }
  0x19   : > { %15626 = dma.hbm_to_vmem [thread:$0]  (!%p16085_p6), %s274_s18, 32, %s276_s12, [#allocation14]  }
  0x1a   : > { %s235_s29 = sshll.u32 %s18560_s2, 4  ;;  %s237_s16 = sshll.u32 %s15996_s13, 4  ;;  %s236_s29 = int_to_ptr.hbm [resolvable:$true] %s235_s29  ;;  %s238_s16 = int_to_ptr.vmem [resolvable:$true] %s237_s16 }
  0x1b   : > { %s258_s14 = sshll.u32 %s18468_s4, 4  ;;  %s285_s18 = sshll.u32 %s18470_s6, 4  ;;  %s259_s14 = int_to_ptr.hbm [resolvable:$true] %s258_s14  ;;  %s286_s18 = int_to_ptr.hbm [resolvable:$true] %s285_s18 }
  0x1c   : > { %15617 = dma.hbm_to_vmem [thread:$0]  (!%p16085_p6), %s236_s29, 32, %s238_s16, [#allocation8]  }
  0x1d   : > { %s15997_s20 = smov [#allocation12]   ;;  %s15998_s28 = smov [#allocation15]  }
  0x1e   : > { %s260_s23 = sshll.u32 %s15997_s20, 4  ;;  %s287_s29 = sshll.u32 %s15998_s28, 4  ;;  %s261_s23 = int_to_ptr.vmem [resolvable:$true] %s260_s23  ;;  %s288_s29 = int_to_ptr.vmem [resolvable:$true] %s287_s29 }
  0x1f   : > { %15623 = dma.hbm_to_vmem [thread:$0]  (!%p16085_p6), %s259_s14, 36864, %s261_s23, [#allocation11], %s15993_s21, %s15993_s21, %s15994_s22  }
  0x20   : > { %15629 = dma.hbm_to_vmem [thread:$0]  (!%p16085_p6), %s286_s18, 32, %s288_s29, [#allocation14]  }
  0x21   : > { %s10287_s10 = sadd.s32 4294967294, %s15989_s27   ;;  %s16115_s12 = sadd.s32 1, %s15989_s27  }
  0x22   : > { %s30_s13 = ssub.s32 %s15989_s27, %s16115_s12  ;;  %s33_s16 = sadd.s32 1, %s15985_s26 }
  0x23   : > { %p31_p7 = scmp.eq.s32.totalorder %s30_s13, 0  ;;  %p40_p8 = scmp.ne.s32.totalorder %s15985_s26, %s15981_s25 }
  0x24   : > { %p41_p9 = scmp.eq.s32.totalorder %s15989_s27, 0  ;;  %p46_p10 = scmp.ne.s32.totalorder %s15981_s25, %s15977_s24 }
  0x25   : > { %s16126_s21 = scalar_select %p31_p7, %s15985_s26, %s33_s16  }
  0x26   : > { %p42_p11 = por %p41_p9, %p40_p8  ;;  %p16130_p12 = por %p47_p1, %p46_p10 }
  0x27   : > { %p196_p13 = scmp.eq.s32.totalorder %s16068_s8, 1  ;;  %p202_p0 = scmp.eq.s32.totalorder %s10287_s10, 1 }
  0x28   : > { %p15644_p2 = scmp.lt.s32.totalorder %s15989_s27, 2  ;;  %s298_s15 = sand.u32 1, %s15985_s26  }
  0x29   : > { %p16137_p4 = por %p196_p13, %p40_p8  ;;  %p16141_p6 = por %p202_p0, %p46_p10 }
  0x2a   : > { %s15580_s14 = smul.u32 140, %s298_s15  ;;  %p16146_p7 = pnand %p15644_p2, %p42_p11 }
  0x2b   : > { %s15581_s17 = smul.u32 140, %s15989_s27  ;;  %s299_s13 = scalar_lea.sflag [#allocation5], %s298_s15 }
  0x2c   : > { %s302_s28 = scalar_lea.vmem [#allocation4], %s15580_s14  ;;  %p15885_p9 = pneg %p16146_p7 }
  0x2d   : > { %s307_s23 = scalar_lea.hbm %s18464_s0, %s15581_s17  ;;  %s310_s29 = sshll.u32 %s302_s28, 4  ;;  %s311_s29 = int_to_ptr.vmem [resolvable:$true] %s310_s29 }
  0x2e   : > { %s308_s10 = sshll.u32 %s307_s23, 4  ;;  %s15888_s18 = scalar_lea.hbm %s18464_s0, 280  ;;  %s309_s10 = int_to_ptr.hbm [resolvable:$true] %s308_s10 }
  0x2f   : > { %s15881_s16 = sshra.s32 %s309_s10, 4  ;;  %s15882_s16 = int_to_ptr.hbm [resolvable:$true] %s15881_s16 }
  0x30   : > { %s15883_s1 = scalar_lea.hbm %s15882_s16, 140  ;;  %p15889_p13 = scmp.lt.s32.totalorder %s15882_s16, %s18464_s0 }
  0x31   : > { %p15884_p8 = scmp.ne.s32.totalorder %s15882_s16, %s15883_s1  ;;  %p15890_p0 = scmp.lt.s32.totalorder %s15888_s18, %s15883_s1 }
  0x33   : > { %p15886_p10 = pnand %p15885_p9, %p15884_p8  ;;  %p15891_p2 = por %p15890_p0, %p15889_p13 }
  0x35   : > { %p15887_p11 = pneg %p15886_p10 }
  0x37   : > { %p15892_p5 = pnand %p15891_p2, %p15887_p11 }
  0x39   : > { %15895 = shalt.err (!%p15892_p5)
}
  0x3a   : > { %s15999_s15 = smov 320   ;;  %s16000_s14 = smov 20  }
  0x3b   : > { %15633 = dma.hbm_to_vmem [thread:$0]  (!%p16146_p7), %s309_s10, 2240, %s311_s29, %s299_s13, %s15999_s15, %s15999_s15, %s16000_s14  }
  0x3c   : > { %322 = sbr.rel (%p16073_p3) target bundleno = 1440 (0x5a0), region = 48 }
  0x41   : > { %s16166_s2 = sand.u32 1, %s15981_s25  }
  0x42   : > { %s15582_s3 = smul.u32 140, %s16166_s2  ;;  %s325_s23 = scalar_lea.sflag [#allocation5], %s16166_s2 }
  0x44   : > { %s16170_s1 = scalar_lea.vmem [#allocation4], %s15582_s3 }
  0x45   : > { %15956 = dma.done.wait (%p16130_p12), %s325_s23, 2240  }
  0x46   : > { %15958 = vsyncadd (%p16130_p12), %s325_s23, 4294965056 }
  0x47   : > { %15960 = dma.done.wait (%p47_p1), [#allocation8], 92192  }
  0x48   : > { %15962 = vsyncadd (%p47_p1), [#allocation8], 4294875104 }
  0x49   : > { %15964 = dma.done.wait (%p47_p1), [#allocation11], 36896  }
  0x4a   : > { %15966 = vsyncadd (%p47_p1), [#allocation11], 4294930400 }
  0x4b   : > { %15968 = dma.done.wait (%p47_p1), [#allocation14], 64  }
  0x4c   : > { %15970 = vsyncadd (%p47_p1), [#allocation14], 4294967232  ;;  %v10366_v0 = vld [vmem:[#allocation7 + $0x7f0] sm:$0xf]  ;;  %v14768_v1 = vld [vmem:[#allocation7 + $0x7f4] sm:$0xf0] }
  0x4d   : > { %v10430_v2 = vld [vmem:[#allocation7 + $0x870] sm:$0xf]  ;;  %v10367_v3 = vor.u32 %v14768_v1, %v10366_v0  ;;  %v14784_v4 = vld [vmem:[#allocation7 + $0x874] sm:$0xf0]  ;;  %v10358_v11 = vld [vmem:[#allocation7 + $0x7e0] sm:$0xf] }
  0x4e   : > { %v10494_v5 = vld [vmem:[#allocation7 + $0x8f0] sm:$0xf]  ;;  %v14800_v6 = vld [vmem:[#allocation7 + $0x8f4] sm:$0xf0]  ;;  %v10431_v7 = vor.u32 %v14784_v4, %v10430_v2  ;;  %v14766_v13 = vld [vmem:[#allocation7 + $0x7e4] sm:$0xf0] }
  0x4f   : > { %v10495_v8 = vor.u32 %v14800_v6, %v10494_v5  ;;  %v10558_v9 = vld [vmem:[#allocation7 + $0x970] sm:$0xf]  ;;  %v14816_v10 = vld [vmem:[#allocation7 + $0x974] sm:$0xf0]  ;;  %2690 = vmatpush.bf16.msra.mxu0 %v10367_v3  ;;  %v10422_v14 = vld [vmem:[#allocation7 + $0x860] sm:$0xf]  ;;  %v10359_v16 = vor.u32 %v14766_v13, %v10358_v11 }
  0x50   : > { %v10559_v12 = vor.u32 %v14816_v10, %v10558_v9  ;;  %v14782_v15 = vld [vmem:[#allocation7 + $0x864] sm:$0xf0]  ;;  %2709 = vmatpush.bf16.msra.mxu1 %v10431_v7  ;;  %v10486_v18 = vld [vmem:[#allocation7 + $0x8e0] sm:$0xf]  ;;  %v10350_v23 = vld [vmem:[#allocation7 + $0x7d0] sm:$0xf] }
  0x51   : > { %2728 = vmatpush.bf16.msra.mxu2 %v10495_v8  ;;  %v10423_v17 = vor.u32 %v14782_v15, %v10422_v14  ;;  %v14798_v19 = vld [vmem:[#allocation7 + $0x8e4] sm:$0xf0]  ;;  %v10550_v20 = vld [vmem:[#allocation7 + $0x960] sm:$0xf]  ;;  %v14764_v24 = vld [vmem:[#allocation7 + $0x7d4] sm:$0xf0] }
  0x52   : > { %2747 = vmatpush.bf16.msra.mxu3 %v10559_v12  ;;  %v10487_v21 = vor.u32 %v14798_v19, %v10486_v18  ;;  %v14814_v22 = vld [vmem:[#allocation7 + $0x964] sm:$0xf0]  ;;  %v10414_v26 = vld [vmem:[#allocation7 + $0x850] sm:$0xf]  ;;  %v14780_v27 = vld [vmem:[#allocation7 + $0x854] sm:$0xf0]  ;;  %v10351_v29 = vor.u32 %v14764_v24, %v10350_v23 }
  0x53   : > { %v10551_v25 = vor.u32 %v14814_v22, %v10550_v20  ;;  %v10478_v28 = vld [vmem:[#allocation7 + $0x8d0] sm:$0xf]  ;;  %2691 = vmatpush.bf16.msra.mxu0 %v10359_v16  ;;  %v14796_v30 = vld [vmem:[#allocation7 + $0x8d4] sm:$0xf0]  ;;  %v10415_v33 = vor.u32 %v14780_v27, %v10414_v26  ;;  %v10342_v35 = vld [vmem:[#allocation7 + $0x7c0] sm:$0xf] }
  0x54   : > { %v10542_v31 = vld [vmem:[#allocation7 + $0x950] sm:$0xf]  ;;  %v14812_v32 = vld [vmem:[#allocation7 + $0x954] sm:$0xf0]  ;;  %2710 = vmatpush.bf16.msra.mxu1 %v10423_v17  ;;  %v10479_v34 = vor.u32 %v14796_v30, %v10478_v28  ;;  %v14762_v36 = vld [vmem:[#allocation7 + $0x7c4] sm:$0xf0] }
  0x55   : > { %2729 = vmatpush.bf16.msra.mxu2 %v10487_v21  ;;  %v10406_v37 = vld [vmem:[#allocation7 + $0x840] sm:$0xf]  ;;  %v10543_v38 = vor.u32 %v14812_v32, %v10542_v31  ;;  %v14778_v39 = vld [vmem:[#allocation7 + $0x844] sm:$0xf0]  ;;  %v10343_v44 = vor.u32 %v14762_v36, %v10342_v35  ;;  %v10334_v47 = vld [vmem:[#allocation7 + $0x7b0] sm:$0xf] }
  0x56   : > { %2748 = vmatpush.bf16.msra.mxu3 %v10551_v25  ;;  %v10470_v40 = vld [vmem:[#allocation7 + $0x8c0] sm:$0xf]  ;;  %v14794_v41 = vld [vmem:[#allocation7 + $0x8c4] sm:$0xf0]  ;;  %v10407_v45 = vor.u32 %v14778_v39, %v10406_v37  ;;  %v14760_v48 = vld [vmem:[#allocation7 + $0x7b4] sm:$0xf0] }
  0x57   : > { %v10534_v42 = vld [vmem:[#allocation7 + $0x940] sm:$0xf]  ;;  %v14810_v43 = vld [vmem:[#allocation7 + $0x944] sm:$0xf0]  ;;  %2692 = vmatpush.bf16.msra.mxu0 %v10351_v29  ;;  %v10471_v46 = vor.u32 %v14794_v41, %v10470_v40  ;;  %v10398_v49 = vld [vmem:[#allocation7 + $0x830] sm:$0xf]  ;;  %v10335_v56 = vor.u32 %v14760_v48, %v10334_v47 }
  0x58   : > { %2711 = vmatpush.bf16.msra.mxu1 %v10415_v33  ;;  %v10535_v50 = vor.u32 %v14810_v43, %v10534_v42  ;;  %v14776_v51 = vld [vmem:[#allocation7 + $0x834] sm:$0xf0]  ;;  %v10462_v52 = vld [vmem:[#allocation7 + $0x8b0] sm:$0xf]  ;;  %v10326_v57 = vld [vmem:[#allocation7 + $0x7a0] sm:$0xf] }
  0x59   : > { %2730 = vmatpush.bf16.msra.mxu2 %v10479_v34  ;;  %v14792_v53 = vld [vmem:[#allocation7 + $0x8b4] sm:$0xf0]  ;;  %v10526_v54 = vld [vmem:[#allocation7 + $0x930] sm:$0xf]  ;;  %v10399_v58 = vor.u32 %v14776_v51, %v10398_v49  ;;  %v14758_v60 = vld [vmem:[#allocation7 + $0x7a4] sm:$0xf0] }
  0x5a   : > { %2749 = vmatpush.bf16.msra.mxu3 %v10543_v38  ;;  %v14808_v55 = vld [vmem:[#allocation7 + $0x934] sm:$0xf0]  ;;  %v10463_v59 = vor.u32 %v14792_v53, %v10462_v52  ;;  %v10390_v61 = vld [vmem:[#allocation7 + $0x820] sm:$0xf]  ;;  %v14774_v62 = vld [vmem:[#allocation7 + $0x824] sm:$0xf0]  ;;  %v10327_v6 = vor.u32 %v14758_v60, %v10326_v57 }
  0x5b   : > { %2693 = vmatpush.bf16.msra.mxu0 %v10343_v44  ;;  %v10527_v63 = vor.u32 %v14808_v55, %v10526_v54  ;;  %v10454_v0 = vld [vmem:[#allocation7 + $0x8a0] sm:$0xf]  ;;  %v14790_v1 = vld [vmem:[#allocation7 + $0x8a4] sm:$0xf0]  ;;  %v10318_v4 = vld [vmem:[#allocation7 + $0x790] sm:$0xf]  ;;  %v10391_v10 = vor.u32 %v14774_v62, %v10390_v61 }
  0x5c   : > { %2712 = vmatpush.bf16.msra.mxu1 %v10407_v45  ;;  %v10518_v2 = vld [vmem:[#allocation7 + $0x920] sm:$0xf]  ;;  %v14806_v3 = vld [vmem:[#allocation7 + $0x924] sm:$0xf0]  ;;  %v14756_v5 = vld [vmem:[#allocation7 + $0x794] sm:$0xf0]  ;;  %v10455_v11 = vor.u32 %v14790_v1, %v10454_v0 }
  0x5d   : > { %2731 = vmatpush.bf16.msra.mxu2 %v10471_v46  ;;  %v10382_v7 = vld [vmem:[#allocation7 + $0x810] sm:$0xf]  ;;  %v14772_v8 = vld [vmem:[#allocation7 + $0x814] sm:$0xf0]  ;;  %v10519_v15 = vor.u32 %v14806_v3, %v10518_v2  ;;  %v10310_v16 = vld [vmem:[#allocation7 + $0x780] sm:$0xf]  ;;  %v10319_v24 = vor.u32 %v14756_v5, %v10318_v4 }
  0x5e   : > { %2750 = vmatpush.bf16.msra.mxu3 %v10535_v50  ;;  %v10446_v9 = vld [vmem:[#allocation7 + $0x890] sm:$0xf]  ;;  %v14788_v12 = vld [vmem:[#allocation7 + $0x894] sm:$0xf0]  ;;  %v16192_v18 = vld [vmem:[%s16170_s1 + $0x14] sm:$0xff]  ;;  %v10383_v25 = vor.u32 %v14772_v8, %v10382_v7  ;;  %vm721_vm3 = vcmask 1042432  }
  0x5f   : > { %2694 = vmatpush.bf16.msra.mxu0 %v10335_v56  ;;  %v10510_v13 = vld [vmem:[#allocation7 + $0x910] sm:$0xf]  ;;  %v14804_v14 = vld [vmem:[#allocation7 + $0x914] sm:$0xf0]  ;;  %v14754_v19 = vld [vmem:[#allocation7 + $0x784] sm:$0xf0]  ;;  %v1370_v20 = vunpack.c.l.b16 %v16192_v18  ;;  %v1371_v29 = vunpack.c.h.b16 %v16192_v18  ;;  %v10447_v31 = vor.u32 %v14788_v12, %v10446_v9 }
  0x60   : > { %2713 = vmatpush.bf16.msra.mxu1 %v10399_v58  ;;  %v16189_v17 = vld [vmem:[%s16170_s1] sm:$0xff]  ;;  %v16197_v22 = vld [vmem:[%s16170_s1 + $0x8] sm:$0xff]  ;;  %v16211_v35 = vld [vmem:[%s16170_s1 + $0x30] sm:$0xff]  ;;  %v10511_v38 = vor.u32 %v14804_v14, %v10510_v13  ;;  %v10311_v42 = vor.u32 %v14754_v19, %v10310_v16  ;;  %vm448_vm0 = vsmask.f32 3328  ;;  %vm722_vm4 = vcmask 1046532  }
  0x61   : > { %2732 = vmatpush.bf16.msra.mxu2 %v10463_v59  ;;  %v3268_v21 = vunpack.c.l.b16 %v16189_v17  ;;  %v16200_v23 = vld [vmem:[%s16170_s1 + $0x1c] sm:$0xff]  ;;  %v10374_v26 = vld [vmem:[#allocation7 + $0x800] sm:$0xf]  ;;  %v3269_v30 = vunpack.c.h.b16 %v16189_v17  ;;  %18565 = vst [vmem:[#allocation22_spill] sm:$0xff] %v16211_v35  ;;  %v3270_v37 = vunpack.c.l.b16 %v16197_v22  ;;  %v14832_v46 = vld [vmem:[#allocation7 + $0x9f4] sm:$0xf0]  ;;  %v18473_v48 = vunpack.c.l.b16 %v16211_v35 }
  0x62   : > { %2751 = vmatpush.bf16.msra.mxu3 %v10527_v63  ;;  %v14770_v27 = vld [vmem:[#allocation7 + $0x804] sm:$0xf0]  ;;  %v16203_v28 = vld [vmem:[%s16170_s1 + $0x28] sm:$0xff]  ;;  %v1372_v36 = vunpack.c.l.b16 %v16200_v23  ;;  %416 = vst [vmem:[#allocation2 + $0x80] sm:$0xff] %v16211_v35  ;;  %v14848_v50 = vld [vmem:[#allocation7 + $0xa74] sm:$0xf0]  ;;  %v1373_v51 = vunpack.c.h.b16 %v16200_v23  ;;  %v3271_v52 = vunpack.c.h.b16 %v16197_v22  ;;  %v18472_v55 = vunpack.c.h.b16 %v16211_v35 }
  0x63   : > { %2695 = vmatpush.bf16.msra.mxu0 %v10327_v6  ;;  %v10438_v32 = vld [vmem:[#allocation7 + $0x880] sm:$0xf]  ;;  %v14786_v33 = vld [vmem:[#allocation7 + $0x884] sm:$0xf0]  ;;  %415 = vst [vmem:[#allocation2 + $0x78] sm:$0xff] %v16203_v28  ;;  %v16208_v34 = vpack.c.b16 %v1370_v20, %v3268_v21  ;;  %v16215_v41 = vpack.c.b16 %v1371_v29, %v3269_v30  ;;  %v18477_v43 = vunpack.c.l.b16 %v16203_v28  ;;  %v18479_v47 = vunpack.c.h.b16 %v16203_v28  ;;  %vm16634_vm5 = vmor %vm721_vm3, %vm722_vm4  ;;  %s10304_s9 = sshll.u32 %s16166_s2, 5 }
  0x64   : > { %2714 = vmatpush.bf16.msra.mxu1 %v10391_v10  ;;  %v10502_v39 = vld [vmem:[#allocation7 + $0x900] sm:$0xf]  ;;  %v14802_v40 = vld [vmem:[#allocation7 + $0x904] sm:$0xf0]  ;;  %v16218_v44 = vpack.c.b16 %v1372_v36, %v3270_v37  ;;  %v10622_v45 = vld [vmem:[#allocation7 + $0x9f0] sm:$0xf]  ;;  %v10375_v53 = vor.u32 %v14770_v27, %v10374_v26  ;;  %v10439_v54 = vor.u32 %v14786_v33, %v10438_v32  ;;  %v16226_v60 = vpack.c.b16 %v1373_v51, %v3271_v52 }
  0x65   : > { %2733 = vmatpush.bf16.msra.mxu2 %v10455_v11  ;;  %v10686_v49 = vld [vmem:[#allocation7 + $0xa70] sm:$0xf]  ;;  %v10503_v56 = vor.u32 %v14802_v40, %v10502_v39  ;;  %v10623_v57 = vor.u32 %v14832_v46, %v10622_v45  ;;  %v14864_v59 = vld [vmem:[#allocation7 + $0xaf4] sm:$0xf0]  ;;  %v16230_v62 = vpack.c.b16 %v18477_v43, %v1370_v20  ;;  %v10614_v1 = vld [vmem:[#allocation7 + $0x9e0] sm:$0xf]  ;;  %v16234_v3 = vpack.c.b16 %v18479_v47, %v1371_v29 }
  0x66   : > { %2752 = vmatpush.bf16.msra.mxu3 %v10519_v15  ;;  %18566 = vst [vmem:[#allocation23_spill] sm:$0xff] %v16218_v44  ;;  %v10750_v58 = vld [vmem:[#allocation7 + $0xaf0] sm:$0xf]  ;;  %v10687_v63 = vor.u32 %v14848_v50, %v10686_v49  ;;  %v14880_v0 = vld [vmem:[#allocation7 + $0xb74] sm:$0xf0]  ;;  %v16238_v4 = vpack.c.b16 %v18473_v48, %v1372_v36  ;;  %v16242_v8 = vpack.c.b16 %v18472_v55, %v1373_v51  ;;  %v452_v36 = vshrl.u32 %v16189_v17, 16 }
  0x67   : > { %2696 = vmatpush.bf16.msra.mxu0 %v10319_v24  ;;  %18567 = vst [vmem:[#allocation24_spill] sm:$0xff] %v16226_v60  ;;  %v10814_v61 = vld [vmem:[#allocation7 + $0xb70] sm:$0xf]  ;;  %v14830_v2 = vld [vmem:[#allocation7 + $0x9e4] sm:$0xf0]  ;;  %v10751_v7 = vor.u32 %v14864_v59, %v10750_v58  ;;  %v455_v37 = vshll.u32 %v16189_v17, 16 }
  0x68   : > { %2715 = vmatpush.bf16.msra.mxu1 %v10383_v25  ;;  %v10678_v5 = vld [vmem:[#allocation7 + $0xa60] sm:$0xf]  ;;  %v14846_v6 = vld [vmem:[#allocation7 + $0xa64] sm:$0xf0]  ;;  %v10815_v12 = vor.u32 %v14880_v0, %v10814_v61  ;;  %v10615_v13 = vor.u32 %v14830_v2, %v10614_v1  ;;  %v10606_v16 = vld [vmem:[#allocation7 + $0x9d0] sm:$0xf] }
  0x69   : > { %2734 = vmatpush.bf16.msra.mxu2 %v10447_v31  ;;  %v10742_v9 = vld [vmem:[#allocation7 + $0xae0] sm:$0xf]  ;;  %v14862_v10 = vld [vmem:[#allocation7 + $0xae4] sm:$0xf0]  ;;  %v10679_v20 = vor.u32 %v14846_v6, %v10678_v5  ;;  %v14828_v21 = vld [vmem:[#allocation7 + $0x9d4] sm:$0xf0] }
  0x6a   : > { %2753 = vmatpush.bf16.msra.mxu3 %v10511_v38  ;;  %v16245_v11 = vld [vmem:[%s16170_s1 + $0x3c] sm:$0xff]  ;;  %v10806_v14 = vld [vmem:[#allocation7 + $0xb60] sm:$0xf]  ;;  %v16248_v19 = vld [vmem:[%s16170_s1 + $0x50] sm:$0xff]  ;;  %v10743_v30 = vor.u32 %v14862_v10, %v10742_v9  ;;  %v10607_v39 = vor.u32 %v14828_v21, %v10606_v16  ;;  %v16306_v9 = vrot.slane %v455_v37, 5  ;;  %vm7475_vm6 = vcmask 1043459  }
  0x6b   : > { %2697 = vmatpush.bf16.msra.mxu0 %v10311_v42  ;;  %v14878_v15 = vld [vmem:[#allocation7 + $0xb64] sm:$0xf0]  ;;  %v10670_v24 = vld [vmem:[#allocation7 + $0xa50] sm:$0xf]  ;;  %v14844_v25 = vld [vmem:[#allocation7 + $0xa54] sm:$0xf0]  ;;  %v18476_v50 = vunpack.c.l.b16 %v16245_v11  ;;  %v1415_v51 = vunpack.c.l.b16 %v16248_v19  ;;  %v18478_v17 = vunpack.c.h.b16 %v16245_v11 }
  0x6c   : > { %2716 = vmatpush.bf16.msra.mxu1 %v10375_v53  ;;  %v16253_v26 = vld [vmem:[#allocation7 + $0xad0] sm:$0xf]  ;;  %v16255_v27 = vld [vmem:[#allocation7 + $0xad4] sm:$0xf0]  ;;  %418 = vst [vmem:[#allocation2 + $0xb4] sm:$0xff] %v16245_v11  ;;  %v10807_v38 = vor.u32 %v14878_v15, %v10806_v14  ;;  %v10671_v45 = vor.u32 %v14844_v25, %v10670_v24  ;;  %vm7478_vm9 = vcmask 1047559  }
  0x6d   : > { %2735 = vmatpush.bf16.msra.mxu2 %v10439_v54  ;;  %v16259_v29 = vld [vmem:[%s16170_s1 + $0x44] sm:$0xff]  ;;  %421 = vst [vmem:[#allocation2 + $0xf0] sm:$0xff] %v16248_v19  ;;  %v16268_v33 = vld [vmem:[%s16170_s1 + $0x58] sm:$0xff]  ;;  %v14826_v42 = vld [vmem:[#allocation7 + $0x9c4] sm:$0xf0]  ;;  %v16340_v37 = vpack.c.b16 %v1415_v51, %v18476_v50  ;;  %vm7425_vm11 = vcmask 1043456  }
  0x6e   : > { %2754 = vmatpush.bf16.msra.mxu3 %v10503_v56  ;;  %2698 = vmatmul.bf16.vlgmr.msra.gmra.mxu0 %v16230_v62  ;;  %18568 = vst [vmem:[#allocation25_spill] sm:$0xff] %v16259_v29  ;;  %v16262_v31 = vld [vmem:[#allocation7 + $0xb50] sm:$0xf]  ;;  %v16264_v32 = vld [vmem:[#allocation7 + $0xb54] sm:$0xf0]  ;;  %v18475_v58 = vunpack.c.l.b16 %v16259_v29  ;;  %v1417_v59 = vunpack.c.l.b16 %v16268_v33  ;;  %v18474_v61 = vunpack.c.h.b16 %v16259_v29  ;;  %v1418_v6 = vunpack.c.h.b16 %v16268_v33  ;;  %s18412_s22 = scalar_lea.vmem [#allocation16], %s10304_s9 }
  0x6f   : > { %2766 = vmatpush.bf16.msrb.mxu0 %v10623_v57  ;;  %2717 = vmatmul.bf16.vlgmr.msra.gmra.mxu1 %v16234_v3  ;;  %v10598_v40 = vld [vmem:[#allocation7 + $0x9c0] sm:$0xf]  ;;  %419 = vst [vmem:[#allocation2 + $0xbc] sm:$0xff] %v16259_v29  ;;  %v16275_v49 = vld [vmem:[#allocation7 + $0xa44] sm:$0xf0]  ;;  %v1416_v57 = vunpack.c.h.b16 %v16248_v19  ;;  %v10799_v10 = vor.u32 %v16264_v32, %v16262_v31  ;;  %vm7428_vm13 = vcmask 1047556  }
  0x70   : > { %2785 = vmatpush.bf16.msrb.mxu1 %v10687_v63  ;;  %2736 = vmatmul.bf16.vlgmr.msra.gmra.mxu2 %v16238_v4  ;;  %v16273_v46 = vld [vmem:[#allocation7 + $0xa40] sm:$0xf]  ;;  %422 = vst [vmem:[#allocation2 + $0xf8] sm:$0xff] %v16268_v33  ;;  %v16283_v53 = vld [vmem:[#allocation7 + $0xac4] sm:$0xf0]  ;;  %v10735_v63 = vor.u32 %v16255_v27, %v16253_v26  ;;  %v16362_v51 = vpack.c.b16 %v1418_v6, %v18474_v61  ;;  %v529_v61 = vshll.u32 %v16245_v11, 16 }
  0x71   : > { %2804 = vmatpush.bf16.msrb.mxu2 %v10751_v7  ;;  %2755 = vmatmul.bf16.vlgmr.msra.gmra.mxu3 %v16242_v8  ;;  %v16281_v52 = vld [vmem:[#allocation7 + $0xac0] sm:$0xf]  ;;  %v16287_v56 = vld [vmem:[#allocation7 + $0xb44] sm:$0xf0]  ;;  %v16295_v0 = vld [vmem:[#allocation7 + $0x9b0] sm:$0xf]  ;;  %v10663_v26 = vor.u32 %v16275_v49, %v16273_v46  ;;  %v16358_v49 = vpack.c.b16 %v1417_v59, %v18475_v58 }
  0x72   : > { %2823 = vmatpush.bf16.msrb.mxu3 %v10815_v12  ;;  %v16285_v54 = vld [vmem:[#allocation7 + $0xb40] sm:$0xf]  ;;  %v16297_v1 = vld [vmem:[#allocation7 + $0x9b4] sm:$0xf0]  ;;  %v16299_v2 = vld [vmem:[#allocation7 + $0xa30] sm:$0xf]  ;;  %v10599_v12 = vor.u32 %v14826_v42, %v10598_v40 }
  0x73   : > { %2767 = vmatpush.bf16.msrb.mxu0 %v10615_v13  ;;  %v16301_v5 = vld [vmem:[#allocation7 + $0xa34] sm:$0xf0]  ;;  %v16304_v7 = vrot.slane %v452_v36, 4  ;;  %v16310_v13 = vld [vmem:[#allocation7 + $0xab0] sm:$0xf]  ;;  %v10791_v46 = vor.u32 %v16287_v56, %v16285_v54  ;;  %v16429_v50 = vrot.slane %v529_v61, 5 }
  0x74   : > { %2786 = vmatpush.bf16.msrb.mxu1 %v10679_v20  ;;  %v16312_v14 = vld [vmem:[#allocation7 + $0xab4] sm:$0xf0]  ;;  %v16314_v15 = vld [vmem:[#allocation7 + $0xb30] sm:$0xf]  ;;  %v16318_v20 = vld [vmem:[#allocation7 + $0x9a0] sm:$0xf] }
  0x75   : > { %2805 = vmatpush.bf16.msrb.mxu2 %v10743_v30  ;;  %v16316_v16 = vld [vmem:[#allocation7 + $0xb34] sm:$0xf0]  ;;  %v16320_v21 = vld [vmem:[#allocation7 + $0x9a4] sm:$0xf0]  ;;  %v16322_v24 = vld [vmem:[#allocation7 + $0xa20] sm:$0xf]  ;;  %v10719_v6 = vor.u32 %v16312_v14, %v16310_v13 }
  0x76   : > { %2824 = vmatpush.bf16.msrb.mxu3 %v10807_v38  ;;  %v16324_v25 = vld [vmem:[#allocation7 + $0xa24] sm:$0xf0]  ;;  %v16328_v27 = vld [vmem:[#allocation7 + $0xaa0] sm:$0xf]  ;;  %v16336_v36 = vld [vmem:[#allocation7 + $0x990] sm:$0xf]  ;;  %v16344_v38 = vpack.c.b16 %v1416_v57, %v18478_v17 }
  0x77   : > { %2768 = vmatpush.bf16.msrb.mxu0 %v10607_v39  ;;  %v16330_v30 = vld [vmem:[#allocation7 + $0xaa4] sm:$0xf0]  ;;  %v16332_v31 = vld [vmem:[#allocation7 + $0xb20] sm:$0xf]  ;;  %v16346_v39 = vld [vmem:[#allocation7 + $0x994] sm:$0xf0] }
  0x78   : > { %2787 = vmatpush.bf16.msrb.mxu1 %v10671_v45  ;;  %v16334_v32 = vld [vmem:[#allocation7 + $0xb24] sm:$0xf0]  ;;  %v16348_v40 = vld [vmem:[#allocation7 + $0xa10] sm:$0xf]  ;;  %v16350_v42 = vld [vmem:[#allocation7 + $0xa14] sm:$0xf0]  ;;  %v10727_v45 = vor.u32 %v16283_v53, %v16281_v52  ;;  %v10591_v52 = vor.u32 %v16297_v1, %v16295_v0  ;;  %v10655_v53 = vor.u32 %v16301_v5, %v16299_v2  ;;  %v10783_v0 = vor.u32 %v16316_v16, %v16314_v15 }
  0x79   : > { %2806 = vmatpush.bf16.msrb.mxu2 %v10735_v63  ;;  %v16364_v57 = vld [vmem:[#allocation7 + $0xa90] sm:$0xf]  ;;  %v16366_v55 = vld [vmem:[#allocation7 + $0xa94] sm:$0xf0]  ;;  %v16376_v56 = vld [vmem:[#allocation7 + $0x980] sm:$0xf]  ;;  %v458_v63 = vor.u32 %v16306_v9, %v16304_v7  ;;  %v10583_v1 = vor.u32 %v16320_v21, %v16318_v20  ;;  %v10647_v2 = vor.u32 %v16324_v25, %v16322_v24  ;;  %v10711_v5 = vor.u32 %v16330_v30, %v16328_v27 }
  0x7a   : > { %v16368_v48 = vld [vmem:[#allocation7 + $0xb10] sm:$0xf]  ;;  %2825 = vmatpush.bf16.msrb.mxu3 %v10799_v10  ;;  %v16374_v54 = vld [vmem:[#allocation7 + $0xb14] sm:$0xf0]  ;;  %v16378_v59 = vld [vmem:[#allocation7 + $0x984] sm:$0xf0]  ;;  %v10775_v7 = vor.u32 %v16334_v32, %v16332_v31  ;;  %v10575_v9 = vor.u32 %v16346_v39, %v16336_v36  ;;  %v10639_v10 = vor.u32 %v16350_v42, %v16348_v40  ;;  %v18572_v40 = vor.u32 %v16366_v55, %v16364_v57 }
  0x7b   : > { %2769 = vmatpush.bf16.msrb.mxu0 %v10599_v12  ;;  %v393_v12 = vld [vmem:[%s16170_s1 + $0x10] sm:$0xf]  ;;  %v396_v13 = vld [vmem:[%s16170_s1 + $0x24] sm:$0xf]  ;;  %v399_v20 = vld [vmem:[%s16170_s1 + $0x38] sm:$0xf] }
  0x7c   : > { %2788 = vmatpush.bf16.msrb.mxu1 %v10663_v26  ;;  %411 = vst [vmem:[#allocation2 + $0x10] sm:$0xf] %v393_v12  ;;  %vm449_vm1 = vsmask.f32 7440  ;;  %v459_v21 = vrot.slane %v458_v63, 4  ;;  %v461_v24 = vshll.u32 %v16192_v18, 16 }
  0x7d   : > { %2807 = vmatpush.bf16.msrb.mxu2 %v10727_v45  ;;  %414 = vst [vmem:[#allocation2 + $0x4c] sm:$0xf] %v396_v13  ;;  %v493_v25 = vshrl.u32 %v16192_v18, 16  ;;  %v499_v26 = vshll.u32 %v16203_v28, 16  ;;  %v523_v45 = vshrl.u32 %v16203_v28, 16  ;;  %v466_v12 = vshrl.u32 %v16197_v22, 16  ;;  %vm16425_vm2 = vmor %vm448_vm0, %vm449_vm1 }
  0x7e   : > { %2826 = vmatpush.bf16.msrb.mxu3 %v10791_v46  ;;  %2703 = vmatmul.bf16.gmra.mxu0 %v16340_v37  ;;  %417 = vst [vmem:[#allocation2 + $0x88] sm:$0xf] %v399_v20  ;;  %v469_v46 = vshll.u32 %v16197_v22, 16  ;;  %v463_v18 = vrot.slane %v461_v24, 5  ;;  %v16421_v20 = vld [vmem:[#allocation7 + $0xa04] sm:$0xf0] }
  0x7f   : > { %2770 = vmatpush.bf16.msrb.mxu0 %v10591_v52  ;;  %2722 = vmatmul.bf16.gmra.mxu1 %v16344_v38  ;;  %v16417_v52 = vld [vmem:[#allocation7 + $0xa00] sm:$0xf]  ;;  %v495_v63 = vrot.slane %v493_v25, 4  ;;  %v501_v13 = vrot.slane %v499_v26, 5  ;;  %v18569_v22 = vmov 0  ;;  %v525_v58 = vrot.slane %v523_v45, 4 }
  0x80   : > { %2789 = vmatpush.bf16.msrb.mxu1 %v10655_v53  ;;  %2741 = vmatmul.bf16.gmra.mxu2 %v16358_v49  ;;  %v475_v53 = vshll.u32 %v16200_v23, 16  ;;  %v18570_v22 = vsel %vm16425_vm2, 4294967295, %v18569_v22  ;;  %v468_v43 = vrot.slane %v466_v12, 4  ;;  %v471_v24 = vrot.slane %v469_v46, 5  ;;  %v16434_v47 = vld [vmem:[#allocation7 + $0xbf0] sm:$0xf] }
  0x81   : > { %2808 = vmatpush.bf16.msrb.mxu2 %v10719_v6  ;;  %2760 = vmatmul.bf16.gmra.mxu3 %v16362_v51  ;;  %18571 = vst [vmem:[#allocation26_spill] sm:$0xff] %v18570_v22  ;;  %v464_v6 = vsel %vm16425_vm2, %v459_v21, %v463_v18  ;;  %v496_v25 = vor.u32 %v495_v63, %v463_v18  ;;  %v503_v17 = vshrl.u32 %v16200_v23, 16  ;;  %v14896_v16 = vld [vmem:[#allocation7 + $0xbf4] sm:$0xf0]  ;;  %v509_v61 = vshll.u32 %v16211_v35, 16  ;;  %s15563_s19 = sshll.u32 %s16068_s8, 5 }
  0x82   : > { %2827 = vmatpush.bf16.msrb.mxu3 %v10783_v0  ;;  %v477_v26 = vrot.slane %v475_v53, 5  ;;  %v526_v15 = vor.u32 %v525_v58, %v501_v13  ;;  %661 = vst [vmem:[#allocation2 + $0x14] sm:$0xff] %v464_v6  ;;  %v472_v45 = vor.u32 %v471_v24, %v468_v43  ;;  %v533_v12 = vshrl.u32 %v16211_v35, 16  ;;  %v10942_v0 = vld [vmem:[#allocation7 + $0xc70] sm:$0xf]  ;;  %s10153_s10 = scalar_lea.hbm %s18471_s7, %s15563_s19  ;;  %s10154_s13 = sshll.u32 %s18412_s22, 4  ;;  %s10155_s13 = int_to_ptr.vmem [resolvable:$true] %s10154_s13 }
  0x83   : > { %2771 = vmatpush.bf16.msrb.mxu0 %v10583_v1  ;;  %v10631_v1 = vor.u32 %v16421_v20, %v16417_v52  ;;  %v16440_v21 = vld [vmem:[#allocation7 + $0xa80] sm:$0xf]  ;;  %v16442_v46 = vld [vmem:[#allocation7 + $0xa84] sm:$0xf0]  ;;  %v497_v23 = vrot.slane %v496_v25, 4  ;;  %v505_v18 = vrot.slane %v503_v17, 4 }
  0x84   : > { %2790 = vmatpush.bf16.msrb.mxu1 %v10647_v2  ;;  %v539_v63 = vshll.u32 %v16259_v29, 16  ;;  %v14912_v2 = vld [vmem:[#allocation7 + $0xc74] sm:$0xf0]  ;;  %v10758_v43 = vld [vmem:[#allocation7 + $0xb00] sm:$0xf]  ;;  %v527_v53 = vrot.slane %v526_v15, 4  ;;  %v10695_v42 = vor.u32 %v16442_v46, %v16440_v21 }
  0x85   : > { %2809 = vmatpush.bf16.msrb.mxu2 %v10711_v5  ;;  %v14866_v58 = vld [vmem:[#allocation7 + $0xb04] sm:$0xf0]  ;;  %v473_v24 = vrot.slane %v472_v45, 4  ;;  %v511_v6 = vrot.slane %v509_v61, 5  ;;  %v535_v14 = vrot.slane %v533_v12, 4  ;;  %v502_v17 = vsel %vm16425_vm2, %v497_v23, %v501_v13  ;;  %s10156_s16 = sshll.u32 %s10153_s10, 4  ;;  %s10157_s16 = int_to_ptr.hbm [resolvable:$true] %s10156_s16 }
  0x86   : > { %v11006_v52 = vld [vmem:[#allocation7 + $0xcf0] sm:$0xf]  ;;  %v14928_v20 = vld [vmem:[#allocation7 + $0xcf4] sm:$0xf0]  ;;  %2828 = vmatpush.bf16.msrb.mxu3 %v10775_v7  ;;  %v506_v27 = vor.u32 %v505_v18, %v477_v26  ;;  %v16456_v30 = vrot.slane %v539_v63, 5  ;;  %v10879_v5 = vor.u32 %v14896_v16, %v16434_v47  ;;  %v532_v31 = vsel %vm16425_vm2, %v527_v53, %v16429_v50  ;;  %664 = vst [vmem:[#allocation2 + $0x50] sm:$0xff] %v502_v17 }
  0x87   : > { %2772 = vmatpush.bf16.msrb.mxu0 %v10575_v9  ;;  %v11070_v15 = vld [vmem:[#allocation7 + $0xd70] sm:$0xf]  ;;  %v14944_v25 = vld [vmem:[#allocation7 + $0xd74] sm:$0xf0]  ;;  %v478_v32 = vsel %vm16425_vm2, %v473_v24, %v477_v26  ;;  %v536_v36 = vor.u32 %v535_v14, %v511_v6  ;;  %v10870_v39 = vld [vmem:[#allocation7 + $0xbe0] sm:$0xf]  ;;  %v10943_v16 = vor.u32 %v14912_v2, %v10942_v0  ;;  %v18573_v61 = vor.u32 %v16374_v54, %v16368_v48 }
  0x88   : > { %2791 = vmatpush.bf16.msrb.mxu1 %v10639_v10  ;;  %v14894_v7 = vld [vmem:[#allocation7 + $0xbe4] sm:$0xf0]  ;;  %v553_v9 = vshrl.u32 %v16245_v11, 16  ;;  %667 = vst [vmem:[#allocation2 + $0x8c] sm:$0xff] %v532_v31  ;;  %v507_v47 = vrot.slane %v506_v27, 4  ;;  %v18574_v12 = vor.u32 %v16378_v59, %v16376_v56  ;;  %v10759_v0 = vor.u32 %v14866_v58, %v10758_v43  ;;  %s10142_s8 = scalar_lea.sflag [#allocation6], %s16166_s2 }
  0x89   : > { %v10934_v13 = vld [vmem:[#allocation7 + $0xc60] sm:$0xf]  ;;  %v14910_v45 = vld [vmem:[#allocation7 + $0xc64] sm:$0xf0]  ;;  %2810 = vmatpush.bf16.msrb.mxu2 %v18572_v40  ;;  %v537_v10 = vrot.slane %v536_v36, 4  ;;  %662 = vst [vmem:[#allocation2 + $0x1c] sm:$0xff] %v478_v32  ;;  %v11007_v57 = vor.u32 %v14928_v20, %v11006_v52  ;;  %v11071_v48 = vor.u32 %v14944_v25, %v11070_v15  ;;  %v10871_v54 = vor.u32 %v14894_v7, %v10870_v39 }
  0x8a   : > { %v10998_v26 = vld [vmem:[#allocation7 + $0xce0] sm:$0xf]  ;;  %v14926_v14 = vld [vmem:[#allocation7 + $0xce4] sm:$0xf0]  ;;  %2829 = vmatpush.bf16.msrb.mxu3 %v18573_v61  ;;  %v512_v55 = vsel %vm16425_vm2, %v507_v47, %v511_v6  ;;  %v555_v21 = vrot.slane %v553_v9, 4  ;;  %v10935_v59 = vor.u32 %v14910_v45, %v10934_v13  ;;  %v16509_v39 = vld [vmem:[%s16170_s1 + $0x64] sm:$0xff] }
  0x8b   : > { %2773 = vmatpush.bf16.msrb.mxu0 %v18574_v12  ;;  %v11062_v23 = vld [vmem:[#allocation7 + $0xd60] sm:$0xf]  ;;  %v14942_v18 = vld [vmem:[#allocation7 + $0xd64] sm:$0xf0]  ;;  %v542_v46 = vsel %vm16425_vm2, %v537_v10, %v16456_v30  ;;  %665 = vst [vmem:[#allocation2 + $0x58] sm:$0xff] %v512_v55  ;;  %v10999_v20 = vor.u32 %v14926_v14, %v10998_v26  ;;  %v583_v40 = vshrl.u32 %v16248_v19, 16 }
  0x8c   : > { %2792 = vmatpush.bf16.msrb.mxu1 %v10631_v1  ;;  %v10862_v63 = vld [vmem:[#allocation7 + $0xbd0] sm:$0xf]  ;;  %v14892_v56 = vld [vmem:[#allocation7 + $0xbd4] sm:$0xf0]  ;;  %668 = vst [vmem:[#allocation2 + $0x94] sm:$0xff] %v542_v46  ;;  %v556_v58 = vor.u32 %v555_v21, %v16429_v50  ;;  %v559_v1 = vshll.u32 %v16248_v19, 16  ;;  %v11063_v17 = vor.u32 %v14942_v18, %v11062_v23 }
  0x8d   : > { %v16484_v2 = vld [vmem:[#allocation7 + $0xc50] sm:$0xf]  ;;  %v16486_v43 = vld [vmem:[#allocation7 + $0xc54] sm:$0xf0]  ;;  %2811 = vmatpush.bf16.msrb.mxu2 %v10695_v42  ;;  %v16496_v52 = vld [vmem:[#allocation2 + $0x4c] sm:$0xff]  ;;  %v10863_v31 = vor.u32 %v14892_v56, %v10862_v63  ;;  %18577 = vst [vmem:[#allocation29_spill] sm:$0xff] %v16509_v39 }
  0x8e   : > { %v16490_v53 = vld [vmem:[#allocation7 + $0xcd0] sm:$0xf]  ;;  %v16492_v24 = vld [vmem:[#allocation7 + $0xcd4] sm:$0xf0]  ;;  %2830 = vmatpush.bf16.msrb.mxu3 %v10759_v0  ;;  %18575 = vst [vmem:[#allocation27_spill] sm:$0xff] %v16496_v52  ;;  %v18486_v15 = vunpack.c.l.b16 %v16496_v52  ;;  %v18489_v25 = vunpack.c.h.b16 %v16496_v52  ;;  %v557_v7 = vrot.slane %v556_v58, 4  ;;  %v10927_v42 = vor.u32 %v16486_v43, %v16484_v2 }
  0x8f   : > { %2842 = vmatpush.bf16.msra.mxu0 %v10879_v5  ;;  %v16494_v6 = vld [vmem:[#allocation7 + $0xd50] sm:$0xf]  ;;  %v16498_v27 = vld [vmem:[#allocation7 + $0xd54] sm:$0xf0]  ;;  %v16500_v5 = vld [vmem:[#allocation7 + $0xbc0] sm:$0xf]  ;;  %v10991_v10 = vor.u32 %v16492_v24, %v16490_v53 }
  0x90   : > { %2861 = vmatpush.bf16.msra.mxu1 %v10943_v16  ;;  %v16502_v50 = vld [vmem:[#allocation2 + $0x88] sm:$0xff]  ;;  %v14890_v32 = vld [vmem:[#allocation7 + $0xbc4] sm:$0xf0]  ;;  %v561_v45 = vrot.slane %v559_v1, 5  ;;  %v11055_v55 = vor.u32 %v16498_v27, %v16494_v6  ;;  %v585_v63 = vrot.slane %v583_v40, 4  ;;  %v589_v1 = vshll.u32 %v16509_v39, 16 }
  0x91   : > { %2880 = vmatpush.bf16.msra.mxu2 %v11007_v57  ;;  %18576 = vst [vmem:[#allocation28_spill] sm:$0xff] %v16502_v50  ;;  %v16506_v36 = vld [vmem:[#allocation7 + $0xc40] sm:$0xf]  ;;  %v18484_v9 = vunpack.c.l.b16 %v16502_v50  ;;  %v18485_v47 = vunpack.c.h.b16 %v16502_v50  ;;  %v16513_v16 = vld [vmem:[#allocation7 + $0xc44] sm:$0xf0]  ;;  %v10855_v57 = vor.u32 %v14890_v32, %v16500_v5  ;;  %v563_v27 = vshrl.u32 %v16259_v29, 16 }
  0x92   : > { %2899 = vmatpush.bf16.msra.mxu3 %v11071_v48  ;;  %v16515_v13 = vld [vmem:[#allocation7 + $0xcc0] sm:$0xf]  ;;  %v16522_v26 = vld [vmem:[#allocation7 + $0xcc4] sm:$0xf0]  ;;  %v16539_v0 = vld [vmem:[#allocation2 + $0x54] sm:$0xff]  ;;  %v10919_v58 = vor.u32 %v16513_v16, %v16506_v36  ;;  %v569_v16 = vshll.u32 %v16268_v33, 16 }
  0x93   : > { %2843 = vmatpush.bf16.msra.mxu0 %v10871_v54  ;;  %v16524_v14 = vld [vmem:[#allocation7 + $0xd40] sm:$0xf]  ;;  %v16531_v12 = vpack.c.b16 %v18484_v9, %v18486_v15  ;;  %v16537_v19 = vpack.c.b16 %v18485_v47, %v18489_v25  ;;  %18578 = vst [vmem:[#allocation30_spill] sm:$0xff] %v16539_v0  ;;  %v14938_v23 = vld [vmem:[#allocation7 + $0xd44] sm:$0xf0]  ;;  %v18483_v46 = vunpack.c.l.b16 %v16539_v0  ;;  %v18482_v48 = vunpack.c.h.b16 %v16539_v0  ;;  %s15925_s18 = sshra.s32 %s10157_s16, 4  ;;  %s15926_s18 = int_to_ptr.hbm [resolvable:$true] %s15925_s18 }
  0x94   : > { %2862 = vmatpush.bf16.msra.mxu1 %v10935_v59  ;;  %v402_v61 = vld [vmem:[%s16170_s1 + $0x4c] sm:$0xf]  ;;  %v405_v18 = vld [vmem:[%s16170_s1 + $0x60] sm:$0xf]  ;;  %v562_v54 = vsel %vm16425_vm2, %v557_v7, %v561_v45  ;;  %v10846_v56 = vld [vmem:[#allocation7 + $0xbb0] sm:$0xf]  ;;  %v10983_v6 = vor.u32 %v16522_v26, %v16515_v13  ;;  %p15932_p12 = scmp.lt.s32.totalorder %s15926_s18, %s18471_s7 }
  0x95   : > { %2881 = vmatpush.bf16.msra.mxu2 %v10999_v20  ;;  %v16545_v21 = vld [vmem:[#allocation2 + $0x90] sm:$0xff]  ;;  %420 = vst [vmem:[#allocation2 + $0xc4] sm:$0xf] %v402_v61  ;;  %v14888_v59 = vld [vmem:[#allocation7 + $0xbb4] sm:$0xf0]  ;;  %2774 = vmatmul.bf16.vlgmr.msrb.gmra.mxu0 %v16531_v12  ;;  %v11047_v20 = vor.u32 %v14938_v23, %v16524_v14  ;;  %v16577_v7 = vrot.slane %v589_v1, 5 }
  0x96   : > { %18579 = vst [vmem:[#allocation31_spill] sm:$0xff] %v16545_v21  ;;  %2900 = vmatpush.bf16.msra.mxu3 %v11063_v17  ;;  %2793 = vmatmul.bf16.vlgmr.msrb.gmra.mxu1 %v16537_v19  ;;  %v18481_v2 = vunpack.c.l.b16 %v16545_v21  ;;  %v18480_v43 = vunpack.c.h.b16 %v16545_v21  ;;  %v16559_v53 = vld [vmem:[%s16170_s1 + $0x6c] sm:$0xff]  ;;  %v10910_v24 = vld [vmem:[#allocation7 + $0xc30] sm:$0xf]  ;;  %v586_v17 = vor.u32 %v585_v63, %v561_v45  ;;  %v593_v26 = vshrl.u32 %v16268_v33, 16  ;;  %s15927_s20 = scalar_lea.hbm %s15926_s18, 32 }
  0x97   : > { %2844 = vmatpush.bf16.msra.mxu0 %v10863_v31  ;;  %423 = vst [vmem:[#allocation2 + $0x100] sm:$0xf] %v405_v18  ;;  %v14904_v5 = vld [vmem:[#allocation7 + $0xc34] sm:$0xf0]  ;;  %v10974_v31 = vld [vmem:[#allocation7 + $0xcb0] sm:$0xf]  ;;  %v10847_v23 = vor.u32 %v14888_v59, %v10846_v56  ;;  %p15928_p1 = scmp.ne.s32.totalorder %s15926_s18, %s15927_s20 }
  0x98   : > { %18580 = vst [vmem:[#allocation32_spill] sm:$0xff] %v16559_v53  ;;  %2863 = vmatpush.bf16.msra.mxu1 %v10927_v42  ;;  %v16569_v32 = vpack.c.b16 %v18481_v2, %v18483_v46  ;;  %v16575_v36 = vpack.c.b16 %v18480_v43, %v18482_v48  ;;  %v14920_v13 = vld [vmem:[#allocation7 + $0xcb4] sm:$0xf0]  ;;  %v11038_v45 = vld [vmem:[#allocation7 + $0xd30] sm:$0xf]  ;;  %v587_v40 = vrot.slane %v586_v17, 4  ;;  %v10911_v33 = vor.u32 %v14904_v5, %v10910_v24 }
  0x99   : > { %670 = vst [vmem:[#allocation2 + $0xc8] sm:$0xff] %v562_v54  ;;  %2882 = vmatpush.bf16.msra.mxu2 %v10991_v10  ;;  %v565_v42 = vrot.slane %v563_v27, 4  ;;  %v599_v14 = vshll.u32 %v16559_v53, 16  ;;  %v14936_v61 = vld [vmem:[#allocation7 + $0xd34] sm:$0xf0]  ;;  %v571_v10 = vrot.slane %v569_v16, 5  ;;  %v10975_v56 = vor.u32 %v14920_v13, %v10974_v31  ;;  %p15929_p3 = pnand %p15928_p1, %p16137_p4 }
  0x9a   : > { %18581 = vst [vmem:[#allocation33_spill] sm:$0xff] %v16577_v7  ;;  %2901 = vmatpush.bf16.msra.mxu3 %v11055_v55  ;;  %2812 = vmatmul.bf16.vlgmr.msrb.gmra.mxu2 %v16569_v32  ;;  %v10838_v18 = vld [vmem:[#allocation7 + $0xba0] sm:$0xf]  ;;  %v14886_v54 = vld [vmem:[#allocation7 + $0xba4] sm:$0xf0]  ;;  %v592_v55 = vsel %vm16425_vm2, %v587_v40, %v16577_v7  ;;  %v595_v63 = vrot.slane %v593_v26, 4  ;;  %v11039_v40 = vor.u32 %v14936_v61, %v11038_v45 }
  0x9b   : > { %2845 = vmatpush.bf16.msra.mxu0 %v10855_v57  ;;  %2831 = vmatmul.bf16.vlgmr.msrb.gmra.mxu3 %v16575_v36  ;;  %v566_v57 = vor.u32 %v565_v42, %v16456_v30  ;;  %v10902_v1 = vld [vmem:[#allocation7 + $0xc20] sm:$0xf]  ;;  %v14902_v17 = vld [vmem:[#allocation7 + $0xc24] sm:$0xf0]  ;;  %673 = vst [vmem:[#allocation2 + $0x104] sm:$0xff] %v592_v55  ;;  %v16588_v27 = vrot.slane %v599_v14, 5  ;;  %v10839_v2 = vor.u32 %v14886_v54, %v10838_v18  ;;  %p15930_p5 = pneg %p15929_p3 }
  0x9c   : > { %2864 = vmatpush.bf16.msra.mxu1 %v10919_v58  ;;  %v10966_v59 = vld [vmem:[#allocation7 + $0xca0] sm:$0xf]  ;;  %v14918_v16 = vld [vmem:[#allocation7 + $0xca4] sm:$0xf0]  ;;  %v596_v43 = vor.u32 %v595_v63, %v571_v10  ;;  %v14884_v26 = vld [vmem:[#allocation7 + $0xb94] sm:$0xf0] }
  0x9d   : > { %2883 = vmatpush.bf16.msra.mxu2 %v10983_v6  ;;  %18582 = vst [vmem:[#allocation34_spill] sm:$0xff] %v16588_v27  ;;  %v567_v58 = vrot.slane %v566_v57, 4  ;;  %v11030_v30 = vld [vmem:[#allocation7 + $0xd20] sm:$0xf]  ;;  %v14934_v42 = vld [vmem:[#allocation7 + $0xd24] sm:$0xf0]  ;;  %v10967_v45 = vor.u32 %v14918_v16, %v10966_v59 }
  0x9e   : > { %2902 = vmatpush.bf16.msra.mxu3 %v11047_v20  ;;  %v16591_v24 = vld [vmem:[%s16170_s1 + $0x14] sm:$0xff]  ;;  %v10830_v6 = vld [vmem:[#allocation7 + $0xb90] sm:$0xf]  ;;  %v597_v13 = vrot.slane %v596_v43, 4  ;;  %v10903_v20 = vor.u32 %v14902_v17, %v10902_v1  ;;  %v14916_v18 = vld [vmem:[#allocation7 + $0xc94] sm:$0xf0]  ;;  %v11031_v57 = vor.u32 %v14934_v42, %v11030_v30 }
  0x9f   : > { %2846 = vmatpush.bf16.msra.mxu0 %v10847_v23  ;;  %v16596_v14 = vld [vmem:[%s16170_s1 + $0x28] sm:$0xff]  ;;  %v572_v31 = vsel %vm16425_vm2, %v567_v58, %v571_v10  ;;  %v14900_v23 = vld [vmem:[#allocation7 + $0xc14] sm:$0xf0]  ;;  %v10831_v10 = vor.u32 %v14884_v26, %v10830_v6  ;;  %v726_v16 = vrot.slane %v16591_v24, 5  ;;  %v14914_v48 = vld [vmem:[#allocation7 + $0xc84] sm:$0xf0] }
  0xa0   : > { %v16593_v5 = vld [vmem:[#allocation2 + $0xc4] sm:$0xff]  ;;  %2865 = vmatpush.bf16.msra.mxu1 %v10911_v33  ;;  %v10894_v55 = vld [vmem:[#allocation7 + $0xc10] sm:$0xf]  ;;  %671 = vst [vmem:[#allocation2 + $0xd0] sm:$0xff] %v572_v31  ;;  %v602_v54 = vsel %vm16425_vm2, %v597_v13, %v16588_v27  ;;  %v14932_v63 = vld [vmem:[#allocation7 + $0xd14] sm:$0xf0] }
  0xa1   : > { %18583 = vst [vmem:[#allocation35_spill] sm:$0xff] %v16593_v5  ;;  %2884 = vmatpush.bf16.msra.mxu2 %v10975_v56  ;;  %v10958_v61 = vld [vmem:[#allocation7 + $0xc90] sm:$0xf]  ;;  %v10822_v33 = vld [vmem:[#allocation7 + $0xb80] sm:$0xf]  ;;  %v18487_v1 = vunpack.c.l.b16 %v16593_v5  ;;  %v18488_v17 = vunpack.c.h.b16 %v16593_v5  ;;  %v10895_v31 = vor.u32 %v14900_v23, %v10894_v55  ;;  %v18585_v30 = vmov 0 }
  0xa2   : > { %2903 = vmatpush.bf16.msra.mxu3 %v11039_v40  ;;  %v11022_v43 = vld [vmem:[#allocation7 + $0xd10] sm:$0xf]  ;;  %674 = vst [vmem:[#allocation2 + $0x10c] sm:$0xff] %v602_v54  ;;  %v14882_v56 = vld [vmem:[#allocation7 + $0xb84] sm:$0xf0]  ;;  %v1091_v58 = vld [vmem:[#allocation2 + $0x100] sm:$0xff]  ;;  %v10959_v13 = vor.u32 %v14916_v18, %v10958_v61 }
  0xa3   : > { %2847 = vmatpush.bf16.msra.mxu0 %v10839_v2  ;;  %v10886_v59 = vld [vmem:[#allocation7 + $0xc00] sm:$0xf]  ;;  %v14898_v40 = vld [vmem:[#allocation7 + $0xc04] sm:$0xf0]  ;;  %v1419_v42 = vunpack.c.l.b16 %v1091_v58  ;;  %v1420_v6 = vunpack.c.h.b16 %v1091_v58  ;;  %v11023_v26 = vor.u32 %v14932_v63, %v11022_v43  ;;  %v10823_v54 = vor.u32 %v14882_v56, %v10822_v33  ;;  %v429_v61 = vld [vmem:[%s16170_s1 + $0x10] sm:$0xf] }
  0xa4   : > { %2866 = vmatpush.bf16.msra.mxu1 %v10903_v20  ;;  %v16606_v2 = vld [vmem:[#allocation7 + $0xc80] sm:$0xf]  ;;  %v14930_v9 = vld [vmem:[#allocation7 + $0xd04] sm:$0xf0]  ;;  %v10887_v20 = vor.u32 %v14898_v40, %v10886_v59  ;;  %v432_v18 = vld [vmem:[%s16170_s1 + $0x24] sm:$0xf] }
  0xa5   : > { %2885 = vmatpush.bf16.msra.mxu2 %v10967_v45  ;;  %v11014_v46 = vld [vmem:[#allocation7 + $0xd00] sm:$0xf]  ;;  %v10951_v55 = vor.u32 %v14914_v48, %v16606_v2  ;;  %v16615_v15 = vpack.c.b16 %v1419_v42, %v18487_v1  ;;  %v16619_v45 = vpack.c.b16 %v1420_v6, %v18488_v17  ;;  %v679_v2 = vld [vmem:[%s16170_s1] sm:$0xee]  ;;  %v18586_v30 = vsel %vm16634_vm5, 4294967295, %v18585_v30  ;;  %s15931_s14 = scalar_lea.hbm %s18471_s7, 64 }
  0xa6   : > { %2904 = vmatpush.bf16.msra.mxu3 %v11031_v57  ;;  %v11015_v23 = vor.u32 %v14930_v9, %v11014_v46  ;;  %v435_v47 = vld [vmem:[%s16170_s1 + $0x38] sm:$0xf]  ;;  %v16622_v43 = vld [vmem:[%s16170_s1 + $0x4c] sm:$0xf]  ;;  %v480_v57 = vshrl.u32 %v429_v61, 16  ;;  %v489_v9 = vshll.u32 %v432_v18, 16  ;;  %p15933_p7 = scmp.lt.s32.totalorder %s15931_s14, %s15927_s20 }
  0xa7   : > { %2848 = vmatpush.bf16.msra.mxu0 %v10831_v10  ;;  %v483_v10 = vshll.u32 %v429_v61, 16  ;;  %v16624_v63 = vld [vmem:[#allocation2 + $0xcc] sm:$0xff]  ;;  %v513_v46 = vshrl.u32 %v432_v18, 16  ;;  %v519_v48 = vshll.u32 %v435_v47, 16  ;;  %v543_v33 = vshrl.u32 %v435_v47, 16  ;;  %2798 = vmatmul.bf16.gmra.mxu1 %v16619_v45  ;;  %18587 = vst [vmem:[#allocation37_spill] sm:$0xff] %v18586_v30 }
  0xa8   : > { %18584 = vst [vmem:[#allocation36_spill] sm:$0xff] %v16624_v63  ;;  %2867 = vmatpush.bf16.msra.mxu1 %v10895_v31  ;;  %2779 = vmatmul.bf16.gmra.mxu0 %v16615_v15  ;;  %v18492_v56 = vunpack.c.l.b16 %v16624_v63  ;;  %v18491_v59 = vunpack.c.h.b16 %v16624_v63  ;;  %v482_v58 = vrot.slane %v480_v57, 4  ;;  %v491_v6 = vrot.slane %v489_v9, 5  ;;  %v11134_v57 = vld [vmem:[#allocation7 + $0xdf0] sm:$0xf]  ;;  %p15934_p8 = por %p15933_p7, %p15932_p12 }
  0xa9   : > { %v485_v40 = vrot.slane %v483_v10, 5  ;;  %v1092_v42 = vld [vmem:[#allocation2 + $0x108] sm:$0xff]  ;;  %2886 = vmatpush.bf16.msra.mxu2 %v10959_v13  ;;  %v515_v31 = vrot.slane %v513_v46, 4  ;;  %v521_v61 = vrot.slane %v519_v48, 5  ;;  %v545_v18 = vrot.slane %v543_v33, 4 }
  0xaa   : > { %2905 = vmatpush.bf16.msra.mxu3 %v11023_v26  ;;  %v1421_v1 = vunpack.c.l.b16 %v1092_v42  ;;  %v1422_v47 = vunpack.c.h.b16 %v1092_v42  ;;  %v549_v25 = vshll.u32 %v16622_v43, 16  ;;  %v14960_v10 = vld [vmem:[#allocation7 + $0xdf4] sm:$0xf0]  ;;  %v10305_v9 = vrot.slane %v679_v2, 9  ;;  %v11198_v48 = vld [vmem:[#allocation7 + $0xe70] sm:$0xf]  ;;  %p15935_p9 = pnand %p15934_p8, %p15930_p5 }
  0xab   : > { %2849 = vmatpush.bf16.msra.mxu0 %v10823_v54  ;;  %v486_v17 = vor.u32 %v485_v40, %v482_v58  ;;  %v516_v13 = vor.u32 %v515_v31, %v491_v6  ;;  %v546_v26 = vor.u32 %v545_v18, %v521_v61  ;;  %v736_v46 = vrot.slane %v726_v16, 4  ;;  %v14976_v54 = vld [vmem:[#allocation7 + $0xe74] sm:$0xf0]  ;;  %v14974_v63 = vld [vmem:[#allocation7 + $0xe64] sm:$0xf0] }
  0xac   : > { %2868 = vmatpush.bf16.msra.mxu1 %v10887_v20  ;;  %v16642_v33 = vpack.c.b16 %v1421_v1, %v18492_v56  ;;  %v16646_v58 = vpack.c.b16 %v1422_v47, %v18491_v59  ;;  %v16648_v42 = vrot.slane %v549_v25, 5  ;;  %v11262_v20 = vld [vmem:[#allocation7 + $0xef0] sm:$0xf]  ;;  %v14992_v31 = vld [vmem:[#allocation7 + $0xef4] sm:$0xf0]  ;;  %v727_v27 = vsel %vm16634_vm5, %v10305_v9, %v726_v16 }
  0xad   : > { %v487_v40 = vrot.slane %v486_v17, 4  ;;  %2887 = vmatpush.bf16.msra.mxu2 %v10951_v55  ;;  %v517_v2 = vrot.slane %v516_v13, 4  ;;  %v547_v18 = vrot.slane %v546_v26, 4  ;;  %v18588_v1 = vrot.slane %v16596_v14, 5  ;;  %v14767_v17 = vld [vmem:[#allocation7 + $0x7f4] sm:$0xf] }
  0xae   : > { %2906 = vmatpush.bf16.msra.mxu3 %v11015_v23  ;;  %v10368_v25 = vld [vmem:[#allocation7 + $0x7f8] sm:$0xf0]  ;;  %v11126_v59 = vld [vmem:[#allocation7 + $0xde0] sm:$0xf]  ;;  %v14958_v56 = vld [vmem:[#allocation7 + $0xde4] sm:$0xf0]  ;;  %2817 = vmatmul.bf16.gmra.mxu2 %v16642_v33  ;;  %v11135_v7 = vor.u32 %v14960_v10, %v11134_v57  ;;  %v3279_v57 = vunpack.c.h.b16 %v727_v27 }
  0xaf   : > { %v16658_v47 = vsel %vm16634_vm5, %v736_v46, %v18588_v1  ;;  %2836 = vmatmul.bf16.gmra.mxu3 %v16646_v58  ;;  %v492_v24 = vsel %vm16425_vm2, %v487_v40, %v491_v6  ;;  %v18589_v55 = vmov %v18588_v1  ;;  %v18502_v23 = vrot.slane %v16245_v11, 5  ;;  %v11190_v26 = vld [vmem:[#allocation7 + $0xe60] sm:$0xf]  ;;  %v14990_v21 = vld [vmem:[#allocation7 + $0xee4] sm:$0xf0] }
  0xb0   : > { %v745_v16 = vrot.slane %v18589_v55, 4  ;;  %v1380_v13 = vunpack.c.l.b16 %v16658_v47  ;;  %v522_v9 = vsel %vm16425_vm2, %v517_v2, %v521_v61  ;;  %v552_v46 = vsel %vm16425_vm2, %v547_v18, %v16648_v42  ;;  %663 = vst [vmem:[#allocation2 + $0x24] sm:$0xf] %v492_v24  ;;  %v11254_v6 = vld [vmem:[#allocation7 + $0xee0] sm:$0xf]  ;;  %2918 = vmatpush.bf16.msrb.mxu0 %v11135_v7 }
  0xb1   : > { %v3278_v1 = vunpack.c.l.b16 %v727_v27  ;;  %666 = vst [vmem:[#allocation2 + $0x60] sm:$0xf] %v522_v9  ;;  %v11199_v40 = vor.u32 %v14976_v54, %v11198_v48  ;;  %v11263_v55 = vor.u32 %v14992_v31, %v11262_v20  ;;  %v14765_v61 = vld [vmem:[#allocation7 + $0x7e4] sm:$0xf]  ;;  %v1381_v18 = vunpack.c.h.b16 %v16658_v47  ;;  %v10360_v10 = vld [vmem:[#allocation7 + $0x7e8] sm:$0xf0] }
  0xb2   : > { %v16677_v14 = vsel %vm16634_vm5, %v745_v16, %v18502_v23  ;;  %669 = vst [vmem:[#allocation2 + $0x9c] sm:$0xf] %v552_v46  ;;  %v11118_v24 = vld [vmem:[#allocation7 + $0xdd0] sm:$0xf]  ;;  %v10371_v9 = vor.u32 %v14767_v17, %v10368_v25  ;;  %v11127_v0 = vor.u32 %v14958_v56, %v11126_v59  ;;  %v11191_v29 = vor.u32 %v14974_v63, %v11190_v26  ;;  %v14956_v16 = vld [vmem:[#allocation7 + $0xdd4] sm:$0xf0] }
  0xb3   : > { %18590 = vst [vmem:[#allocation38_spill] sm:$0xff] %v16677_v14  ;;  %v16679_v2 = vpack.c.b16 %v1380_v13, %v3278_v1  ;;  %2937 = vmatpush.bf16.msrb.mxu1 %v11199_v40  ;;  %2956 = vmatpush.bf16.msrb.mxu2 %v11263_v55  ;;  %v11182_v23 = vld [vmem:[#allocation7 + $0xe50] sm:$0xf]  ;;  %v18504_v48 = vunpack.c.l.b16 %v16677_v14  ;;  %v18503_v54 = vunpack.c.h.b16 %v16677_v14  ;;  %v16685_v20 = vpack.c.b16 %v1381_v18, %v3279_v57  ;;  %v14972_v31 = vld [vmem:[#allocation7 + $0xe54] sm:$0xf0] }
  0xb4   : > { %805 = vst [vmem:[#allocation2 + $0xa0] sm:$0xff] %v16677_v14  ;;  %v11255_v7 = vor.u32 %v14990_v21, %v11254_v6  ;;  %v11246_v27 = vld [vmem:[#allocation7 + $0xed0] sm:$0xf]  ;;  %2975 = vmatpush.bf16.msrb.mxu3 %v10371_v9  ;;  %v10363_v47 = vor.u32 %v14765_v61, %v10360_v10  ;;  %v14988_v46 = vld [vmem:[#allocation7 + $0xed4] sm:$0xf0]  ;;  %2919 = vmatpush.bf16.msrb.mxu0 %v11127_v0  ;;  %v573_v6 = vshrl.u32 %v16622_v43, 16 }
  0xb5   : > { %18591 = vst [vmem:[#allocation39_spill] sm:$0xff] %v16679_v2  ;;  %v14763_v1 = vld [vmem:[#allocation7 + $0x7d4] sm:$0xf]  ;;  %v10352_v17 = vld [vmem:[#allocation7 + $0x7d8] sm:$0xf0]  ;;  %v11119_v63 = vor.u32 %v14956_v16, %v11118_v24  ;;  %v11183_v25 = vor.u32 %v14972_v31, %v11182_v23  ;;  %v11247_v26 = vor.u32 %v14988_v46, %v11246_v27  ;;  %v16696_v61 = vpack.c.b16 %v18504_v48, %v1380_v13 }
  0xb6   : > { %18592 = vst [vmem:[#allocation40_spill] sm:$0xff] %v16685_v20  ;;  %v16687_v56 = vld [vmem:[#allocation7 + $0xdc0] sm:$0xf]  ;;  %v16689_v59 = vld [vmem:[#allocation7 + $0xdc4] sm:$0xf0]  ;;  %v16700_v0 = vpack.c.b16 %v18503_v54, %v1381_v18  ;;  %v10355_v57 = vor.u32 %v14763_v1, %v10352_v17 }
  0xb7   : > { %2938 = vmatpush.bf16.msrb.mxu1 %v11191_v29  ;;  %2957 = vmatpush.bf16.msrb.mxu2 %v11255_v7  ;;  %v11174_v40 = vld [vmem:[#allocation7 + $0xe40] sm:$0xf]  ;;  %v14970_v21 = vld [vmem:[#allocation7 + $0xe44] sm:$0xf0]  ;;  %v11111_v13 = vor.u32 %v16689_v59, %v16687_v56  ;;  %v14761_v9 = vld [vmem:[#allocation7 + $0x7c4] sm:$0xf] }
  0xb8   : > { %v16692_v55 = vld [vmem:[#allocation2 + $0x5c] sm:$0xff]  ;;  %v11238_v29 = vld [vmem:[#allocation7 + $0xec0] sm:$0xf]  ;;  %v14986_v23 = vld [vmem:[#allocation7 + $0xec4] sm:$0xf0]  ;;  %2976 = vmatpush.bf16.msrb.mxu3 %v10363_v47  ;;  %v575_v7 = vrot.slane %v573_v6, 4  ;;  %2920 = vmatpush.bf16.msrb.mxu0 %v11119_v63  ;;  %v11175_v27 = vor.u32 %v14970_v21, %v11174_v40 }
  0xb9   : > { %18593 = vst [vmem:[#allocation41_spill] sm:$0xff] %v16692_v55  ;;  %v16702_v10 = vld [vmem:[#allocation2 + $0x98] sm:$0xff]  ;;  %v10344_v46 = vld [vmem:[#allocation7 + $0x7c8] sm:$0xf0]  ;;  %v444_v1 = vld [vmem:[%s16170_s1 + $0x74] sm:$0xf]  ;;  %v11239_v48 = vor.u32 %v14986_v23, %v11238_v29  ;;  %v18596_v31 = vunpack.c.l.b16 %v16692_v55  ;;  %v18598_v21 = vunpack.c.h.b16 %v16692_v55 }
  0xba   : > { %18594 = vst [vmem:[#allocation42_spill] sm:$0xff] %v16702_v10  ;;  %v441_v16 = vld [vmem:[%s16170_s1 + $0x60] sm:$0xf]  ;;  %v691_v54 = vld [vmem:[%s16170_s1 + $0x50] sm:$0xff]  ;;  %v576_v47 = vor.u32 %v575_v7, %v16648_v42  ;;  %v18595_v56 = vrot.slane %v16245_v11, 5  ;;  %v18597_v63 = vunpack.c.l.b16 %v16702_v10  ;;  %v609_v29 = vshll.u32 %v444_v1, 16 }
  0xbb   : > { %v579_v17 = vshll.u32 %v441_v16, 16  ;;  %2939 = vmatpush.bf16.msrb.mxu1 %v11183_v25  ;;  %2958 = vmatpush.bf16.msrb.mxu2 %v11247_v26  ;;  %v603_v43 = vshrl.u32 %v441_v16, 16  ;;  %v11102_v6 = vld [vmem:[#allocation7 + $0xdb0] sm:$0xf]  ;;  %v14952_v24 = vld [vmem:[#allocation7 + $0xdb4] sm:$0xf0]  ;;  %v18599_v25 = vunpack.c.h.b16 %v16702_v10  ;;  %v10347_v7 = vor.u32 %v14761_v9, %v10344_v46 }
  0xbc   : > { %v754_v59 = vrot.slane %v18595_v56, 4  ;;  %v11166_v18 = vld [vmem:[#allocation7 + $0xe30] sm:$0xf]  ;;  %v16720_v40 = vpack.c.b16 %v18597_v63, %v18596_v31  ;;  %v14968_v23 = vld [vmem:[#allocation7 + $0xe34] sm:$0xf0]  ;;  %2977 = vmatpush.bf16.msrb.mxu3 %v10355_v57  ;;  %v577_v56 = vrot.slane %v576_v47, 4  ;;  %2921 = vmatpush.bf16.msrb.mxu0 %v11111_v13 }
  0xbd   : > { %v16726_v26 = vpack.c.b16 %v18599_v25, %v18598_v21  ;;  %v581_v42 = vrot.slane %v579_v17, 5  ;;  %v11230_v16 = vld [vmem:[#allocation7 + $0xeb0] sm:$0xf]  ;;  %v605_v14 = vrot.slane %v603_v43, 4  ;;  %v755_v20 = vrot.slane %v691_v54, 5 }
  0xbe   : > { %v14984_v2 = vld [vmem:[#allocation7 + $0xeb4] sm:$0xf0]  ;;  %2850 = vmatmul.bf16.vlgmr.msra.gmra.mxu0 %v16720_v40  ;;  %v16730_v31 = vrot.slane %v609_v29, 5  ;;  %v14759_v21 = vld [vmem:[#allocation7 + $0x7b4] sm:$0xf]  ;;  %2888 = vmatmul.bf16.vlgmr.msra.gmra.mxu2 %v16696_v61  ;;  %v11103_v17 = vor.u32 %v14952_v24, %v11102_v6  ;;  %v11167_v47 = vor.u32 %v14968_v23, %v11166_v18 }
  0xbf   : > { %2869 = vmatmul.bf16.vlgmr.msra.gmra.mxu1 %v16726_v26  ;;  %v10336_v25 = vld [vmem:[#allocation7 + $0x7b8] sm:$0xf0]  ;;  %2907 = vmatmul.bf16.vlgmr.msra.gmra.mxu3 %v16700_v0  ;;  %v582_v57 = vsel %vm16425_vm2, %v577_v56, %v581_v42  ;;  %v606_v43 = vor.u32 %v605_v14, %v581_v42  ;;  %v16739_v54 = vsel %vm16634_vm5, %v754_v59, %v755_v20  ;;  %v763_v9 = vrot.slane %v755_v20, 4  ;;  %v11094_v46 = vld [vmem:[#allocation7 + $0xda0] sm:$0xf]  ;;  %v16748_v6 = vld [vmem:[%s16170_s1 + $0x1c] sm:$0xff] }
  0xc0   : > { %18600 = vst [vmem:[#allocation43_spill] sm:$0xff] %v16730_v31  ;;  %v14950_v1 = vld [vmem:[#allocation7 + $0xda4] sm:$0xf0]  ;;  %2940 = vmatpush.bf16.msrb.mxu1 %v11175_v27  ;;  %v11231_v29 = vor.u32 %v14984_v2, %v11230_v16  ;;  %v11158_v63 = vld [vmem:[#allocation7 + $0xe20] sm:$0xf]  ;;  %2959 = vmatpush.bf16.msrb.mxu2 %v11239_v48  ;;  %v18602_v14 = vrot.slane %v16509_v39, 5  ;;  %v10339_v20 = vor.u32 %v14759_v21, %v10336_v25 }
  0xc1   : > { %18601 = vst [vmem:[#allocation44_spill] sm:$0xff] %v16739_v54  ;;  %v14966_v10 = vld [vmem:[#allocation7 + $0xe24] sm:$0xf0]  ;;  %2978 = vmatpush.bf16.msrb.mxu3 %v10347_v7  ;;  %v607_v56 = vrot.slane %v606_v43, 4  ;;  %v11222_v13 = vld [vmem:[#allocation7 + $0xea0] sm:$0xf]  ;;  %2922 = vmatpush.bf16.msrb.mxu0 %v11103_v17 }
  0xc2   : > { %672 = vst [vmem:[#allocation2 + $0xd8] sm:$0xf] %v582_v57  ;;  %v765_v59 = vsel %vm16634_vm5, %v763_v9, %v18602_v14  ;;  %v14982_v27 = vld [vmem:[#allocation7 + $0xea4] sm:$0xf0]  ;;  %v14757_v18 = vld [vmem:[#allocation7 + $0x7a4] sm:$0xf]  ;;  %v11095_v57 = vor.u32 %v14950_v1, %v11094_v46  ;;  %v11159_v43 = vor.u32 %v14966_v10, %v11158_v63  ;;  %v18604_v10 = vunpack.c.l.b16 %v16739_v54 }
  0xc3   : > { %808 = vst [vmem:[#allocation2 + $0xdc] sm:$0xff] %v16739_v54  ;;  %v10328_v2 = vld [vmem:[#allocation7 + $0x7a8] sm:$0xf0]  ;;  %v612_v48 = vsel %vm16425_vm2, %v607_v56, %v16730_v31  ;;  %v1425_v42 = vunpack.c.l.b16 %v765_v59  ;;  %v1426_v16 = vunpack.c.h.b16 %v765_v59  ;;  %v11086_v7 = vld [vmem:[#allocation7 + $0xd90] sm:$0xf]  ;;  %v686_v24 = vld [vmem:[%s16170_s1 + $0x30] sm:$0xff]  ;;  %v11223_v39 = vor.u32 %v14982_v27, %v11222_v13 }
  0xc4   : > { %811 = vst [vmem:[#allocation2 + $0x118] sm:$0xff] %v765_v59  ;;  %v14948_v21 = vld [vmem:[#allocation7 + $0xd94] sm:$0xf0]  ;;  %v11150_v25 = vld [vmem:[#allocation7 + $0xe10] sm:$0xf]  ;;  %2941 = vmatpush.bf16.msrb.mxu1 %v11167_v47  ;;  %2960 = vmatpush.bf16.msrb.mxu2 %v11231_v29  ;;  %v10331_v56 = vor.u32 %v14757_v18, %v10328_v2  ;;  %v18605_v46 = vunpack.c.h.b16 %v16739_v54  ;;  %v730_v13 = vrot.slane %v16748_v6, 5 }
  0xc5   : > { %675 = vst [vmem:[#allocation2 + $0x114] sm:$0xf] %v612_v48  ;;  %v14964_v9 = vld [vmem:[#allocation7 + $0xe14] sm:$0xf0]  ;;  %v11214_v14 = vld [vmem:[#allocation7 + $0xe90] sm:$0xf]  ;;  %2979 = vmatpush.bf16.msrb.mxu3 %v10339_v20  ;;  %v16766_v63 = vpack.c.b16 %v1425_v42, %v18604_v10  ;;  %v11087_v47 = vor.u32 %v14948_v21, %v11086_v7  ;;  %2923 = vmatpush.bf16.msrb.mxu0 %v11095_v57 }
  0xc6   : > { %v14980_v31 = vld [vmem:[#allocation7 + $0xe94] sm:$0xf0]  ;;  %v14755_v22 = vld [vmem:[#allocation7 + $0x794] sm:$0xf]  ;;  %v10320_v23 = vld [vmem:[#allocation7 + $0x798] sm:$0xf0]  ;;  %v16770_v1 = vpack.c.b16 %v1426_v16, %v18605_v46  ;;  %v11151_v27 = vor.u32 %v14964_v9, %v11150_v25 }
  0xc7   : > { %v16755_v59 = vld [vmem:[#allocation7 + $0xd80] sm:$0xf]  ;;  %v16757_v55 = vld [vmem:[#allocation7 + $0xd84] sm:$0xf0]  ;;  %v16760_v48 = vld [vmem:[%s16170_s1 + $0x44] sm:$0xff]  ;;  %v11215_v18 = vor.u32 %v14980_v31, %v11214_v14  ;;  %v10323_v2 = vor.u32 %v14755_v22, %v10320_v23  ;;  %v739_v25 = vrot.slane %v730_v13, 4 }
  0xc8   : > { %v16772_v29 = vld [vmem:[#allocation7 + $0xe00] sm:$0xf]  ;;  %v16774_v20 = vld [vmem:[#allocation7 + $0xe04] sm:$0xf0]  ;;  %2942 = vmatpush.bf16.msrb.mxu1 %v11159_v43  ;;  %2961 = vmatpush.bf16.msrb.mxu2 %v11223_v39  ;;  %v11079_v16 = vor.u32 %v16757_v55, %v16755_v59  ;;  %v16784_v6 = vld [vmem:[#allocation7 + $0x784] sm:$0xf] }
  0xc9   : > { %v16762_v17 = vld [vmem:[#allocation2 + $0xd4] sm:$0xff]  ;;  %2980 = vmatpush.bf16.msrb.mxu3 %v10331_v56  ;;  %v16780_v7 = vld [vmem:[#allocation7 + $0xe80] sm:$0xf]  ;;  %v16782_v21 = vld [vmem:[#allocation7 + $0xe84] sm:$0xf0]  ;;  %v740_v31 = vrot.slane %v686_v24, 5  ;;  %v11143_v39 = vor.u32 %v16774_v20, %v16772_v29  ;;  %2924 = vmatpush.bf16.msrb.mxu0 %v11087_v47 }
  0xca   : > { %18603 = vst [vmem:[#allocation45_spill] sm:$0xff] %v16762_v17  ;;  %v680_v57 = vld [vmem:[%s16170_s1 + $0x8] sm:$0xee]  ;;  %v681_v22 = vld [vmem:[%s16170_s1 + $0x10] sm:$0xe]  ;;  %v18609_v20 = vunpack.c.h.b16 %v16762_v17 }
  0xcb   : > { %v10312_v43 = vld [vmem:[#allocation7 + $0x788] sm:$0xf0]  ;;  %v10306_v9 = vrot.slane %v680_v57, 9  ;;  %v16795_v59 = vsel %vm16634_vm5, %v739_v25, %v740_v31  ;;  %v748_v10 = vrot.slane %v740_v31, 4  ;;  %v16799_v42 = vld [vmem:[%s16170_s1 + $0x4c] sm:$0xf] }
  0xcc   : > { %v684_v14 = vld [vmem:[%s16170_s1 + $0x24] sm:$0xf]  ;;  %v687_v46 = vld [vmem:[%s16170_s1 + $0x38] sm:$0xf]  ;;  %v10307_v24 = vrot.slane %v681_v22, 9  ;;  %2943 = vmatpush.bf16.msrb.mxu1 %v11151_v27  ;;  %2962 = vmatpush.bf16.msrb.mxu2 %v11215_v18  ;;  %v18606_v25 = vrot.slane %v16760_v48, 5 }
  0xcd   : > { %v1093_v56 = vld [vmem:[#allocation2 + $0x110] sm:$0xff]  ;;  %v734_v54 = vrot.slane %v684_v14, 5  ;;  %v731_v29 = vsel %vm16634_vm5, %v10306_v9, %v730_v13  ;;  %v14783_v57 = vld [vmem:[#allocation7 + $0x874] sm:$0xf]  ;;  %v10432_v55 = vld [vmem:[#allocation7 + $0x878] sm:$0xf0]  ;;  %2981 = vmatpush.bf16.msrb.mxu3 %v10323_v2  ;;  %v18608_v13 = vunpack.c.l.b16 %v16762_v17  ;;  %v11207_v2 = vor.u32 %v16782_v21, %v16780_v7  ;;  %2925 = vmatpush.bf16.msrb.mxu0 %v11079_v16 }
  0xce   : > { %v1423_v23 = vunpack.c.l.b16 %v1093_v56  ;;  %v1424_v35 = vunpack.c.h.b16 %v1093_v56  ;;  %v16808_v31 = vsel %vm16634_vm5, %v748_v10, %v18606_v25  ;;  %v3280_v22 = vunpack.c.l.b16 %v731_v29  ;;  %v14799_v27 = vld [vmem:[#allocation7 + $0x8f4] sm:$0xf]  ;;  %v10496_v56 = vld [vmem:[#allocation7 + $0x8f8] sm:$0xf0]  ;;  %2893 = vmatmul.bf16.gmra.mxu2 %v16766_v63  ;;  %v10552_v60 = vld [vmem:[#allocation7 + $0x968] sm:$0xf0] }
  0xcf   : > { %18607 = vst [vmem:[#allocation46_spill] sm:$0xff] %v16808_v31  ;;  %v3281_v47 = vunpack.c.h.b16 %v731_v29  ;;  %v10315_v10 = vor.u32 %v16784_v6, %v10312_v43  ;;  %v14815_v25 = vld [vmem:[#allocation7 + $0x974] sm:$0xf]  ;;  %v10560_v14 = vld [vmem:[#allocation7 + $0x978] sm:$0xf0]  ;;  %2912 = vmatmul.bf16.gmra.mxu3 %v16770_v1  ;;  %v735_v7 = vsel %vm16634_vm5, %v10307_v24, %v734_v54  ;;  %v742_v21 = vrot.slane %v734_v54, 4 }
  0xd0   : > { %v16813_v9 = vpack.c.b16 %v1423_v23, %v18608_v13  ;;  %v16817_v18 = vpack.c.b16 %v1424_v35, %v18609_v20  ;;  %806 = vst [vmem:[#allocation2 + $0xa8] sm:$0xff] %v16808_v31  ;;  %v18610_v23 = vunpack.c.l.b16 %v16795_v59  ;;  %v18612_v35 = vunpack.c.h.b16 %v16795_v59  ;;  %v14831_v6 = vld [vmem:[#allocation7 + $0x9f4] sm:$0xf]  ;;  %v10624_v43 = vld [vmem:[#allocation7 + $0x9f8] sm:$0xf0]  ;;  %2944 = vmatpush.bf16.msrb.mxu1 %v11143_v39  ;;  %2963 = vmatpush.bf16.msrb.mxu2 %v11207_v2 }
  0xd1   : > { %v743_v13 = vrot.slane %v687_v46, 5  ;;  %v752_v17 = vrot.slane %v16799_v42, 5  ;;  %801 = vst [vmem:[#allocation2 + $0x38] sm:$0xf] %v735_v7  ;;  %v10488_v24 = vld [vmem:[#allocation7 + $0x8e8] sm:$0xf0]  ;;  %2982 = vmatpush.bf16.msrb.mxu3 %v10315_v10  ;;  %v10627_v50 = vor.u32 %v14831_v6, %v10624_v43 }
  0xd2   : > { %v16827_v29 = vpack.c.b16 %v18610_v23, %v3280_v22  ;;  %v16831_v20 = vpack.c.b16 %v18612_v35, %v3281_v47  ;;  %2855 = vmatmul.bf16.gmra.mxu0 %v16813_v9  ;;  %2874 = vmatmul.bf16.gmra.mxu1 %v16817_v18  ;;  %v14781_v22 = vld [vmem:[#allocation7 + $0x864] sm:$0xf]  ;;  %v10435_v23 = vor.u32 %v14783_v57, %v10432_v55  ;;  %v10616_v57 = vld [vmem:[#allocation7 + $0x9e8] sm:$0xf0]  ;;  %v14779_v2 = vld [vmem:[#allocation7 + $0x854] sm:$0xf] }
  0xd3   : > { %v10499_v47 = vor.u32 %v14799_v27, %v10496_v56  ;;  %v10563_v35 = vor.u32 %v14815_v25, %v10560_v14  ;;  %v744_v54 = vsel %vm16634_vm5, %v742_v21, %v743_v13  ;;  %v751_v5 = vrot.slane %v743_v13, 4  ;;  %v14813_v46 = vld [vmem:[#allocation7 + $0x964] sm:$0xf]  ;;  %v10416_v10 = vld [vmem:[#allocation7 + $0x858] sm:$0xf0] }
  0xd4   : > { %18611 = vst [vmem:[#allocation47_spill] sm:$0xff] %v16827_v29  ;;  %v10424_v29 = vld [vmem:[#allocation7 + $0x868] sm:$0xf0]  ;;  %2994 = vmatpush.bf16.msra.mxu0 %v10435_v23  ;;  %v14829_v55 = vld [vmem:[#allocation7 + $0x9e4] sm:$0xf]  ;;  %v10555_v27 = vor.u32 %v14813_v46, %v10552_v60  ;;  %v10419_v13 = vor.u32 %v14779_v2, %v10416_v10  ;;  %v18531_v23 = vunpack.c.h.b16 %v16808_v31 }
  0xd5   : > { %18613 = vst [vmem:[#allocation48_spill] sm:$0xff] %v16831_v20  ;;  %v14797_v20 = vld [vmem:[#allocation7 + $0x8e4] sm:$0xf]  ;;  %3013 = vmatpush.bf16.msra.mxu1 %v10499_v47  ;;  %v10427_v16 = vor.u32 %v14781_v22, %v10424_v29  ;;  %v753_v14 = vsel %vm16634_vm5, %v751_v5, %v752_v17  ;;  %3032 = vmatpush.bf16.msra.mxu2 %v10563_v35  ;;  %v14795_v25 = vld [vmem:[#allocation7 + $0x8d4] sm:$0xf]  ;;  %v18530_v29 = vunpack.c.l.b16 %v16808_v31 }
  0xd6   : > { %804 = vst [vmem:[#allocation2 + $0x74] sm:$0xf] %v744_v54  ;;  %v10491_v39 = vor.u32 %v14797_v20, %v10488_v24  ;;  %3051 = vmatpush.bf16.msra.mxu3 %v10627_v50  ;;  %v10619_v56 = vor.u32 %v14829_v55, %v10616_v57  ;;  %v10480_v7 = vld [vmem:[#allocation7 + $0x8d8] sm:$0xf0]  ;;  %v14811_v21 = vld [vmem:[#allocation7 + $0x954] sm:$0xf] }
  0xd7   : > { %807 = vst [vmem:[#allocation2 + $0xb0] sm:$0xf] %v753_v14  ;;  %v10544_v20 = vld [vmem:[#allocation7 + $0x958] sm:$0xf0]  ;;  %v14827_v6 = vld [vmem:[#allocation7 + $0x9d4] sm:$0xf]  ;;  %v10483_v5 = vor.u32 %v14795_v25, %v10480_v7 }
  0xd8   : > { %v10608_v43 = vld [vmem:[#allocation7 + $0x9d8] sm:$0xf0]  ;;  %2995 = vmatpush.bf16.msra.mxu0 %v10427_v16  ;;  %v14777_v22 = vld [vmem:[#allocation7 + $0x844] sm:$0xf]  ;;  %v10408_v50 = vld [vmem:[#allocation7 + $0x848] sm:$0xf0]  ;;  %v10547_v47 = vor.u32 %v14811_v21, %v10544_v20 }
  0xd9   : > { %3014 = vmatpush.bf16.msra.mxu1 %v10491_v39  ;;  %v692_v60 = vld [vmem:[%s16170_s1 + $0x58] sm:$0xff]  ;;  %3033 = vmatpush.bf16.msra.mxu2 %v10555_v27  ;;  %v10611_v35 = vor.u32 %v14827_v6, %v10608_v43  ;;  %v18614_v39 = vunpack.c.l.b16 %v16795_v59  ;;  %v10411_v10 = vor.u32 %v14777_v22, %v10408_v50  ;;  %v18616_v27 = vrot.slane %v16760_v48, 5  ;;  %v693_v7 = vld [vmem:[%s16170_s1 + $0x60] sm:$0xf]  ;;  %v16861_v6 = vld [vmem:[%s16170_s1 + $0x74] sm:$0xf] }
  0xda   : > { %3052 = vmatpush.bf16.msra.mxu3 %v10619_v56  ;;  %v14793_v24 = vld [vmem:[#allocation7 + $0x8c4] sm:$0xf]  ;;  %v10472_v54 = vld [vmem:[#allocation7 + $0x8c8] sm:$0xf0]  ;;  %v758_v25 = vrot.slane %v692_v60, 5  ;;  %v18532_v20 = vrot.slane %v16559_v53, 5 }
  0xdb   : > { %v14809_v46 = vld [vmem:[#allocation7 + $0x944] sm:$0xf]  ;;  %v10536_v55 = vld [vmem:[#allocation7 + $0x948] sm:$0xf0]  ;;  %v16851_v14 = vpack.c.b16 %v18530_v29, %v18614_v39  ;;  %v757_v56 = vrot.slane %v18616_v27, 4  ;;  %18617 = vst [vmem:[#allocation50_spill] sm:$0xff] %v16861_v6  ;;  %v18618_v29 = vunpack.c.h.b16 %v16795_v59  ;;  %v10475_v60 = vor.u32 %v14793_v24, %v10472_v54 }
  0xdc   : > { %v14825_v57 = vld [vmem:[#allocation7 + $0x9c4] sm:$0xf]  ;;  %v10600_v16 = vld [vmem:[#allocation7 + $0x9c8] sm:$0xf0]  ;;  %2996 = vmatpush.bf16.msra.mxu0 %v10419_v13  ;;  %v760_v43 = vrot.slane %v752_v17, 4  ;;  %v761_v39 = vrot.slane %v693_v7, 5  ;;  %v10539_v59 = vor.u32 %v14809_v46, %v10536_v55 }
  0xdd   : > { %v16853_v2 = vld [vmem:[#allocation2 + $0x74] sm:$0xf]  ;;  %3015 = vmatpush.bf16.msra.mxu1 %v10483_v5  ;;  %v16869_v48 = vpack.c.b16 %v18531_v23, %v18618_v29  ;;  %3034 = vmatpush.bf16.msra.mxu2 %v10547_v47  ;;  %v16875_v13 = vsel %vm16634_vm5, %v757_v56, %v758_v25  ;;  %v766_v5 = vrot.slane %v758_v25, 4  ;;  %v18535_v50 = vrot.slane %v16861_v6, 5  ;;  %v14775_v42 = vld [vmem:[#allocation7 + $0x834] sm:$0xf] }
  0xde   : > { %18615 = vst [vmem:[#allocation49_spill] sm:$0xff] %v16853_v2  ;;  %v18534_v21 = vunpack.c.l.b16 %v16853_v2  ;;  %v16871_v22 = vld [vmem:[#allocation2 + $0xb0] sm:$0xf]  ;;  %3053 = vmatpush.bf16.msra.mxu3 %v10611_v35  ;;  %v10400_v29 = vld [vmem:[#allocation7 + $0x838] sm:$0xf0]  ;;  %v10603_v7 = vor.u32 %v14825_v57, %v10600_v16  ;;  %v762_v35 = vsel %vm16634_vm5, %v760_v43, %v761_v39  ;;  %v769_v56 = vrot.slane %v761_v39, 4 }
  0xdf   : > { %18619 = vst [vmem:[#allocation51_spill] sm:$0xff] %v16871_v22  ;;  %v18533_v17 = vunpack.c.l.b16 %v16871_v22  ;;  %v14791_v27 = vld [vmem:[#allocation7 + $0x8b4] sm:$0xf]  ;;  %v16884_v47 = vsel %vm16634_vm5, %v766_v5, %v18532_v20  ;;  %v10464_v25 = vld [vmem:[#allocation7 + $0x8b8] sm:$0xf0]  ;;  %2983 = vmatmul.bf16.vlgmr.msrb.gmra.mxu3 %v16230_v62  ;;  %v10403_v54 = vor.u32 %v14775_v42, %v10400_v29  ;;  %v18622_v31 = vunpack.c.l.b16 %v16875_v13 }
  0xe0   : > { %18620 = vst [vmem:[#allocation52_spill] sm:$0xff] %v16875_v13  ;;  %v14807_v23 = vld [vmem:[#allocation7 + $0x934] sm:$0xf]  ;;  %2997 = vmatpush.bf16.msra.mxu0 %v10411_v10  ;;  %v10528_v46 = vld [vmem:[#allocation7 + $0x938] sm:$0xf0]  ;;  %v771_v57 = vsel %vm16634_vm5, %v769_v56, %v18535_v50  ;;  %v10467_v62 = vor.u32 %v14791_v27, %v10464_v25 }
  0xe1   : > { %809 = vst [vmem:[#allocation2 + $0xe4] sm:$0xff] %v16875_v13  ;;  %v16892_v24 = vpack.c.b16 %v18533_v17, %v18534_v21  ;;  %v14823_v55 = vld [vmem:[#allocation7 + $0x9b4] sm:$0xf]  ;;  %v10592_v16 = vld [vmem:[#allocation7 + $0x9b8] sm:$0xf0]  ;;  %3016 = vmatpush.bf16.msra.mxu1 %v10475_v60  ;;  %3035 = vmatpush.bf16.msra.mxu2 %v10539_v59  ;;  %v10531_v39 = vor.u32 %v14807_v23, %v10528_v46 }
  0xe2   : > { %812 = vst [vmem:[#allocation2 + $0x120] sm:$0xff] %v16884_v47  ;;  %2926 = vmatmul.bf16.vlgmr.msrb.gmra.mxu0 %v16851_v14  ;;  %2945 = vmatmul.bf16.vlgmr.msrb.gmra.mxu1 %v16869_v48  ;;  %v14773_v43 = vld [vmem:[#allocation7 + $0x824] sm:$0xf]  ;;  %v10392_v10 = vld [vmem:[#allocation7 + $0x828] sm:$0xf0]  ;;  %v10595_v5 = vor.u32 %v14823_v55, %v10592_v16 }
  0xe3   : > { %810 = vst [vmem:[#allocation2 + $0xec] sm:$0xf] %v762_v35  ;;  %2964 = vmatmul.bf16.vlgmr.msrb.gmra.mxu2 %v16892_v24  ;;  %3054 = vmatpush.bf16.msra.mxu3 %v10603_v7  ;;  %v14789_v42 = vld [vmem:[#allocation7 + $0x8a4] sm:$0xf]  ;;  %v10456_v29 = vld [vmem:[#allocation7 + $0x8a8] sm:$0xf0]  ;;  %v10395_v17 = vor.u32 %v14773_v43, %v10392_v10  ;;  %v1427_v43 = vunpack.c.l.b16 %v16884_v47  ;;  %v1428_v10 = vunpack.c.h.b16 %v16884_v47 }
  0xe4   : > { %813 = vst [vmem:[#allocation2 + $0x128] sm:$0xf] %v771_v57  ;;  %v14805_v20 = vld [vmem:[#allocation7 + $0x924] sm:$0xf]  ;;  %2998 = vmatpush.bf16.msra.mxu0 %v10403_v54  ;;  %v10520_v21 = vld [vmem:[#allocation7 + $0x928] sm:$0xf0]  ;;  %v10459_v53 = vor.u32 %v14789_v42, %v10456_v29 }
  0xe5   : > { %v14821_v56 = vld [vmem:[#allocation7 + $0x9a4] sm:$0xf]  ;;  %v10584_v35 = vld [vmem:[#allocation7 + $0x9a8] sm:$0xf0]  ;;  %v14771_v50 = vld [vmem:[#allocation7 + $0x814] sm:$0xf]  ;;  %3017 = vmatpush.bf16.msra.mxu1 %v10467_v62  ;;  %3036 = vmatpush.bf16.msra.mxu2 %v10531_v39  ;;  %v10523_v27 = vor.u32 %v14805_v20, %v10520_v21 }
  0xe6   : > { %v10384_v6 = vld [vmem:[#allocation7 + $0x818] sm:$0xf0]  ;;  %v14787_v60 = vld [vmem:[#allocation7 + $0x894] sm:$0xf]  ;;  %v10587_v59 = vor.u32 %v14821_v56, %v10584_v35  ;;  %v14769_v21 = vld [vmem:[#allocation7 + $0x804] sm:$0xf] }
  0xe7   : > { %3055 = vmatpush.bf16.msra.mxu3 %v10595_v5  ;;  %v10448_v7 = vld [vmem:[#allocation7 + $0x898] sm:$0xf0]  ;;  %v14803_v23 = vld [vmem:[#allocation7 + $0x914] sm:$0xf]  ;;  %v10387_v54 = vor.u32 %v14771_v50, %v10384_v6  ;;  %v10376_v20 = vld [vmem:[#allocation7 + $0x808] sm:$0xf0]  ;;  %v16912_v5 = vpack.c.b16 %v1427_v43, %v18622_v31 }
  0xe8   : > { %v10512_v25 = vld [vmem:[#allocation7 + $0x918] sm:$0xf0]  ;;  %2999 = vmatpush.bf16.msra.mxu0 %v10395_v17  ;;  %v14819_v55 = vld [vmem:[#allocation7 + $0x994] sm:$0xf]  ;;  %v10451_v29 = vor.u32 %v14787_v60, %v10448_v7  ;;  %v14785_v17 = vld [vmem:[#allocation7 + $0x884] sm:$0xf]  ;;  %v10379_v62 = vor.u32 %v14769_v21, %v10376_v20 }
  0xe9   : > { %v10576_v57 = vld [vmem:[#allocation7 + $0x998] sm:$0xf0]  ;;  %3018 = vmatpush.bf16.msra.mxu1 %v10459_v53  ;;  %v10440_v6 = vld [vmem:[#allocation7 + $0x888] sm:$0xf0]  ;;  %3037 = vmatpush.bf16.msra.mxu2 %v10523_v27  ;;  %v10515_v50 = vor.u32 %v14803_v23, %v10512_v25  ;;  %v14801_v35 = vld [vmem:[#allocation7 + $0x904] sm:$0xf]  ;;  %v18623_v53 = vunpack.c.h.b16 %v16875_v13 }
  0xea   : > { %v16903_v46 = vld [vmem:[#allocation2 + $0xec] sm:$0xf]  ;;  %v10579_v56 = vor.u32 %v14819_v55, %v10576_v57  ;;  %v10504_v16 = vld [vmem:[#allocation7 + $0x908] sm:$0xf0]  ;;  %v14847_v22 = vld [vmem:[#allocation7 + $0xa74] sm:$0xf] }
  0xeb   : > { %18621 = vst [vmem:[#allocation53_spill] sm:$0xff] %v16903_v46  ;;  %v1096_v39 = vld [vmem:[#allocation2 + $0x128] sm:$0xf]  ;;  %3056 = vmatpush.bf16.msra.mxu3 %v10587_v59  ;;  %v14817_v30 = vld [vmem:[#allocation7 + $0x984] sm:$0xf]  ;;  %v16916_v60 = vpack.c.b16 %v1428_v10, %v18623_v53  ;;  %v18624_v23 = vunpack.c.l.b16 %v16903_v46  ;;  %v10507_v31 = vor.u32 %v14801_v35, %v10504_v16  ;;  %v2699_v10 = vpop.f32.mrf.mxu0 }
  0xec   : > { %v1429_v42 = vunpack.c.l.b16 %v1096_v39  ;;  %3000 = vmatpush.bf16.msra.mxu0 %v10387_v54  ;;  %v10568_v47 = vld [vmem:[#allocation7 + $0x988] sm:$0xf0]  ;;  %v10688_v2 = vld [vmem:[#allocation7 + $0xa78] sm:$0xf0]  ;;  %v14863_v27 = vld [vmem:[#allocation7 + $0xaf4] sm:$0xf]  ;;  %v10443_v54 = vor.u32 %v14785_v17, %v10440_v6 }
  0xed   : > { %v10752_v59 = vld [vmem:[#allocation7 + $0xaf8] sm:$0xf0]  ;;  %v14879_v7 = vld [vmem:[#allocation7 + $0xb74] sm:$0xf]  ;;  %3019 = vmatpush.bf16.msra.mxu1 %v10451_v29  ;;  %3038 = vmatpush.bf16.msra.mxu2 %v10515_v50  ;;  %v10571_v43 = vor.u32 %v14817_v30, %v10568_v47  ;;  %v10691_v21 = vor.u32 %v14847_v22, %v10688_v2  ;;  %v14845_v53 = vld [vmem:[#allocation7 + $0xa64] sm:$0xf] }
  0xee   : > { %v16920_v25 = vpack.c.b16 %v1429_v42, %v18624_v23  ;;  %v10816_v55 = vld [vmem:[#allocation7 + $0xb78] sm:$0xf0]  ;;  %v14895_v57 = vld [vmem:[#allocation7 + $0xbf4] sm:$0xf]  ;;  %v10755_v20 = vor.u32 %v14863_v27, %v10752_v59  ;;  %v10680_v13 = vld [vmem:[#allocation7 + $0xa68] sm:$0xf0]  ;;  %v2718_v42 = vpop.f32.mrf.mxu1 }
  0xef   : > { %v10880_v39 = vld [vmem:[#allocation7 + $0xbf8] sm:$0xf0]  ;;  %3057 = vmatpush.bf16.msra.mxu3 %v10579_v56  ;;  %v10819_v29 = vor.u32 %v14879_v7, %v10816_v55  ;;  %v14861_v6 = vld [vmem:[#allocation7 + $0xae4] sm:$0xf]  ;;  %v10744_v50 = vld [vmem:[#allocation7 + $0xae8] sm:$0xf0]  ;;  %v2719_v30 = vadd.f32 %v2718_v42, %v2699_v10  ;;  %v10683_v22 = vor.u32 %v14845_v53, %v10680_v13 }
  0xf0   : > { %2988 = vmatmul.bf16.gmra.mxu3 %v16340_v37  ;;  %3001 = vmatpush.bf16.msra.mxu0 %v10379_v62  ;;  %v10883_v17 = vor.u32 %v14895_v57, %v10880_v39  ;;  %v14877_v56 = vld [vmem:[#allocation7 + $0xb64] sm:$0xf]  ;;  %v10808_v37 = vld [vmem:[#allocation7 + $0xb68] sm:$0xf0]  ;;  %v10747_v62 = vor.u32 %v14861_v6, %v10744_v50  ;;  %v14843_v35 = vld [vmem:[#allocation7 + $0xa54] sm:$0xf] }
  0xf1   : > { %3020 = vmatpush.bf16.msra.mxu1 %v10443_v54  ;;  %v14893_v16 = vld [vmem:[#allocation7 + $0xbe4] sm:$0xf]  ;;  %v10872_v2 = vld [vmem:[#allocation7 + $0xbe8] sm:$0xf0]  ;;  %3039 = vmatpush.bf16.msra.mxu2 %v10507_v31  ;;  %v10672_v47 = vld [vmem:[#allocation7 + $0xa58] sm:$0xf0]  ;;  %v10811_v27 = vor.u32 %v14877_v56, %v10808_v37 }
  0xf2   : > { %2931 = vmatmul.bf16.gmra.mxu0 %v16912_v5  ;;  %2950 = vmatmul.bf16.gmra.mxu1 %v16916_v60  ;;  %v10875_v59 = vor.u32 %v14893_v16, %v10872_v2  ;;  %v14859_v7 = vld [vmem:[#allocation7 + $0xad4] sm:$0xf]  ;;  %v10736_v23 = vld [vmem:[#allocation7 + $0xad8] sm:$0xf0]  ;;  %v10675_v13 = vor.u32 %v14843_v35, %v10672_v47  ;;  %v10664_v6 = vld [vmem:[#allocation7 + $0xa48] sm:$0xf0] }
  0xf3   : > { %2969 = vmatmul.bf16.gmra.mxu2 %v16920_v25  ;;  %3058 = vmatpush.bf16.msra.mxu3 %v10571_v43  ;;  %v14875_v55 = vld [vmem:[#allocation7 + $0xb54] sm:$0xf]  ;;  %v10800_v57 = vld [vmem:[#allocation7 + $0xb58] sm:$0xf0]  ;;  %v2737_v10 = vpop.f32.mrf.mxu2  ;;  %v16926_v31 = vpop.f32.mrf.mxu0  ;;  %v14857_v56 = vld [vmem:[#allocation7 + $0xac4] sm:$0xf] }
  0xf4   : > { %3070 = vmatpush.bf16.msrb.mxu0 %v10691_v21  ;;  %v14891_v54 = vld [vmem:[#allocation7 + $0xbd4] sm:$0xf]  ;;  %v10864_v39 = vld [vmem:[#allocation7 + $0xbd8] sm:$0xf0]  ;;  %v2738_v42 = vadd.f32 %v2737_v10, %v2719_v30  ;;  %v2756_v43 = vpop.f32.mrf.mxu3  ;;  %v10739_v21 = vor.u32 %v14859_v7, %v10736_v23  ;;  %v10803_v53 = vor.u32 %v14875_v55, %v10800_v57  ;;  %v10728_v37 = vld [vmem:[#allocation7 + $0xac8] sm:$0xf0] }
  0xf5   : > { %3089 = vmatpush.bf16.msrb.mxu1 %v10755_v20  ;;  %3108 = vmatpush.bf16.msrb.mxu2 %v10819_v29  ;;  %v10867_v29 = vor.u32 %v14891_v54, %v10864_v39  ;;  %v14873_v30 = vld [vmem:[#allocation7 + $0xb44] sm:$0xf]  ;;  %v10792_v2 = vld [vmem:[#allocation7 + $0xb48] sm:$0xf0]  ;;  %v14839_v35 = vld [vmem:[#allocation7 + $0xa34] sm:$0xf] }
  0xf6   : > { %v16928_v20 = vpop.f32.mrf.mxu1  ;;  %v16930_v50 = vadd.f32 %v2756_v43, %v2738_v42  ;;  %v10656_v47 = vld [vmem:[#allocation7 + $0xa38] sm:$0xf0]  ;;  %v10795_v7 = vor.u32 %v14873_v30, %v10792_v2  ;;  %v14855_v55 = vld [vmem:[#allocation7 + $0xab4] sm:$0xf]  ;;  %v14853_v30 = vld [vmem:[#allocation7 + $0xaa4] sm:$0xf] }
  0xf7   : > { %3127 = vmatpush.bf16.msrb.mxu3 %v10883_v17  ;;  %v14841_v17 = vld [vmem:[#allocation7 + $0xa44] sm:$0xf]  ;;  %v10720_v57 = vld [vmem:[#allocation7 + $0xab8] sm:$0xf0]  ;;  %v14871_v54 = vld [vmem:[#allocation7 + $0xb34] sm:$0xf]  ;;  %v10659_v42 = vor.u32 %v14839_v35, %v10656_v47 }
  0xf8   : > { %3071 = vmatpush.bf16.msrb.mxu0 %v10683_v22  ;;  %v10667_v16 = vor.u32 %v14841_v17, %v10664_v6  ;;  %v14889_v22 = vld [vmem:[#allocation7 + $0xbc4] sm:$0xf]  ;;  %v10784_v43 = vld [vmem:[#allocation7 + $0xb38] sm:$0xf0]  ;;  %v10648_v17 = vld [vmem:[#allocation7 + $0xa28] sm:$0xf0] }
  0xf9   : > { %3090 = vmatpush.bf16.msrb.mxu1 %v10747_v62  ;;  %3109 = vmatpush.bf16.msrb.mxu2 %v10811_v27  ;;  %v10856_v62 = vld [vmem:[#allocation7 + $0xbc8] sm:$0xf0]  ;;  %v10731_v27 = vor.u32 %v14857_v56, %v10728_v37  ;;  %v10787_v56 = vor.u32 %v14871_v54, %v10784_v43  ;;  %v14869_v2 = vld [vmem:[#allocation7 + $0xb24] sm:$0xf]  ;;  %v14835_v35 = vld [vmem:[#allocation7 + $0xa14] sm:$0xf] }
  0xfa   : > { %v10859_v23 = vor.u32 %v14889_v22, %v10856_v62  ;;  %v14885_v62 = vld [vmem:[#allocation7 + $0xba4] sm:$0xf]  ;;  %v10640_v47 = vld [vmem:[#allocation7 + $0xa18] sm:$0xf0]  ;;  %v14959_v44 = vld [vmem:[#allocation7 + $0xdf4] sm:$0xf] }
  0xfb   : > { %3128 = vmatpush.bf16.msrb.mxu3 %v10875_v59  ;;  %v16932_v59 = vpop.f32.mrf.mxu2  ;;  %v2704_v39 = vpop.f32.mrf.mxu0  ;;  %v10768_v43 = vld [vmem:[#allocation7 + $0xb18] sm:$0xf0]  ;;  %vm7476_vm7 = vsmask.f32 7950  ;;  %vm7479_vm10 = vsmask.f32 7966 }
  0xfc   : > { %3072 = vmatpush.bf16.msrb.mxu0 %v10675_v13  ;;  %v16935_v10 = vpop.f32.mrf.mxu3  ;;  %v14887_v13 = vld [vmem:[#allocation7 + $0xbb4] sm:$0xf]  ;;  %v11136_v52 = vld [vmem:[#allocation7 + $0xdf8] sm:$0xf0]  ;;  %vm7426_vm12 = vsmask.f32 7938  ;;  %vm17798_vm15 = vmand %vm7475_vm6, %vm7476_vm7 }
  0xfd   : > { %3091 = vmatpush.bf16.msrb.mxu1 %v10739_v21  ;;  %3110 = vmatpush.bf16.msrb.mxu2 %v10803_v53  ;;  %v10848_v21 = vld [vmem:[#allocation7 + $0xbb8] sm:$0xf0]  ;;  %vm7429_vm14 = vsmask.f32 7954  ;;  %vm17809_vm1 = vmand %vm7478_vm9, %vm7479_vm10  ;;  %vm7382_vm6 = vsmask.f32 256 }
  0xfe   : > { %v2723_v53 = vpop.f32.mrf.mxu1  ;;  %v10851_v37 = vor.u32 %v14887_v13, %v10848_v21  ;;  %v14883_v13 = vld [vmem:[#allocation7 + $0xb94] sm:$0xf]  ;;  %v10832_v21 = vld [vmem:[#allocation7 + $0xb98] sm:$0xf0]  ;;  %vm17823_vm3 = vmand %vm7425_vm11, %vm7426_vm12  ;;  %vm7383_vm7 = vsmask.f32 4368 }
  0xff   : > { %3129 = vmatpush.bf16.msrb.mxu3 %v10867_v29  ;;  %v14837_v29 = vld [vmem:[#allocation7 + $0xa24] sm:$0xf]  ;;  %v2724_v6 = vadd.f32 %v2723_v53, %v2704_v39  ;;  %vm17834_vm4 = vmand %vm7428_vm13, %vm7429_vm14  ;;  %vm7438_vm10 = vcmask 1040384   ;;  %vm7440_vm14 = vcmask 1044484  }
 0x100   : > { %3059 = vmatmul.bf16.vlgmr.msra.gmra.mxu3 %v16531_v12  ;;  %3073 = vmatpush.bf16.msrb.mxu0 %v10667_v16  ;;  %v10723_v12 = vor.u32 %v14855_v55, %v10720_v57  ;;  %v10712_v16 = vld [vmem:[#allocation7 + $0xaa8] sm:$0xf0]  ;;  %v10651_v22 = vor.u32 %v14837_v29, %v10648_v17  ;;  %v10704_v55 = vld [vmem:[#allocation7 + $0xa98] sm:$0xf0]  ;;  %v14867_v57 = vld [vmem:[#allocation7 + $0xb14] sm:$0xf] }
 0x101   : > { %3092 = vmatpush.bf16.msrb.mxu1 %v10731_v27  ;;  %3111 = vmatpush.bf16.msrb.mxu2 %v10795_v7  ;;  %v10715_v46 = vor.u32 %v14853_v30, %v10712_v16  ;;  %v14833_v53 = vld [vmem:[#allocation7 + $0xa04] sm:$0xf]  ;;  %v10632_v29 = vld [vmem:[#allocation7 + $0xa08] sm:$0xf0]  ;;  %vm7431_vm9 = vmor %vm17834_vm4, %vm17823_vm3 }
 0x102   : > { %3002 = vmatmul.bf16.vlgmr.msra.gmra.mxu0 %v16234_v3  ;;  %3021 = vmatmul.bf16.vlgmr.msra.gmra.mxu1 %v16238_v4  ;;  %v10776_v3 = vld [vmem:[#allocation7 + $0xb28] sm:$0xf0]  ;;  %vm17899_vm12 = vmor %vm7382_vm6, %vm7383_vm7 }
 0x103   : > { %3040 = vmatmul.bf16.vlgmr.msra.gmra.mxu2 %v16242_v8  ;;  %3130 = vmatpush.bf16.msrb.mxu3 %v10859_v23  ;;  %v10840_v4 = vld [vmem:[#allocation7 + $0xba8] sm:$0xf0]  ;;  %v2742_v8 = vpop.f32.mrf.mxu2  ;;  %v10779_v27 = vor.u32 %v14869_v2, %v10776_v3  ;;  %v14851_v23 = vld [vmem:[#allocation7 + $0xa94] sm:$0xf]  ;;  %v16942_v30 = vpop.f32.mrf.mxu0  ;;  %v10835_v2 = vor.u32 %v14883_v13, %v10832_v21  ;;  %vm17956_vm3 = vmand %vm7425_vm11, %vm448_vm0 }
 0x104   : > { %3074 = vmatpush.bf16.msrb.mxu0 %v10659_v42  ;;  %v10843_v7 = vor.u32 %v14885_v62, %v10840_v4  ;;  %v2743_v54 = vadd.f32 %v2742_v8, %v2724_v6  ;;  %v2761_v39 = vpop.f32.mrf.mxu3  ;;  %v10643_v42 = vor.u32 %v14835_v35, %v10640_v47  ;;  %v10771_v6 = vor.u32 %v14867_v57, %v10768_v43  ;;  %v10760_v3 = vld [vmem:[#allocation7 + $0xb08] sm:$0xf0]  ;;  %v14881_v62 = vld [vmem:[#allocation7 + $0xb84] sm:$0xf]  ;;  %v14911_v47 = vld [vmem:[#allocation7 + $0xc74] sm:$0xf] }
 0x105   : > { %3093 = vmatpush.bf16.msrb.mxu1 %v10723_v12  ;;  %3112 = vmatpush.bf16.msrb.mxu2 %v10787_v56  ;;  %v10707_v12 = vor.u32 %v14851_v23, %v10704_v55  ;;  %v14849_v56 = vld [vmem:[#allocation7 + $0xa84] sm:$0xf]  ;;  %v10635_v4 = vor.u32 %v14833_v53, %v10632_v29  ;;  %v10824_v35 = vld [vmem:[#allocation7 + $0xb88] sm:$0xf0]  ;;  %v10944_v8 = vld [vmem:[#allocation7 + $0xc78] sm:$0xf0]  ;;  %v11139_v53 = vor.u32 %v14959_v44, %v11136_v52 }
 0x106   : > { %v16940_v17 = vadd.f32 %v2761_v39, %v2743_v54  ;;  %v16944_v16 = vpop.f32.mrf.mxu1  ;;  %v11008_v23 = vld [vmem:[#allocation7 + $0xcf8] sm:$0xf0]  ;;  %v14943_v55 = vld [vmem:[#allocation7 + $0xd74] sm:$0xf]  ;;  %v10947_v57 = vor.u32 %v14911_v47, %v10944_v8  ;;  %v14909_v43 = vld [vmem:[#allocation7 + $0xc64] sm:$0xf] }
 0x107   : > { %3131 = vmatpush.bf16.msrb.mxu3 %v10851_v37  ;;  %v10696_v37 = vld [vmem:[#allocation7 + $0xa88] sm:$0xf0]  ;;  %v11072_v39 = vld [vmem:[#allocation7 + $0xd78] sm:$0xf0]  ;;  %v14925_v29 = vld [vmem:[#allocation7 + $0xce4] sm:$0xf] }
 0x108   : > { %3075 = vmatpush.bf16.msrb.mxu0 %v10651_v22  ;;  %v14865_v22 = vld [vmem:[#allocation7 + $0xb04] sm:$0xf]  ;;  %v10699_v54 = vor.u32 %v14849_v56, %v10696_v37  ;;  %v10936_v13 = vld [vmem:[#allocation7 + $0xc68] sm:$0xf0]  ;;  %v11075_v21 = vor.u32 %v14943_v55, %v11072_v39  ;;  %v14907_v44 = vld [vmem:[#allocation7 + $0xc54] sm:$0xf] }
 0x109   : > { %3094 = vmatpush.bf16.msrb.mxu1 %v10715_v46  ;;  %3113 = vmatpush.bf16.msrb.mxu2 %v10779_v27  ;;  %v14927_v46 = vld [vmem:[#allocation7 + $0xcf4] sm:$0xf]  ;;  %v10763_v27 = vor.u32 %v14865_v22, %v10760_v3  ;;  %v14941_v56 = vld [vmem:[#allocation7 + $0xd64] sm:$0xf]  ;;  %v11064_v37 = vld [vmem:[#allocation7 + $0xd68] sm:$0xf0] }
 0x10a   : > { %v10928_v52 = vld [vmem:[#allocation7 + $0xc58] sm:$0xf0]  ;;  %v14939_v8 = vld [vmem:[#allocation7 + $0xd54] sm:$0xf]  ;;  %vm17968_vm4 = vmand %vm7438_vm10, %vm7382_vm6 }
 0x10b   : > { %3132 = vmatpush.bf16.msrb.mxu3 %v10843_v7  ;;  %v10827_v7 = vor.u32 %v14881_v62, %v10824_v35  ;;  %v14923_v35 = vld [vmem:[#allocation7 + $0xcd4] sm:$0xf]  ;;  %v10992_v47 = vld [vmem:[#allocation7 + $0xcd8] sm:$0xf0] }
 0x10c   : > { %3076 = vmatpush.bf16.msrb.mxu0 %v10643_v42  ;;  %v11011_v42 = vor.u32 %v14927_v46, %v11008_v23  ;;  %v16952_v22 = vpop.f32.mrf.mxu3  ;;  %v11056_v23 = vld [vmem:[#allocation7 + $0xd58] sm:$0xf0]  ;;  %v14955_v55 = vld [vmem:[#allocation7 + $0xdd4] sm:$0xf] }
 0x10d   : > { %3095 = vmatpush.bf16.msrb.mxu1 %v10707_v12  ;;  %3114 = vmatpush.bf16.msrb.mxu2 %v10771_v6  ;;  %v11000_v12 = vld [vmem:[#allocation7 + $0xce8] sm:$0xf0]  ;;  %v14957_v6 = vld [vmem:[#allocation7 + $0xde4] sm:$0xf] }
 0x10f   : > { %3133 = vmatpush.bf16.msrb.mxu3 %v10835_v2  ;;  %v16950_v2 = vpop.f32.mrf.mxu2 }
 0x110   : > { %3064 = vmatmul.bf16.gmra.mxu3 %v16615_v15  ;;  %3077 = vmatpush.bf16.msrb.mxu0 %v10635_v4  ;;  %v11128_v15 = vld [vmem:[#allocation7 + $0xde8] sm:$0xf0] }
 0x111   : > { %3096 = vmatpush.bf16.msrb.mxu1 %v10699_v54  ;;  %3115 = vmatpush.bf16.msrb.mxu2 %v10763_v27  ;;  %v11131_v4 = vor.u32 %v14957_v6, %v11128_v15  ;;  %v11120_v54 = vld [vmem:[#allocation7 + $0xdd8] sm:$0xf0]  ;;  %v10931_v27 = vor.u32 %v14907_v44, %v10928_v52  ;;  %v14953_v6 = vld [vmem:[#allocation7 + $0xdc4] sm:$0xf]  ;;  %v11112_v15 = vld [vmem:[#allocation7 + $0xdc8] sm:$0xf0] }
 0x112   : > { %3007 = vmatmul.bf16.gmra.mxu0 %v16344_v38  ;;  %3026 = vmatmul.bf16.gmra.mxu1 %v16358_v49  ;;  %v10939_v38 = vor.u32 %v14909_v43, %v10936_v13  ;;  %v11003_v49 = vor.u32 %v14925_v29, %v11000_v12  ;;  %v2775_v3 = vpop.f32.mrf.mxu0  ;;  %v14905_v43 = vld [vmem:[#allocation7 + $0xc44] sm:$0xf]  ;;  %v10920_v13 = vld [vmem:[#allocation7 + $0xc48] sm:$0xf0]  ;;  %v10912_v44 = vld [vmem:[#allocation7 + $0xc38] sm:$0xf0] }
 0x113   : > { %3045 = vmatmul.bf16.gmra.mxu2 %v16362_v51  ;;  %3134 = vmatpush.bf16.msrb.mxu3 %v10827_v7  ;;  %v2794_v62 = vpop.f32.mrf.mxu1  ;;  %v11067_v51 = vor.u32 %v14941_v56, %v11064_v37  ;;  %v2776_v46 = vadd.f32 %v2775_v3, %v16930_v50  ;;  %v10995_v7 = vor.u32 %v14923_v35, %v10992_v47  ;;  %v10984_v29 = vld [vmem:[#allocation7 + $0xcc8] sm:$0xf0]  ;;  %v14937_v50 = vld [vmem:[#allocation7 + $0xd44] sm:$0xf]  ;;  %v10976_v35 = vld [vmem:[#allocation7 + $0xcb8] sm:$0xf0] }
 0x114   : > { %3146 = vmatpush.bf16.msra.mxu0 %v10947_v57  ;;  %v11059_v57 = vor.u32 %v14939_v8, %v11056_v23  ;;  %v10923_v56 = vor.u32 %v14905_v43, %v10920_v13  ;;  %v11048_v37 = vld [vmem:[#allocation7 + $0xd48] sm:$0xf0]  ;;  %v11040_v23 = vld [vmem:[#allocation7 + $0xd38] sm:$0xf0]  ;;  %v14917_v43 = vld [vmem:[#allocation7 + $0xca4] sm:$0xf] }
 0x115   : > { %3165 = vmatpush.bf16.msra.mxu1 %v11011_v42  ;;  %3184 = vmatpush.bf16.msra.mxu2 %v11075_v21  ;;  %v2795_v39 = vadd.f32 %v2794_v62, %v2776_v46  ;;  %v11123_v42 = vor.u32 %v14955_v55, %v11120_v54  ;;  %v2721_v21 = vadd.f32 %v16928_v20, %v16926_v31  ;;  %v14951_v55 = vld [vmem:[#allocation7 + $0xdb4] sm:$0xf]  ;;  %v11104_v54 = vld [vmem:[#allocation7 + $0xdb8] sm:$0xf0]  ;;  %v10968_v13 = vld [vmem:[#allocation7 + $0xca8] sm:$0xf0] }
 0x116   : > { %v11051_v20 = vor.u32 %v14937_v50, %v11048_v37  ;;  %v14899_v50 = vld [vmem:[#allocation7 + $0xc14] sm:$0xf] }
 0x117   : > { %3203 = vmatpush.bf16.msra.mxu3 %v11139_v53  ;;  %v14921_v53 = vld [vmem:[#allocation7 + $0xcc4] sm:$0xf]  ;;  %v2740_v12 = vadd.f32 %v16932_v59, %v2721_v21  ;;  %v14935_v59 = vld [vmem:[#allocation7 + $0xd34] sm:$0xf] }
 0x118   : > { %3147 = vmatpush.bf16.msra.mxu0 %v10939_v38  ;;  %v10987_v3 = vor.u32 %v14921_v53, %v10984_v29  ;;  %v14933_v21 = vld [vmem:[#allocation7 + $0xd24] sm:$0xf]  ;;  %v11032_v53 = vld [vmem:[#allocation7 + $0xd28] sm:$0xf0] }
 0x119   : > { %3166 = vmatpush.bf16.msra.mxu1 %v11003_v49  ;;  %3185 = vmatpush.bf16.msra.mxu2 %v11067_v51  ;;  %v14903_v49 = vld [vmem:[#allocation7 + $0xc34] sm:$0xf]  ;;  %v11115_v51 = vor.u32 %v14953_v6, %v11112_v15  ;;  %v2759_v47 = vadd.f32 %v16935_v10, %v2740_v12  ;;  %v11096_v29 = vld [vmem:[#allocation7 + $0xda8] sm:$0xf0]  ;;  %v10896_v12 = vld [vmem:[#allocation7 + $0xc18] sm:$0xf0]  ;;  %v11035_v15 = vor.u32 %v14933_v21, %v11032_v53 }
 0x11a   : > { %v2777_v38 = vpop.f32.mrf.mxu0  ;;  %v10915_v46 = vor.u32 %v14903_v49, %v10912_v44  ;;  %v14915_v49 = vld [vmem:[#allocation7 + $0xc94] sm:$0xf]  ;;  %v10960_v44 = vld [vmem:[#allocation7 + $0xc98] sm:$0xf0]  ;;  %v11326_v53 = vld [vmem:[#allocation7 + $0x70] sm:$0xf] }
 0x11b   : > { %3204 = vmatpush.bf16.msra.mxu3 %v11131_v4  ;;  %v2796_v52 = vpop.f32.mrf.mxu1  ;;  %v14919_v4 = vld [vmem:[#allocation7 + $0xcb4] sm:$0xf]  ;;  %v11200_v21 = vld [vmem:[#allocation7 + $0xe78] sm:$0xf0] }
 0x11c   : > { %3148 = vmatpush.bf16.msra.mxu0 %v10931_v27  ;;  %v14901_v27 = vld [vmem:[#allocation7 + $0xc24] sm:$0xf]  ;;  %v10979_v10 = vor.u32 %v14919_v4, %v10976_v35  ;;  %v11024_v35 = vld [vmem:[#allocation7 + $0xd18] sm:$0xf0] }
 0x11d   : > { %3167 = vmatpush.bf16.msra.mxu1 %v10995_v7  ;;  %3186 = vmatpush.bf16.msra.mxu2 %v11059_v57  ;;  %v2813_v62 = vpop.f32.mrf.mxu2  ;;  %v10904_v7 = vld [vmem:[#allocation7 + $0xc28] sm:$0xf0]  ;;  %v2778_v57 = vadd.f32 %v2777_v38, %v2759_v47  ;;  %v11088_v47 = vld [vmem:[#allocation7 + $0xd98] sm:$0xf0] }
 0x11e   : > { %v2832_v31 = vpop.f32.mrf.mxu3  ;;  %v2814_v8 = vadd.f32 %v2813_v62, %v2795_v39  ;;  %v11107_v39 = vor.u32 %v14951_v55, %v11104_v54  ;;  %v2726_v62 = vadd.f32 %v16944_v16, %v16942_v30  ;;  %v14913_v30 = vld [vmem:[#allocation7 + $0xc84] sm:$0xf]  ;;  %v10952_v16 = vld [vmem:[#allocation7 + $0xc88] sm:$0xf0] }
 0x11f   : > { %3205 = vmatpush.bf16.msra.mxu3 %v11123_v42 }
 0x120   : > { %3135 = vmatmul.bf16.vlgmr.msrb.gmra.mxu3 %v16720_v40  ;;  %3149 = vmatpush.bf16.msra.mxu0 %v10923_v56  ;;  %v16963_v42 = vadd.f32 %v2832_v31, %v2814_v8  ;;  %v11043_v40 = vor.u32 %v14935_v59, %v11040_v23  ;;  %v10971_v56 = vor.u32 %v14917_v43, %v10968_v13  ;;  %v14947_v59 = vld [vmem:[#allocation7 + $0xd94] sm:$0xf]  ;;  %v14897_v8 = vld [vmem:[#allocation7 + $0xc04] sm:$0xf]  ;;  %v11080_v43 = vld [vmem:[#allocation7 + $0xd88] sm:$0xf0] }
 0x121   : > { %3168 = vmatpush.bf16.msra.mxu1 %v10987_v3  ;;  %3187 = vmatpush.bf16.msra.mxu2 %v11051_v20  ;;  %v14931_v3 = vld [vmem:[#allocation7 + $0xd14] sm:$0xf]  ;;  %v2745_v23 = vadd.f32 %v16950_v2, %v2726_v62 }
 0x122   : > { %3078 = vmatmul.bf16.vlgmr.msrb.gmra.mxu0 %v16537_v19  ;;  %3097 = vmatmul.bf16.vlgmr.msrb.gmra.mxu1 %v16569_v32  ;;  %v10907_v19 = vor.u32 %v14901_v27, %v10904_v7  ;;  %v14949_v32 = vld [vmem:[#allocation7 + $0xda4] sm:$0xf]  ;;  %v10963_v27 = vor.u32 %v14915_v49, %v10960_v44  ;;  %v11091_v7 = vor.u32 %v14947_v59, %v11088_v47  ;;  %v14975_v13 = vld [vmem:[#allocation7 + $0xe74] sm:$0xf]  ;;  %v14542_v59 = vld [vmem:[#allocation7 + $0xe4] sm:$0xf0] }
 0x123   : > { %3116 = vmatmul.bf16.vlgmr.msrb.gmra.mxu2 %v16575_v36  ;;  %3206 = vmatpush.bf16.msra.mxu3 %v11115_v51  ;;  %v2797_v36 = vadd.f32 %v2796_v52, %v2778_v57  ;;  %v11099_v38 = vor.u32 %v14949_v32, %v11096_v29  ;;  %v10899_v52 = vor.u32 %v14899_v50, %v10896_v12  ;;  %v14929_v57 = vld [vmem:[#allocation7 + $0xd04] sm:$0xf]  ;;  %v14991_v2 = vld [vmem:[#allocation7 + $0xef4] sm:$0xf]  ;;  %v14528_v50 = vld [vmem:[#allocation7 + $0x74] sm:$0xf0] }
 0x124   : > { %3150 = vmatpush.bf16.msra.mxu0 %v10915_v46  ;;  %v2799_v51 = vpop.f32.mrf.mxu1  ;;  %v10888_v46 = vld [vmem:[#allocation7 + $0xc08] sm:$0xf0]  ;;  %v2764_v32 = vadd.f32 %v16952_v22, %v2745_v23  ;;  %v10955_v29 = vor.u32 %v14913_v30, %v10952_v16  ;;  %v11390_v12 = vld [vmem:[#allocation7 + $0xf0] sm:$0xf]  ;;  %v14973_v44 = vld [vmem:[#allocation7 + $0xe64] sm:$0xf]  ;;  %v11327_v62 = vor.u32 %v14528_v50, %v11326_v53 }
 0x125   : > { %3169 = vmatpush.bf16.msra.mxu1 %v10979_v10  ;;  %v2815_v37 = vpop.f32.mrf.mxu2  ;;  %v2780_v6 = vpop.f32.mrf.mxu0  ;;  %3188 = vmatpush.bf16.msra.mxu2 %v11043_v40  ;;  %v11016_v10 = vld [vmem:[#allocation7 + $0xd08] sm:$0xf0]  ;;  %v14945_v40 = vld [vmem:[#allocation7 + $0xd84] sm:$0xf]  ;;  %v14971_v23 = vld [vmem:[#allocation7 + $0xe54] sm:$0xf] }
 0x126   : > { %v2816_v31 = vadd.f32 %v2815_v37, %v2797_v36  ;;  %v2781_v20 = vadd.f32 %v2780_v6, %v16940_v17  ;;  %v2834_v4 = vpop.f32.mrf.mxu3  ;;  %v11027_v17 = vor.u32 %v14931_v3, %v11024_v35  ;;  %v14544_v36 = vld [vmem:[#allocation7 + $0xf4] sm:$0xf0]  ;;  %v11019_v37 = vor.u32 %v14929_v57, %v11016_v10  ;;  %v11192_v3 = vld [vmem:[#allocation7 + $0xe68] sm:$0xf0]  ;;  %v11382_v35 = vld [vmem:[#allocation7 + $0xe0] sm:$0xf] }
 0x127   : > { %3207 = vmatpush.bf16.msra.mxu3 %v11107_v39  ;;  %v10891_v39 = vor.u32 %v14897_v8, %v10888_v46  ;;  %v11083_v6 = vor.u32 %v14945_v40, %v11080_v43  ;;  %v14987_v16 = vld [vmem:[#allocation7 + $0xed4] sm:$0xf]  ;;  %v14524_v10 = vld [vmem:[#allocation7 + $0x54] sm:$0xf0]  ;;  %v11374_v40 = vld [vmem:[#allocation7 + $0xd0] sm:$0xf] }
 0x128   : > { %3151 = vmatpush.bf16.msra.mxu0 %v10907_v19  ;;  %v2800_v55 = vadd.f32 %v2799_v51, %v2781_v20  ;;  %v16969_v54 = vadd.f32 %v2834_v4, %v2816_v31  ;;  %v11264_v19 = vld [vmem:[#allocation7 + $0xef8] sm:$0xf0]  ;;  %v11391_v31 = vor.u32 %v14544_v36, %v11390_v12  ;;  %v14989_v20 = vld [vmem:[#allocation7 + $0xee4] sm:$0xf]  ;;  %v11256_v51 = vld [vmem:[#allocation7 + $0xee8] sm:$0xf0] }
 0x129   : > { %3170 = vmatpush.bf16.msra.mxu1 %v10971_v56  ;;  %3189 = vmatpush.bf16.msra.mxu2 %v11035_v15  ;;  %v11267_v49 = vor.u32 %v14991_v2, %v11264_v19  ;;  %v11318_v4 = vld [vmem:[#allocation7 + $0x60] sm:$0xf]  ;;  %v11259_v46 = vor.u32 %v14989_v20, %v11256_v51  ;;  %v14969_v2 = vld [vmem:[#allocation7 + $0xe44] sm:$0xf]  ;;  %v11176_v19 = vld [vmem:[#allocation7 + $0xe48] sm:$0xf0] }
 0x12a   : > { %v11240_v50 = vld [vmem:[#allocation7 + $0xec8] sm:$0xf0]  ;;  %v11302_v12 = vld [vmem:[#allocation7 + $0x40] sm:$0xf] }
 0x12b   : > { %3208 = vmatpush.bf16.msra.mxu3 %v11099_v38  ;;  %v11203_v38 = vor.u32 %v14975_v13, %v11200_v21 }
 0x12c   : > { %3152 = vmatpush.bf16.msra.mxu0 %v10899_v52  ;;  %v2801_v22 = vpop.f32.mrf.mxu1 }
 0x12d   : > { %3171 = vmatpush.bf16.msra.mxu1 %v10963_v27  ;;  %v2782_v56 = vpop.f32.mrf.mxu0  ;;  %3190 = vmatpush.bf16.msra.mxu2 %v11027_v17  ;;  %v11184_v27 = vld [vmem:[#allocation7 + $0xe58] sm:$0xf0] }
 0x12e   : > { %v2783_v15 = vadd.f32 %v2782_v56, %v2764_v32  ;;  %v11248_v17 = vld [vmem:[#allocation7 + $0xed8] sm:$0xf0] }
 0x12f   : > { %3209 = vmatpush.bf16.msra.mxu3 %v11091_v7  ;;  %v11310_v7 = vld [vmem:[#allocation7 + $0x50] sm:$0xf]  ;;  %v11251_v43 = vor.u32 %v14987_v16, %v11248_v17  ;;  %v11224_v16 = vld [vmem:[#allocation7 + $0xea8] sm:$0xf0]  ;;  %v11286_v17 = vld [vmem:[#allocation7 + $0x20] sm:$0xf] }
 0x130   : > { %3140 = vmatmul.bf16.gmra.mxu3 %v16813_v9  ;;  %3153 = vmatpush.bf16.msra.mxu0 %v10891_v39  ;;  %v2802_v52 = vadd.f32 %v2801_v22, %v2783_v15  ;;  %v14526_v9 = vld [vmem:[#allocation7 + $0x64] sm:$0xf0]  ;;  %v14540_v39 = vld [vmem:[#allocation7 + $0xd4] sm:$0xf0]  ;;  %v11311_v13 = vor.u32 %v14524_v10, %v11310_v7  ;;  %v11168_v22 = vld [vmem:[#allocation7 + $0xe38] sm:$0xf0] }
 0x131   : > { %3172 = vmatpush.bf16.msra.mxu1 %v10955_v29  ;;  %v2818_v47 = vpop.f32.mrf.mxu2  ;;  %3191 = vmatpush.bf16.msra.mxu2 %v11019_v37  ;;  %v11319_v30 = vor.u32 %v14526_v9, %v11318_v4  ;;  %v11375_v21 = vor.u32 %v14540_v39, %v11374_v40  ;;  %v14985_v29 = vld [vmem:[#allocation7 + $0xec4] sm:$0xf]  ;;  %v14522_v15 = vld [vmem:[#allocation7 + $0x44] sm:$0xf0]  ;;  %v11232_v9 = vld [vmem:[#allocation7 + $0xeb8] sm:$0xf0] }
 0x132   : > { %3083 = vmatmul.bf16.gmra.mxu0 %v16619_v45  ;;  %3102 = vmatmul.bf16.gmra.mxu1 %v16642_v33  ;;  %v2837_v8 = vpop.f32.mrf.mxu3  ;;  %v2819_v45 = vadd.f32 %v2818_v47, %v2800_v55  ;;  %v11195_v33 = vor.u32 %v14973_v44, %v11192_v3  ;;  %v11187_v55 = vor.u32 %v14971_v23, %v11184_v27  ;;  %v14967_v3 = vld [vmem:[#allocation7 + $0xe34] sm:$0xf]  ;;  %v14520_v47 = vld [vmem:[#allocation7 + $0x34] sm:$0xf0]  ;;  %v14518_v40 = vld [vmem:[#allocation7 + $0x24] sm:$0xf0] }
 0x133   : > { %3121 = vmatmul.bf16.gmra.mxu2 %v16646_v58  ;;  %3210 = vmatpush.bf16.msra.mxu3 %v11083_v6  ;;  %v11383_v58 = vor.u32 %v14542_v59, %v11382_v35  ;;  %v11179_v6 = vor.u32 %v14969_v2, %v11176_v19  ;;  %v11303_v51 = vor.u32 %v14522_v15, %v11302_v12  ;;  %v11294_v35 = vld [vmem:[#allocation7 + $0x30] sm:$0xf]  ;;  %v11350_v39 = vld [vmem:[#allocation7 + $0xa0] sm:$0xf]  ;;  %v11144_v15 = vld [vmem:[#allocation7 + $0xe08] sm:$0xf0] }
 0x134   : > { %3222 = vmatpush.bf16.msrb.mxu0 %v11203_v38  ;;  %v16976_v57 = vadd.f32 %v2837_v8, %v2819_v45  ;;  %v11366_v38 = vld [vmem:[#allocation7 + $0xc0] sm:$0xf]  ;;  %v11171_v59 = vor.u32 %v14967_v3, %v11168_v22  ;;  %v11358_v8 = vld [vmem:[#allocation7 + $0xb0] sm:$0xf]  ;;  %v14965_v45 = vld [vmem:[#allocation7 + $0xe24] sm:$0xf] }
 0x135   : > { %3241 = vmatpush.bf16.msrb.mxu1 %v11267_v49  ;;  %4543 = vmatpush.bf16.msrb.mxu2 %v11327_v62  ;;  %v14538_v49 = vld [vmem:[#allocation7 + $0xc4] sm:$0xf0]  ;;  %v11278_v12 = vld [vmem:[#allocation7 + $0x10] sm:$0xf] }
 0x136   : > { %v11367_v4 = vor.u32 %v14538_v49, %v11366_v38  ;;  %v14977_v49 = vld [vmem:[#allocation7 + $0xe84] sm:$0xf] }
 0x137   : > { %4562 = vmatpush.bf16.msrb.mxu3 %v11391_v31  ;;  %v11243_v31 = vor.u32 %v14985_v29, %v11240_v50  ;;  %v14979_v29 = vld [vmem:[#allocation7 + $0xe94] sm:$0xf]  ;;  %v11216_v50 = vld [vmem:[#allocation7 + $0xe98] sm:$0xf0] }
 0x138   : > { %3223 = vmatpush.bf16.msrb.mxu0 %v11195_v33  ;;  %v11160_v33 = vld [vmem:[#allocation7 + $0xe28] sm:$0xf0]  ;;  %v11219_v38 = vor.u32 %v14979_v29, %v11216_v50 }
 0x139   : > { %3242 = vmatpush.bf16.msrb.mxu1 %v11259_v46  ;;  %4544 = vmatpush.bf16.msrb.mxu2 %v11319_v30  ;;  %v2820_v53 = vpop.f32.mrf.mxu2 }
 0x13a   : > { %v2839_v32 = vpop.f32.mrf.mxu3  ;;  %v2821_v36 = vadd.f32 %v2820_v53, %v2802_v52  ;;  %v14983_v52 = vld [vmem:[#allocation7 + $0xeb4] sm:$0xf]  ;;  %v11287_v53 = vor.u32 %v14518_v40, %v11286_v17  ;;  %v11446_v40 = vld [vmem:[#allocation7 + $0x160] sm:$0xf] }
 0x13b   : > { %4563 = vmatpush.bf16.msrb.mxu3 %v11383_v58  ;;  %v2851_v56 = vpop.f32.mrf.mxu0  ;;  %v11235_v46 = vor.u32 %v14983_v52, %v11232_v9  ;;  %v14981_v58 = vld [vmem:[#allocation7 + $0xea4] sm:$0xf]  ;;  %v11334_v52 = vld [vmem:[#allocation7 + $0x80] sm:$0xf] }
 0x13c   : > { %v2870_v37 = vpop.f32.mrf.mxu1  ;;  %3224 = vmatpush.bf16.msrb.mxu0 %v11187_v55  ;;  %v2852_v44 = vadd.f32 %v2851_v56, %v16963_v42  ;;  %v16979_v62 = vadd.f32 %v2839_v32, %v2821_v36  ;;  %v14536_v42 = vld [vmem:[#allocation7 + $0xb4] sm:$0xf0]  ;;  %v14534_v55 = vld [vmem:[#allocation7 + $0xa4] sm:$0xf0]  ;;  %v11227_v2 = vor.u32 %v14981_v58, %v11224_v16  ;;  %v11646_v58 = vld [vmem:[#allocation7 + $0x2f0] sm:$0xf] }
 0x13d   : > { %3243 = vmatpush.bf16.msrb.mxu1 %v11251_v43  ;;  %4545 = vmatpush.bf16.msrb.mxu2 %v11311_v13  ;;  %v11359_v30 = vor.u32 %v14536_v42, %v11358_v8  ;;  %v14963_v43 = vld [vmem:[#allocation7 + $0xe14] sm:$0xf]  ;;  %v11152_v13 = vld [vmem:[#allocation7 + $0xe18] sm:$0xf0]  ;;  %v11351_v32 = vor.u32 %v14534_v55, %v11350_v39  ;;  %v14516_v56 = vld [vmem:[#allocation7 + $0x14] sm:$0xf0] }
 0x13e   : > { %v2871_v20 = vadd.f32 %v2870_v37, %v2852_v44  ;;  %v11155_v36 = vor.u32 %v14963_v43, %v11152_v13  ;;  %v11342_v37 = vld [vmem:[#allocation7 + $0x90] sm:$0xf]  ;;  %v11208_v44 = vld [vmem:[#allocation7 + $0xe88] sm:$0xf0]  ;;  %v14560_v8 = vld [vmem:[#allocation7 + $0x174] sm:$0xf0] }
 0x13f   : > { %4564 = vmatpush.bf16.msrb.mxu3 %v11375_v21  ;;  %v11518_v42 = vld [vmem:[#allocation7 + $0x1f0] sm:$0xf]  ;;  %v14608_v16 = vld [vmem:[#allocation7 + $0x2f4] sm:$0xf0]  ;;  %v14558_v39 = vld [vmem:[#allocation7 + $0x164] sm:$0xf0] }
 0x140   : > { %3211 = vmatmul.bf16.vlgmr.msra.gmra.mxu3 %v16851_v14  ;;  %3225 = vmatpush.bf16.msrb.mxu0 %v11179_v6  ;;  %v11295_v14 = vor.u32 %v14520_v47, %v11294_v35  ;;  %v14532_v6 = vld [vmem:[#allocation7 + $0x94] sm:$0xf0]  ;;  %v11454_v47 = vld [vmem:[#allocation7 + $0x170] sm:$0xf]  ;;  %v11647_v43 = vor.u32 %v14608_v16, %v11646_v58  ;;  %v11510_v13 = vld [vmem:[#allocation7 + $0x1e0] sm:$0xf] }
 0x141   : > { %3244 = vmatpush.bf16.msrb.mxu1 %v11243_v31  ;;  %v2889_v23 = vpop.f32.mrf.mxu2  ;;  %4546 = vmatpush.bf16.msrb.mxu2 %v11303_v51  ;;  %v11279_v31 = vor.u32 %v14516_v56, %v11278_v12  ;;  %v11270_v51 = vld [vmem:[#allocation7] sm:$0xf]  ;;  %v11438_v12 = vld [vmem:[#allocation7 + $0x150] sm:$0xf]  ;;  %v14552_v16 = vld [vmem:[#allocation7 + $0x134] sm:$0xf0] }
 0x142   : > { %3154 = vmatmul.bf16.vlgmr.msra.gmra.mxu0 %v16726_v26  ;;  %3173 = vmatmul.bf16.vlgmr.msra.gmra.mxu1 %v16696_v61  ;;  %v2908_v27 = vpop.f32.mrf.mxu3  ;;  %v2890_v7 = vadd.f32 %v2889_v23, %v2871_v20  ;;  %v11163_v61 = vor.u32 %v14965_v45, %v11160_v33  ;;  %v11343_v20 = vor.u32 %v14532_v6, %v11342_v37  ;;  %v14576_v45 = vld [vmem:[#allocation7 + $0x1f4] sm:$0xf0]  ;;  %v11582_v33 = vld [vmem:[#allocation7 + $0x270] sm:$0xf] }
 0x143   : > { %3192 = vmatmul.bf16.vlgmr.msra.gmra.mxu2 %v16700_v0  ;;  %4565 = vmatpush.bf16.msrb.mxu3 %v11367_v4  ;;  %v2853_v10 = vpop.f32.mrf.mxu0  ;;  %v14514_v4 = vld [vmem:[#allocation7 + $0x4] sm:$0xf0]  ;;  %v14572_v6 = vld [vmem:[#allocation7 + $0x1d4] sm:$0xf0]  ;;  %v11422_v58 = vld [vmem:[#allocation7 + $0x130] sm:$0xf] }
 0x144   : > { %v2872_v26 = vpop.f32.mrf.mxu1  ;;  %3226 = vmatpush.bf16.msrb.mxu0 %v11171_v59  ;;  %v2854_v0 = vadd.f32 %v2853_v10, %v16969_v54  ;;  %v16986_v21 = vadd.f32 %v2908_v27, %v2890_v7  ;;  %v14961_v54 = vld [vmem:[#allocation7 + $0xe04] sm:$0xf]  ;;  %v14530_v59 = vld [vmem:[#allocation7 + $0x84] sm:$0xf0]  ;;  %v11271_v7 = vor.u32 %v14514_v4, %v11270_v51 }
 0x145   : > { %3245 = vmatpush.bf16.msrb.mxu1 %v11235_v46  ;;  %4547 = vmatpush.bf16.msrb.mxu2 %v11295_v14  ;;  %v11147_v35 = vor.u32 %v14961_v54, %v11144_v15  ;;  %v11211_v14 = vor.u32 %v14977_v49, %v11208_v44  ;;  %v11335_v10 = vor.u32 %v14530_v59, %v11334_v52  ;;  %v11566_v54 = vld [vmem:[#allocation7 + $0x250] sm:$0xf]  ;;  %v14588_v44 = vld [vmem:[#allocation7 + $0x254] sm:$0xf0]  ;;  %v14554_v59 = vld [vmem:[#allocation7 + $0x144] sm:$0xf0] }
 0x146   : > { %v2873_v19 = vadd.f32 %v2872_v26, %v2854_v0  ;;  %v11455_v26 = vor.u32 %v14560_v8, %v11454_v47  ;;  %v11567_v52 = vor.u32 %v14588_v44, %v11566_v54  ;;  %v14548_v54 = vld [vmem:[#allocation7 + $0x114] sm:$0xf0] }
 0x147   : > { %4566 = vmatpush.bf16.msrb.mxu3 %v11359_v30  ;;  %v14592_v30 = vld [vmem:[#allocation7 + $0x274] sm:$0xf0] }
 0x148   : > { %3227 = vmatpush.bf16.msrb.mxu0 %v11163_v61  ;;  %v11519_v61 = vor.u32 %v14576_v45, %v11518_v42  ;;  %v11583_v0 = vor.u32 %v14592_v30, %v11582_v33  ;;  %v11494_v42 = vld [vmem:[#allocation7 + $0x1c0] sm:$0xf]  ;;  %v14570_v45 = vld [vmem:[#allocation7 + $0x1c4] sm:$0xf0] }
 0x149   : > { %3246 = vmatpush.bf16.msrb.mxu1 %v11227_v2  ;;  %v2891_v3 = vpop.f32.mrf.mxu2  ;;  %4548 = vmatpush.bf16.msrb.mxu2 %v11287_v53  ;;  %v11574_v2 = vld [vmem:[#allocation7 + $0x260] sm:$0xf]  ;;  %v14606_v53 = vld [vmem:[#allocation7 + $0x2e4] sm:$0xf0] }
 0x14a   : > { %v2910_v22 = vpop.f32.mrf.mxu3  ;;  %v2892_v9 = vadd.f32 %v2891_v3, %v2873_v19  ;;  %v14590_v19 = vld [vmem:[#allocation7 + $0x264] sm:$0xf0]  ;;  %v11630_v3 = vld [vmem:[#allocation7 + $0x2d0] sm:$0xf]  ;;  %v11558_v33 = vld [vmem:[#allocation7 + $0x240] sm:$0xf] }
 0x14b   : > { %4567 = vmatpush.bf16.msrb.mxu3 %v11351_v32  ;;  %v11575_v56 = vor.u32 %v14590_v19, %v11574_v2  ;;  %v14602_v30 = vld [vmem:[#allocation7 + $0x2c4] sm:$0xf0]  ;;  %v11614_v2 = vld [vmem:[#allocation7 + $0x2b0] sm:$0xf]  ;;  %v14600_v19 = vld [vmem:[#allocation7 + $0x2b4] sm:$0xf0] }
 0x14c   : > { %3228 = vmatpush.bf16.msrb.mxu0 %v11155_v36  ;;  %v16988_v27 = vadd.f32 %v2910_v22, %v2892_v9  ;;  %v14556_v36 = vld [vmem:[#allocation7 + $0x154] sm:$0xf0] }
 0x14d   : > { %3247 = vmatpush.bf16.msrb.mxu1 %v11219_v38  ;;  %4549 = vmatpush.bf16.msrb.mxu2 %v11279_v31  ;;  %v14604_v22 = vld [vmem:[#allocation7 + $0x2d4] sm:$0xf0] }
 0x14e   : > { %v11631_v9 = vor.u32 %v14604_v22, %v11630_v3 }
 0x14f   : > { %v2856_v46 = vpop.f32.mrf.mxu0  ;;  %v2875_v23 = vpop.f32.mrf.mxu1  ;;  %4568 = vmatpush.bf16.msrb.mxu3 %v11343_v20  ;;  %v11439_v20 = vor.u32 %v14556_v36, %v11438_v12  ;;  %v14566_v12 = vld [vmem:[#allocation7 + $0x1a4] sm:$0xf0]  ;;  %v11542_v36 = vld [vmem:[#allocation7 + $0x220] sm:$0xf] }
 0x150   : > { %v2857_v17 = vadd.f32 %v2856_v46, %v16976_v57  ;;  %3216 = vmatmul.bf16.gmra.mxu3 %v16912_v5  ;;  %3229 = vmatpush.bf16.msrb.mxu0 %v11147_v35  ;;  %v14574_v57 = vld [vmem:[#allocation7 + $0x1e4] sm:$0xf0]  ;;  %v11638_v5 = vld [vmem:[#allocation7 + $0x2e0] sm:$0xf] }
 0x151   : > { %3248 = vmatpush.bf16.msrb.mxu1 %v11211_v14  ;;  %v2894_v32 = vpop.f32.mrf.mxu2  ;;  %4550 = vmatpush.bf16.msrb.mxu2 %v11271_v7  ;;  %v11639_v37 = vor.u32 %v14606_v53, %v11638_v5  ;;  %v11430_v35 = vld [vmem:[#allocation7 + $0x140] sm:$0xf] }
 0x152   : > { %v2876_v55 = vadd.f32 %v2875_v23, %v2857_v17  ;;  %3159 = vmatmul.bf16.gmra.mxu0 %v16817_v18  ;;  %3178 = vmatmul.bf16.gmra.mxu1 %v16766_v63  ;;  %v2913_v29 = vpop.f32.mrf.mxu3  ;;  %v11447_v18 = vor.u32 %v14558_v39, %v11446_v40  ;;  %v11511_v63 = vor.u32 %v14574_v57, %v11510_v13  ;;  %v14586_v23 = vld [vmem:[#allocation7 + $0x244] sm:$0xf0]  ;;  %v11622_v14 = vld [vmem:[#allocation7 + $0x2c0] sm:$0xf]  ;;  %v14584_v57 = vld [vmem:[#allocation7 + $0x234] sm:$0xf0] }
 0x153   : > { %3197 = vmatmul.bf16.gmra.mxu2 %v16770_v1  ;;  %4569 = vmatpush.bf16.msrb.mxu3 %v11335_v10  ;;  %v11502_v1 = vld [vmem:[#allocation7 + $0x1d0] sm:$0xf]  ;;  %v11559_v40 = vor.u32 %v14586_v23, %v11558_v33  ;;  %v11623_v39 = vor.u32 %v14602_v30, %v11622_v14  ;;  %v11423_v13 = vor.u32 %v14552_v16, %v11422_v58  ;;  %v11414_v53 = vld [vmem:[#allocation7 + $0x120] sm:$0xf]  ;;  %v14578_v58 = vld [vmem:[#allocation7 + $0x204] sm:$0xf0] }
 0x154   : > { %v2895_v50 = vadd.f32 %v2894_v32, %v2876_v55  ;;  %4581 = vmatpush.bf16.msra.mxu0 %v11455_v26  ;;  %v11503_v51 = vor.u32 %v14572_v6, %v11502_v1  ;;  %v11495_v26 = vor.u32 %v14570_v45, %v11494_v42  ;;  %v11486_v55 = vld [vmem:[#allocation7 + $0x1b0] sm:$0xf]  ;;  %v14550_v32 = vld [vmem:[#allocation7 + $0x124] sm:$0xf0]  ;;  %v11398_v42 = vld [vmem:[#allocation7 + $0x100] sm:$0xf] }
 0x155   : > { %4600 = vmatpush.bf16.msra.mxu1 %v11519_v61  ;;  %4619 = vmatpush.bf16.msra.mxu2 %v11583_v0  ;;  %v14568_v0 = vld [vmem:[#allocation7 + $0x1b4] sm:$0xf0]  ;;  %v11406_v6 = vld [vmem:[#allocation7 + $0x110] sm:$0xf]  ;;  %v14546_v45 = vld [vmem:[#allocation7 + $0x104] sm:$0xf0] }
 0x156   : > { %v16995_v49 = vadd.f32 %v2913_v29, %v2895_v50  ;;  %v11526_v30 = vld [vmem:[#allocation7 + $0x200] sm:$0xf] }
 0x157   : > { %4638 = vmatpush.bf16.msra.mxu3 %v11647_v43  ;;  %v2858_v15 = vpop.f32.mrf.mxu0  ;;  %v2877_v38 = vpop.f32.mrf.mxu1  ;;  %v11550_v43 = vld [vmem:[#allocation7 + $0x230] sm:$0xf]  ;;  %v11590_v16 = vld [vmem:[#allocation7 + $0x280] sm:$0xf] }
 0x158   : > { %v2859_v31 = vadd.f32 %v2858_v15, %v16979_v62  ;;  %4582 = vmatpush.bf16.msra.mxu0 %v11447_v18  ;;  %v11431_v62 = vor.u32 %v14554_v59, %v11430_v35  ;;  %v11551_v50 = vor.u32 %v14584_v57, %v11550_v43  ;;  %v11615_v18 = vor.u32 %v14600_v19, %v11614_v2  ;;  %v14580_v35 = vld [vmem:[#allocation7 + $0x214] sm:$0xf0]  ;;  %v11598_v59 = vld [vmem:[#allocation7 + $0x290] sm:$0xf] }
 0x159   : > { %4601 = vmatpush.bf16.msra.mxu1 %v11511_v63  ;;  %4620 = vmatpush.bf16.msra.mxu2 %v11575_v56  ;;  %v2896_v47 = vpop.f32.mrf.mxu2  ;;  %v11478_v63 = vld [vmem:[#allocation7 + $0x1a0] sm:$0xf]  ;;  %v11415_v56 = vor.u32 %v14550_v32, %v11414_v53  ;;  %v11774_v43 = vld [vmem:[#allocation7 + $0x3f0] sm:$0xf]  ;;  %v18627_v53 = vunpack.c.l.b16 %v16203_v28  ;;  %v18628_v32 = vunpack.c.l.b16 %v16245_v11 }
 0x15a   : > { %v2878_v4 = vadd.f32 %v2877_v38, %v2859_v31  ;;  %v2915_v8 = vpop.f32.mrf.mxu3  ;;  %v11479_v3 = vor.u32 %v14566_v12, %v11478_v63  ;;  %v11838_v57 = vld [vmem:[#allocation7 + $0x470] sm:$0xf]  ;;  %v14672_v12 = vld [vmem:[#allocation7 + $0x4f4] sm:$0xf0] }
 0x15b   : > { %4639 = vmatpush.bf16.msra.mxu3 %v11639_v37  ;;  %v11606_v37 = vld [vmem:[#allocation7 + $0x2a0] sm:$0xf]  ;;  %v11902_v63 = vld [vmem:[#allocation7 + $0x4f0] sm:$0xf] }
 0x15c   : > { %v2897_v46 = vadd.f32 %v2896_v47, %v2878_v4  ;;  %4583 = vmatpush.bf16.msra.mxu0 %v11439_v20  ;;  %v14564_v4 = vld [vmem:[#allocation7 + $0x194] sm:$0xf0] }
 0x15d   : > { %4602 = vmatpush.bf16.msra.mxu1 %v11503_v51  ;;  %4621 = vmatpush.bf16.msra.mxu2 %v11567_v52  ;;  %v11470_v51 = vld [vmem:[#allocation7 + $0x190] sm:$0xf]  ;;  %v14596_v47 = vld [vmem:[#allocation7 + $0x294] sm:$0xf0] }
 0x15e   : > { %v16998_v17 = vadd.f32 %v2915_v8, %v2897_v46  ;;  %v11534_v52 = vld [vmem:[#allocation7 + $0x210] sm:$0xf]  ;;  %v11471_v33 = vor.u32 %v14564_v4, %v11470_v51  ;;  %v11462_v46 = vld [vmem:[#allocation7 + $0x180] sm:$0xf]  ;;  %v11599_v14 = vor.u32 %v14596_v47, %v11598_v59  ;;  %v14620_v4 = vld [vmem:[#allocation7 + $0x354] sm:$0xf0] }
 0x15f   : > { %4640 = vmatpush.bf16.msra.mxu3 %v11631_v9  ;;  %v2927_v7 = vpop.f32.mrf.mxu0  ;;  %v2946_v10 = vpop.f32.mrf.mxu1  ;;  %v11407_v9 = vor.u32 %v14548_v54, %v11406_v6  ;;  %v11535_v23 = vor.u32 %v14580_v35, %v11534_v52  ;;  %v11903_v54 = vor.u32 %v14672_v12, %v11902_v63  ;;  %v11758_v59 = vld [vmem:[#allocation7 + $0x3d0] sm:$0xf]  ;;  %v14636_v47 = vld [vmem:[#allocation7 + $0x3d4] sm:$0xf0]  ;;  %v14666_v63 = vld [vmem:[#allocation7 + $0x4c4] sm:$0xf0] }
 0x160   : > { %v2928_v61 = vadd.f32 %v2927_v7, %v16986_v21  ;;  %4570 = vmatmul.bf16.vlgmr.msrb.gmra.mxu3 %v16215_v41  ;;  %4584 = vmatpush.bf16.msra.mxu0 %v11431_v62  ;;  %v11487_v21 = vor.u32 %v14568_v0, %v11486_v55  ;;  %v14562_v62 = vld [vmem:[#allocation7 + $0x184] sm:$0xf0]  ;;  %v18625_v7 = vunpack.c.h.b16 %v16203_v28  ;;  %v14624_v55 = vld [vmem:[#allocation7 + $0x374] sm:$0xf0] }
 0x161   : > { %4603 = vmatpush.bf16.msra.mxu1 %v11495_v26  ;;  %4622 = vmatpush.bf16.msra.mxu2 %v11559_v40  ;;  %v14594_v40 = vld [vmem:[#allocation7 + $0x284] sm:$0xf0] }
 0x162   : > { %v2947_v5 = vadd.f32 %v2946_v10, %v2928_v61  ;;  %3230 = vmatmul.bf16.vlgmr.msrb.gmra.mxu0 %v16869_v48  ;;  %3249 = vmatmul.bf16.vlgmr.msrb.gmra.mxu1 %v16892_v24  ;;  %v17005_v29 = vpop.f32.mrf.mxu3  ;;  %v14582_v48 = vld [vmem:[#allocation7 + $0x224] sm:$0xf0]  ;;  %v18626_v10 = vunpack.c.h.b16 %v16245_v11  ;;  %v11399_v61 = vor.u32 %v14546_v45, %v11398_v42 }
 0x163   : > { %4551 = vmatmul.bf16.vlgmr.msrb.gmra.mxu2 %v16208_v34  ;;  %4641 = vmatpush.bf16.msra.mxu3 %v11623_v39  ;;  %v14598_v24 = vld [vmem:[#allocation7 + $0x2a4] sm:$0xf0]  ;;  %v11543_v31 = vor.u32 %v14582_v48, %v11542_v36  ;;  %v11710_v39 = vld [vmem:[#allocation7 + $0x370] sm:$0xf]  ;;  %v11591_v48 = vor.u32 %v14594_v40, %v11590_v16 }
 0x164   : > { %4585 = vmatpush.bf16.msra.mxu0 %v11423_v13  ;;  %v11607_v20 = vor.u32 %v14598_v24, %v11606_v37  ;;  %v17016_v26 = vpack.c.b16 %v18626_v10, %v18625_v7  ;;  %v14640_v13 = vld [vmem:[#allocation7 + $0x3f4] sm:$0xf0]  ;;  %v11711_v37 = vor.u32 %v14624_v55, %v11710_v39  ;;  %v11702_v24 = vld [vmem:[#allocation7 + $0x360] sm:$0xf]  ;;  %v14622_v11 = vld [vmem:[#allocation7 + $0x364] sm:$0xf0]  ;;  %v11759_v7 = vor.u32 %v14636_v47, %v11758_v59 }
 0x165   : > { %4604 = vmatpush.bf16.msra.mxu1 %v11487_v21  ;;  %4623 = vmatpush.bf16.msra.mxu2 %v11551_v50  ;;  %v17024_v21 = vpack.c.b16 %v18628_v32, %v18627_v53  ;;  %v11463_v50 = vor.u32 %v14562_v62, %v11462_v46  ;;  %v11775_v28 = vor.u32 %v14640_v13, %v11774_v43  ;;  %v14652_v46 = vld [vmem:[#allocation7 + $0x454] sm:$0xf0]  ;;  %v11886_v62 = vld [vmem:[#allocation7 + $0x4d0] sm:$0xf]  ;;  %v11686_v39 = vld [vmem:[#allocation7 + $0x340] sm:$0xf] }
 0x166   : > { %v2965_v1 = vpop.f32.mrf.mxu2  ;;  %v14618_v55 = vld [vmem:[#allocation7 + $0x344] sm:$0xf0]  ;;  %v11750_v13 = vld [vmem:[#allocation7 + $0x3c0] sm:$0xf] }
 0x167   : > { %v17007_v15 = vadd.f32 %v2965_v1, %v2947_v5  ;;  %v2929_v38 = vpop.f32.mrf.mxu0  ;;  %v2948_v44 = vpop.f32.mrf.mxu1  ;;  %4642 = vmatpush.bf16.msra.mxu3 %v11615_v18  ;;  %v14656_v18 = vld [vmem:[#allocation7 + $0x474] sm:$0xf0]  ;;  %v11687_v32 = vor.u32 %v14618_v55, %v11686_v39 }
 0x168   : > { %v2930_v22 = vadd.f32 %v2929_v38, %v16988_v27  ;;  %4586 = vmatpush.bf16.msra.mxu0 %v11415_v56  ;;  %v11527_v56 = vor.u32 %v14578_v58, %v11526_v30  ;;  %v11839_v6 = vor.u32 %v14656_v18, %v11838_v57  ;;  %v11766_v38 = vld [vmem:[#allocation7 + $0x3e0] sm:$0xf]  ;;  %v14634_v57 = vld [vmem:[#allocation7 + $0x3c4] sm:$0xf0] }
 0x169   : > { %4605 = vmatpush.bf16.msra.mxu1 %v11479_v3  ;;  %4624 = vmatpush.bf16.msra.mxu2 %v11543_v31  ;;  %v14654_v3 = vld [vmem:[#allocation7 + $0x464] sm:$0xf0]  ;;  %v11878_v18 = vld [vmem:[#allocation7 + $0x4c0] sm:$0xf] }
 0x16a   : > { %v2949_v8 = vadd.f32 %v2948_v44, %v2930_v22  ;;  %v17010_v27 = vpop.f32.mrf.mxu3  ;;  %v11830_v44 = vld [vmem:[#allocation7 + $0x460] sm:$0xf]  ;;  %v14670_v31 = vld [vmem:[#allocation7 + $0x4e4] sm:$0xf0] }
 0x16b   : > { %4643 = vmatpush.bf16.msra.mxu3 %v11607_v20  ;;  %v11894_v22 = vld [vmem:[#allocation7 + $0x4e0] sm:$0xf] }
 0x16c   : > { %4587 = vmatpush.bf16.msra.mxu0 %v11407_v9  ;;  %v11831_v9 = vor.u32 %v14654_v3, %v11830_v44  ;;  %v11895_v35 = vor.u32 %v14670_v31, %v11894_v22  ;;  %v14632_v44 = vld [vmem:[#allocation7 + $0x3b4] sm:$0xf0]  ;;  %v11806_v3 = vld [vmem:[#allocation7 + $0x430] sm:$0xf] }
 0x16d   : > { %4606 = vmatpush.bf16.msra.mxu1 %v11471_v33  ;;  %4625 = vmatpush.bf16.msra.mxu2 %v11535_v23  ;;  %v14668_v23 = vld [vmem:[#allocation7 + $0x4d4] sm:$0xf0] }
 0x16e   : > { %v2967_v0 = vpop.f32.mrf.mxu2  ;;  %v11887_v40 = vor.u32 %v14668_v23, %v11886_v62  ;;  %v14648_v31 = vld [vmem:[#allocation7 + $0x434] sm:$0xf0]  ;;  %v14646_v23 = vld [vmem:[#allocation7 + $0x424] sm:$0xf0] }
 0x16f   : > { %v17018_v2 = vadd.f32 %v2967_v0, %v2949_v8  ;;  %v2932_v19 = vpop.f32.mrf.mxu0  ;;  %v2951_v5 = vpop.f32.mrf.mxu1  ;;  %4644 = vmatpush.bf16.msra.mxu3 %v11599_v14  ;;  %v11822_v8 = vld [vmem:[#allocation7 + $0x450] sm:$0xf]  ;;  %v819_v14 = vld [vmem:[#allocation2 + $0x10] sm:$0xff]  ;;  %v11807_v47 = vor.u32 %v14648_v31, %v11806_v3 }
 0x170   : > { %v2933_v36 = vadd.f32 %v2932_v19, %v16995_v49  ;;  %4575 = vmatmul.bf16.gmra.mxu3 %v17016_v26  ;;  %4588 = vmatpush.bf16.msra.mxu0 %v11399_v61  ;;  %v14638_v49 = vld [vmem:[#allocation7 + $0x3e4] sm:$0xf0]  ;;  %v3273_v58 = vunpack.c.h.b16 %v819_v14  ;;  %v11823_v61 = vor.u32 %v14652_v46, %v11822_v8  ;;  %v3272_v0 = vunpack.c.l.b16 %v819_v14  ;;  %v11814_v19 = vld [vmem:[#allocation7 + $0x440] sm:$0xf] }
 0x171   : > { %4607 = vmatpush.bf16.msra.mxu1 %v11463_v50  ;;  %4626 = vmatpush.bf16.msra.mxu2 %v11527_v56  ;;  %v11767_v51 = vor.u32 %v14638_v49, %v11766_v38  ;;  %v14650_v50 = vld [vmem:[#allocation7 + $0x444] sm:$0xf0]  ;;  %v14616_v56 = vld [vmem:[#allocation7 + $0x334] sm:$0xf0]  ;;  %v11879_v38 = vor.u32 %v14666_v63, %v11878_v18  ;;  %v11742_v49 = vld [vmem:[#allocation7 + $0x3b0] sm:$0xf] }
 0x172   : > { %v2952_v1 = vadd.f32 %v2951_v5, %v2933_v36  ;;  %3235 = vmatmul.bf16.gmra.mxu0 %v16916_v60  ;;  %3254 = vmatmul.bf16.gmra.mxu1 %v16920_v25  ;;  %v11703_v60 = vor.u32 %v14622_v11, %v11702_v24  ;;  %v11694_v25 = vld [vmem:[#allocation7 + $0x350] sm:$0xf]  ;;  %v11798_v46 = vld [vmem:[#allocation7 + $0x420] sm:$0xf]  ;;  %v14660_v63 = vld [vmem:[#allocation7 + $0x494] sm:$0xf0] }
 0x173   : > { %4556 = vmatmul.bf16.gmra.mxu2 %v17024_v21  ;;  %v17031_v20 = vpop.f32.mrf.mxu3  ;;  %4645 = vmatpush.bf16.msra.mxu3 %v11591_v48  ;;  %v11695_v16 = vor.u32 %v14620_v4, %v11694_v25  ;;  %v18629_v5 = vld [vmem:[#allocation27_spill] sm:$0xff]  ;;  %v11862_v14 = vld [vmem:[#allocation7 + $0x4a0] sm:$0xf] }
 0x174   : > { %4657 = vmatpush.bf16.msrb.mxu0 %v11711_v37  ;;  %v11678_v36 = vld [vmem:[#allocation7 + $0x330] sm:$0xf]  ;;  %v18631_v48 = vunpack.c.l.b16 %v18629_v5 }
 0x175   : > { %4676 = vmatpush.bf16.msrb.mxu1 %v11775_v28  ;;  %4695 = vmatpush.bf16.msrb.mxu2 %v11839_v6  ;;  %v11679_v22 = vor.u32 %v14616_v56, %v11678_v36  ;;  %v18632_v4 = vld [vmem:[#allocation23_spill] sm:$0xff]  ;;  %v11654_v36 = vld [vmem:[#allocation7 + $0x300] sm:$0xf]  ;;  %v14610_v56 = vld [vmem:[#allocation7 + $0x304] sm:$0xf0] }
 0x176   : > { %v2970_v52 = vpop.f32.mrf.mxu2  ;;  %v17044_v37 = vpack.c.b16 %v18631_v48, %v3272_v0  ;;  %v11799_v0 = vor.u32 %v14646_v23, %v11798_v46  ;;  %v11854_v18 = vld [vmem:[#allocation7 + $0x490] sm:$0xf] }
 0x177   : > { %4714 = vmatpush.bf16.msrb.mxu3 %v11903_v54  ;;  %v17033_v42 = vadd.f32 %v2970_v52, %v2952_v1  ;;  %v2934_v45 = vpop.f32.mrf.mxu0  ;;  %v2953_v33 = vpop.f32.mrf.mxu1  ;;  %v11751_v1 = vor.u32 %v14634_v57, %v11750_v13  ;;  %v11815_v54 = vor.u32 %v14650_v50, %v11814_v19  ;;  %v18633_v52 = vld [vmem:[#allocation24_spill] sm:$0xff]  ;;  %v11726_v57 = vld [vmem:[#allocation7 + $0x390] sm:$0xf] }
 0x178   : > { %v2935_v30 = vadd.f32 %v2934_v45, %v16998_v17  ;;  %4658 = vmatpush.bf16.msrb.mxu0 %v11703_v60  ;;  %v18630_v17 = vunpack.c.h.b16 %v18629_v5  ;;  %v11870_v60 = vld [vmem:[#allocation7 + $0x4b0] sm:$0xf]  ;;  %v11734_v45 = vld [vmem:[#allocation7 + $0x3a0] sm:$0xf]  ;;  %v14628_v19 = vld [vmem:[#allocation7 + $0x394] sm:$0xf0] }
 0x179   : > { %4677 = vmatpush.bf16.msrb.mxu1 %v11767_v51  ;;  %4696 = vmatpush.bf16.msrb.mxu2 %v11831_v9  ;;  %v14664_v51 = vld [vmem:[#allocation7 + $0x4b4] sm:$0xf0]  ;;  %v11670_v9 = vld [vmem:[#allocation7 + $0x320] sm:$0xf]  ;;  %v11790_v5 = vld [vmem:[#allocation7 + $0x410] sm:$0xf]  ;;  %v11727_v48 = vor.u32 %v14628_v19, %v11726_v57 }
 0x17a   : > { %v2954_v10 = vadd.f32 %v2953_v33, %v2935_v30  ;;  %v17040_v53 = vpack.c.b16 %v18630_v17, %v3273_v58  ;;  %v11871_v8 = vor.u32 %v14664_v51, %v11870_v60  ;;  %v14630_v33 = vld [vmem:[#allocation7 + $0x3a4] sm:$0xf0]  ;;  %v14644_v50 = vld [vmem:[#allocation7 + $0x414] sm:$0xf0]  ;;  %v11655_v51 = vor.u32 %v14610_v56, %v11654_v36 }
 0x17b   : > { %4715 = vmatpush.bf16.msrb.mxu3 %v11895_v35  ;;  %v17036_v43 = vpop.f32.mrf.mxu3  ;;  %v14614_v35 = vld [vmem:[#allocation7 + $0x324] sm:$0xf0]  ;;  %v11735_v39 = vor.u32 %v14630_v33, %v11734_v45  ;;  %v14736_v57 = vld [vmem:[#allocation7 + $0x6f4] sm:$0xf0] }
 0x17c   : > { %4659 = vmatpush.bf16.msrb.mxu0 %v11695_v16  ;;  %v11671_v62 = vor.u32 %v14614_v35, %v11670_v9  ;;  %v14662_v30 = vld [vmem:[#allocation7 + $0x4a4] sm:$0xf0]  ;;  %v11662_v16 = vld [vmem:[#allocation7 + $0x310] sm:$0xf]  ;;  %v14688_v35 = vld [vmem:[#allocation7 + $0x574] sm:$0xf0] }
 0x17d   : > { %4678 = vmatpush.bf16.msrb.mxu1 %v11759_v7  ;;  %4697 = vmatpush.bf16.msrb.mxu2 %v11823_v61  ;;  %v14612_v7 = vld [vmem:[#allocation7 + $0x314] sm:$0xf0]  ;;  %v11863_v13 = vor.u32 %v14662_v30, %v11862_v14  ;;  %v11966_v9 = vld [vmem:[#allocation7 + $0x570] sm:$0xf]  ;;  %v14686_v36 = vld [vmem:[#allocation7 + $0x564] sm:$0xf0] }
 0x17e   : > { %v2972_v12 = vpop.f32.mrf.mxu2  ;;  %v12030_v14 = vld [vmem:[#allocation7 + $0x5f0] sm:$0xf]  ;;  %v14704_v30 = vld [vmem:[#allocation7 + $0x5f4] sm:$0xf0] }
 0x17f   : > { %4716 = vmatpush.bf16.msrb.mxu3 %v11887_v40  ;;  %v17046_v28 = vadd.f32 %v2972_v12, %v2954_v10  ;;  %v3003_v24 = vpop.f32.mrf.mxu0  ;;  %v3022_v11 = vpop.f32.mrf.mxu1 }
 0x180   : > { %v3004_v6 = vadd.f32 %v3003_v24, %v17005_v29  ;;  %4646 = vmatmul.bf16.vlgmr.msra.gmra.mxu3 %v17040_v53  ;;  %4660 = vmatpush.bf16.msrb.mxu0 %v11687_v32  ;;  %v11743_v29 = vor.u32 %v14632_v44, %v11742_v49  ;;  %v11663_v32 = vor.u32 %v14612_v7, %v11662_v16  ;;  %v14626_v24 = vld [vmem:[#allocation7 + $0x384] sm:$0xf0]  ;;  %v11846_v49 = vld [vmem:[#allocation7 + $0x480] sm:$0xf]  ;;  %v18634_v44 = vld [vmem:[#allocation28_spill] sm:$0xff] }
 0x181   : > { %4679 = vmatpush.bf16.msrb.mxu1 %v11751_v1  ;;  %4698 = vmatpush.bf16.msrb.mxu2 %v11815_v54  ;;  %v11791_v1 = vor.u32 %v14644_v50, %v11790_v5  ;;  %v11782_v54 = vld [vmem:[#allocation7 + $0x400] sm:$0xf]  ;;  %v18635_v3 = vunpack.c.h.b16 %v18634_v44 }
 0x182   : > { %v3023_v25 = vadd.f32 %v3022_v11, %v3004_v6  ;;  %4589 = vmatmul.bf16.vlgmr.msra.gmra.mxu0 %v18632_v4  ;;  %4608 = vmatmul.bf16.vlgmr.msra.gmra.mxu1 %v18633_v52  ;;  %v11855_v6 = vor.u32 %v14660_v63, %v11854_v18  ;;  %v11967_v18 = vor.u32 %v14688_v35, %v11966_v9  ;;  %v12014_v35 = vld [vmem:[#allocation7 + $0x5d0] sm:$0xf] }
 0x183   : > { %4627 = vmatmul.bf16.vlgmr.msra.gmra.mxu2 %v17044_v37  ;;  %v3060_v59 = vpop.f32.mrf.mxu3  ;;  %4717 = vmatpush.bf16.msrb.mxu3 %v11879_v38  ;;  %v14642_v38 = vld [vmem:[#allocation7 + $0x404] sm:$0xf0]  ;;  %v12031_v63 = vor.u32 %v14704_v30, %v12030_v14  ;;  %v14732_v14 = vld [vmem:[#allocation7 + $0x6d4] sm:$0xf0] }
 0x184   : > { %4661 = vmatpush.bf16.msrb.mxu0 %v11679_v22  ;;  %v18636_v22 = vld [vmem:[#allocation35_spill] sm:$0xff]  ;;  %v11783_v5 = vor.u32 %v14642_v38, %v11782_v54  ;;  %v14734_v54 = vld [vmem:[#allocation7 + $0x6e4] sm:$0xf0] }
 0x185   : > { %4680 = vmatpush.bf16.msrb.mxu1 %v11743_v29  ;;  %4699 = vmatpush.bf16.msrb.mxu2 %v11807_v47  ;;  %v18637_v31 = vunpack.c.h.b16 %v18636_v22 }
 0x186   : > { %v3041_v58 = vpop.f32.mrf.mxu2 }
 0x187   : > { %v3042_v10 = vadd.f32 %v3041_v58, %v3023_v25  ;;  %v3005_v61 = vpop.f32.mrf.mxu0  ;;  %v3024_v40 = vpop.f32.mrf.mxu1  ;;  %4718 = vmatpush.bf16.msrb.mxu3 %v11871_v8  ;;  %v17060_v60 = vpack.c.b16 %v18637_v31, %v18635_v3  ;;  %v14658_v25 = vld [vmem:[#allocation7 + $0x484] sm:$0xf0]  ;;  %v18640_v8 = vld [vmem:[#allocation25_spill] sm:$0xff]  ;;  %v12094_v58 = vld [vmem:[#allocation7 + $0x670] sm:$0xf] }
 0x188   : > { %v3006_v55 = vadd.f32 %v3005_v61, %v17010_v27  ;;  %4662 = vmatpush.bf16.msrb.mxu0 %v11671_v62  ;;  %v11718_v27 = vld [vmem:[#allocation7 + $0x380] sm:$0xf]  ;;  %v18641_v45 = vunpack.c.l.b16 %v18640_v8  ;;  %v18643_v62 = vunpack.c.h.b16 %v18640_v8  ;;  %v18644_v61 = vunpack.c.l.b16 %v18634_v44  ;;  %v14684_v31 = vld [vmem:[#allocation7 + $0x554] sm:$0xf0] }
 0x189   : > { %v17054_v17 = vadd.f32 %v3060_v59, %v3042_v10  ;;  %4681 = vmatpush.bf16.msrb.mxu1 %v11735_v39  ;;  %4700 = vmatpush.bf16.msrb.mxu2 %v11799_v0  ;;  %v18638_v59 = vld [vmem:[#allocation22_spill] sm:$0xff]  ;;  %v14720_v0 = vld [vmem:[#allocation7 + $0x674] sm:$0xf0] }
 0x18a   : > { %v3025_v12 = vadd.f32 %v3024_v40, %v3006_v55  ;;  %v18639_v47 = vunpack.c.l.b16 %v18638_v59  ;;  %v18642_v46 = vunpack.c.h.b16 %v18638_v59  ;;  %v18645_v40 = vunpack.c.l.b16 %v18636_v22  ;;  %v11950_v22 = vld [vmem:[#allocation7 + $0x550] sm:$0xf] }
 0x18b   : > { %v3062_v11 = vpop.f32.mrf.mxu3  ;;  %4719 = vmatpush.bf16.msrb.mxu3 %v11863_v13  ;;  %v11719_v55 = vor.u32 %v14626_v24, %v11718_v27  ;;  %v12158_v13 = vld [vmem:[#allocation7 + $0x6f0] sm:$0xf]  ;;  %v12022_v27 = vld [vmem:[#allocation7 + $0x5e0] sm:$0xf]  ;;  %v14702_v24 = vld [vmem:[#allocation7 + $0x5e4] sm:$0xf0] }
 0x18c   : > { %4663 = vmatpush.bf16.msrb.mxu0 %v11663_v32  ;;  %v17066_v33 = vpack.c.b16 %v18641_v45, %v18639_v47  ;;  %v17072_v23 = vpack.c.b16 %v18643_v62, %v18642_v46  ;;  %v17078_v39 = vpack.c.b16 %v18645_v40, %v18644_v61  ;;  %v11847_v32 = vor.u32 %v14658_v25, %v11846_v49  ;;  %v820_v49 = vld [vmem:[#allocation2 + $0x18] sm:$0xff]  ;;  %v14716_v46 = vld [vmem:[#allocation7 + $0x654] sm:$0xf0] }
 0x18d   : > { %4682 = vmatpush.bf16.msrb.mxu1 %v11727_v48  ;;  %4701 = vmatpush.bf16.msrb.mxu2 %v11791_v1  ;;  %v12095_v48 = vor.u32 %v14720_v0, %v12094_v58  ;;  %v12086_v1 = vld [vmem:[#allocation7 + $0x660] sm:$0xf]  ;;  %v12023_v3 = vor.u32 %v14702_v24, %v12022_v27  ;;  %v12078_v59 = vld [vmem:[#allocation7 + $0x650] sm:$0xf]  ;;  %v3274_v30 = vunpack.c.l.b16 %v820_v49  ;;  %v821_v58 = vld [vmem:[#allocation2 + $0x20] sm:$0xff]  ;;  %v11951_v61 = vor.u32 %v14684_v31, %v11950_v22 }
 0x18e   : > { %v3043_v29 = vpop.f32.mrf.mxu2  ;;  %v12142_v62 = vld [vmem:[#allocation7 + $0x6d0] sm:$0xf]  ;;  %v14714_v27 = vld [vmem:[#allocation7 + $0x644] sm:$0xf0]  ;;  %v12134_v24 = vld [vmem:[#allocation7 + $0x6c0] sm:$0xf] }
 0x18f   : > { %v3044_v16 = vadd.f32 %v3043_v29, %v3025_v12  ;;  %v3008_v7 = vpop.f32.mrf.mxu0  ;;  %v3027_v10 = vpop.f32.mrf.mxu1  ;;  %4720 = vmatpush.bf16.msrb.mxu3 %v11855_v6  ;;  %v11958_v12 = vld [vmem:[#allocation7 + $0x560] sm:$0xf]  ;;  %v14700_v29 = vld [vmem:[#allocation7 + $0x5d4] sm:$0xf0] }
 0x190   : > { %v3009_v19 = vadd.f32 %v3008_v7, %v17031_v20  ;;  %4651 = vmatmul.bf16.gmra.mxu3 %v17060_v60  ;;  %4664 = vmatpush.bf16.msrb.mxu0 %v11655_v51  ;;  %v12159_v20 = vor.u32 %v14736_v57, %v12158_v13  ;;  %v12150_v6 = vld [vmem:[#allocation7 + $0x6e0] sm:$0xf]  ;;  %v11959_v44 = vor.u32 %v14686_v36, %v11958_v12  ;;  %v3277_v7 = vunpack.c.h.b16 %v821_v58  ;;  %v14698_v12 = vld [vmem:[#allocation7 + $0x5c4] sm:$0xf0]  ;;  %v14680_v22 = vld [vmem:[#allocation7 + $0x534] sm:$0xf0] }
 0x191   : > { %v17081_v50 = vadd.f32 %v3062_v11, %v3044_v16  ;;  %4683 = vmatpush.bf16.msrb.mxu1 %v11719_v55  ;;  %v14718_v11 = vld [vmem:[#allocation7 + $0x664] sm:$0xf0]  ;;  %4702 = vmatpush.bf16.msrb.mxu2 %v11783_v5  ;;  %v12151_v9 = vor.u32 %v14734_v54, %v12150_v6  ;;  %v12015_v40 = vor.u32 %v14700_v29, %v12014_v35  ;;  %v3275_v55 = vunpack.c.h.b16 %v820_v49  ;;  %v18646_v36 = vld [vmem:[#allocation41_spill] sm:$0xff] }
 0x192   : > { %v3028_v56 = vadd.f32 %v3027_v10, %v3009_v19  ;;  %4594 = vmatmul.bf16.gmra.mxu0 %v17066_v33  ;;  %4613 = vmatmul.bf16.gmra.mxu1 %v17072_v23  ;;  %v12087_v25 = vor.u32 %v14718_v11, %v12086_v1  ;;  %v12079_v13 = vor.u32 %v14716_v46, %v12078_v59  ;;  %v11942_v19 = vld [vmem:[#allocation7 + $0x540] sm:$0xf]  ;;  %v14682_v5 = vld [vmem:[#allocation7 + $0x544] sm:$0xf0]  ;;  %v18651_v31 = vunpack.c.l.b16 %v18646_v36  ;;  %v14696_v46 = vld [vmem:[#allocation7 + $0x5b4] sm:$0xf0] }
 0x193   : > { %4632 = vmatmul.bf16.gmra.mxu2 %v17078_v39  ;;  %v3065_v38 = vpop.f32.mrf.mxu3  ;;  %4721 = vmatpush.bf16.msrb.mxu3 %v11847_v32  ;;  %v12143_v57 = vor.u32 %v14732_v14, %v12142_v62  ;;  %v3276_v32 = vunpack.c.l.b16 %v821_v58  ;;  %v14730_v1 = vld [vmem:[#allocation7 + $0x6c4] sm:$0xf0]  ;;  %v12062_v62 = vld [vmem:[#allocation7 + $0x630] sm:$0xf]  ;;  %v14712_v58 = vld [vmem:[#allocation7 + $0x634] sm:$0xf0] }
 0x194   : > { %4733 = vmatpush.bf16.msra.mxu0 %v11967_v18  ;;  %v18648_v11 = vld [vmem:[#allocation30_spill] sm:$0xff] }
 0x195   : > { %4752 = vmatpush.bf16.msra.mxu1 %v12031_v63  ;;  %4771 = vmatpush.bf16.msra.mxu2 %v12095_v48  ;;  %v12006_v63 = vld [vmem:[#allocation7 + $0x5c0] sm:$0xf]  ;;  %v18649_v6 = vunpack.c.l.b16 %v18648_v11 }
 0x196   : > { %v3046_v51 = vpop.f32.mrf.mxu2  ;;  %v12007_v29 = vor.u32 %v14698_v12, %v12006_v63  ;;  %v14710_v63 = vld [vmem:[#allocation7 + $0x624] sm:$0xf0]  ;;  %v12118_v12 = vld [vmem:[#allocation7 + $0x6a0] sm:$0xf] }
 0x197   : > { %4790 = vmatpush.bf16.msra.mxu3 %v12159_v20  ;;  %v3047_v47 = vadd.f32 %v3046_v51, %v3028_v56  ;;  %v3010_v8 = vpop.f32.mrf.mxu0  ;;  %v3029_v45 = vpop.f32.mrf.mxu1  ;;  %v18647_v56 = vunpack.c.h.b16 %v18646_v36  ;;  %v11943_v20 = vor.u32 %v14682_v5, %v11942_v19  ;;  %v17096_v54 = vpack.c.b16 %v18649_v6, %v3274_v30  ;;  %v11990_v19 = vld [vmem:[#allocation7 + $0x5a0] sm:$0xf]  ;;  %v14694_v5 = vld [vmem:[#allocation7 + $0x5a4] sm:$0xf0] }
 0x198   : > { %v3011_v16 = vadd.f32 %v3010_v8, %v17036_v43  ;;  %4734 = vmatpush.bf16.msra.mxu0 %v11959_v44  ;;  %v12070_v43 = vld [vmem:[#allocation7 + $0x640] sm:$0xf]  ;;  %v17104_v51 = vpack.c.b16 %v18651_v31, %v3276_v32  ;;  %v12135_v8 = vor.u32 %v14730_v1, %v12134_v24  ;;  %v12046_v31 = vld [vmem:[#allocation7 + $0x610] sm:$0xf] }
 0x199   : > { %v17088_v10 = vadd.f32 %v3065_v38, %v3047_v47  ;;  %4753 = vmatpush.bf16.msra.mxu1 %v12023_v3  ;;  %4772 = vmatpush.bf16.msra.mxu2 %v12087_v25  ;;  %v17092_v48 = vpack.c.b16 %v18647_v56, %v3277_v7  ;;  %v18650_v38 = vunpack.c.h.b16 %v18648_v11  ;;  %v11934_v3 = vld [vmem:[#allocation7 + $0x530] sm:$0xf]  ;;  %v12071_v47 = vor.u32 %v14714_v27, %v12070_v43  ;;  %v14728_v7 = vld [vmem:[#allocation7 + $0x6b4] sm:$0xf0]  ;;  %v12054_v32 = vld [vmem:[#allocation7 + $0x620] sm:$0xf] }
 0x19a   : > { %v3030_v0 = vadd.f32 %v3029_v45, %v3011_v16  ;;  %v11998_v45 = vld [vmem:[#allocation7 + $0x5b0] sm:$0xf]  ;;  %v11935_v30 = vor.u32 %v14680_v22, %v11934_v3  ;;  %v14726_v43 = vld [vmem:[#allocation7 + $0x6a4] sm:$0xf0]  ;;  %v11991_v11 = vor.u32 %v14694_v5, %v11990_v19  ;;  %v14692_v22 = vld [vmem:[#allocation7 + $0x594] sm:$0xf0] }
 0x19b   : > { %4791 = vmatpush.bf16.msra.mxu3 %v12151_v9  ;;  %v3067_v18 = vpop.f32.mrf.mxu3  ;;  %v17100_v49 = vpack.c.b16 %v18650_v38, %v3275_v55  ;;  %v12126_v16 = vld [vmem:[#allocation7 + $0x6b0] sm:$0xf]  ;;  %v11999_v55 = vor.u32 %v14696_v46, %v11998_v45  ;;  %v12055_v38 = vor.u32 %v14710_v63, %v12054_v32  ;;  %v14674_v45 = vld [vmem:[#allocation7 + $0x504] sm:$0xf0] }
 0x19c   : > { %4735 = vmatpush.bf16.msra.mxu0 %v11951_v61  ;;  %v11918_v56 = vld [vmem:[#allocation7 + $0x510] sm:$0xf]  ;;  %v14722_v5 = vld [vmem:[#allocation7 + $0x684] sm:$0xf0] }
 0x19d   : > { %4754 = vmatpush.bf16.msra.mxu1 %v12015_v40  ;;  %4773 = vmatpush.bf16.msra.mxu2 %v12079_v13  ;;  %v14678_v40 = vld [vmem:[#allocation7 + $0x524] sm:$0xf0]  ;;  %v12063_v13 = vor.u32 %v14712_v58, %v12062_v62  ;;  %v11982_v3 = vld [vmem:[#allocation7 + $0x590] sm:$0xf] }
 0x19e   : > { %v3048_v44 = vpop.f32.mrf.mxu2  ;;  %v11983_v46 = vor.u32 %v14692_v22, %v11982_v3  ;;  %v14690_v62 = vld [vmem:[#allocation7 + $0x584] sm:$0xf0]  ;;  %v12222_v32 = vld [vmem:[#allocation7 + $0x770] sm:$0xf] }
 0x19f   : > { %4792 = vmatpush.bf16.msra.mxu3 %v12143_v57  ;;  %v3049_v25 = vadd.f32 %v3048_v44, %v3030_v0  ;;  %v3079_v9 = vpop.f32.mrf.mxu0  ;;  %v3098_v35 = vpop.f32.mrf.mxu1  ;;  %v12127_v57 = vor.u32 %v14728_v7, %v12126_v16  ;;  %v12119_v44 = vor.u32 %v14726_v43, %v12118_v12  ;;  %v12038_v7 = vld [vmem:[#allocation7 + $0x600] sm:$0xf]  ;;  %v18656_v12 = vld [vmem:[#allocation31_spill] sm:$0xff] }
 0x1a0   : > { %v3080_v59 = vadd.f32 %v3079_v9, %v17054_v17  ;;  %4722 = vmatmul.bf16.vlgmr.msrb.gmra.mxu3 %v17092_v48  ;;  %4736 = vmatpush.bf16.msra.mxu0 %v11943_v20  ;;  %v11926_v17 = vld [vmem:[#allocation7 + $0x520] sm:$0xf]  ;;  %v14676_v20 = vld [vmem:[#allocation7 + $0x514] sm:$0xf0]  ;;  %v18657_v43 = vunpack.c.l.b16 %v18656_v12 }
 0x1a1   : > { %v17107_v14 = vadd.f32 %v3067_v18, %v3049_v25  ;;  %4755 = vmatpush.bf16.msra.mxu1 %v12007_v29  ;;  %4774 = vmatpush.bf16.msra.mxu2 %v12071_v47  ;;  %v11927_v18 = vor.u32 %v14678_v40, %v11926_v17  ;;  %v11919_v9 = vor.u32 %v14676_v20, %v11918_v56  ;;  %v12110_v29 = vld [vmem:[#allocation7 + $0x690] sm:$0xf]  ;;  %v12102_v17 = vld [vmem:[#allocation7 + $0x680] sm:$0xf]  ;;  %v18652_v40 = vld [vmem:[#allocation42_spill] sm:$0xff] }
 0x1a2   : > { %v3099_v61 = vadd.f32 %v3098_v35, %v3080_v59  ;;  %4665 = vmatmul.bf16.vlgmr.msrb.gmra.mxu0 %v17096_v54  ;;  %4684 = vmatmul.bf16.vlgmr.msrb.gmra.mxu1 %v17100_v49  ;;  %v14708_v35 = vld [vmem:[#allocation7 + $0x614] sm:$0xf0] }
 0x1a3   : > { %4703 = vmatmul.bf16.vlgmr.msrb.gmra.mxu2 %v17104_v51  ;;  %v3136_v0 = vpop.f32.mrf.mxu3  ;;  %4793 = vmatpush.bf16.msra.mxu3 %v12135_v8  ;;  %v14724_v59 = vld [vmem:[#allocation7 + $0x694] sm:$0xf0]  ;;  %v11910_v8 = vld [vmem:[#allocation7 + $0x500] sm:$0xf]  ;;  %v12047_v58 = vor.u32 %v14708_v35, %v12046_v31  ;;  %v18662_v31 = vunpack.c.l.b16 %v18652_v40 }
 0x1a4   : > { %4737 = vmatpush.bf16.msra.mxu0 %v11935_v30  ;;  %v12111_v16 = vor.u32 %v14724_v59, %v12110_v29  ;;  %v11911_v19 = vor.u32 %v14674_v45, %v11910_v8  ;;  %v11392_v59 = vld [vmem:[#allocation7 + $0xf8] sm:$0xf0]  ;;  %v14559_v8 = vld [vmem:[#allocation7 + $0x174] sm:$0xf] }
 0x1a5   : > { %4756 = vmatpush.bf16.msra.mxu1 %v11999_v55  ;;  %4775 = vmatpush.bf16.msra.mxu2 %v12063_v13  ;;  %v18653_v55 = vunpack.c.h.b16 %v18652_v40  ;;  %v11456_v45 = vld [vmem:[#allocation7 + $0x178] sm:$0xf0] }
 0x1a6   : > { %v3117_v36 = vpop.f32.mrf.mxu2 }
 0x1a7   : > { %v3118_v27 = vadd.f32 %v3117_v36, %v3099_v61  ;;  %v3081_v24 = vpop.f32.mrf.mxu0  ;;  %v3100_v1 = vpop.f32.mrf.mxu1  ;;  %4794 = vmatpush.bf16.msra.mxu3 %v12127_v57  ;;  %v14706_v61 = vld [vmem:[#allocation7 + $0x604] sm:$0xf0]  ;;  %v18658_v36 = vld [vmem:[#allocation36_spill] sm:$0xff] }
 0x1a8   : > { %v3082_v6 = vadd.f32 %v3081_v24, %v17081_v50  ;;  %4738 = vmatpush.bf16.msra.mxu0 %v11927_v18  ;;  %v11974_v50 = vld [vmem:[#allocation7 + $0x580] sm:$0xf]  ;;  %v14752_v18 = vld [vmem:[#allocation7 + $0x774] sm:$0xf0]  ;;  %v18659_v56 = vunpack.c.l.b16 %v18658_v36  ;;  %v18661_v24 = vunpack.c.h.b16 %v18658_v36 }
 0x1a9   : > { %v17114_v25 = vadd.f32 %v3136_v0, %v3118_v27  ;;  %4757 = vmatpush.bf16.msra.mxu1 %v11991_v11  ;;  %4776 = vmatpush.bf16.msra.mxu2 %v12055_v38  ;;  %v18654_v0 = vld [vmem:[#allocation45_spill] sm:$0xff]  ;;  %v18660_v27 = vunpack.c.h.b16 %v18656_v12  ;;  %v14527_v11 = vld [vmem:[#allocation7 + $0x74] sm:$0xf]  ;;  %v11975_v29 = vor.u32 %v14690_v62, %v11974_v50  ;;  %v12103_v12 = vor.u32 %v14722_v5, %v12102_v17 }
 0x1aa   : > { %v3101_v47 = vadd.f32 %v3100_v1, %v3082_v6  ;;  %v18655_v13 = vunpack.c.h.b16 %v18654_v0  ;;  %v17126_v20 = vpack.c.b16 %v18659_v56, %v18657_v43  ;;  %v11328_v6 = vld [vmem:[#allocation7 + $0x78] sm:$0xf0]  ;;  %v14543_v38 = vld [vmem:[#allocation7 + $0xf4] sm:$0xf]  ;;  %v12223_v40 = vor.u32 %v14752_v18, %v12222_v32  ;;  %v14750_v43 = vld [vmem:[#allocation7 + $0x764] sm:$0xf0] }
 0x1ab   : > { %v3138_v30 = vpop.f32.mrf.mxu3  ;;  %4795 = vmatpush.bf16.msra.mxu3 %v12119_v44  ;;  %v17132_v1 = vpack.c.b16 %v18661_v24, %v18660_v27  ;;  %v11395_v50 = vor.u32 %v14543_v38, %v11392_v59  ;;  %v14525_v62 = vld [vmem:[#allocation7 + $0x64] sm:$0xf]  ;;  %v12206_v32 = vld [vmem:[#allocation7 + $0x750] sm:$0xf]  ;;  %v14748_v18 = vld [vmem:[#allocation7 + $0x754] sm:$0xf0] }
 0x1ac   : > { %v17120_v57 = vpack.c.b16 %v18655_v13, %v18653_v55  ;;  %4739 = vmatpush.bf16.msra.mxu0 %v11919_v9  ;;  %v18663_v9 = vunpack.c.l.b16 %v18654_v0  ;;  %v12039_v13 = vor.u32 %v14706_v61, %v12038_v7  ;;  %v11331_v0 = vor.u32 %v14527_v11, %v11328_v6  ;;  %v14557_v7 = vld [vmem:[#allocation7 + $0x164] sm:$0xf]  ;;  %v11448_v61 = vld [vmem:[#allocation7 + $0x168] sm:$0xf0]  ;;  %v14523_v24 = vld [vmem:[#allocation7 + $0x54] sm:$0xf] }
 0x1ad   : > { %4758 = vmatpush.bf16.msra.mxu1 %v11983_v46  ;;  %4777 = vmatpush.bf16.msra.mxu2 %v12047_v58  ;;  %v11320_v58 = vld [vmem:[#allocation7 + $0x68] sm:$0xf0]  ;;  %v11451_v27 = vor.u32 %v14557_v7, %v11448_v61  ;;  %v11312_v11 = vld [vmem:[#allocation7 + $0x58] sm:$0xf0]  ;;  %v14539_v6 = vld [vmem:[#allocation7 + $0xd4] sm:$0xf] }
 0x1ae   : > { %v3119_v63 = vpop.f32.mrf.mxu2  ;;  %v17138_v35 = vpack.c.b16 %v18663_v9, %v18662_v31  ;;  %v11323_v5 = vor.u32 %v14525_v62, %v11320_v58  ;;  %v14555_v31 = vld [vmem:[#allocation7 + $0x154] sm:$0xf]  ;;  %v11440_v9 = vld [vmem:[#allocation7 + $0x158] sm:$0xf0]  ;;  %v14553_v62 = vld [vmem:[#allocation7 + $0x144] sm:$0xf] }
 0x1af   : > { %v3120_v44 = vadd.f32 %v3119_v63, %v3101_v47  ;;  %v3084_v3 = vpop.f32.mrf.mxu0  ;;  %v3103_v22 = vpop.f32.mrf.mxu1  ;;  %4796 = vmatpush.bf16.msra.mxu3 %v12111_v16  ;;  %v12214_v63 = vld [vmem:[#allocation7 + $0x760] sm:$0xf]  ;;  %v14541_v16 = vld [vmem:[#allocation7 + $0xe4] sm:$0xf]  ;;  %v11432_v58 = vld [vmem:[#allocation7 + $0x148] sm:$0xf0] }
 0x1b0   : > { %v3085_v55 = vadd.f32 %v3084_v3, %v17088_v10  ;;  %4727 = vmatmul.bf16.gmra.mxu3 %v17120_v57  ;;  %4740 = vmatpush.bf16.msra.mxu0 %v11911_v19  ;;  %v11459_v10 = vor.u32 %v14559_v8, %v11456_v45  ;;  %v12215_v19 = vor.u32 %v14750_v43, %v12214_v63  ;;  %v14521_v43 = vld [vmem:[#allocation7 + $0x44] sm:$0xf]  ;;  %v14744_v7 = vld [vmem:[#allocation7 + $0x734] sm:$0xf0] }
 0x1b1   : > { %v17141_v47 = vadd.f32 %v3138_v30, %v3120_v44  ;;  %4759 = vmatpush.bf16.msra.mxu1 %v11975_v29  ;;  %v11384_v30 = vld [vmem:[#allocation7 + $0xe8] sm:$0xf0]  ;;  %4778 = vmatpush.bf16.msra.mxu2 %v12039_v13  ;;  %v12207_v8 = vor.u32 %v14748_v18, %v12206_v32  ;;  %v11315_v45 = vor.u32 %v14523_v24, %v11312_v11  ;;  %v14535_v24 = vld [vmem:[#allocation7 + $0xb4] sm:$0xf] }
 0x1b2   : > { %v3104_v46 = vadd.f32 %v3103_v22, %v3085_v55  ;;  %4670 = vmatmul.bf16.gmra.mxu0 %v17126_v20  ;;  %4689 = vmatmul.bf16.gmra.mxu1 %v17132_v1  ;;  %v11387_v56 = vor.u32 %v14541_v16, %v11384_v30  ;;  %v11376_v22 = vld [vmem:[#allocation7 + $0xd8] sm:$0xf0]  ;;  %v12190_v30 = vld [vmem:[#allocation7 + $0x730] sm:$0xf] }
 0x1b3   : > { %4708 = vmatmul.bf16.gmra.mxu2 %v17138_v35  ;;  %v3141_v17 = vpop.f32.mrf.mxu3  ;;  %4797 = vmatpush.bf16.msra.mxu3 %v12103_v12  ;;  %v11379_v13 = vor.u32 %v14539_v6, %v11376_v22  ;;  %v11443_v12 = vor.u32 %v14555_v31, %v11440_v9  ;;  %v18664_v6 = vld [vmem:[#allocation48_spill] sm:$0xff]  ;;  %v18665_v9 = vld [vmem:[#allocation39_spill] sm:$0xff] }
 0x1b4   : > { %4809 = vmatpush.bf16.msrb.mxu0 %v12223_v40  ;;  %v12198_v40 = vld [vmem:[#allocation7 + $0x740] sm:$0xf]  ;;  %v11424_v22 = vld [vmem:[#allocation7 + $0x138] sm:$0xf0] }
 0x1b5   : > { %4828 = vmatpush.bf16.msrb.mxu1 %v11331_v0  ;;  %4847 = vmatpush.bf16.msrb.mxu2 %v11395_v50  ;;  %v14746_v0 = vld [vmem:[#allocation7 + $0x744] sm:$0xf0]  ;;  %v14537_v50 = vld [vmem:[#allocation7 + $0xc4] sm:$0xf] }
 0x1b6   : > { %v3122_v36 = vpop.f32.mrf.mxu2 }
 0x1b7   : > { %4866 = vmatpush.bf16.msrb.mxu3 %v11459_v10  ;;  %v3123_v38 = vadd.f32 %v3122_v36, %v3104_v46  ;;  %v3086_v44 = vpop.f32.mrf.mxu0  ;;  %v3105_v3 = vpop.f32.mrf.mxu1  ;;  %v11304_v46 = vld [vmem:[#allocation7 + $0x48] sm:$0xf0]  ;;  %v11435_v36 = vor.u32 %v14553_v62, %v11432_v58  ;;  %v12174_v58 = vld [vmem:[#allocation7 + $0x710] sm:$0xf] }
 0x1b8   : > { %v3087_v29 = vadd.f32 %v3086_v44, %v17107_v14  ;;  %4810 = vmatpush.bf16.msrb.mxu0 %v12215_v19  ;;  %v12199_v14 = vor.u32 %v14746_v0, %v12198_v40  ;;  %v11368_v10 = vld [vmem:[#allocation7 + $0xc8] sm:$0xf0]  ;;  %v11360_v44 = vld [vmem:[#allocation7 + $0xb8] sm:$0xf0]  ;;  %v14517_v0 = vld [vmem:[#allocation7 + $0x24] sm:$0xf] }
 0x1b9   : > { %v17148_v59 = vadd.f32 %v3141_v17, %v3123_v38  ;;  %4829 = vmatpush.bf16.msrb.mxu1 %v11323_v5  ;;  %4848 = vmatpush.bf16.msrb.mxu2 %v11387_v56  ;;  %v11307_v5 = vor.u32 %v14521_v43, %v11304_v46  ;;  %v11371_v18 = vor.u32 %v14537_v50, %v11368_v10  ;;  %v14519_v56 = vld [vmem:[#allocation7 + $0x34] sm:$0xf]  ;;  %v14533_v43 = vld [vmem:[#allocation7 + $0xa4] sm:$0xf]  ;;  %v11352_v50 = vld [vmem:[#allocation7 + $0xa8] sm:$0xf0] }
 0x1ba   : > { %v3106_v55 = vadd.f32 %v3105_v3, %v3087_v29  ;;  %v12191_v38 = vor.u32 %v14744_v7, %v12190_v30  ;;  %v14551_v3 = vld [vmem:[#allocation7 + $0x134] sm:$0xf]  ;;  %v18666_v29 = vld [vmem:[#allocation40_spill] sm:$0xff]  ;;  %v11416_v10 = vld [vmem:[#allocation7 + $0x128] sm:$0xf0] }
 0x1bb   : > { %4867 = vmatpush.bf16.msrb.mxu3 %v11451_v27  ;;  %v3143_v63 = vpop.f32.mrf.mxu3  ;;  %v11296_v27 = vld [vmem:[#allocation7 + $0x38] sm:$0xf0]  ;;  %v11427_v40 = vor.u32 %v14551_v3, %v11424_v22 }
 0x1bc   : > { %4811 = vmatpush.bf16.msrb.mxu0 %v12207_v8  ;;  %v14742_v8 = vld [vmem:[#allocation7 + $0x724] sm:$0xf0]  ;;  %v11408_v3 = vld [vmem:[#allocation7 + $0x118] sm:$0xf0] }
 0x1bd   : > { %4830 = vmatpush.bf16.msrb.mxu1 %v11315_v45  ;;  %4849 = vmatpush.bf16.msrb.mxu2 %v11379_v13  ;;  %v18667_v45 = vld [vmem:[#allocation47_spill] sm:$0xff] }
 0x1be   : > { %v3124_v16 = vpop.f32.mrf.mxu2 }
 0x1bf   : > { %4868 = vmatpush.bf16.msrb.mxu3 %v11443_v12  ;;  %v3125_v61 = vadd.f32 %v3124_v16, %v3106_v55  ;;  %v3155_v17 = vpop.f32.mrf.mxu0  ;;  %v3174_v19 = vpop.f32.mrf.mxu1  ;;  %v11299_v55 = vor.u32 %v14519_v56, %v11296_v27  ;;  %v11363_v12 = vor.u32 %v14535_v24, %v11360_v44  ;;  %v14740_v16 = vld [vmem:[#allocation7 + $0x714] sm:$0xf0]  ;;  %v14531_v56 = vld [vmem:[#allocation7 + $0x94] sm:$0xf] }
 0x1c0   : > { %v3156_v32 = vadd.f32 %v3155_v17, %v17114_v25  ;;  %4798 = vmatmul.bf16.vlgmr.msra.gmra.mxu3 %v18664_v6  ;;  %4812 = vmatpush.bf16.msrb.mxu0 %v12199_v14  ;;  %v12182_v25 = vld [vmem:[#allocation7 + $0x720] sm:$0xf]  ;;  %v14549_v14 = vld [vmem:[#allocation7 + $0x124] sm:$0xf]  ;;  %v12175_v24 = vor.u32 %v14740_v16, %v12174_v58  ;;  %v14547_v44 = vld [vmem:[#allocation7 + $0x114] sm:$0xf] }
 0x1c1   : > { %v17151_v11 = vadd.f32 %v3143_v63, %v3125_v61  ;;  %4831 = vmatpush.bf16.msrb.mxu1 %v11307_v5  ;;  %4850 = vmatpush.bf16.msrb.mxu2 %v11371_v18  ;;  %v11288_v63 = vld [vmem:[#allocation7 + $0x28] sm:$0xf0]  ;;  %v12183_v46 = vor.u32 %v14742_v8, %v12182_v25  ;;  %v11355_v5 = vor.u32 %v14533_v43, %v11352_v50  ;;  %v14515_v18 = vld [vmem:[#allocation7 + $0x14] sm:$0xf]  ;;  %v14738_v25 = vld [vmem:[#allocation7 + $0x704] sm:$0xf0] }
 0x1c2   : > { %v3175_v31 = vadd.f32 %v3174_v19, %v3156_v32  ;;  %4741 = vmatmul.bf16.vlgmr.msra.gmra.mxu0 %v18665_v9  ;;  %4760 = vmatmul.bf16.vlgmr.msra.gmra.mxu1 %v18666_v29  ;;  %v11291_v17 = vor.u32 %v14517_v0, %v11288_v63  ;;  %v11419_v32 = vor.u32 %v14549_v14, %v11416_v10  ;;  %v14529_v63 = vld [vmem:[#allocation7 + $0x84] sm:$0xf]  ;;  %v18670_v14 = vld [vmem:[#allocation52_spill] sm:$0xff]  ;;  %v11400_v16 = vld [vmem:[#allocation7 + $0x108] sm:$0xf0] }
 0x1c3   : > { %4779 = vmatmul.bf16.vlgmr.msra.gmra.mxu2 %v18667_v45  ;;  %v3212_v13 = vpop.f32.mrf.mxu3  ;;  %4869 = vmatpush.bf16.msrb.mxu3 %v11435_v36  ;;  %v11280_v36 = vld [vmem:[#allocation7 + $0x18] sm:$0xf0]  ;;  %v11411_v0 = vor.u32 %v14547_v44, %v11408_v3  ;;  %v14545_v43 = vld [vmem:[#allocation7 + $0x104] sm:$0xf]  ;;  %v18671_v10 = vunpack.c.h.b16 %v18670_v14  ;;  %v14591_v44 = vld [vmem:[#allocation7 + $0x274] sm:$0xf]  ;;  %v18679_v6 = vunpack.c.l.b16 %v18670_v14 }
 0x1c4   : > { %4813 = vmatpush.bf16.msrb.mxu0 %v12191_v38  ;;  %v11344_v38 = vld [vmem:[#allocation7 + $0x98] sm:$0xf0]  ;;  %v11283_v8 = vor.u32 %v14515_v18, %v11280_v36 }
 0x1c5   : > { %4832 = vmatpush.bf16.msrb.mxu1 %v11299_v55  ;;  %4851 = vmatpush.bf16.msrb.mxu2 %v11363_v12  ;;  %v11272_v55 = vld [vmem:[#allocation7 + $0x8] sm:$0xf0]  ;;  %v11584_v3 = vld [vmem:[#allocation7 + $0x278] sm:$0xf0] }
 0x1c6   : > { %v3193_v62 = vpop.f32.mrf.mxu2  ;;  %v11712_v29 = vld [vmem:[#allocation7 + $0x378] sm:$0xf0]  ;;  %v11587_v14 = vor.u32 %v14591_v44, %v11584_v3 }
 0x1c7   : > { %v3194_v30 = vadd.f32 %v3193_v62, %v3175_v31  ;;  %v3157_v7 = vpop.f32.mrf.mxu0  ;;  %v3176_v61 = vpop.f32.mrf.mxu1  ;;  %4870 = vmatpush.bf16.msrb.mxu3 %v11427_v40  ;;  %v12166_v31 = vld [vmem:[#allocation7 + $0x700] sm:$0xf]  ;;  %v11347_v40 = vor.u32 %v14531_v56, %v11344_v38  ;;  %v11504_v44 = vld [vmem:[#allocation7 + $0x1d8] sm:$0xf0] }
 0x1c8   : > { %v3158_v19 = vadd.f32 %v3157_v7, %v17141_v47  ;;  %4814 = vmatpush.bf16.msrb.mxu0 %v12183_v46  ;;  %v14513_v47 = vld [vmem:[#allocation7 + $0x4] sm:$0xf]  ;;  %v18668_v46 = vld [vmem:[#allocation46_spill] sm:$0xff]  ;;  %v12167_v58 = vor.u32 %v14738_v25, %v12166_v31  ;;  %v11520_v7 = vld [vmem:[#allocation7 + $0x1f8] sm:$0xf0] }
 0x1c9   : > { %v17158_v27 = vadd.f32 %v3212_v13, %v3194_v30  ;;  %4833 = vmatpush.bf16.msrb.mxu1 %v11291_v17  ;;  %4852 = vmatpush.bf16.msrb.mxu2 %v11355_v5  ;;  %v11336_v13 = vld [vmem:[#allocation7 + $0x88] sm:$0xf0]  ;;  %v18669_v50 = vunpack.c.h.b16 %v18668_v46  ;;  %v14575_v30 = vld [vmem:[#allocation7 + $0x1f4] sm:$0xf]  ;;  %v18674_v5 = vld [vmem:[#allocation44_spill] sm:$0xff] }
 0x1ca   : > { %v3177_v22 = vadd.f32 %v3176_v61, %v3158_v19  ;;  %v18672_v17 = vld [vmem:[#allocation38_spill] sm:$0xff]  ;;  %v18677_v56 = vunpack.c.h.b16 %v18674_v5 }
 0x1cb   : > { %v3214_v12 = vpop.f32.mrf.mxu3  ;;  %4871 = vmatpush.bf16.msrb.mxu3 %v11419_v32  ;;  %v17164_v62 = vpack.c.b16 %v18671_v10, %v18669_v50  ;;  %v18673_v19 = vunpack.c.l.b16 %v18672_v17  ;;  %v18675_v32 = vunpack.c.l.b16 %v18674_v5  ;;  %v18676_v36 = vunpack.c.h.b16 %v18672_v17  ;;  %v14623_v17 = vld [vmem:[#allocation7 + $0x374] sm:$0xf] }
 0x1cc   : > { %4815 = vmatpush.bf16.msrb.mxu0 %v12175_v24  ;;  %v14607_v24 = vld [vmem:[#allocation7 + $0x2f4] sm:$0xf]  ;;  %v18678_v10 = vunpack.c.l.b16 %v18668_v46  ;;  %v11523_v46 = vor.u32 %v14575_v30, %v11520_v7 }
 0x1cd   : > { %v17170_v18 = vpack.c.b16 %v18675_v32, %v18673_v19  ;;  %v17176_v38 = vpack.c.b16 %v18677_v56, %v18676_v36  ;;  %4834 = vmatpush.bf16.msrb.mxu1 %v11283_v8  ;;  %v11275_v19 = vor.u32 %v14513_v47, %v11272_v55  ;;  %v11648_v32 = vld [vmem:[#allocation7 + $0x2f8] sm:$0xf0]  ;;  %4853 = vmatpush.bf16.msrb.mxu2 %v11347_v40  ;;  %v14589_v55 = vld [vmem:[#allocation7 + $0x264] sm:$0xf]  ;;  %v11576_v40 = vld [vmem:[#allocation7 + $0x268] sm:$0xf0] }
 0x1ce   : > { %v3195_v61 = vpop.f32.mrf.mxu2  ;;  %v17182_v45 = vpack.c.b16 %v18679_v6, %v18678_v10  ;;  %v11339_v36 = vor.u32 %v14529_v63, %v11336_v13  ;;  %v11403_v56 = vor.u32 %v14545_v43, %v11400_v16  ;;  %v14573_v6 = vld [vmem:[#allocation7 + $0x1e4] sm:$0xf]  ;;  %v11651_v47 = vor.u32 %v14607_v24, %v11648_v32  ;;  %v11704_v13 = vld [vmem:[#allocation7 + $0x368] sm:$0xf0]  ;;  %v14571_v7 = vld [vmem:[#allocation7 + $0x1d4] sm:$0xf] }
 0x1cf   : > { %v3196_v31 = vadd.f32 %v3195_v61, %v3177_v22  ;;  %v3160_v25 = vpop.f32.mrf.mxu0  ;;  %v3179_v50 = vpop.f32.mrf.mxu1  ;;  %4872 = vmatpush.bf16.msrb.mxu3 %v11411_v0  ;;  %v11512_v61 = vld [vmem:[#allocation7 + $0x1e8] sm:$0xf0]  ;;  %v14605_v0 = vld [vmem:[#allocation7 + $0x2e4] sm:$0xf]  ;;  %v11579_v30 = vor.u32 %v14589_v55, %v11576_v40 }
 0x1d0   : > { %v3161_v5 = vadd.f32 %v3160_v25, %v17148_v59  ;;  %4803 = vmatmul.bf16.gmra.mxu3 %v17164_v62  ;;  %4816 = vmatpush.bf16.msrb.mxu0 %v12167_v58  ;;  %v11715_v59 = vor.u32 %v14623_v17, %v11712_v29  ;;  %v14621_v63 = vld [vmem:[#allocation7 + $0x364] sm:$0xf]  ;;  %v824_v58 = vld [vmem:[#allocation2 + $0x38] sm:$0xf]  ;;  %v11515_v16 = vor.u32 %v14573_v6, %v11512_v61  ;;  %v11568_v25 = vld [vmem:[#allocation7 + $0x258] sm:$0xf0] }
 0x1d1   : > { %v17185_v22 = vadd.f32 %v3214_v12, %v3196_v31  ;;  %4835 = vmatpush.bf16.msrb.mxu1 %v11275_v19  ;;  %v11640_v12 = vld [vmem:[#allocation7 + $0x2e8] sm:$0xf0]  ;;  %4854 = vmatpush.bf16.msrb.mxu2 %v11339_v36  ;;  %v11707_v24 = vor.u32 %v14621_v63, %v11704_v13  ;;  %v14587_v31 = vld [vmem:[#allocation7 + $0x254] sm:$0xf]  ;;  %v11632_v17 = vld [vmem:[#allocation7 + $0x2d8] sm:$0xf0]  ;;  %v3282_v61 = vunpack.c.l.b16 %v824_v58 }
 0x1d2   : > { %v3180_v8 = vadd.f32 %v3179_v50, %v3161_v5  ;;  %4746 = vmatmul.bf16.gmra.mxu0 %v17170_v18  ;;  %4765 = vmatmul.bf16.gmra.mxu1 %v17176_v38  ;;  %v11643_v3 = vor.u32 %v14605_v0, %v11640_v12  ;;  %v14603_v50 = vld [vmem:[#allocation7 + $0x2d4] sm:$0xf]  ;;  %v11696_v36 = vld [vmem:[#allocation7 + $0x358] sm:$0xf0]  ;;  %v11571_v6 = vor.u32 %v14587_v31, %v11568_v25  ;;  %v11496_v40 = vld [vmem:[#allocation7 + $0x1c8] sm:$0xf0] }
 0x1d3   : > { %4784 = vmatmul.bf16.gmra.mxu2 %v17182_v45  ;;  %v3217_v43 = vpop.f32.mrf.mxu3  ;;  %4873 = vmatpush.bf16.msrb.mxu3 %v11403_v56  ;;  %v14619_v5 = vld [vmem:[#allocation7 + $0x354] sm:$0xf]  ;;  %v14585_v12 = vld [vmem:[#allocation7 + $0x244] sm:$0xf]  ;;  %v11560_v63 = vld [vmem:[#allocation7 + $0x248] sm:$0xf0] }
 0x1d4   : > { %4885 = vmatpush.bf16.msra.mxu0 %v11523_v46  ;;  %v11699_v55 = vor.u32 %v14619_v5, %v11696_v36  ;;  %v14601_v13 = vld [vmem:[#allocation7 + $0x2c4] sm:$0xf]  ;;  %v14583_v5 = vld [vmem:[#allocation7 + $0x234] sm:$0xf]  ;;  %v11552_v36 = vld [vmem:[#allocation7 + $0x238] sm:$0xf0] }
 0x1d5   : > { %4904 = vmatpush.bf16.msra.mxu1 %v11587_v14  ;;  %4923 = vmatpush.bf16.msra.mxu2 %v11651_v47  ;;  %v11507_v14 = vor.u32 %v14571_v7, %v11504_v44  ;;  %v18680_v7 = vld [vmem:[#allocation49_spill] sm:$0xff] }
 0x1d6   : > { %v3198_v29 = vpop.f32.mrf.mxu2  ;;  %v18681_v44 = vunpack.c.l.b16 %v18680_v7  ;;  %v11672_v7 = vld [vmem:[#allocation7 + $0x328] sm:$0xf0] }
 0x1d7   : > { %4942 = vmatpush.bf16.msra.mxu3 %v11715_v59  ;;  %v3199_v10 = vadd.f32 %v3198_v29, %v3180_v8  ;;  %v3162_v19 = vpop.f32.mrf.mxu0  ;;  %v3181_v32 = vpop.f32.mrf.mxu1  ;;  %v11635_v59 = vor.u32 %v14603_v50, %v11632_v17  ;;  %v14569_v8 = vld [vmem:[#allocation7 + $0x1c4] sm:$0xf] }
 0x1d8   : > { %v3163_v56 = vadd.f32 %v3162_v19, %v17151_v11  ;;  %4886 = vmatpush.bf16.msra.mxu0 %v11515_v16  ;;  %v11499_v11 = vor.u32 %v14569_v8, %v11496_v40  ;;  %v14617_v16 = vld [vmem:[#allocation7 + $0x344] sm:$0xf]  ;;  %v17196_v58 = vpack.c.b16 %v18681_v44, %v3282_v61  ;;  %v11616_v61 = vld [vmem:[#allocation7 + $0x2b8] sm:$0xf0]  ;;  %v11480_v8 = vld [vmem:[#allocation7 + $0x1a8] sm:$0xf0]  ;;  %v11555_v40 = vor.u32 %v14583_v5, %v11552_v36 }
 0x1d9   : > { %v17192_v46 = vadd.f32 %v3217_v43, %v3199_v10  ;;  %4905 = vmatpush.bf16.msra.mxu1 %v11579_v30  ;;  %4924 = vmatpush.bf16.msra.mxu2 %v11643_v3  ;;  %v11624_v43 = vld [vmem:[#allocation7 + $0x2c8] sm:$0xf0]  ;;  %v14567_v3 = vld [vmem:[#allocation7 + $0x1b4] sm:$0xf]  ;;  %v11563_v10 = vor.u32 %v14585_v12, %v11560_v63  ;;  %v14581_v63 = vld [vmem:[#allocation7 + $0x224] sm:$0xf] }
 0x1da   : > { %v3182_v47 = vadd.f32 %v3181_v32, %v3163_v56  ;;  %v11688_v30 = vld [vmem:[#allocation7 + $0x348] sm:$0xf0]  ;;  %v11627_v32 = vor.u32 %v14601_v13, %v11624_v43  ;;  %v14599_v56 = vld [vmem:[#allocation7 + $0x2b4] sm:$0xf] }
 0x1db   : > { %4943 = vmatpush.bf16.msra.mxu3 %v11707_v24  ;;  %v3219_v0 = vpop.f32.mrf.mxu3  ;;  %v11488_v24 = vld [vmem:[#allocation7 + $0x1b8] sm:$0xf0]  ;;  %v11691_v17 = vor.u32 %v14617_v16, %v11688_v30  ;;  %v11544_v13 = vld [vmem:[#allocation7 + $0x228] sm:$0xf0]  ;;  %v14613_v30 = vld [vmem:[#allocation7 + $0x324] sm:$0xf] }
 0x1dc   : > { %4887 = vmatpush.bf16.msra.mxu0 %v11507_v14  ;;  %v11608_v16 = vld [vmem:[#allocation7 + $0x2a8] sm:$0xf0]  ;;  %v14563_v44 = vld [vmem:[#allocation7 + $0x194] sm:$0xf] }
 0x1dd   : > { %4906 = vmatpush.bf16.msra.mxu1 %v11571_v6  ;;  %4925 = vmatpush.bf16.msra.mxu2 %v11635_v59  ;;  %v11491_v6 = vor.u32 %v14567_v3, %v11488_v24  ;;  %v14615_v59 = vld [vmem:[#allocation7 + $0x334] sm:$0xf] }
 0x1de   : > { %v3200_v29 = vpop.f32.mrf.mxu2 }
 0x1df   : > { %4944 = vmatpush.bf16.msra.mxu3 %v11699_v55  ;;  %v3201_v31 = vadd.f32 %v3200_v29, %v3182_v47  ;;  %v3231_v25 = vpop.f32.mrf.mxu0  ;;  %v3250_v50 = vpop.f32.mrf.mxu1  ;;  %v11680_v55 = vld [vmem:[#allocation7 + $0x338] sm:$0xf0] }
 0x1e0   : > { %v3232_v19 = vadd.f32 %v3231_v25, %v17158_v27  ;;  %4874 = vmatmul.bf16.vlgmr.msrb.gmra.mxu3 %v18632_v4  ;;  %4888 = vmatpush.bf16.msra.mxu0 %v11499_v11  ;;  %v14565_v27 = vld [vmem:[#allocation7 + $0x1a4] sm:$0xf]  ;;  %v11619_v4 = vor.u32 %v14599_v56, %v11616_v61  ;;  %v11683_v12 = vor.u32 %v14615_v59, %v11680_v55  ;;  %v11472_v29 = vld [vmem:[#allocation7 + $0x198] sm:$0xf0]  ;;  %v11464_v55 = vld [vmem:[#allocation7 + $0x188] sm:$0xf0] }
 0x1e1   : > { %v17199_v14 = vadd.f32 %v3219_v0, %v3201_v31  ;;  %4907 = vmatpush.bf16.msra.mxu1 %v11563_v10  ;;  %4926 = vmatpush.bf16.msra.mxu2 %v11627_v32  ;;  %v14597_v11 = vld [vmem:[#allocation7 + $0x2a4] sm:$0xf]  ;;  %v11483_v43 = vor.u32 %v14565_v27, %v11480_v8  ;;  %v11547_v31 = vor.u32 %v14581_v63, %v11544_v13  ;;  %v11536_v32 = vld [vmem:[#allocation7 + $0x218] sm:$0xf0]  ;;  %v11528_v8 = vld [vmem:[#allocation7 + $0x208] sm:$0xf0] }
 0x1e2   : > { %v17202_v47 = vadd.f32 %v3250_v50, %v3232_v19  ;;  %4817 = vmatmul.bf16.vlgmr.msrb.gmra.mxu0 %v17196_v58  ;;  %4836 = vmatmul.bf16.vlgmr.msrb.gmra.mxu1 %v16208_v34  ;;  %v11611_v50 = vor.u32 %v14597_v11, %v11608_v16  ;;  %v11675_v10 = vor.u32 %v14613_v30, %v11672_v7  ;;  %v14579_v19 = vld [vmem:[#allocation7 + $0x214] sm:$0xf]  ;;  %v11600_v56 = vld [vmem:[#allocation7 + $0x298] sm:$0xf0]  ;;  %v14561_v59 = vld [vmem:[#allocation7 + $0x184] sm:$0xf] }
 0x1e3   : > { %4855 = vmatmul.bf16.vlgmr.msrb.gmra.mxu2 %v16215_v41  ;;  %v4571_v0 = vpop.f32.mrf.mxu3  ;;  %4945 = vmatpush.bf16.msra.mxu3 %v11691_v17  ;;  %v14595_v17 = vld [vmem:[#allocation7 + $0x294] sm:$0xf]  ;;  %v11475_v36 = vor.u32 %v14563_v44, %v11472_v29  ;;  %v14577_v27 = vld [vmem:[#allocation7 + $0x204] sm:$0xf]  ;;  %v11592_v63 = vld [vmem:[#allocation7 + $0x288] sm:$0xf0]  ;;  %v11467_v11 = vor.u32 %v14561_v59, %v11464_v55 }
 0x1e4   : > { %4889 = vmatpush.bf16.msra.mxu0 %v11491_v6  ;;  %v14611_v6 = vld [vmem:[#allocation7 + $0x314] sm:$0xf]  ;;  %v14609_v13 = vld [vmem:[#allocation7 + $0x304] sm:$0xf]  ;;  %v11776_v30 = vld [vmem:[#allocation7 + $0x3f8] sm:$0xf0] }
 0x1e5   : > { %4908 = vmatpush.bf16.msra.mxu1 %v11555_v40  ;;  %4927 = vmatpush.bf16.msra.mxu2 %v11619_v4  ;;  %v11603_v4 = vor.u32 %v14595_v17, %v11600_v56  ;;  %v14639_v16 = vld [vmem:[#allocation7 + $0x3f4] sm:$0xf]  ;;  %v18684_v29 = vld [vmem:[#allocation53_spill] sm:$0xff]  ;;  %v11904_v17 = vld [vmem:[#allocation7 + $0x4f8] sm:$0xf0] }
 0x1e6   : > { %v4552_v34 = vpop.f32.mrf.mxu2  ;;  %v11968_v56 = vld [vmem:[#allocation7 + $0x578] sm:$0xf0] }
 0x1e7   : > { %v4553_v41 = vadd.f32 %v4552_v34, %v17007_v15  ;;  %v3233_v3 = vpop.f32.mrf.mxu0  ;;  %v3252_v24 = vpop.f32.mrf.mxu1  ;;  %4946 = vmatpush.bf16.msra.mxu3 %v11683_v12  ;;  %v11664_v15 = vld [vmem:[#allocation7 + $0x318] sm:$0xf0]  ;;  %v18682_v34 = vld [vmem:[#allocation51_spill] sm:$0xff] }
 0x1e8   : > { %v3234_v25 = vadd.f32 %v3233_v3, %v17185_v22  ;;  %4890 = vmatpush.bf16.msra.mxu0 %v11483_v43  ;;  %v11539_v22 = vor.u32 %v14579_v19, %v11536_v32  ;;  %v11667_v12 = vor.u32 %v14611_v6, %v11664_v15  ;;  %v11656_v43 = vld [vmem:[#allocation7 + $0x308] sm:$0xf0]  ;;  %v18683_v44 = vunpack.c.l.b16 %v18682_v34 }
 0x1e9   : > { %v17209_v5 = vadd.f32 %v4571_v0, %v4553_v41  ;;  %4909 = vmatpush.bf16.msra.mxu1 %v11547_v31  ;;  %4928 = vmatpush.bf16.msra.mxu2 %v11611_v50  ;;  %v14593_v0 = vld [vmem:[#allocation7 + $0x284] sm:$0xf]  ;;  %v18685_v41 = vunpack.c.l.b16 %v18684_v29  ;;  %v11840_v31 = vld [vmem:[#allocation7 + $0x478] sm:$0xf0]  ;;  %v11531_v32 = vor.u32 %v14577_v27, %v11528_v8  ;;  %v11659_v59 = vor.u32 %v14609_v13, %v11656_v43  ;;  %v14635_v43 = vld [vmem:[#allocation7 + $0x3d4] sm:$0xf] }
 0x1ea   : > { %v17211_v61 = vadd.f32 %v3252_v24, %v3234_v25  ;;  %v14655_v24 = vld [vmem:[#allocation7 + $0x474] sm:$0xf]  ;;  %v11595_v15 = vor.u32 %v14593_v0, %v11592_v63  ;;  %v11779_v34 = vor.u32 %v14639_v16, %v11776_v30  ;;  %v14653_v8 = vld [vmem:[#allocation7 + $0x464] sm:$0xf]  ;;  %v11960_v0 = vld [vmem:[#allocation7 + $0x568] sm:$0xf0] }
 0x1eb   : > { %v4573_v40 = vpop.f32.mrf.mxu3  ;;  %4947 = vmatpush.bf16.msra.mxu3 %v11675_v10  ;;  %v17217_v3 = vpack.c.b16 %v18685_v41, %v18683_v44  ;;  %v14671_v25 = vld [vmem:[#allocation7 + $0x4f4] sm:$0xf]  ;;  %v11768_v44 = vld [vmem:[#allocation7 + $0x3e8] sm:$0xf0] }
 0x1ec   : > { %4891 = vmatpush.bf16.msra.mxu0 %v11475_v36  ;;  %v14687_v36 = vld [vmem:[#allocation7 + $0x574] sm:$0xf] }
 0x1ed   : > { %4910 = vmatpush.bf16.msra.mxu1 %v11539_v22  ;;  %4929 = vmatpush.bf16.msra.mxu2 %v11603_v4  ;;  %v11971_v27 = vor.u32 %v14687_v36, %v11968_v56  ;;  %v11832_v4 = vld [vmem:[#allocation7 + $0x468] sm:$0xf0]  ;;  %v14651_v41 = vld [vmem:[#allocation7 + $0x454] sm:$0xf] }
 0x1ee   : > { %v4554_v7 = vpop.f32.mrf.mxu2 }
 0x1ef   : > { %v4555_v50 = vadd.f32 %v4554_v7, %v17018_v2  ;;  %v3236_v10 = vpop.f32.mrf.mxu0  ;;  %v3255_v19 = vpop.f32.mrf.mxu1  ;;  %4948 = vmatpush.bf16.msra.mxu3 %v11667_v12  ;;  %v11843_v2 = vor.u32 %v14655_v24, %v11840_v31  ;;  %v14637_v7 = vld [vmem:[#allocation7 + $0x3e4] sm:$0xf]  ;;  %v14667_v24 = vld [vmem:[#allocation7 + $0x4d4] sm:$0xf] }
 0x1f0   : > { %v3237_v6 = vadd.f32 %v3236_v10, %v17192_v46  ;;  %4879 = vmatmul.bf16.gmra.mxu3 %v17066_v33  ;;  %4892 = vmatpush.bf16.msra.mxu0 %v11467_v11  ;;  %v11907_v46 = vor.u32 %v14671_v25, %v11904_v17  ;;  %v14669_v12 = vld [vmem:[#allocation7 + $0x4e4] sm:$0xf]  ;;  %v11896_v33 = vld [vmem:[#allocation7 + $0x4e8] sm:$0xf0]  ;;  %v11771_v13 = vor.u32 %v14637_v7, %v11768_v44  ;;  %v11888_v10 = vld [vmem:[#allocation7 + $0x4d8] sm:$0xf0] }
 0x1f1   : > { %v17221_v55 = vadd.f32 %v4573_v40, %v4555_v50  ;;  %4911 = vmatpush.bf16.msra.mxu1 %v11531_v32  ;;  %v14685_v40 = vld [vmem:[#allocation7 + $0x564] sm:$0xf]  ;;  %4930 = vmatpush.bf16.msra.mxu2 %v11595_v15  ;;  %v11835_v11 = vor.u32 %v14653_v8, %v11832_v4  ;;  %v11899_v30 = vor.u32 %v14669_v12, %v11896_v33  ;;  %v11952_v32 = vld [vmem:[#allocation7 + $0x558] sm:$0xf0]  ;;  %v11880_v8 = vld [vmem:[#allocation7 + $0x4c8] sm:$0xf0] }
 0x1f2   : > { %v17224_v22 = vadd.f32 %v3255_v19, %v3237_v6  ;;  %4822 = vmatmul.bf16.gmra.mxu0 %v17217_v3  ;;  %4841 = vmatmul.bf16.gmra.mxu1 %v17024_v21  ;;  %v11760_v21 = vld [vmem:[#allocation7 + $0x3d8] sm:$0xf0]  ;;  %v11963_v29 = vor.u32 %v14685_v40, %v11960_v0  ;;  %v14683_v19 = vld [vmem:[#allocation7 + $0x554] sm:$0xf]  ;;  %v14649_v44 = vld [vmem:[#allocation7 + $0x444] sm:$0xf] }
 0x1f3   : > { %4860 = vmatmul.bf16.gmra.mxu2 %v17016_v26  ;;  %v4576_v63 = vpop.f32.mrf.mxu3  ;;  %4949 = vmatpush.bf16.msra.mxu3 %v11659_v59  ;;  %v11824_v26 = vld [vmem:[#allocation7 + $0x458] sm:$0xf0]  ;;  %v11763_v56 = vor.u32 %v14635_v43, %v11760_v21  ;;  %v11891_v59 = vor.u32 %v14667_v24, %v11888_v10  ;;  %v14681_v4 = vld [vmem:[#allocation7 + $0x544] sm:$0xf]  ;;  %v11944_v12 = vld [vmem:[#allocation7 + $0x548] sm:$0xf0] }
 0x1f4   : > { %4961 = vmatpush.bf16.msrb.mxu0 %v11779_v34  ;;  %v11827_v6 = vor.u32 %v14651_v41, %v11824_v26  ;;  %v11955_v34 = vor.u32 %v14683_v19, %v11952_v32  ;;  %v14631_v40 = vld [vmem:[#allocation7 + $0x3b4] sm:$0xf]  ;;  %v11744_v0 = vld [vmem:[#allocation7 + $0x3b8] sm:$0xf0]  ;;  %v11736_v19 = vld [vmem:[#allocation7 + $0x3a8] sm:$0xf0] }
 0x1f5   : > { %4980 = vmatpush.bf16.msrb.mxu1 %v11843_v2  ;;  %4999 = vmatpush.bf16.msrb.mxu2 %v11907_v46  ;;  %v11752_v2 = vld [vmem:[#allocation7 + $0x3c8] sm:$0xf0]  ;;  %v11808_v41 = vld [vmem:[#allocation7 + $0x438] sm:$0xf0]  ;;  %v14663_v26 = vld [vmem:[#allocation7 + $0x4b4] sm:$0xf] }
 0x1f6   : > { %v4557_v16 = vpop.f32.mrf.mxu2  ;;  %v11816_v46 = vld [vmem:[#allocation7 + $0x448] sm:$0xf0]  ;;  %v11936_v10 = vld [vmem:[#allocation7 + $0x538] sm:$0xf0] }
 0x1f7   : > { %5018 = vmatpush.bf16.msrb.mxu3 %v11971_v27  ;;  %v4558_v31 = vadd.f32 %v4557_v16, %v17033_v42  ;;  %v3238_v25 = vpop.f32.mrf.mxu0  ;;  %v3257_v50 = vpop.f32.mrf.mxu1  ;;  %v14633_v42 = vld [vmem:[#allocation7 + $0x3c4] sm:$0xf]  ;;  %v11819_v43 = vor.u32 %v14649_v44, %v11816_v46  ;;  %v14627_v44 = vld [vmem:[#allocation7 + $0x394] sm:$0xf]  ;;  %v11728_v46 = vld [vmem:[#allocation7 + $0x398] sm:$0xf0] }
 0x1f8   : > { %v3239_v17 = vadd.f32 %v3238_v25, %v17199_v14  ;;  %4962 = vmatpush.bf16.msrb.mxu0 %v11771_v13  ;;  %v14665_v27 = vld [vmem:[#allocation7 + $0x4c4] sm:$0xf]  ;;  %v11755_v14 = vor.u32 %v14633_v42, %v11752_v2  ;;  %v11872_v25 = vld [vmem:[#allocation7 + $0x4b8] sm:$0xf0]  ;;  %v11864_v2 = vld [vmem:[#allocation7 + $0x4a8] sm:$0xf0] }
 0x1f9   : > { %v17231_v36 = vadd.f32 %v4576_v63, %v4558_v31  ;;  %4981 = vmatpush.bf16.msrb.mxu1 %v11835_v11  ;;  %5000 = vmatpush.bf16.msrb.mxu2 %v11899_v30  ;;  %v11883_v16 = vor.u32 %v14665_v27, %v11880_v8  ;;  %v11947_v30 = vor.u32 %v14681_v4, %v11944_v12 }
 0x1fa   : > { %v17233_v15 = vadd.f32 %v3257_v50, %v3239_v17  ;;  %v11747_v31 = vor.u32 %v14631_v40, %v11744_v0  ;;  %v14679_v50 = vld [vmem:[#allocation7 + $0x534] sm:$0xf]  ;;  %v11792_v0 = vld [vmem:[#allocation7 + $0x418] sm:$0xf0] }
 0x1fb   : > { %5019 = vmatpush.bf16.msrb.mxu3 %v11963_v29  ;;  %v4578_v7 = vpop.f32.mrf.mxu3  ;;  %v14647_v29 = vld [vmem:[#allocation7 + $0x434] sm:$0xf] }
 0x1fc   : > { %4963 = vmatpush.bf16.msrb.mxu0 %v11763_v56  ;;  %v11811_v32 = vor.u32 %v14647_v29, %v11808_v41  ;;  %v11939_v56 = vor.u32 %v14679_v50, %v11936_v10  ;;  %v14643_v40 = vld [vmem:[#allocation7 + $0x414] sm:$0xf]  ;;  %v14625_v29 = vld [vmem:[#allocation7 + $0x384] sm:$0xf]  ;;  %v11720_v41 = vld [vmem:[#allocation7 + $0x388] sm:$0xf0] }
 0x1fd   : > { %4982 = vmatpush.bf16.msrb.mxu1 %v11827_v6  ;;  %5001 = vmatpush.bf16.msrb.mxu2 %v11891_v59  ;;  %v14645_v6 = vld [vmem:[#allocation7 + $0x424] sm:$0xf]  ;;  %v11800_v59 = vld [vmem:[#allocation7 + $0x428] sm:$0xf0] }
 0x1fe   : > { %v4559_v33 = vpop.f32.mrf.mxu2  ;;  %v11803_v8 = vor.u32 %v14645_v6, %v11800_v59  ;;  %v14719_v59 = vld [vmem:[#allocation7 + $0x674] sm:$0xf] }
 0x1ff   : > { %5020 = vmatpush.bf16.msrb.mxu3 %v11955_v34  ;;  %v4560_v63 = vadd.f32 %v4559_v33, %v17046_v28  ;;  %v4590_v13 = vpop.f32.mrf.mxu0  ;;  %v4609_v11 = vpop.f32.mrf.mxu1  ;;  %v14661_v34 = vld [vmem:[#allocation7 + $0x4a4] sm:$0xf] }
 0x200   : > { %v4591_v21 = vadd.f32 %v4590_v13, %v17209_v5  ;;  %4950 = vmatmul.bf16.vlgmr.msra.gmra.mxu3 %v17096_v54  ;;  %4964 = vmatpush.bf16.msrb.mxu0 %v11755_v14  ;;  %v14629_v5 = vld [vmem:[#allocation7 + $0x3a4] sm:$0xf]  ;;  %v11875_v54 = vor.u32 %v14663_v26, %v11872_v25  ;;  %v11867_v12 = vor.u32 %v14661_v34, %v11864_v2  ;;  %v12096_v34 = vld [vmem:[#allocation7 + $0x678] sm:$0xf0] }
 0x201   : > { %v17237_v24 = vadd.f32 %v4578_v7, %v4560_v63  ;;  %4983 = vmatpush.bf16.msrb.mxu1 %v11819_v43  ;;  %5002 = vmatpush.bf16.msrb.mxu2 %v11883_v16  ;;  %v11739_v42 = vor.u32 %v14629_v5, %v11736_v19  ;;  %v11928_v7 = vld [vmem:[#allocation7 + $0x528] sm:$0xf0]  ;;  %v14659_v63 = vld [vmem:[#allocation7 + $0x494] sm:$0xf]  ;;  %v11856_v43 = vld [vmem:[#allocation7 + $0x498] sm:$0xf0]  ;;  %v11795_v26 = vor.u32 %v14643_v40, %v11792_v0 }
 0x202   : > { %v4610_v28 = vadd.f32 %v4609_v11, %v4591_v21  ;;  %4893 = vmatmul.bf16.vlgmr.msra.gmra.mxu0 %v18633_v52  ;;  %4912 = vmatmul.bf16.vlgmr.msra.gmra.mxu1 %v17044_v37  ;;  %v14677_v52 = vld [vmem:[#allocation7 + $0x524] sm:$0xf]  ;;  %v11731_v11 = vor.u32 %v14627_v44, %v11728_v46  ;;  %v14675_v21 = vld [vmem:[#allocation7 + $0x514] sm:$0xf]  ;;  %v11920_v16 = vld [vmem:[#allocation7 + $0x518] sm:$0xf0]  ;;  %v11859_v50 = vor.u32 %v14659_v63, %v11856_v43 }
 0x203   : > { %4931 = vmatmul.bf16.vlgmr.msra.gmra.mxu2 %v17040_v53  ;;  %v4647_v17 = vpop.f32.mrf.mxu3  ;;  %5021 = vmatpush.bf16.msrb.mxu3 %v11947_v30  ;;  %v11931_v33 = vor.u32 %v14677_v52, %v11928_v7  ;;  %v11923_v10 = vor.u32 %v14675_v21, %v11920_v16  ;;  %v11848_v5 = vld [vmem:[#allocation7 + $0x488] sm:$0xf0]  ;;  %v14673_v19 = vld [vmem:[#allocation7 + $0x504] sm:$0xf]  ;;  %v12160_v44 = vld [vmem:[#allocation7 + $0x6f8] sm:$0xf0] }
 0x204   : > { %4965 = vmatpush.bf16.msrb.mxu0 %v11747_v31  ;;  %v11784_v31 = vld [vmem:[#allocation7 + $0x408] sm:$0xf0]  ;;  %v14751_v46 = vld [vmem:[#allocation7 + $0x774] sm:$0xf]  ;;  %v14701_v40 = vld [vmem:[#allocation7 + $0x5e4] sm:$0xf] }
 0x205   : > { %4984 = vmatpush.bf16.msrb.mxu1 %v11811_v32  ;;  %5003 = vmatpush.bf16.msrb.mxu2 %v11875_v54  ;;  %v11723_v32 = vor.u32 %v14625_v29, %v11720_v41  ;;  %v14703_v54 = vld [vmem:[#allocation7 + $0x5f4] sm:$0xf]  ;;  %v12024_v0 = vld [vmem:[#allocation7 + $0x5e8] sm:$0xf0]  ;;  %v14717_v43 = vld [vmem:[#allocation7 + $0x664] sm:$0xf] }
 0x206   : > { %v4628_v37 = vpop.f32.mrf.mxu2  ;;  %v12088_v21 = vld [vmem:[#allocation7 + $0x668] sm:$0xf0]  ;;  %v14733_v16 = vld [vmem:[#allocation7 + $0x6e4] sm:$0xf] }
 0x207   : > { %v4629_v27 = vadd.f32 %v4628_v37, %v4610_v28  ;;  %v4592_v53 = vpop.f32.mrf.mxu0  ;;  %v4611_v14 = vpop.f32.mrf.mxu1  ;;  %5022 = vmatpush.bf16.msrb.mxu3 %v11939_v56  ;;  %v14657_v28 = vld [vmem:[#allocation7 + $0x484] sm:$0xf]  ;;  %v12032_v56 = vld [vmem:[#allocation7 + $0x5f8] sm:$0xf0]  ;;  %v12216_v29 = vld [vmem:[#allocation7 + $0x768] sm:$0xf0] }
 0x208   : > { %v4593_v4 = vadd.f32 %v4592_v53, %v17221_v55  ;;  %4966 = vmatpush.bf16.msrb.mxu0 %v11739_v42  ;;  %v14641_v55 = vld [vmem:[#allocation7 + $0x404] sm:$0xf]  ;;  %v14735_v42 = vld [vmem:[#allocation7 + $0x6f4] sm:$0xf] }
 0x209   : > { %v17244_v13 = vadd.f32 %v4647_v17, %v4629_v27  ;;  %4985 = vmatpush.bf16.msrb.mxu1 %v11803_v8  ;;  %5004 = vmatpush.bf16.msrb.mxu2 %v11867_v12  ;;  %v11912_v17 = vld [vmem:[#allocation7 + $0x508] sm:$0xf0]  ;;  %v11787_v37 = vor.u32 %v14641_v55, %v11784_v31  ;;  %v12224_v27 = vld [vmem:[#allocation7 + $0x778] sm:$0xf0]  ;;  %v12035_v12 = vor.u32 %v14703_v54, %v12032_v56  ;;  %v14699_v55 = vld [vmem:[#allocation7 + $0x5d4] sm:$0xf] }
 0x20a   : > { %v4612_v30 = vadd.f32 %v4611_v14, %v4593_v4  ;;  %v11851_v14 = vor.u32 %v14657_v28, %v11848_v5  ;;  %v11915_v8 = vor.u32 %v14673_v19, %v11912_v17  ;;  %v14731_v28 = vld [vmem:[#allocation7 + $0x6d4] sm:$0xf]  ;;  %v12144_v17 = vld [vmem:[#allocation7 + $0x6d8] sm:$0xf0] }
 0x20b   : > { %v4649_v25 = vpop.f32.mrf.mxu3  ;;  %5023 = vmatpush.bf16.msrb.mxu3 %v11931_v33  ;;  %v12099_v33 = vor.u32 %v14719_v59, %v12096_v34  ;;  %v14747_v54 = vld [vmem:[#allocation7 + $0x754] sm:$0xf]  ;;  %v12208_v56 = vld [vmem:[#allocation7 + $0x758] sm:$0xf0] }
 0x20c   : > { %4967 = vmatpush.bf16.msrb.mxu0 %v11731_v11  ;;  %v12163_v11 = vor.u32 %v14735_v42, %v12160_v44  ;;  %v12008_v44 = vld [vmem:[#allocation7 + $0x5c8] sm:$0xf0] }
 0x20d   : > { %4986 = vmatpush.bf16.msrb.mxu1 %v11795_v26  ;;  %5005 = vmatpush.bf16.msrb.mxu2 %v11859_v50  ;;  %v12027_v26 = vor.u32 %v14701_v40, %v12024_v0  ;;  %v14695_v0 = vld [vmem:[#allocation7 + $0x5b4] sm:$0xf] }
 0x20e   : > { %v4630_v6 = vpop.f32.mrf.mxu2 }
 0x20f   : > { %v4631_v2 = vadd.f32 %v4630_v6, %v4612_v30  ;;  %v4595_v52 = vpop.f32.mrf.mxu0  ;;  %v4614_v7 = vpop.f32.mrf.mxu1  ;;  %5024 = vmatpush.bf16.msrb.mxu3 %v11923_v10  ;;  %v12152_v30 = vld [vmem:[#allocation7 + $0x6e8] sm:$0xf0]  ;;  %v14715_v10 = vld [vmem:[#allocation7 + $0x654] sm:$0xf] }
 0x210   : > { %v4596_v53 = vadd.f32 %v4595_v52, %v17231_v36  ;;  %4955 = vmatmul.bf16.gmra.mxu3 %v17126_v20  ;;  %4968 = vmatpush.bf16.msrb.mxu0 %v11723_v32  ;;  %v12227_v36 = vor.u32 %v14751_v46, %v12224_v27  ;;  %v14749_v20 = vld [vmem:[#allocation7 + $0x764] sm:$0xf]  ;;  %v12147_v52 = vor.u32 %v14731_v28, %v12144_v17 }
 0x211   : > { %v17247_v4 = vadd.f32 %v4649_v25, %v4631_v2  ;;  %4987 = vmatpush.bf16.msrb.mxu1 %v11787_v37  ;;  %5006 = vmatpush.bf16.msrb.mxu2 %v11851_v14  ;;  %v12155_v25 = vor.u32 %v14733_v16, %v12152_v30  ;;  %v12219_v50 = vor.u32 %v14749_v20, %v12216_v29  ;;  %v14697_v37 = vld [vmem:[#allocation7 + $0x5c4] sm:$0xf]  ;;  %v14711_v29 = vld [vmem:[#allocation7 + $0x634] sm:$0xf] }
 0x212   : > { %v4615_v63 = vadd.f32 %v4614_v7, %v4596_v53  ;;  %4898 = vmatmul.bf16.gmra.mxu0 %v17072_v23  ;;  %4917 = vmatmul.bf16.gmra.mxu1 %v17078_v39  ;;  %v12091_v23 = vor.u32 %v14717_v43, %v12088_v21  ;;  %v12016_v39 = vld [vmem:[#allocation7 + $0x5d8] sm:$0xf0]  ;;  %v12211_v7 = vor.u32 %v14747_v54, %v12208_v56  ;;  %v14713_v27 = vld [vmem:[#allocation7 + $0x644] sm:$0xf]  ;;  %v12072_v53 = vld [vmem:[#allocation7 + $0x648] sm:$0xf0] }
 0x213   : > { %4936 = vmatmul.bf16.gmra.mxu2 %v17060_v60  ;;  %v4652_v41 = vpop.f32.mrf.mxu3  ;;  %5025 = vmatpush.bf16.msrb.mxu3 %v11915_v8  ;;  %v12080_v60 = vld [vmem:[#allocation7 + $0x658] sm:$0xf0]  ;;  %v12019_v34 = vor.u32 %v14699_v55, %v12016_v39  ;;  %v14729_v14 = vld [vmem:[#allocation7 + $0x6c4] sm:$0xf]  ;;  %v12136_v8 = vld [vmem:[#allocation7 + $0x6c8] sm:$0xf0]  ;;  %v12075_v21 = vor.u32 %v14713_v27, %v12072_v53 }
 0x214   : > { %5037 = vmatpush.bf16.msra.mxu0 %v12035_v12  ;;  %v12083_v42 = vor.u32 %v14715_v10, %v12080_v60  ;;  %v14745_v12 = vld [vmem:[#allocation7 + $0x744] sm:$0xf]  ;;  %v12139_v30 = vor.u32 %v14729_v14, %v12136_v8  ;;  %v12128_v39 = vld [vmem:[#allocation7 + $0x6b8] sm:$0xf0]  ;;  %v11992_v10 = vld [vmem:[#allocation7 + $0x5a8] sm:$0xf0] }
 0x215   : > { %5056 = vmatpush.bf16.msra.mxu1 %v12099_v33  ;;  %5075 = vmatpush.bf16.msra.mxu2 %v12163_v11  ;;  %v12200_v33 = vld [vmem:[#allocation7 + $0x748] sm:$0xf0]  ;;  %v14725_v17 = vld [vmem:[#allocation7 + $0x6a4] sm:$0xf]  ;;  %v14707_v27 = vld [vmem:[#allocation7 + $0x614] sm:$0xf] }
 0x216   : > { %v4633_v31 = vpop.f32.mrf.mxu2  ;;  %v12203_v20 = vor.u32 %v14745_v12, %v12200_v33  ;;  %v12120_v56 = vld [vmem:[#allocation7 + $0x6a8] sm:$0xf0]  ;;  %v12048_v53 = vld [vmem:[#allocation7 + $0x618] sm:$0xf0]  ;;  %v14723_v14 = vld [vmem:[#allocation7 + $0x694] sm:$0xf] }
 0x217   : > { %5094 = vmatpush.bf16.msra.mxu3 %v12227_v36  ;;  %v4634_v5 = vadd.f32 %v4633_v31, %v4615_v63  ;;  %v4597_v19 = vpop.f32.mrf.mxu0  ;;  %v4616_v32 = vpop.f32.mrf.mxu1  ;;  %v12000_v63 = vld [vmem:[#allocation7 + $0x5b8] sm:$0xf0]  ;;  %v14743_v31 = vld [vmem:[#allocation7 + $0x734] sm:$0xf] }
 0x218   : > { %v4598_v6 = vadd.f32 %v4597_v19, %v17237_v24  ;;  %5038 = vmatpush.bf16.msra.mxu0 %v12027_v26  ;;  %v12011_v24 = vor.u32 %v14697_v37, %v12008_v44  ;;  %v14727_v26 = vld [vmem:[#allocation7 + $0x6b4] sm:$0xf]  ;;  %v12003_v55 = vor.u32 %v14695_v0, %v12000_v63  ;;  %v14709_v19 = vld [vmem:[#allocation7 + $0x624] sm:$0xf]  ;;  %v12123_v44 = vor.u32 %v14725_v17, %v12120_v56  ;;  %v12112_v12 = vld [vmem:[#allocation7 + $0x698] sm:$0xf0] }
 0x219   : > { %v17254_v59 = vadd.f32 %v4652_v41, %v4634_v5  ;;  %5057 = vmatpush.bf16.msra.mxu1 %v12091_v23  ;;  %5076 = vmatpush.bf16.msra.mxu2 %v12155_v25  ;;  %v12064_v41 = vld [vmem:[#allocation7 + $0x638] sm:$0xf0]  ;;  %v14739_v33 = vld [vmem:[#allocation7 + $0x714] sm:$0xf]  ;;  %v14689_v63 = vld [vmem:[#allocation7 + $0x584] sm:$0xf] }
 0x21a   : > { %v4617_v2 = vadd.f32 %v4616_v32, %v4598_v6  ;;  %v12192_v25 = vld [vmem:[#allocation7 + $0x738] sm:$0xf0]  ;;  %v12067_v60 = vor.u32 %v14711_v29, %v12064_v41  ;;  %v12056_v32 = vld [vmem:[#allocation7 + $0x628] sm:$0xf0]  ;;  %v14737_v41 = vld [vmem:[#allocation7 + $0x704] sm:$0xf] }
 0x21b   : > { %5095 = vmatpush.bf16.msra.mxu3 %v12219_v50  ;;  %v4654_v46 = vpop.f32.mrf.mxu3  ;;  %v12195_v5 = vor.u32 %v14743_v31, %v12192_v25  ;;  %v12184_v6 = vld [vmem:[#allocation7 + $0x728] sm:$0xf0]  ;;  %v15038_v31 = vld [vmem:[#allocation7 + $0xf74] sm:$0xf0] }
 0x21c   : > { %5039 = vmatpush.bf16.msra.mxu0 %v12019_v34  ;;  %v14691_v34 = vld [vmem:[#allocation7 + $0x594] sm:$0xf]  ;;  %v12104_v29 = vld [vmem:[#allocation7 + $0x688] sm:$0xf0]  ;;  %v15086_v17 = vld [vmem:[#allocation7 + $0x10f4] sm:$0xf0] }
 0x21d   : > { %5058 = vmatpush.bf16.msra.mxu1 %v12083_v42  ;;  %5077 = vmatpush.bf16.msra.mxu2 %v12147_v52  ;;  %v11984_v42 = vld [vmem:[#allocation7 + $0x598] sm:$0xf0] }
 0x21e   : > { %v4635_v40 = vpop.f32.mrf.mxu2  ;;  %v11987_v8 = vor.u32 %v14691_v34, %v11984_v42  ;;  %v12398_v42 = vld [vmem:[#allocation7 + $0xf60] sm:$0xf] }
 0x21f   : > { %5096 = vmatpush.bf16.msra.mxu3 %v12211_v7  ;;  %v4636_v11 = vadd.f32 %v4635_v40, %v4617_v2  ;;  %v4666_v36 = vpop.f32.mrf.mxu0  ;;  %v4685_v43 = vpop.f32.mrf.mxu1  ;;  %v12059_v7 = vor.u32 %v14709_v19, %v12056_v32  ;;  %v12176_v40 = vld [vmem:[#allocation7 + $0x718] sm:$0xf0]  ;;  %v15070_v19 = vld [vmem:[#allocation7 + $0x1074] sm:$0xf0]  ;;  %v12598_v32 = vld [vmem:[#allocation7 + $0x10f0] sm:$0xf] }
 0x220   : > { %v4667_v16 = vadd.f32 %v4666_v36, %v17244_v13  ;;  %5026 = vmatmul.bf16.vlgmr.msrb.gmra.mxu3 %v18665_v9  ;;  %5040 = vmatpush.bf16.msra.mxu0 %v12011_v24  ;;  %v14693_v13 = vld [vmem:[#allocation7 + $0x5a4] sm:$0xf]  ;;  %v12131_v9 = vor.u32 %v14727_v26, %v12128_v39  ;;  %v12051_v36 = vor.u32 %v14707_v27, %v12048_v53  ;;  %v12406_v39 = vld [vmem:[#allocation7 + $0xf70] sm:$0xf]  ;;  %v15084_v27 = vld [vmem:[#allocation7 + $0x10e4] sm:$0xf0] }
 0x221   : > { %v17257_v23 = vadd.f32 %v4654_v46, %v4636_v11  ;;  %5059 = vmatpush.bf16.msra.mxu1 %v12075_v21  ;;  %5078 = vmatpush.bf16.msra.mxu2 %v12139_v30  ;;  %v11995_v54 = vor.u32 %v14693_v13, %v11992_v10  ;;  %v11976_v11 = vld [vmem:[#allocation7 + $0x588] sm:$0xf0]  ;;  %v12179_v30 = vor.u32 %v14739_v33, %v12176_v40  ;;  %v15054_v13 = vld [vmem:[#allocation7 + $0xff4] sm:$0xf0]  ;;  %v12534_v10 = vld [vmem:[#allocation7 + $0x1070] sm:$0xf] }
 0x222   : > { %v4686_v50 = vadd.f32 %v4685_v43, %v4667_v16  ;;  %4969 = vmatmul.bf16.vlgmr.msrb.gmra.mxu0 %v17100_v49  ;;  %4988 = vmatmul.bf16.vlgmr.msrb.gmra.mxu1 %v17104_v51  ;;  %v14741_v49 = vld [vmem:[#allocation7 + $0x724] sm:$0xf]  ;;  %v12040_v43 = vld [vmem:[#allocation7 + $0x608] sm:$0xf0]  ;;  %v12115_v16 = vor.u32 %v14723_v14, %v12112_v12  ;;  %v11979_v26 = vor.u32 %v14689_v63, %v11976_v11  ;;  %v12518_v63 = vld [vmem:[#allocation7 + $0x1050] sm:$0xf] }
 0x223   : > { %5007 = vmatmul.bf16.vlgmr.msrb.gmra.mxu2 %v17092_v48  ;;  %v4723_v28 = vpop.f32.mrf.mxu3  ;;  %5097 = vmatpush.bf16.msra.mxu3 %v12203_v20  ;;  %v12187_v46 = vor.u32 %v14741_v49, %v12184_v6  ;;  %v14721_v20 = vld [vmem:[#allocation7 + $0x684] sm:$0xf] }
 0x224   : > { %5041 = vmatpush.bf16.msra.mxu0 %v12003_v55  ;;  %v12168_v55 = vld [vmem:[#allocation7 + $0x708] sm:$0xf0]  ;;  %v12107_v56 = vor.u32 %v14721_v20, %v12104_v29 }
 0x225   : > { %5060 = vmatpush.bf16.msra.mxu1 %v12067_v60  ;;  %5079 = vmatpush.bf16.msra.mxu2 %v12131_v9  ;;  %v12171_v49 = vor.u32 %v14737_v41, %v12168_v55 }
 0x226   : > { %v4704_v51 = vpop.f32.mrf.mxu2 }
 0x227   : > { %v4705_v2 = vadd.f32 %v4704_v51, %v4686_v50  ;;  %v4668_v48 = vpop.f32.mrf.mxu0  ;;  %v4687_v52 = vpop.f32.mrf.mxu1  ;;  %5098 = vmatpush.bf16.msra.mxu3 %v12195_v5  ;;  %v12470_v50 = vld [vmem:[#allocation7 + $0xff0] sm:$0xf]  ;;  %v12407_v51 = vor.u32 %v15038_v31, %v12406_v39  ;;  %v12382_v31 = vld [vmem:[#allocation7 + $0xf40] sm:$0xf] }
 0x228   : > { %v4669_v37 = vadd.f32 %v4668_v48, %v17247_v4  ;;  %5042 = vmatpush.bf16.msra.mxu0 %v11995_v54  ;;  %v14705_v4 = vld [vmem:[#allocation7 + $0x604] sm:$0xf]  ;;  %v12471_v34 = vor.u32 %v15054_v13, %v12470_v50  ;;  %v12446_v13 = vld [vmem:[#allocation7 + $0xfc0] sm:$0xf] }
 0x229   : > { %v17264_v24 = vadd.f32 %v4723_v28, %v4705_v2  ;;  %5061 = vmatpush.bf16.msra.mxu1 %v12059_v7  ;;  %5080 = vmatpush.bf16.msra.mxu2 %v12123_v44  ;;  %v12043_v5 = vor.u32 %v14705_v4, %v12040_v43  ;;  %v15036_v2 = vld [vmem:[#allocation7 + $0xf64] sm:$0xf0]  ;;  %v12462_v7 = vld [vmem:[#allocation7 + $0xfe0] sm:$0xf]  ;;  %v15066_v43 = vld [vmem:[#allocation7 + $0x1054] sm:$0xf0] }
 0x22a   : > { %v4688_v0 = vadd.f32 %v4687_v52, %v4669_v37  ;;  %v12535_v52 = vor.u32 %v15070_v19, %v12534_v10  ;;  %v15052_v37 = vld [vmem:[#allocation7 + $0xfe4] sm:$0xf0]  ;;  %v12526_v44 = vld [vmem:[#allocation7 + $0x1060] sm:$0xf]  ;;  %v12399_v14 = vor.u32 %v15036_v2, %v12398_v42  ;;  %v12519_v55 = vor.u32 %v15066_v43, %v12518_v63 }
 0x22b   : > { %v4725_v21 = vpop.f32.mrf.mxu3  ;;  %5099 = vmatpush.bf16.msra.mxu3 %v12187_v46  ;;  %v15068_v46 = vld [vmem:[#allocation7 + $0x1064] sm:$0xf0] }
 0x22c   : > { %5043 = vmatpush.bf16.msra.mxu0 %v11987_v8  ;;  %v12390_v8 = vld [vmem:[#allocation7 + $0xf50] sm:$0xf]  ;;  %v12527_v33 = vor.u32 %v15068_v46, %v12526_v44  ;;  %v15048_v10 = vld [vmem:[#allocation7 + $0xfc4] sm:$0xf0]  ;;  %v15062_v44 = vld [vmem:[#allocation7 + $0x1034] sm:$0xf0] }
 0x22d   : > { %5062 = vmatpush.bf16.msra.mxu1 %v12051_v36  ;;  %5081 = vmatpush.bf16.msra.mxu2 %v12115_v16  ;;  %v15082_v16 = vld [vmem:[#allocation7 + $0x10d4] sm:$0xf0]  ;;  %v12566_v46 = vld [vmem:[#allocation7 + $0x10b0] sm:$0xf] }
 0x22e   : > { %v4706_v25 = vpop.f32.mrf.mxu2 }
 0x22f   : > { %v4707_v60 = vadd.f32 %v4706_v25, %v4688_v0  ;;  %v4671_v28 = vpop.f32.mrf.mxu0  ;;  %v4690_v9 = vpop.f32.mrf.mxu1  ;;  %5100 = vmatpush.bf16.msra.mxu3 %v12179_v30  ;;  %v12454_v0 = vld [vmem:[#allocation7 + $0xfd0] sm:$0xf]  ;;  %v15032_v25 = vld [vmem:[#allocation7 + $0xf44] sm:$0xf0] }
 0x230   : > { %v4672_v54 = vadd.f32 %v4671_v28, %v17254_v59  ;;  %5031 = vmatmul.bf16.gmra.mxu3 %v17170_v18  ;;  %5044 = vmatpush.bf16.msra.mxu0 %v11979_v26  ;;  %v12599_v59 = vor.u32 %v15086_v17, %v12598_v32  ;;  %v12590_v18 = vld [vmem:[#allocation7 + $0x10e0] sm:$0xf]  ;;  %v15064_v28 = vld [vmem:[#allocation7 + $0x1044] sm:$0xf0]  ;;  %v12374_v32 = vld [vmem:[#allocation7 + $0xf30] sm:$0xf] }
 0x231   : > { %v17267_v6 = vadd.f32 %v4725_v21, %v4707_v60  ;;  %5063 = vmatpush.bf16.msra.mxu1 %v12043_v5  ;;  %5082 = vmatpush.bf16.msra.mxu2 %v12107_v56  ;;  %v12591_v40 = vor.u32 %v15084_v27, %v12590_v18  ;;  %v12582_v21 = vld [vmem:[#allocation7 + $0x10d0] sm:$0xf]  ;;  %v12510_v60 = vld [vmem:[#allocation7 + $0x1040] sm:$0xf]  ;;  %v15080_v5 = vld [vmem:[#allocation7 + $0x10c4] sm:$0xf0] }
 0x232   : > { %v4691_v48 = vadd.f32 %v4690_v9, %v4672_v54  ;;  %4974 = vmatmul.bf16.gmra.mxu0 %v17132_v1  ;;  %4993 = vmatmul.bf16.gmra.mxu1 %v17138_v35  ;;  %v12463_v1 = vor.u32 %v15052_v37, %v12462_v7  ;;  %v15034_v35 = vld [vmem:[#allocation7 + $0xf54] sm:$0xf0]  ;;  %v12583_v39 = vor.u32 %v15082_v16, %v12582_v21  ;;  %v12574_v9 = vld [vmem:[#allocation7 + $0x10c0] sm:$0xf]  ;;  %v12358_v21 = vld [vmem:[#allocation7 + $0xf10] sm:$0xf] }
 0x233   : > { %5012 = vmatmul.bf16.gmra.mxu2 %v17120_v57  ;;  %v4728_v53 = vpop.f32.mrf.mxu3  ;;  %5101 = vmatpush.bf16.msra.mxu3 %v12171_v49  ;;  %v15050_v57 = vld [vmem:[#allocation7 + $0xfd4] sm:$0xf0]  ;;  %v12391_v29 = vor.u32 %v15034_v35, %v12390_v8  ;;  %v12511_v42 = vor.u32 %v15064_v28, %v12510_v60  ;;  %v12575_v2 = vor.u32 %v15080_v5, %v12574_v9  ;;  %v12550_v9 = vld [vmem:[#allocation7 + $0x1090] sm:$0xf] }
 0x234   : > { %6738 = vmatpush.bf16.msrb.mxu0 %v12407_v51  ;;  %v12455_v41 = vor.u32 %v15050_v57, %v12454_v0  ;;  %v15030_v17 = vld [vmem:[#allocation7 + $0xf34] sm:$0xf0]  ;;  %v12447_v51 = vor.u32 %v15048_v10, %v12446_v13  ;;  %v15044_v0 = vld [vmem:[#allocation7 + $0xfa4] sm:$0xf0]  ;;  %v12494_v57 = vld [vmem:[#allocation7 + $0x1020] sm:$0xf] }
 0x235   : > { %6757 = vmatpush.bf16.msrb.mxu1 %v12471_v34  ;;  %6776 = vmatpush.bf16.msrb.mxu2 %v12535_v52  ;;  %v15046_v52 = vld [vmem:[#allocation7 + $0xfb4] sm:$0xf0]  ;;  %v12375_v37 = vor.u32 %v15030_v17, %v12374_v32  ;;  %v12486_v13 = vld [vmem:[#allocation7 + $0x1010] sm:$0xf]  ;;  %v12350_v17 = vld [vmem:[#allocation7 + $0xf00] sm:$0xf] }
 0x236   : > { %v4709_v12 = vpop.f32.mrf.mxu2  ;;  %v15078_v18 = vld [vmem:[#allocation7 + $0x10b4] sm:$0xf0] }
 0x237   : > { %6795 = vmatpush.bf16.msrb.mxu3 %v12599_v59  ;;  %v4710_v11 = vadd.f32 %v4709_v12, %v4691_v48  ;;  %v4673_v36 = vpop.f32.mrf.mxu0  ;;  %v4692_v4 = vpop.f32.mrf.mxu1  ;;  %v12438_v48 = vld [vmem:[#allocation7 + $0xfb0] sm:$0xf]  ;;  %v18688_v8 = vld [vmem:[#allocation48_spill] sm:$0xff] }
 0x238   : > { %v4674_v30 = vadd.f32 %v4673_v36, %v17257_v23  ;;  %6739 = vmatpush.bf16.msrb.mxu0 %v12399_v14  ;;  %v12383_v23 = vor.u32 %v15032_v25, %v12382_v31  ;;  %v12502_v59 = vld [vmem:[#allocation7 + $0x1030] sm:$0xf]  ;;  %v12439_v35 = vor.u32 %v15046_v52, %v12438_v48  ;;  %v12558_v36 = vld [vmem:[#allocation7 + $0x10a0] sm:$0xf]  ;;  %v15026_v16 = vld [vmem:[#allocation7 + $0xf14] sm:$0xf0] }
 0x239   : > { %v17274_v20 = vadd.f32 %v4728_v53, %v4710_v11  ;;  %6758 = vmatpush.bf16.msrb.mxu1 %v12463_v1  ;;  %6777 = vmatpush.bf16.msrb.mxu2 %v12527_v33  ;;  %v18686_v53 = vld [vmem:[#allocation40_spill] sm:$0xff]  ;;  %v18687_v14 = vld [vmem:[#allocation47_spill] sm:$0xff]  ;;  %v15028_v1 = vld [vmem:[#allocation7 + $0xf24] sm:$0xf0]  ;;  %v12567_v33 = vor.u32 %v15078_v18, %v12566_v46  ;;  %v12359_v28 = vor.u32 %v15026_v16, %v12358_v21 }
 0x23a   : > { %v4693_v26 = vadd.f32 %v4692_v4, %v4674_v30  ;;  %v15060_v11 = vld [vmem:[#allocation7 + $0x1024] sm:$0xf0]  ;;  %v15058_v10 = vld [vmem:[#allocation7 + $0x1014] sm:$0xf0]  ;;  %v12542_v52 = vld [vmem:[#allocation7 + $0x1080] sm:$0xf] }
 0x23b   : > { %6796 = vmatpush.bf16.msrb.mxu3 %v12591_v40  ;;  %v4730_v50 = vpop.f32.mrf.mxu3  ;;  %v12430_v40 = vld [vmem:[#allocation7 + $0xfa0] sm:$0xf]  ;;  %v15076_v4 = vld [vmem:[#allocation7 + $0x10a4] sm:$0xf0]  ;;  %v12495_v25 = vor.u32 %v15060_v11, %v12494_v57  ;;  %v406_v60 = vld [vmem:[%s16170_s1 + $0x64] sm:$0xff] }
 0x23c   : > { %6740 = vmatpush.bf16.msrb.mxu0 %v12391_v29  ;;  %v15074_v5 = vld [vmem:[#allocation7 + $0x1094] sm:$0xf0]  ;;  %424 = vst [vmem:[#allocation2 + $0x12c] sm:$0xff] %v406_v60  ;;  %v15056_v48 = vld [vmem:[#allocation7 + $0x1004] sm:$0xf0] }
 0x23d   : > { %6759 = vmatpush.bf16.msrb.mxu1 %v12455_v41  ;;  %6778 = vmatpush.bf16.msrb.mxu2 %v12519_v55  ;;  %v12422_v55 = vld [vmem:[#allocation7 + $0xf90] sm:$0xf]  ;;  %v15102_v46 = vld [vmem:[#allocation7 + $0x1174] sm:$0xf0] }
 0x23e   : > { %v4711_v19 = vpop.f32.mrf.mxu2  ;;  %v12710_v60 = vld [vmem:[#allocation7 + $0x11d0] sm:$0xf] }
 0x23f   : > { %6797 = vmatpush.bf16.msrb.mxu3 %v12583_v39  ;;  %v4712_v54 = vadd.f32 %v4711_v19, %v4693_v26  ;;  %v4742_v56 = vpop.f32.mrf.mxu0  ;;  %v4761_v49 = vpop.f32.mrf.mxu1  ;;  %v12431_v26 = vor.u32 %v15044_v0, %v12430_v40  ;;  %v15042_v39 = vld [vmem:[#allocation7 + $0xf94] sm:$0xf0] }
 0x240   : > { %v4743_v34 = vadd.f32 %v4742_v56, %v17264_v24  ;;  %5102 = vmatmul.bf16.vlgmr.msra.gmra.mxu3 %v17196_v58  ;;  %6741 = vmatpush.bf16.msrb.mxu0 %v12383_v23  ;;  %v12366_v24 = vld [vmem:[#allocation7 + $0xf20] sm:$0xf]  ;;  %v12503_v58 = vor.u32 %v15062_v44, %v12502_v59  ;;  %v12662_v44 = vld [vmem:[#allocation7 + $0x1170] sm:$0xf] }
 0x241   : > { %v17277_v7 = vadd.f32 %v4730_v50, %v4712_v54  ;;  %6760 = vmatpush.bf16.msrb.mxu1 %v12447_v51  ;;  %6779 = vmatpush.bf16.msrb.mxu2 %v12511_v42  ;;  %v12367_v63 = vor.u32 %v15028_v1, %v12366_v24  ;;  %v12559_v50 = vor.u32 %v15076_v4, %v12558_v36  ;;  %v407_v19 = vld [vmem:[%s16170_s1 + $0x6c] sm:$0xff]  ;;  %v15024_v54 = vld [vmem:[#allocation7 + $0xf04] sm:$0xf0] }
 0x242   : > { %v4762_v27 = vadd.f32 %v4761_v49, %v4743_v34  ;;  %5045 = vmatmul.bf16.vlgmr.msra.gmra.mxu0 %v18686_v53  ;;  %5064 = vmatmul.bf16.vlgmr.msra.gmra.mxu1 %v18687_v14  ;;  %v12414_v56 = vld [vmem:[#allocation7 + $0xf80] sm:$0xf]  ;;  %v15040_v49 = vld [vmem:[#allocation7 + $0xf84] sm:$0xf0]  ;;  %v12487_v42 = vor.u32 %v15058_v10, %v12486_v13  ;;  %425 = vst [vmem:[#allocation2 + $0x134] sm:$0xff] %v407_v19 }
 0x243   : > { %5083 = vmatmul.bf16.vlgmr.msra.gmra.mxu2 %v18688_v8  ;;  %v4799_v12 = vpop.f32.mrf.mxu3  ;;  %6798 = vmatpush.bf16.msrb.mxu3 %v12575_v2  ;;  %v12478_v51 = vld [vmem:[#allocation7 + $0x1000] sm:$0xf]  ;;  %v12551_v2 = vor.u32 %v15074_v5, %v12550_v9  ;;  %v12351_v59 = vor.u32 %v15024_v54, %v12350_v17  ;;  %v15118_v53 = vld [vmem:[#allocation7 + $0x11f4] sm:$0xf0]  ;;  %v12790_v14 = vld [vmem:[#allocation7 + $0x1270] sm:$0xf]  ;;  %v12663_v11 = vor.u32 %v15102_v46, %v12662_v44 }
 0x244   : > { %6742 = vmatpush.bf16.msrb.mxu0 %v12375_v37  ;;  %v15072_v37 = vld [vmem:[#allocation7 + $0x1084] sm:$0xf0]  ;;  %v12479_v0 = vor.u32 %v15056_v48, %v12478_v51  ;;  %v12654_v4 = vld [vmem:[#allocation7 + $0x1160] sm:$0xf]  ;;  %v12838_v17 = vld [vmem:[#allocation7 + $0x12d0] sm:$0xf] }
 0x245   : > { %6761 = vmatpush.bf16.msrb.mxu1 %v12439_v35  ;;  %6780 = vmatpush.bf16.msrb.mxu2 %v12503_v58  ;;  %v12415_v35 = vor.u32 %v15040_v49, %v12414_v56  ;;  %v12854_v58 = vld [vmem:[#allocation7 + $0x12f0] sm:$0xf]  ;;  %v12543_v57 = vor.u32 %v15072_v37, %v12542_v52  ;;  %v15146_v54 = vld [vmem:[#allocation7 + $0x12d4] sm:$0xf0]  ;;  %v15000_v51 = vld [vmem:[#allocation2 + $0xb0] sm:$0xf0] }
 0x246   : > { %v4780_v43 = vpop.f32.mrf.mxu2  ;;  %v12230_v49 = vld [vmem:[#allocation2 + $0x78] sm:$0xf]  ;;  %v12839_v44 = vor.u32 %v15146_v54, %v12838_v17  ;;  %v12638_v46 = vld [vmem:[#allocation7 + $0x1140] sm:$0xf]  ;;  %v15108_v54 = vld [vmem:[#allocation7 + $0x11a4] sm:$0xf0] }
 0x247   : > { %v4781_v30 = vadd.f32 %v4780_v43, %v4762_v27  ;;  %v4744_v29 = vpop.f32.mrf.mxu0  ;;  %v4763_v41 = vpop.f32.mrf.mxu1  ;;  %6799 = vmatpush.bf16.msrb.mxu3 %v12567_v33  ;;  %v12726_v27 = vld [vmem:[#allocation7 + $0x11f0] sm:$0xf]  ;;  %v15150_v33 = vld [vmem:[#allocation7 + $0x12f4] sm:$0xf0]  ;;  %v15100_v43 = vld [vmem:[#allocation7 + $0x1164] sm:$0xf0] }
 0x248   : > { %v4745_v31 = vadd.f32 %v4744_v29, %v17267_v6  ;;  %6743 = vmatpush.bf16.msrb.mxu0 %v12367_v63  ;;  %v12423_v6 = vor.u32 %v15042_v39, %v12422_v55  ;;  %v12727_v36 = vor.u32 %v15118_v53, %v12726_v27  ;;  %v15116_v29 = vld [vmem:[#allocation7 + $0x11e4] sm:$0xf0]  ;;  %v12232_v27 = vld [vmem:[#allocation2 + $0xb4] sm:$0xf0]  ;;  %v15001_v53 = vld [vmem:[#allocation2 + $0xb8] sm:$0xf0] }
 0x249   : > { %v17285_v23 = vadd.f32 %v4799_v12, %v4781_v30  ;;  %6762 = vmatpush.bf16.msrb.mxu1 %v12431_v26  ;;  %6781 = vmatpush.bf16.msrb.mxu2 %v12495_v25  ;;  %v15134_v12 = vld [vmem:[#allocation7 + $0x1274] sm:$0xf0]  ;;  %v12718_v30 = vld [vmem:[#allocation7 + $0x11e0] sm:$0xf]  ;;  %v15132_v26 = vld [vmem:[#allocation7 + $0x1264] sm:$0xf0] }
 0x24a   : > { %v4764_v32 = vadd.f32 %v4763_v41, %v4745_v31  ;;  %v12791_v16 = vor.u32 %v15134_v12, %v12790_v14  ;;  %v12782_v41 = vld [vmem:[#allocation7 + $0x1260] sm:$0xf]  ;;  %v15148_v55 = vld [vmem:[#allocation7 + $0x12e4] sm:$0xf0]  ;;  %v12655_v31 = vor.u32 %v15100_v43, %v12654_v4  ;;  %v12646_v25 = vld [vmem:[#allocation7 + $0x1150] sm:$0xf] }
 0x24b   : > { %v4801_v34 = vpop.f32.mrf.mxu3  ;;  %6800 = vmatpush.bf16.msrb.mxu3 %v12559_v50  ;;  %v12783_v13 = vor.u32 %v15132_v26, %v12782_v41  ;;  %v15094_v4 = vld [vmem:[#allocation7 + $0x1134] sm:$0xf0] }
 0x24c   : > { %6744 = vmatpush.bf16.msrb.mxu0 %v12359_v28  ;;  %v12774_v28 = vld [vmem:[#allocation7 + $0x1250] sm:$0xf] }
 0x24d   : > { %6763 = vmatpush.bf16.msrb.mxu1 %v12423_v6  ;;  %6782 = vmatpush.bf16.msrb.mxu2 %v12487_v42  ;;  %v14994_v42 = vld [vmem:[#allocation2 + $0x84] sm:$0xf] }
 0x24e   : > { %v4782_v18 = vpop.f32.mrf.mxu2 }
 0x24f   : > { %v4783_v24 = vadd.f32 %v4782_v18, %v4764_v32  ;;  %v4747_v1 = vpop.f32.mrf.mxu0  ;;  %v4766_v8 = vpop.f32.mrf.mxu1  ;;  %6801 = vmatpush.bf16.msrb.mxu3 %v12551_v2  ;;  %v15130_v32 = vld [vmem:[#allocation7 + $0x1254] sm:$0xf0]  ;;  %v15096_v18 = vld [vmem:[#allocation7 + $0x1144] sm:$0xf0] }
 0x250   : > { %v4748_v40 = vadd.f32 %v4747_v1, %v17274_v20  ;;  %5107 = vmatmul.bf16.gmra.mxu3 %v17217_v3  ;;  %6745 = vmatpush.bf16.msrb.mxu0 %v12351_v59  ;;  %v12855_v20 = vor.u32 %v15150_v33, %v12854_v58  ;;  %v12846_v3 = vld [vmem:[#allocation7 + $0x12e0] sm:$0xf]  ;;  %v12240_v59 = vld [vmem:[#allocation2 + $0xbc] sm:$0xf0]  ;;  %v12775_v37 = vor.u32 %v15130_v32, %v12774_v28  ;;  %v15112_v1 = vld [vmem:[#allocation7 + $0x11c4] sm:$0xf0] }
 0x251   : > { %v17289_v63 = vadd.f32 %v4801_v34, %v4783_v24  ;;  %6764 = vmatpush.bf16.msrb.mxu1 %v12415_v35  ;;  %6783 = vmatpush.bf16.msrb.mxu2 %v12479_v0  ;;  %v12847_v10 = vor.u32 %v15148_v55, %v12846_v3  ;;  %v14993_v34 = vld [vmem:[#allocation2 + $0x7c] sm:$0xf]  ;;  %v12702_v24 = vld [vmem:[#allocation7 + $0x11c0] sm:$0xf]  ;;  %v17298_v35 = vor.u32 %v14994_v42, %v12240_v59  ;;  %v15128_v58 = vld [vmem:[#allocation7 + $0x1244] sm:$0xf0] }
 0x252   : > { %v4767_v21 = vadd.f32 %v4766_v8, %v4748_v40  ;;  %5050 = vmatmul.bf16.gmra.mxu0 %v17176_v38  ;;  %5069 = vmatmul.bf16.gmra.mxu1 %v17182_v45  ;;  %v12719_v38 = vor.u32 %v15116_v29, %v12718_v30  ;;  %v15098_v45 = vld [vmem:[#allocation7 + $0x1154] sm:$0xf0]  ;;  %v12766_v8 = vld [vmem:[#allocation7 + $0x1240] sm:$0xf]  ;;  %v12639_v12 = vor.u32 %v15096_v18, %v12638_v46  ;;  %v15144_v40 = vld [vmem:[#allocation7 + $0x12c4] sm:$0xf0] }
 0x253   : > { %5088 = vmatmul.bf16.gmra.mxu2 %v17164_v62  ;;  %v4804_v39 = vpop.f32.mrf.mxu3  ;;  %6802 = vmatpush.bf16.msrb.mxu3 %v12543_v57  ;;  %v15114_v62 = vld [vmem:[#allocation7 + $0x11d4] sm:$0xf0]  ;;  %v12647_v2 = vor.u32 %v15098_v45, %v12646_v25  ;;  %v12830_v33 = vld [vmem:[#allocation7 + $0x12c0] sm:$0xf]  ;;  %v17300_v57 = vor.u32 %v15000_v51, %v12230_v49  ;;  %v12703_v30 = vor.u32 %v15112_v1, %v12702_v24  ;;  %v12694_v55 = vld [vmem:[#allocation7 + $0x11b0] sm:$0xf] }
 0x254   : > { %6814 = vmatpush.bf16.msra.mxu0 %v12663_v11  ;;  %v12711_v48 = vor.u32 %v15114_v62, %v12710_v60  ;;  %v17302_v11 = vor.u32 %v14993_v34, %v12232_v27  ;;  %v12767_v26 = vor.u32 %v15128_v58, %v12766_v8  ;;  %v12831_v3 = vor.u32 %v15144_v40, %v12830_v33  ;;  %v15126_v45 = vld [vmem:[#allocation7 + $0x1234] sm:$0xf0]  ;;  %v15124_v49 = vld [vmem:[#allocation7 + $0x1224] sm:$0xf0]  ;;  %v12814_v34 = vld [vmem:[#allocation7 + $0x12a0] sm:$0xf] }
 0x255   : > { %6833 = vmatpush.bf16.msra.mxu1 %v12727_v36  ;;  %6852 = vmatpush.bf16.msra.mxu2 %v12791_v16  ;;  %v12630_v36 = vld [vmem:[#allocation7 + $0x1130] sm:$0xf]  ;;  %v17317_v62 = vld [vmem:[%s16170_s1 + $0x6c] sm:$0xff]  ;;  %v15140_v42 = vld [vmem:[#allocation7 + $0x12a4] sm:$0xf0] }
 0x256   : > { %v4785_v50 = vpop.f32.mrf.mxu2  ;;  %v12631_v25 = vor.u32 %v15094_v4, %v12630_v36  ;;  %v623_v28 = vshrl.u32 %v17317_v62, 16  ;;  %v17321_v59 = vld [vmem:[#allocation7 + $0x1190] sm:$0xf]  ;;  %v15015_v58 = vld [vmem:[#allocation2 + $0x128] sm:$0xf0] }
 0x257   : > { %6871 = vmatpush.bf16.msra.mxu3 %v12855_v20  ;;  %v4786_v9 = vadd.f32 %v4785_v50, %v4767_v21  ;;  %v4749_v5 = vpop.f32.mrf.mxu0  ;;  %v4768_v19 = vpop.f32.mrf.mxu1  ;;  %v12822_v50 = vld [vmem:[#allocation7 + $0x12b0] sm:$0xf]  ;;  %v15009_v33 = vld [vmem:[#allocation2 + $0xfc] sm:$0xf]  ;;  %v15138_v36 = vld [vmem:[#allocation7 + $0x1294] sm:$0xf0] }
 0x258   : > { %v4750_v56 = vadd.f32 %v4749_v5, %v17277_v7  ;;  %6815 = vmatpush.bf16.msra.mxu0 %v12655_v31  ;;  %v12238_v7 = vld [vmem:[#allocation2 + $0x80] sm:$0xf]  ;;  %v12758_v31 = vld [vmem:[#allocation7 + $0x1230] sm:$0xf]  ;;  %v12686_v5 = vld [vmem:[#allocation7 + $0x11a0] sm:$0xf] }
 0x259   : > { %v17296_v6 = vadd.f32 %v4804_v39, %v4786_v9  ;;  %6834 = vmatpush.bf16.msra.mxu1 %v12719_v38  ;;  %6853 = vmatpush.bf16.msra.mxu2 %v12783_v13  ;;  %v17304_v20 = vor.u32 %v15001_v53, %v12238_v7  ;;  %v15110_v39 = vld [vmem:[#allocation7 + $0x11b4] sm:$0xf0]  ;;  %v12759_v32 = vor.u32 %v15126_v45, %v12758_v31  ;;  %v17325_v53 = vld [vmem:[#allocation7 + $0x1210] sm:$0xf]  ;;  %v408_v4 = vld [vmem:[%s16170_s1 + $0x74] sm:$0xf] }
 0x25a   : > { %v4769_v52 = vadd.f32 %v4768_v19, %v4750_v56  ;;  %v15142_v13 = vld [vmem:[#allocation7 + $0x12b4] sm:$0xf0]  ;;  %v12695_v9 = vor.u32 %v15110_v39, %v12694_v55  ;;  %v12750_v56 = vld [vmem:[#allocation7 + $0x1220] sm:$0xf]  ;;  %v12687_v27 = vor.u32 %v15108_v54, %v12686_v5  ;;  %v17329_v24 = vld [vmem:[#allocation7 + $0x1290] sm:$0xf] }
 0x25b   : > { %6872 = vmatpush.bf16.msra.mxu3 %v12847_v10  ;;  %v4806_v14 = vpop.f32.mrf.mxu3  ;;  %v15697_v10 = vld [vmem:[%s16170_s1 + $0x64] sm:$0xff]  ;;  %v12823_v17 = vor.u32 %v15142_v13, %v12822_v50  ;;  %v12751_v7 = vor.u32 %v15124_v49, %v12750_v56  ;;  %v445_v55 = vld [vmem:[%s16170_s1 + $0x78] sm:$0x11]  ;;  %v17341_v31 = vld [vmem:[#allocation7 + $0x1184] sm:$0xf0] }
 0x25c   : > { %6816 = vmatpush.bf16.msra.mxu0 %v12647_v2  ;;  %v613_v60 = vshrl.u32 %v15697_v10, 16  ;;  %v12614_v2 = vld [vmem:[#allocation7 + $0x1110] sm:$0xf]  ;;  %v17339_v39 = vld [vmem:[#allocation7 + $0x1180] sm:$0xf] }
 0x25d   : > { %6835 = vmatpush.bf16.msra.mxu1 %v12711_v48  ;;  %6854 = vmatpush.bf16.msra.mxu2 %v12775_v37  ;;  %v17323_v37 = vld [vmem:[#allocation7 + $0x1194] sm:$0xf0]  ;;  %v12300_v40 = vld [vmem:[#allocation2 + $0x134] sm:$0xf0]  ;;  %v18691_v45 = vld [vmem:[#allocation33_spill] sm:$0xff] }
 0x25e   : > { %v4787_v0 = vpop.f32.mrf.mxu2  ;;  %v12679_v13 = vor.u32 %v17323_v37, %v17321_v59  ;;  %426 = vst [vmem:[#allocation2 + $0x13c] sm:$0xf] %v408_v4  ;;  %v15136_v5 = vld [vmem:[#allocation7 + $0x1284] sm:$0xf0]  ;;  %v17359_v56 = vor.u32 %v15009_v33, %v12300_v40  ;;  %v12671_v59 = vor.u32 %v17341_v31, %v17339_v39  ;;  %v13046_v37 = vld [vmem:[#allocation7 + $0x1470] sm:$0xf] }
 0x25f   : > { %6873 = vmatpush.bf16.msra.mxu3 %v12839_v44  ;;  %v4788_v43 = vadd.f32 %v4787_v0, %v4769_v52  ;;  %v4818_v21 = vpop.f32.mrf.mxu0  ;;  %v4837_v16 = vpop.f32.mrf.mxu1  ;;  %v15090_v52 = vld [vmem:[#allocation7 + $0x1114] sm:$0xf0]  ;;  %v12815_v0 = vor.u32 %v15140_v42, %v12814_v34  ;;  %v12982_v34 = vld [vmem:[#allocation7 + $0x13f0] sm:$0xf]  ;;  %v15212_v39 = vld [vmem:[#allocation7 + $0x14e4] sm:$0xf0] }
 0x260   : > { %v17307_v29 = vadd.f32 %v4818_v21, %v17285_v23  ;;  %v4838_v41 = vadd.f32 %v4837_v16, %v17202_v47  ;;  %6803 = vmatmul.bf16.vlgmr.msrb.gmra.mxu3 %v17298_v35  ;;  %6817 = vmatpush.bf16.msra.mxu0 %v12639_v12  ;;  %v12622_v47 = vld [vmem:[#allocation7 + $0x1120] sm:$0xf]  ;;  %v15092_v23 = vld [vmem:[#allocation7 + $0x1124] sm:$0xf0]  ;;  %v15008_v16 = vld [vmem:[#allocation2 + $0xf4] sm:$0xf] }
 0x261   : > { %v17310_v38 = vadd.f32 %v4806_v14, %v4788_v43  ;;  %6836 = vmatpush.bf16.msra.mxu1 %v12703_v30  ;;  %6855 = vmatpush.bf16.msra.mxu2 %v12767_v26  ;;  %v12623_v51 = vor.u32 %v15092_v23, %v12622_v47  ;;  %v17327_v14 = vld [vmem:[#allocation7 + $0x1214] sm:$0xf0]  ;;  %v12290_v12 = vld [vmem:[#allocation2 + $0xf0] sm:$0xf]  ;;  %v615_v43 = vrot.slane %v613_v60, 4  ;;  %v12615_v26 = vor.u32 %v15090_v52, %v12614_v2 }
 0x262   : > { %18689 = vst [vmem:[#allocation27_spill] sm:$0xff] %v17307_v29  ;;  %6746 = vmatmul.bf16.vlgmr.msrb.gmra.mxu0 %v17300_v57  ;;  %6765 = vmatmul.bf16.vlgmr.msrb.gmra.mxu1 %v17302_v11  ;;  %v12292_v30 = vld [vmem:[#allocation2 + $0x12c] sm:$0xf0]  ;;  %v17350_v23 = vld [vmem:[#allocation7 + $0x1280] sm:$0xf]  ;;  %v12743_v60 = vor.u32 %v17327_v14, %v17325_v53  ;;  %v17357_v54 = vor.u32 %v15015_v58, %v12290_v12 }
 0x263   : > { %6784 = vmatmul.bf16.vlgmr.msrb.gmra.mxu2 %v17304_v20  ;;  %v4875_v19 = vpop.f32.mrf.mxu3  ;;  %6874 = vmatpush.bf16.msra.mxu3 %v12831_v3  ;;  %v15088_v3 = vld [vmem:[#allocation7 + $0x1104] sm:$0xf0]  ;;  %v616_v50 = vor.u32 %v615_v43, %v18691_v45  ;;  %v13110_v53 = vld [vmem:[#allocation7 + $0x14f0] sm:$0xf]  ;;  %v15214_v14 = vld [vmem:[#allocation7 + $0x14f4] sm:$0xf0] }
 0x264   : > { %6818 = vmatpush.bf16.msra.mxu0 %v12631_v25  ;;  %v17343_v25 = vld [vmem:[#allocation7 + $0x1200] sm:$0xf]  ;;  %v17348_v47 = vld [vmem:[#allocation7 + $0x1204] sm:$0xf0] }
 0x265   : > { %6837 = vmatpush.bf16.msra.mxu1 %v12695_v9  ;;  %6856 = vmatpush.bf16.msra.mxu2 %v12759_v32  ;;  %v12807_v9 = vor.u32 %v15138_v36, %v17329_v24  ;;  %v619_v32 = vshll.u32 %v445_v55, 16  ;;  %v617_v42 = vrot.slane %v616_v50, 4  ;;  %v12735_v62 = vor.u32 %v17348_v47, %v17343_v25  ;;  %v18692_v12 = vld [vmem:[#allocation34_spill] sm:$0xff]  ;;  %v12910_v36 = vld [vmem:[#allocation7 + $0x1360] sm:$0xf] }
 0x266   : > { %v4856_v48 = vpop.f32.mrf.mxu2  ;;  %v13102_v55 = vld [vmem:[#allocation7 + $0x14e0] sm:$0xf]  ;;  %v12902_v47 = vld [vmem:[#allocation7 + $0x1350] sm:$0xf] }
 0x267   : > { %v4857_v44 = vadd.f32 %v4856_v48, %v4838_v41  ;;  %v4820_v46 = vpop.f32.mrf.mxu0  ;;  %v4839_v18 = vpop.f32.mrf.mxu1  ;;  %6875 = vmatpush.bf16.msra.mxu3 %v12823_v17  ;;  %v12298_v41 = vld [vmem:[#allocation2 + $0xf8] sm:$0xf]  ;;  %v625_v17 = vrot.slane %v623_v28, 4  ;;  %v17361_v48 = vor.u32 %v15008_v16, %v12292_v30  ;;  %v15182_v28 = vld [vmem:[#allocation7 + $0x13f4] sm:$0xf0]  ;;  %v621_v24 = vrot.slane %v619_v32, 5 }
 0x268   : > { %v17332_v1 = vadd.f32 %v4820_v46, %v17289_v63  ;;  %v4840_v8 = vadd.f32 %v4839_v18, %v17211_v61  ;;  %v15016_v63 = vld [vmem:[#allocation2 + $0x130] sm:$0xf0]  ;;  %6819 = vmatpush.bf16.msra.mxu0 %v12623_v51  ;;  %v12606_v61 = vld [vmem:[#allocation7 + $0x1100] sm:$0xf]  ;;  %v15166_v51 = vld [vmem:[#allocation7 + $0x1374] sm:$0xf0]  ;;  %v12983_v43 = vor.u32 %v15182_v28, %v12982_v34 }
 0x269   : > { %v17336_v21 = vadd.f32 %v4875_v19, %v4857_v44  ;;  %6838 = vmatpush.bf16.msra.mxu1 %v12687_v27  ;;  %6857 = vmatpush.bf16.msra.mxu2 %v12751_v7  ;;  %v12918_v19 = vld [vmem:[#allocation7 + $0x1370] sm:$0xf]  ;;  %v12607_v49 = vor.u32 %v15088_v3, %v12606_v61  ;;  %v17363_v52 = vor.u32 %v15016_v63, %v12298_v41  ;;  %v15198_v44 = vld [vmem:[#allocation7 + $0x1474] sm:$0xf0]  ;;  %v15164_v16 = vld [vmem:[#allocation7 + $0x1364] sm:$0xf0] }
 0x26a   : > { %18690 = vst [vmem:[#allocation23_spill] sm:$0xff] %v17332_v1  ;;  %v12799_v7 = vor.u32 %v15136_v5, %v17350_v23  ;;  %v626_v58 = vor.u32 %v625_v17, %v18692_v12  ;;  %v12974_v30 = vld [vmem:[#allocation7 + $0x13e0] sm:$0xf]  ;;  %v15180_v41 = vld [vmem:[#allocation7 + $0x13e4] sm:$0xf0]  ;;  %v12911_v50 = vor.u32 %v15164_v16, %v12910_v36  ;;  %v13103_v5 = vor.u32 %v15212_v39, %v13102_v55 }
 0x26b   : > { %v4877_v10 = vpop.f32.mrf.mxu3  ;;  %6876 = vmatpush.bf16.msra.mxu3 %v12815_v0  ;;  %v12919_v0 = vor.u32 %v15166_v51, %v12918_v19  ;;  %v13038_v61 = vld [vmem:[#allocation7 + $0x1460] sm:$0xf]  ;;  %v15196_v3 = vld [vmem:[#allocation7 + $0x1464] sm:$0xf0]  ;;  %v15162_v23 = vld [vmem:[#allocation7 + $0x1354] sm:$0xf0] }
 0x26c   : > { %6820 = vmatpush.bf16.msra.mxu0 %v12615_v26  ;;  %v13111_v26 = vor.u32 %v15214_v14, %v13110_v53  ;;  %v627_v31 = vrot.slane %v626_v58, 4  ;;  %v12966_v19 = vld [vmem:[#allocation7 + $0x13d0] sm:$0xf]  ;;  %v15178_v32 = vld [vmem:[#allocation7 + $0x13d4] sm:$0xf0]  ;;  %v12903_v53 = vor.u32 %v15162_v23, %v12902_v47 }
 0x26d   : > { %6839 = vmatpush.bf16.msra.mxu1 %v12679_v13  ;;  %6858 = vmatpush.bf16.msra.mxu2 %v12743_v60  ;;  %v12975_v13 = vor.u32 %v15180_v41, %v12974_v30  ;;  %v13030_v17 = vld [vmem:[#allocation7 + $0x1450] sm:$0xf]  ;;  %v12967_v14 = vor.u32 %v15178_v32, %v12966_v19  ;;  %v15003_v36 = vld [vmem:[#allocation2 + $0xc8] sm:$0xf0]  ;;  %v15176_v16 = vld [vmem:[#allocation7 + $0x13c4] sm:$0xf0] }
 0x26e   : > { %v4858_v2 = vpop.f32.mrf.mxu2  ;;  %v13022_v30 = vld [vmem:[#allocation7 + $0x1440] sm:$0xf]  ;;  %v15174_v19 = vld [vmem:[#allocation7 + $0x13b4] sm:$0xf0]  ;;  %v13014_v32 = vld [vmem:[#allocation7 + $0x1430] sm:$0xf] }
 0x26f   : > { %v4859_v46 = vadd.f32 %v4858_v2, %v4840_v8  ;;  %v4823_v18 = vpop.f32.mrf.mxu0  ;;  %v4842_v27 = vpop.f32.mrf.mxu1  ;;  %6877 = vmatpush.bf16.msra.mxu3 %v12807_v9  ;;  %v446_v8 = vld [vmem:[%s16170_s1 + $0x80] sm:$0x11]  ;;  %v13039_v9 = vor.u32 %v15196_v3, %v13038_v61  ;;  %v13094_v2 = vld [vmem:[#allocation7 + $0x14d0] sm:$0xf] }
 0x270   : > { %v17372_v33 = vadd.f32 %v4823_v18, %v17296_v6  ;;  %v4843_v40 = vadd.f32 %v4842_v27, %v17224_v22  ;;  %6808 = vmatmul.bf16.gmra.mxu3 %v17359_v56  ;;  %6821 = vmatpush.bf16.msra.mxu0 %v12607_v49  ;;  %v622_v6 = vsel %vm16425_vm2, %v617_v42, %v621_v24  ;;  %v629_v25 = vshll.u32 %v446_v8, 16  ;;  %v15194_v42 = vld [vmem:[#allocation7 + $0x1454] sm:$0xf0]  ;;  %v15002_v18 = vld [vmem:[#allocation2 + $0xc0] sm:$0xf0] }
 0x271   : > { %v17376_v4 = vadd.f32 %v4877_v10, %v4859_v46  ;;  %v13047_v22 = vor.u32 %v15198_v44, %v13046_v37  ;;  %676 = vst [vmem:[#allocation2 + $0x140] sm:$0xff] %v622_v6  ;;  %6840 = vmatpush.bf16.msra.mxu1 %v12671_v59  ;;  %6859 = vmatpush.bf16.msra.mxu2 %v12735_v62  ;;  %v15210_v59 = vld [vmem:[#allocation7 + $0x14d4] sm:$0xf0]  ;;  %v12246_v46 = vld [vmem:[#allocation2 + $0x88] sm:$0xf] }
 0x272   : > { %18693 = vst [vmem:[#allocation24_spill] sm:$0xff] %v17372_v33  ;;  %6751 = vmatmul.bf16.gmra.mxu0 %v17357_v54  ;;  %6770 = vmatmul.bf16.gmra.mxu1 %v17361_v48  ;;  %v631_v10 = vrot.slane %v629_v25, 5  ;;  %v14995_v27 = vld [vmem:[#allocation2 + $0x8c] sm:$0xf]  ;;  %v12256_v24 = vld [vmem:[#allocation2 + $0xcc] sm:$0xf0]  ;;  %v13031_v12 = vor.u32 %v15194_v42, %v13030_v17  ;;  %v13095_v58 = vor.u32 %v15210_v59, %v13094_v2 }
 0x273   : > { %6789 = vmatmul.bf16.gmra.mxu2 %v17363_v52  ;;  %v4880_v45 = vpop.f32.mrf.mxu3  ;;  %6878 = vmatpush.bf16.msra.mxu3 %v12799_v7  ;;  %v14996_v7 = vld [vmem:[#allocation2 + $0x94] sm:$0xf]  ;;  %v15208_v61 = vld [vmem:[#allocation7 + $0x14c4] sm:$0xf0]  ;;  %v17394_v55 = vor.u32 %v15002_v18, %v12246_v46  ;;  %v15158_v25 = vld [vmem:[#allocation7 + $0x1334] sm:$0xf0] }
 0x274   : > { %6890 = vmatpush.bf16.msrb.mxu0 %v12919_v0  ;;  %v632_v62 = vsel %vm16425_vm2, %v627_v31, %v631_v10  ;;  %v12248_v0 = vld [vmem:[#allocation2 + $0xc4] sm:$0xf0]  ;;  %v17392_v41 = vor.u32 %v14996_v7, %v12256_v24  ;;  %v12886_v31 = vld [vmem:[#allocation7 + $0x1330] sm:$0xf]  ;;  %v15206_v42 = vld [vmem:[#allocation7 + $0x14b4] sm:$0xf0] }
 0x275   : > { %6909 = vmatpush.bf16.msrb.mxu1 %v12983_v43  ;;  %6928 = vmatpush.bf16.msrb.mxu2 %v13047_v22  ;;  %677 = vst [vmem:[#allocation2 + $0x148] sm:$0xff] %v632_v62  ;;  %v12958_v43 = vld [vmem:[#allocation7 + $0x13c0] sm:$0xf]  ;;  %v15192_v22 = vld [vmem:[#allocation7 + $0x1444] sm:$0xf0]  ;;  %v17396_v39 = vor.u32 %v14995_v27, %v12248_v0 }
 0x276   : > { %v4861_v60 = vpop.f32.mrf.mxu2  ;;  %v12959_v23 = vor.u32 %v15176_v16, %v12958_v43  ;;  %v15156_v59 = vld [vmem:[#allocation7 + $0x1324] sm:$0xf0]  ;;  %v12942_v18 = vld [vmem:[#allocation7 + $0x13a0] sm:$0xf]  ;;  %v12870_v0 = vld [vmem:[#allocation7 + $0x1310] sm:$0xf] }
 0x277   : > { %6947 = vmatpush.bf16.msrb.mxu3 %v13111_v26  ;;  %v4862_v49 = vadd.f32 %v4861_v60, %v4843_v40  ;;  %v4825_v51 = vpop.f32.mrf.mxu0  ;;  %v4844_v34 = vpop.f32.mrf.mxu1  ;;  %v15160_v40 = vld [vmem:[#allocation7 + $0x1344] sm:$0xf0]  ;;  %v13086_v26 = vld [vmem:[#allocation7 + $0x14c0] sm:$0xf]  ;;  %v13023_v60 = vor.u32 %v15192_v22, %v13022_v30  ;;  %v17410_v43 = vld [vmem:[#allocation7 + $0x1394] sm:$0xf0] }
 0x278   : > { %v17387_v28 = vadd.f32 %v4825_v51, %v17310_v38  ;;  %v4845_v37 = vadd.f32 %v4844_v34, %v17233_v15  ;;  %6891 = vmatpush.bf16.msrb.mxu0 %v12911_v50  ;;  %v12894_v38 = vld [vmem:[#allocation7 + $0x1340] sm:$0xf]  ;;  %v12254_v15 = vld [vmem:[#allocation2 + $0x90] sm:$0xf]  ;;  %v15190_v51 = vld [vmem:[#allocation7 + $0x1434] sm:$0xf0] }
 0x279   : > { %v17390_v44 = vadd.f32 %v4880_v45, %v4862_v49  ;;  %6910 = vmatpush.bf16.msrb.mxu1 %v12975_v13  ;;  %6929 = vmatpush.bf16.msrb.mxu2 %v13039_v9  ;;  %v12895_v6 = vor.u32 %v15160_v40, %v12894_v38  ;;  %v17398_v47 = vor.u32 %v15003_v36, %v12254_v15  ;;  %v13078_v34 = vld [vmem:[#allocation7 + $0x14b0] sm:$0xf]  ;;  %v15699_v62 = vld [vmem:[%s16170_s1 + $0x74] sm:$0xf]  ;;  %v13006_v24 = vld [vmem:[#allocation7 + $0x1420] sm:$0xf] }
 0x27a   : > { %18695 = vst [vmem:[#allocation28_spill] sm:$0xff] %v17387_v28  ;;  %v13087_v9 = vor.u32 %v15208_v61, %v13086_v26  ;;  %v12887_v49 = vor.u32 %v15158_v25, %v12886_v31  ;;  %v13015_v7 = vor.u32 %v15190_v51, %v13014_v32  ;;  %v13070_v38 = vld [vmem:[#allocation7 + $0x14a0] sm:$0xf]  ;;  %v15204_v40 = vld [vmem:[#allocation7 + $0x14a4] sm:$0xf0] }
 0x27b   : > { %6948 = vmatpush.bf16.msrb.mxu3 %v13103_v5  ;;  %v4882_v8 = vpop.f32.mrf.mxu3  ;;  %v12950_v5 = vld [vmem:[#allocation7 + $0x13b0] sm:$0xf]  ;;  %v15154_v36 = vld [vmem:[#allocation7 + $0x1314] sm:$0xf0]  ;;  %v15011_v25 = vld [vmem:[#allocation2 + $0x10c] sm:$0xf] }
 0x27c   : > { %6892 = vmatpush.bf16.msrb.mxu0 %v12903_v53  ;;  %v12951_v46 = vor.u32 %v15174_v19, %v12950_v5  ;;  %v13079_v53 = vor.u32 %v15206_v42, %v13078_v34  ;;  %v17412_v26 = vld [vmem:[#allocation7 + $0x1410] sm:$0xf]  ;;  %v17414_v61 = vld [vmem:[#allocation7 + $0x1414] sm:$0xf0]  ;;  %v15017_v5 = vld [vmem:[#allocation2 + $0x138] sm:$0xf0]  ;;  %v12871_v34 = vor.u32 %v15154_v36, %v12870_v0 }
 0x27d   : > { %6911 = vmatpush.bf16.msrb.mxu1 %v12967_v14  ;;  %6930 = vmatpush.bf16.msrb.mxu2 %v13031_v12  ;;  %v15172_v14 = vld [vmem:[#allocation7 + $0x13a4] sm:$0xf0]  ;;  %v15010_v19 = vld [vmem:[#allocation2 + $0x104] sm:$0xf]  ;;  %v12308_v32 = vld [vmem:[#allocation2 + $0x13c] sm:$0xf0]  ;;  %v12999_v0 = vor.u32 %v17414_v61, %v17412_v26 }
 0x27e   : > { %v4863_v3 = vpop.f32.mrf.mxu2  ;;  %v15188_v12 = vld [vmem:[#allocation7 + $0x1424] sm:$0xf0]  ;;  %v12943_v22 = vor.u32 %v15172_v14, %v12942_v18  ;;  %v15018_v51 = vld [vmem:[#allocation2 + $0x140] sm:$0xf0]  ;;  %v18696_v18 = vld [vmem:[#allocation43_spill] sm:$0xff] }
 0x27f   : > { %6949 = vmatpush.bf16.msrb.mxu3 %v13095_v58  ;;  %v4864_v45 = vadd.f32 %v4863_v3, %v4845_v37  ;;  %v4894_v50 = vpop.f32.mrf.mxu0  ;;  %v4913_v13 = vpop.f32.mrf.mxu1  ;;  %v633_v37 = vshrl.u32 %v15699_v62, 16  ;;  %v17416_v3 = vld [vmem:[#allocation7 + $0x1490] sm:$0xf]  ;;  %v15152_v42 = vld [vmem:[#allocation7 + $0x1304] sm:$0xf0] }
 0x280   : > { %v4895_v10 = vadd.f32 %v4894_v50, %v17336_v21  ;;  %6879 = vmatmul.bf16.vlgmr.msra.gmra.mxu3 %v17392_v41  ;;  %6893 = vmatpush.bf16.msrb.mxu0 %v12895_v6  ;;  %v12878_v21 = vld [vmem:[#allocation7 + $0x1320] sm:$0xf]  ;;  %v13071_v50 = vor.u32 %v15204_v40, %v13070_v38  ;;  %v15200_v36 = vld [vmem:[#allocation7 + $0x1484] sm:$0xf0]  ;;  %v15246_v26 = vld [vmem:[#allocation7 + $0x15f4] sm:$0xf0] }
 0x281   : > { %v17401_v17 = vadd.f32 %v4882_v8, %v4864_v45  ;;  %6912 = vmatpush.bf16.msrb.mxu1 %v12959_v23  ;;  %6931 = vmatpush.bf16.msrb.mxu2 %v13023_v60  ;;  %v12879_v58 = vor.u32 %v15156_v59, %v12878_v21  ;;  %v17408_v8 = vld [vmem:[#allocation7 + $0x1390] sm:$0xf]  ;;  %v13007_v45 = vor.u32 %v15188_v12, %v13006_v24  ;;  %v12316_v59 = vld [vmem:[#allocation2 + $0x144] sm:$0xf0]  ;;  %v15232_v63 = vld [vmem:[#allocation7 + $0x1584] sm:$0xf0] }
 0x282   : > { %v4914_v2 = vadd.f32 %v4913_v13, %v4895_v10  ;;  %6822 = vmatmul.bf16.vlgmr.msra.gmra.mxu0 %v17394_v55  ;;  %6841 = vmatmul.bf16.vlgmr.msra.gmra.mxu1 %v17396_v39  ;;  %v15202_v13 = vld [vmem:[#allocation7 + $0x1494] sm:$0xf0]  ;;  %v447_v23 = vld [vmem:[%s16170_s1 + $0x88] sm:$0x1]  ;;  %v635_v10 = vrot.slane %v633_v37, 4  ;;  %v18697_v12 = vld [vmem:[#allocation29_spill] sm:$0xff] }
 0x283   : > { %6860 = vmatmul.bf16.vlgmr.msra.gmra.mxu2 %v17398_v47  ;;  %v4951_v27 = vpop.f32.mrf.mxu3  ;;  %6950 = vmatpush.bf16.msrb.mxu3 %v13087_v9  ;;  %v12306_v9 = vld [vmem:[#allocation2 + $0x100] sm:$0xf]  ;;  %v17423_v62 = vld [vmem:[#allocation7 + $0x1380] sm:$0xf]  ;;  %v639_v24 = vshll.u32 %v447_v23, 16 }
 0x284   : > { %6894 = vmatpush.bf16.msrb.mxu0 %v12887_v49  ;;  %v12314_v49 = vld [vmem:[#allocation2 + $0x108] sm:$0xf]  ;;  %v13302_v61 = vld [vmem:[#allocation7 + $0x1670] sm:$0xf]  ;;  %v15023_v28 = vld [vmem:[#allocation7 + $0xf04] sm:$0xf] }
 0x285   : > { %6913 = vmatpush.bf16.msrb.mxu1 %v12951_v46  ;;  %6932 = vmatpush.bf16.msrb.mxu2 %v13015_v7  ;;  %v17425_v46 = vld [vmem:[#allocation7 + $0x1384] sm:$0xf0]  ;;  %v17427_v37 = vld [vmem:[#allocation7 + $0x1400] sm:$0xf]  ;;  %v12935_v7 = vor.u32 %v17410_v43, %v17408_v8  ;;  %v17441_v8 = vor.u32 %v15011_v25, %v12316_v59  ;;  %v12352_v33 = vld [vmem:[#allocation7 + $0xf08] sm:$0xf0] }
 0x286   : > { %v4932_v15 = vpop.f32.mrf.mxu2  ;;  %v17434_v14 = vld [vmem:[#allocation7 + $0x1480] sm:$0xf] }
 0x287   : > { %v4933_v16 = vadd.f32 %v4932_v15, %v4914_v2  ;;  %v4896_v30 = vpop.f32.mrf.mxu0  ;;  %v4915_v6 = vpop.f32.mrf.mxu1  ;;  %6951 = vmatpush.bf16.msrb.mxu3 %v13079_v53  ;;  %v697_v2 = vld [vmem:[%s16170_s1 + $0x78] sm:$0x11]  ;;  %v17432_v53 = vld [vmem:[#allocation7 + $0x1404] sm:$0xf0]  ;;  %v13063_v15 = vor.u32 %v15202_v13, %v17416_v3  ;;  %v15262_v3 = vld [vmem:[#allocation7 + $0x1674] sm:$0xf0] }
 0x288   : > { %v4897_v31 = vadd.f32 %v4896_v30, %v17376_v4  ;;  %6895 = vmatpush.bf16.msrb.mxu0 %v12879_v58  ;;  %v12862_v4 = vld [vmem:[#allocation7 + $0x1300] sm:$0xf]  ;;  %v18698_v58 = vrot.slane %v18697_v12, 5  ;;  %v773_v30 = vrot.slane %v697_v2, 5  ;;  %v15260_v12 = vld [vmem:[#allocation7 + $0x1664] sm:$0xf0] }
 0x289   : > { %v17420_v60 = vadd.f32 %v4951_v27, %v4933_v16  ;;  %v636_v27 = vor.u32 %v635_v10, %v18696_v18  ;;  %6914 = vmatpush.bf16.msrb.mxu1 %v12943_v22  ;;  %6933 = vmatpush.bf16.msrb.mxu2 %v13007_v45  ;;  %v13174_v16 = vld [vmem:[#allocation7 + $0x1570] sm:$0xf]  ;;  %v12863_v43 = vor.u32 %v15152_v42, %v12862_v4  ;;  %v15228_v18 = vld [vmem:[#allocation7 + $0x1564] sm:$0xf0] }
 0x28a   : > { %v4916_v21 = vadd.f32 %v4915_v6, %v4897_v31  ;;  %v772_v38 = vrot.slane %v18698_v58, 4  ;;  %v15230_v6 = vld [vmem:[#allocation7 + $0x1574] sm:$0xf0]  ;;  %v13238_v22 = vld [vmem:[#allocation7 + $0x15f0] sm:$0xf]  ;;  %v17443_v10 = vor.u32 %v15017_v5, %v12306_v9  ;;  %v17445_v45 = vor.u32 %v15010_v19, %v12308_v32 }
 0x28b   : > { %v4953_v40 = vpop.f32.mrf.mxu3  ;;  %6952 = vmatpush.bf16.msrb.mxu3 %v13071_v50  ;;  %v637_v31 = vrot.slane %v636_v27, 4  ;;  %v17447_v50 = vor.u32 %v15018_v51, %v12314_v49  ;;  %v12927_v4 = vor.u32 %v17425_v46, %v17423_v62  ;;  %v12991_v9 = vor.u32 %v17432_v53, %v17427_v37  ;;  %v15037_v5 = vld [vmem:[#allocation7 + $0xf74] sm:$0xf]  ;;  %v12408_v19 = vld [vmem:[#allocation7 + $0xf78] sm:$0xf0] }
 0x28c   : > { %6896 = vmatpush.bf16.msrb.mxu0 %v12871_v34  ;;  %v774_v2 = vsel %vm16634_vm5, %v772_v38, %v773_v30  ;;  %v641_v32 = vrot.slane %v639_v24, 5  ;;  %v13055_v51 = vor.u32 %v15200_v36, %v17434_v14  ;;  %v13175_v42 = vor.u32 %v15230_v6, %v13174_v16  ;;  %v13166_v46 = vld [vmem:[#allocation7 + $0x1560] sm:$0xf]  ;;  %v15244_v14 = vld [vmem:[#allocation7 + $0x15e4] sm:$0xf0] }
 0x28d   : > { %6915 = vmatpush.bf16.msrb.mxu1 %v12935_v7  ;;  %814 = vst [vmem:[#allocation2 + $0x154] sm:$0xff] %v774_v2  ;;  %6934 = vmatpush.bf16.msrb.mxu2 %v12999_v0  ;;  %v13239_v62 = vor.u32 %v15246_v26, %v13238_v22  ;;  %v13230_v37 = vld [vmem:[#allocation7 + $0x15e0] sm:$0xf]  ;;  %v12411_v53 = vor.u32 %v15037_v5, %v12408_v19  ;;  %v15035_v58 = vld [vmem:[#allocation7 + $0xf64] sm:$0xf] }
 0x28e   : > { %v4934_v23 = vpop.f32.mrf.mxu2  ;;  %v642_v27 = vsel %vm16425_vm2, %v637_v31, %v641_v32  ;;  %v13294_v24 = vld [vmem:[#allocation7 + $0x1660] sm:$0xf]  ;;  %v12400_v38 = vld [vmem:[#allocation7 + $0xf68] sm:$0xf0]  ;;  %v13167_v0 = vor.u32 %v15228_v18, %v13166_v46  ;;  %v13158_v36 = vld [vmem:[#allocation7 + $0x1550] sm:$0xf] }
 0x28f   : > { %v4935_v25 = vadd.f32 %v4934_v23, %v4916_v21  ;;  %v4899_v59 = vpop.f32.mrf.mxu0  ;;  %v4918_v34 = vpop.f32.mrf.mxu1  ;;  %6953 = vmatpush.bf16.msrb.mxu3 %v13063_v15  ;;  %678 = vst [vmem:[#allocation2 + $0x150] sm:$0xf] %v642_v27  ;;  %v13231_v15 = vor.u32 %v15244_v14, %v13230_v37  ;;  %v15226_v16 = vld [vmem:[#allocation7 + $0x1554] sm:$0xf0]  ;;  %v12403_v6 = vor.u32 %v15035_v58, %v12400_v38  ;;  %v13222_v22 = vld [vmem:[#allocation7 + $0x15d0] sm:$0xf] }
 0x290   : > { %v4900_v49 = vadd.f32 %v4899_v59, %v17390_v44  ;;  %6884 = vmatmul.bf16.gmra.mxu3 %v17441_v8  ;;  %6897 = vmatpush.bf16.msrb.mxu0 %v12863_v43  ;;  %v13303_v44 = vor.u32 %v15262_v3, %v13302_v61  ;;  %v13295_v43 = vor.u32 %v15260_v12, %v13294_v24  ;;  %v15242_v31 = vld [vmem:[#allocation7 + $0x15d4] sm:$0xf0]  ;;  %v13286_v23 = vld [vmem:[#allocation7 + $0x1650] sm:$0xf]  ;;  %v12392_v59 = vld [vmem:[#allocation7 + $0xf58] sm:$0xf0] }
 0x291   : > { %v17457_v21 = vadd.f32 %v4953_v40, %v4935_v25  ;;  %6916 = vmatpush.bf16.msrb.mxu1 %v12927_v4  ;;  %6935 = vmatpush.bf16.msrb.mxu2 %v12991_v9  ;;  %v15258_v2 = vld [vmem:[#allocation7 + $0x1654] sm:$0xf0]  ;;  %v15033_v25 = vld [vmem:[#allocation7 + $0xf54] sm:$0xf]  ;;  %v12262_v9 = vld [vmem:[#allocation2 + $0x98] sm:$0xf] }
 0x292   : > { %v4919_v7 = vadd.f32 %v4918_v34, %v4900_v49  ;;  %6827 = vmatmul.bf16.gmra.mxu0 %v17443_v10  ;;  %6846 = vmatmul.bf16.gmra.mxu1 %v17445_v45  ;;  %v15004_v5 = vld [vmem:[#allocation2 + $0xd0] sm:$0xf0]  ;;  %v14997_v19 = vld [vmem:[#allocation2 + $0x9c] sm:$0xf]  ;;  %v14998_v32 = vld [vmem:[#allocation2 + $0xa4] sm:$0xf]  ;;  %v13159_v49 = vor.u32 %v15226_v16, %v13158_v36  ;;  %v13287_v46 = vor.u32 %v15258_v2, %v13286_v23 }
 0x293   : > { %6865 = vmatmul.bf16.gmra.mxu2 %v17447_v50  ;;  %v4956_v40 = vpop.f32.mrf.mxu3  ;;  %6954 = vmatpush.bf16.msrb.mxu3 %v13055_v51  ;;  %v13223_v51 = vor.u32 %v15242_v31, %v13222_v22  ;;  %v12395_v18 = vor.u32 %v15033_v25, %v12392_v59  ;;  %v13150_v37 = vld [vmem:[#allocation7 + $0x1540] sm:$0xf]  ;;  %v15224_v27 = vld [vmem:[#allocation7 + $0x1544] sm:$0xf0]  ;;  %v17470_v16 = vor.u32 %v15004_v5, %v12262_v9  ;;  %v13206_v59 = vld [vmem:[#allocation7 + $0x15b0] sm:$0xf] }
 0x294   : > { %6966 = vmatpush.bf16.msra.mxu0 %v13175_v42  ;;  %v13214_v14 = vld [vmem:[#allocation7 + $0x15c0] sm:$0xf]  ;;  %v15240_v24 = vld [vmem:[#allocation7 + $0x15c4] sm:$0xf0]  ;;  %v13151_v38 = vor.u32 %v15224_v27, %v13150_v37  ;;  %v13270_v9 = vld [vmem:[#allocation7 + $0x1630] sm:$0xf] }
 0x295   : > { %6985 = vmatpush.bf16.msra.mxu1 %v13239_v62  ;;  %7004 = vmatpush.bf16.msra.mxu2 %v13303_v44  ;;  %v12272_v62 = vld [vmem:[#allocation2 + $0xdc] sm:$0xf0]  ;;  %v15005_v44 = vld [vmem:[#allocation2 + $0xd8] sm:$0xf0]  ;;  %v13278_v12 = vld [vmem:[#allocation7 + $0x1640] sm:$0xf] }
 0x296   : > { %v4937_v30 = vpop.f32.mrf.mxu2  ;;  %v17468_v58 = vor.u32 %v14998_v32, %v12272_v62  ;;  %v15254_v32 = vld [vmem:[#allocation7 + $0x1634] sm:$0xf0]  ;;  %v15220_v62 = vld [vmem:[#allocation7 + $0x1524] sm:$0xf0] }
 0x297   : > { %7023 = vmatpush.bf16.msra.mxu3 %v12411_v53  ;;  %v4938_v26 = vadd.f32 %v4937_v30, %v4919_v7  ;;  %v4901_v61 = vpop.f32.mrf.mxu0  ;;  %v4920_v3 = vpop.f32.mrf.mxu1  ;;  %v12264_v7 = vld [vmem:[#allocation2 + $0xd4] sm:$0xf0]  ;;  %v13271_v27 = vor.u32 %v15254_v32, %v13270_v9  ;;  %v15250_v9 = vld [vmem:[#allocation7 + $0x1614] sm:$0xf0] }
 0x298   : > { %v4902_v34 = vadd.f32 %v4901_v61, %v17401_v17  ;;  %6967 = vmatpush.bf16.msra.mxu0 %v13167_v0  ;;  %v12270_v17 = vld [vmem:[#allocation2 + $0xa0] sm:$0xf]  ;;  %v15031_v0 = vld [vmem:[#allocation7 + $0xf44] sm:$0xf]  ;;  %v17472_v30 = vor.u32 %v14997_v19, %v12264_v7  ;;  %v13215_v61 = vor.u32 %v15240_v24, %v13214_v14 }
 0x299   : > { %v17466_v4 = vadd.f32 %v4956_v40, %v4938_v26  ;;  %6986 = vmatpush.bf16.msra.mxu1 %v13231_v15  ;;  %7005 = vmatpush.bf16.msra.mxu2 %v13295_v43  ;;  %v15256_v40 = vld [vmem:[#allocation7 + $0x1644] sm:$0xf0]  ;;  %v12384_v15 = vld [vmem:[#allocation7 + $0xf48] sm:$0xf0]  ;;  %v13142_v43 = vld [vmem:[#allocation7 + $0x1530] sm:$0xf]  ;;  %v17474_v26 = vor.u32 %v15005_v44, %v12270_v17 }
 0x29a   : > { %v4921_v42 = vadd.f32 %v4920_v3, %v4902_v34  ;;  %v13279_v2 = vor.u32 %v15256_v40, %v13278_v12  ;;  %v12387_v25 = vor.u32 %v15031_v0, %v12384_v15  ;;  %v15238_v34 = vld [vmem:[#allocation7 + $0x15b4] sm:$0xf0]  ;;  %v15236_v17 = vld [vmem:[#allocation7 + $0x15a4] sm:$0xf0]  ;;  %v13262_v44 = vld [vmem:[#allocation7 + $0x1620] sm:$0xf] }
 0x29b   : > { %7024 = vmatpush.bf16.msra.mxu3 %v12403_v6  ;;  %v4958_v53 = vpop.f32.mrf.mxu3  ;;  %v15222_v6 = vld [vmem:[#allocation7 + $0x1534] sm:$0xf0]  ;;  %v15027_v24 = vld [vmem:[#allocation7 + $0xf24] sm:$0xf]  ;;  %v12368_v12 = vld [vmem:[#allocation7 + $0xf28] sm:$0xf0] }
 0x29c   : > { %6968 = vmatpush.bf16.msra.mxu0 %v13159_v49  ;;  %v13143_v19 = vor.u32 %v15222_v6, %v13142_v43  ;;  %v15029_v49 = vld [vmem:[#allocation7 + $0xf34] sm:$0xf]  ;;  %v13126_v40 = vld [vmem:[#allocation7 + $0x1510] sm:$0xf]  ;;  %v15218_v0 = vld [vmem:[#allocation7 + $0x1514] sm:$0xf0] }
 0x29d   : > { %6987 = vmatpush.bf16.msra.mxu1 %v13223_v51  ;;  %7006 = vmatpush.bf16.msra.mxu2 %v13287_v46  ;;  %v12376_v51 = vld [vmem:[#allocation7 + $0xf38] sm:$0xf0]  ;;  %v13207_v46 = vor.u32 %v15238_v34, %v13206_v59  ;;  %v17483_v15 = vld [vmem:[#allocation7 + $0x1590] sm:$0xf]  ;;  %v12371_v34 = vor.u32 %v15027_v24, %v12368_v12  ;;  %v15020_v24 = vld [vmem:[#allocation2 + $0x150] sm:$0xf0] }
 0x29e   : > { %v4939_v36 = vpop.f32.mrf.mxu2  ;;  %v12379_v7 = vor.u32 %v15029_v49, %v12376_v51  ;;  %v12332_v59 = vld [vmem:[#allocation2 + $0x154] sm:$0xf0]  ;;  %v18700_v32 = vld [vmem:[#allocation32_spill] sm:$0xff]  ;;  %v15216_v12 = vld [vmem:[#allocation7 + $0x1504] sm:$0xf0] }
 0x29f   : > { %7025 = vmatpush.bf16.msra.mxu3 %v12395_v18  ;;  %v4940_v22 = vadd.f32 %v4939_v36, %v4921_v42  ;;  %v4970_v31 = vpop.f32.mrf.mxu0  ;;  %v4989_v23 = vpop.f32.mrf.mxu1  ;;  %v13198_v18 = vld [vmem:[#allocation7 + $0x15a0] sm:$0xf]  ;;  %v18701_v49 = vrot.slane %v18700_v32, 5  ;;  %v15248_v32 = vld [vmem:[#allocation7 + $0x1604] sm:$0xf0] }
 0x2a0   : > { %v4971_v3 = vadd.f32 %v4970_v31, %v17420_v60  ;;  %6955 = vmatmul.bf16.vlgmr.msrb.gmra.mxu3 %v17468_v58  ;;  %6969 = vmatpush.bf16.msra.mxu0 %v13151_v38  ;;  %v13134_v60 = vld [vmem:[#allocation7 + $0x1520] sm:$0xf] }
 0x2a1   : > { %v17477_v5 = vadd.f32 %v4958_v53, %v4940_v22  ;;  %6988 = vmatpush.bf16.msra.mxu1 %v13215_v61  ;;  %7007 = vmatpush.bf16.msra.mxu2 %v13279_v2  ;;  %v15252_v53 = vld [vmem:[#allocation7 + $0x1624] sm:$0xf0]  ;;  %v13135_v14 = vor.u32 %v15220_v62, %v13134_v60  ;;  %v13199_v22 = vor.u32 %v15236_v17, %v13198_v18  ;;  %v17485_v61 = vld [vmem:[#allocation7 + $0x1610] sm:$0xf]  ;;  %v775_v51 = vrot.slane %v18701_v49, 4 }
 0x2a2   : > { %v4990_v42 = vadd.f32 %v4989_v23, %v4971_v3  ;;  %6898 = vmatmul.bf16.vlgmr.msrb.gmra.mxu0 %v17470_v16  ;;  %6917 = vmatmul.bf16.vlgmr.msrb.gmra.mxu1 %v17472_v30  ;;  %v13263_v31 = vor.u32 %v15252_v53, %v13262_v44  ;;  %v15234_v23 = vld [vmem:[#allocation7 + $0x1594] sm:$0xf0]  ;;  %v12322_v62 = vld [vmem:[#allocation2 + $0x110] sm:$0xf]  ;;  %v15012_v18 = vld [vmem:[#allocation2 + $0x114] sm:$0xf] }
 0x2a3   : > { %6936 = vmatmul.bf16.vlgmr.msrb.gmra.mxu2 %v17474_v26  ;;  %v5027_v37 = vpop.f32.mrf.mxu3  ;;  %7026 = vmatpush.bf16.msra.mxu3 %v12387_v25  ;;  %v698_v3 = vld [vmem:[%s16170_s1 + $0x80] sm:$0x11]  ;;  %v13118_v44 = vld [vmem:[#allocation7 + $0x1500] sm:$0xf]  ;;  %v699_v53 = vld [vmem:[%s16170_s1 + $0x88] sm:$0x1] }
 0x2a4   : > { %6970 = vmatpush.bf16.msra.mxu0 %v13143_v19  ;;  %v15013_v25 = vld [vmem:[#allocation2 + $0x11c] sm:$0xf]  ;;  %v12324_v17 = vld [vmem:[#allocation2 + $0x14c] sm:$0xf0]  ;;  %v779_v1 = vrot.slane %v699_v53, 5 }
 0x2a5   : > { %6989 = vmatpush.bf16.msra.mxu1 %v13207_v46  ;;  %7008 = vmatpush.bf16.msra.mxu2 %v13271_v27  ;;  %v15025_v19 = vld [vmem:[#allocation7 + $0xf14] sm:$0xf]  ;;  %v15019_v46 = vld [vmem:[#allocation2 + $0x148] sm:$0xf0]  ;;  %v12360_v27 = vld [vmem:[#allocation7 + $0xf18] sm:$0xf0]  ;;  %v17500_v29 = vor.u32 %v15013_v25, %v12332_v59 }
 0x2a6   : > { %v5008_v38 = vpop.f32.mrf.mxu2  ;;  %v15051_v53 = vld [vmem:[#allocation7 + $0xfe4] sm:$0xf] }
 0x2a7   : > { %v5009_v36 = vadd.f32 %v5008_v38, %v4990_v42  ;;  %v4972_v43 = vpop.f32.mrf.mxu0  ;;  %v4991_v6 = vpop.f32.mrf.mxu1  ;;  %7027 = vmatpush.bf16.msra.mxu3 %v12379_v7  ;;  %v776_v42 = vrot.slane %v698_v3, 5  ;;  %v12330_v7 = vld [vmem:[#allocation2 + $0x118] sm:$0xf] }
 0x2a8   : > { %v4973_v2 = vadd.f32 %v4972_v43, %v17457_v21  ;;  %6971 = vmatpush.bf16.msra.mxu0 %v13135_v14  ;;  %v13127_v21 = vor.u32 %v15218_v0, %v13126_v40  ;;  %v13182_v43 = vld [vmem:[#allocation7 + $0x1580] sm:$0xf]  ;;  %v18702_v14 = vld [vmem:[#allocation50_spill] sm:$0xff]  ;;  %v17508_v59 = vor.u32 %v15020_v24, %v12330_v7  ;;  %v15067_v24 = vld [vmem:[#allocation7 + $0x1064] sm:$0xf] }
 0x2a9   : > { %v17491_v60 = vadd.f32 %v5027_v37, %v5009_v36  ;;  %v777_v3 = vsel %vm16634_vm5, %v775_v51, %v776_v42  ;;  %6990 = vmatpush.bf16.msra.mxu1 %v13199_v22  ;;  %v13191_v37 = vor.u32 %v15234_v23, %v17483_v15  ;;  %v13246_v36 = vld [vmem:[#allocation7 + $0x1600] sm:$0xf]  ;;  %v18703_v40 = vrot.slane %v18702_v14, 5  ;;  %7009 = vmatpush.bf16.msra.mxu2 %v13263_v31  ;;  %v15053_v15 = vld [vmem:[#allocation7 + $0xff4] sm:$0xf] }
 0x2aa   : > { %v4992_v38 = vadd.f32 %v4991_v6, %v4973_v2  ;;  %815 = vst [vmem:[#allocation2 + $0x15c] sm:$0xff] %v777_v3  ;;  %v13255_v6 = vor.u32 %v15250_v9, %v17485_v61  ;;  %v12363_v2 = vor.u32 %v15025_v19, %v12360_v27  ;;  %v13119_v22 = vor.u32 %v15216_v12, %v13118_v44  ;;  %v12472_v23 = vld [vmem:[#allocation7 + $0xff8] sm:$0xf0]  ;;  %v15069_v51 = vld [vmem:[#allocation7 + $0x1074] sm:$0xf] }
 0x2ab   : > { %v778_v0 = vrot.slane %v18703_v40, 4  ;;  %v5029_v49 = vpop.f32.mrf.mxu3  ;;  %7028 = vmatpush.bf16.msra.mxu3 %v12371_v34  ;;  %v17502_v3 = vor.u32 %v15019_v46, %v12322_v62  ;;  %v17504_v14 = vor.u32 %v15012_v18, %v12324_v17  ;;  %v12536_v31 = vld [vmem:[#allocation7 + $0x1078] sm:$0xf0]  ;;  %v15085_v34 = vld [vmem:[#allocation7 + $0x10f4] sm:$0xf]  ;;  %v13247_v46 = vor.u32 %v15248_v32, %v13246_v36 }
 0x2ac   : > { %6972 = vmatpush.bf16.msra.mxu0 %v13127_v21  ;;  %v12600_v40 = vld [vmem:[#allocation7 + $0x10f8] sm:$0xf0]  ;;  %v13183_v21 = vor.u32 %v15232_v63, %v13182_v43  ;;  %v15101_v27 = vld [vmem:[#allocation7 + $0x1174] sm:$0xf]  ;;  %v12355_v18 = vor.u32 %v15023_v28, %v12352_v33  ;;  %v12539_v13 = vor.u32 %v15069_v51, %v12536_v31  ;;  %v12528_v12 = vld [vmem:[#allocation7 + $0x1068] sm:$0xf0] }
 0x2ad   : > { %v780_v61 = vsel %vm16634_vm5, %v778_v0, %v779_v1  ;;  %6991 = vmatpush.bf16.msra.mxu1 %v13191_v37  ;;  %v12664_v44 = vld [vmem:[#allocation7 + $0x1178] sm:$0xf0]  ;;  %7010 = vmatpush.bf16.msra.mxu2 %v13255_v6  ;;  %v12475_v1 = vor.u32 %v15053_v15, %v12472_v23  ;;  %v12603_v63 = vor.u32 %v15085_v34, %v12600_v40  ;;  %v15083_v43 = vld [vmem:[#allocation7 + $0x10e4] sm:$0xf]  ;;  %v12592_v33 = vld [vmem:[#allocation7 + $0x10e8] sm:$0xf0] }
 0x2ae   : > { %v5010_v42 = vpop.f32.mrf.mxu2  ;;  %816 = vst [vmem:[#allocation2 + $0x164] sm:$0xf] %v780_v61  ;;  %v15099_v28 = vld [vmem:[#allocation7 + $0x1164] sm:$0xf]  ;;  %v12656_v37 = vld [vmem:[#allocation7 + $0x1168] sm:$0xf0]  ;;  %v12531_v0 = vor.u32 %v15067_v24, %v12528_v12  ;;  %vm7481_vm5 = vmor %vm17809_vm1, %vm17798_vm15 }
 0x2af   : > { %v5011_v9 = vadd.f32 %v5010_v42, %v4992_v38  ;;  %v4975_v19 = vpop.f32.mrf.mxu0  ;;  %v4994_v25 = vpop.f32.mrf.mxu1  ;;  %7029 = vmatpush.bf16.msra.mxu3 %v12363_v2  ;;  %v12464_v38 = vld [vmem:[#allocation7 + $0xfe8] sm:$0xf0]  ;;  %v12456_v6 = vld [vmem:[#allocation7 + $0xfd8] sm:$0xf0]  ;;  %v12659_v15 = vor.u32 %v15099_v28, %v12656_v37  ;;  %v15065_v23 = vld [vmem:[#allocation7 + $0x1054] sm:$0xf] }
 0x2b0   : > { %v4976_v62 = vadd.f32 %v4975_v19, %v17466_v4  ;;  %6960 = vmatmul.bf16.gmra.mxu3 %v17500_v29  ;;  %6973 = vmatpush.bf16.msra.mxu0 %v13119_v22  ;;  %v12667_v4 = vor.u32 %v15101_v27, %v12664_v44  ;;  %v12467_v32 = vor.u32 %v15051_v53, %v12464_v38  ;;  %v12520_v51 = vld [vmem:[#allocation7 + $0x1058] sm:$0xf0]  ;;  %v15081_v42 = vld [vmem:[#allocation7 + $0x10d4] sm:$0xf]  ;;  %v12278_v27 = vld [vmem:[#allocation2 + $0xa8] sm:$0xf] }
 0x2b1   : > { %v17511_v17 = vadd.f32 %v5029_v49, %v5011_v9  ;;  %6992 = vmatpush.bf16.msra.mxu1 %v13183_v21  ;;  %7011 = vmatpush.bf16.msra.mxu2 %v13247_v46  ;;  %v15049_v49 = vld [vmem:[#allocation7 + $0xfd4] sm:$0xf]  ;;  %v12595_v22 = vor.u32 %v15083_v43, %v12592_v33  ;;  %v12584_v61 = vld [vmem:[#allocation7 + $0x10d8] sm:$0xf0]  ;;  %v12523_v46 = vor.u32 %v15065_v23, %v12520_v51  ;;  %v15047_v38 = vld [vmem:[#allocation7 + $0xfc4] sm:$0xf] }
 0x2b2   : > { %v4995_v7 = vadd.f32 %v4994_v25, %v4976_v62  ;;  %6903 = vmatmul.bf16.gmra.mxu0 %v17502_v3  ;;  %6922 = vmatmul.bf16.gmra.mxu1 %v17504_v14  ;;  %v15097_v9 = vld [vmem:[#allocation7 + $0x1154] sm:$0xf]  ;;  %v12648_v19 = vld [vmem:[#allocation7 + $0x1158] sm:$0xf0]  ;;  %v12459_v62 = vor.u32 %v15049_v49, %v12456_v6  ;;  %v15007_v24 = vld [vmem:[#allocation2 + $0xe8] sm:$0xf0] }
 0x2b3   : > { %6941 = vmatmul.bf16.gmra.mxu2 %v17508_v59  ;;  %v5032_v36 = vpop.f32.mrf.mxu3  ;;  %7030 = vmatpush.bf16.msra.mxu3 %v12355_v18  ;;  %v15006_v44 = vld [vmem:[#allocation2 + $0xe0] sm:$0xf0]  ;;  %v12651_v53 = vor.u32 %v15097_v9, %v12648_v19  ;;  %v15063_v12 = vld [vmem:[#allocation7 + $0x1044] sm:$0xf]  ;;  %v12512_v43 = vld [vmem:[#allocation7 + $0x1048] sm:$0xf0] }
 0x2b4   : > { %7042 = vmatpush.bf16.msrb.mxu0 %v12475_v1  ;;  %v14999_v1 = vld [vmem:[#allocation2 + $0xac] sm:$0xf]  ;;  %v12576_v37 = vld [vmem:[#allocation7 + $0x10c8] sm:$0xf0]  ;;  %v17520_v49 = vor.u32 %v15006_v44, %v12278_v27  ;;  %v15061_v9 = vld [vmem:[#allocation7 + $0x1034] sm:$0xf] }
 0x2b5   : > { %7061 = vmatpush.bf16.msrb.mxu1 %v12539_v13  ;;  %7080 = vmatpush.bf16.msrb.mxu2 %v12603_v63  ;;  %v12587_v13 = vor.u32 %v15081_v42, %v12584_v61  ;;  %v12280_v63 = vld [vmem:[#allocation2 + $0xe4] sm:$0xf0]  ;;  %v15079_v33 = vld [vmem:[#allocation7 + $0x10c4] sm:$0xf]  ;;  %v12504_v19 = vld [vmem:[#allocation7 + $0x1038] sm:$0xf0] }
 0x2b6   : > { %v5013_v2 = vpop.f32.mrf.mxu2  ;;  %v17522_v6 = vor.u32 %v14999_v1, %v12280_v63  ;;  %v15059_v63 = vld [vmem:[#allocation7 + $0x1024] sm:$0xf]  ;;  %vm7441_vm15 = vsmask.f32 4352  ;;  %vm7489_vm1 = vsmask.f32 7424 }
 0x2b7   : > { %7099 = vmatpush.bf16.msrb.mxu3 %v12667_v4  ;;  %v5014_v31 = vadd.f32 %v5013_v2, %v4995_v7  ;;  %v4977_v34 = vpop.f32.mrf.mxu0  ;;  %v4996_v40 = vpop.f32.mrf.mxu1  ;;  %v12448_v7 = vld [vmem:[#allocation7 + $0xfc8] sm:$0xf0]  ;;  %v12286_v4 = vld [vmem:[#allocation2 + $0xb0] sm:$0xf]  ;;  %v15045_v2 = vld [vmem:[#allocation7 + $0xfb4] sm:$0xf] }
 0x2b8   : > { %v4978_v25 = vadd.f32 %v4977_v34, %v17477_v5  ;;  %7043 = vmatpush.bf16.msrb.mxu0 %v12467_v32  ;;  %v12451_v28 = vor.u32 %v15047_v38, %v12448_v7  ;;  %v12640_v32 = vld [vmem:[#allocation7 + $0x1148] sm:$0xf0]  ;;  %v17524_v42 = vor.u32 %v15007_v24, %v12286_v4  ;;  %v15075_v24 = vld [vmem:[#allocation7 + $0x10a4] sm:$0xf]  ;;  %vm17988_vm0 = vmand %vm7440_vm14, %vm7441_vm15 }
 0x2b9   : > { %v17518_v21 = vadd.f32 %v5032_v36, %v5014_v31  ;;  %7062 = vmatpush.bf16.msrb.mxu1 %v12531_v0  ;;  %7081 = vmatpush.bf16.msrb.mxu2 %v12595_v22  ;;  %v15095_v36 = vld [vmem:[#allocation7 + $0x1144] sm:$0xf]  ;;  %v12440_v22 = vld [vmem:[#allocation7 + $0xfb8] sm:$0xf0]  ;;  %v12515_v31 = vor.u32 %v15063_v12, %v12512_v43  ;;  %v12496_v4 = vld [vmem:[#allocation7 + $0x1028] sm:$0xf0] }
 0x2ba   : > { %v4997_v18 = vadd.f32 %v4996_v40, %v4978_v25  ;;  %v12579_v40 = vor.u32 %v15079_v33, %v12576_v37  ;;  %v12643_v61 = vor.u32 %v15095_v36, %v12640_v32  ;;  %v15077_v25 = vld [vmem:[#allocation7 + $0x10b4] sm:$0xf]  ;;  %v12443_v44 = vor.u32 %v15045_v2, %v12440_v22  ;;  %v12560_v12 = vld [vmem:[#allocation7 + $0x10a8] sm:$0xf0]  ;;  %v15091_v43 = vld [vmem:[#allocation7 + $0x1124] sm:$0xf] }
 0x2bb   : > { %7100 = vmatpush.bf16.msrb.mxu3 %v12659_v15  ;;  %v5034_v5 = vpop.f32.mrf.mxu3  ;;  %v12624_v33 = vld [vmem:[#allocation7 + $0x1128] sm:$0xf0]  ;;  %v15041_v37 = vld [vmem:[#allocation7 + $0xf94] sm:$0xf]  ;;  %v12424_v36 = vld [vmem:[#allocation7 + $0xf98] sm:$0xf0]  ;;  %v12499_v22 = vor.u32 %v15059_v63, %v12496_v4 }
 0x2bc   : > { %7044 = vmatpush.bf16.msrb.mxu0 %v12459_v62  ;;  %v12568_v62 = vld [vmem:[#allocation7 + $0x10b8] sm:$0xf0]  ;;  %v15055_v63 = vld [vmem:[#allocation7 + $0x1004] sm:$0xf]  ;;  %v12480_v4 = vld [vmem:[#allocation7 + $0x1008] sm:$0xf0] }
 0x2bd   : > { %7063 = vmatpush.bf16.msrb.mxu1 %v12523_v46  ;;  %7082 = vmatpush.bf16.msrb.mxu2 %v12587_v13  ;;  %v15093_v46 = vld [vmem:[#allocation7 + $0x1134] sm:$0xf]  ;;  %v12432_v13 = vld [vmem:[#allocation7 + $0xfa8] sm:$0xf0]  ;;  %vm7443_vm11 = vmor %vm17988_vm0, %vm17968_vm4 }
 0x2be   : > { %v5015_v0 = vpop.f32.mrf.mxu2 }
 0x2bf   : > { %7101 = vmatpush.bf16.msrb.mxu3 %v12651_v53  ;;  %v5016_v15 = vadd.f32 %v5015_v0, %v4997_v18  ;;  %v5046_v23 = vpop.f32.mrf.mxu0  ;;  %v5065_v51 = vpop.f32.mrf.mxu1  ;;  %v12632_v18 = vld [vmem:[#allocation7 + $0x1138] sm:$0xf0]  ;;  %v12507_v53 = vor.u32 %v15061_v9, %v12504_v19  ;;  %v12338_v9 = vld [vmem:[#allocation2 + $0x120] sm:$0xf]  ;;  %v15021_v19 = vld [vmem:[#allocation2 + $0x158] sm:$0xf0] }
 0x2c0   : > { %v5047_v34 = vadd.f32 %v5046_v23, %v17491_v60  ;;  %7031 = vmatmul.bf16.vlgmr.msra.gmra.mxu3 %v17300_v57  ;;  %7045 = vmatpush.bf16.msrb.mxu0 %v12451_v28  ;;  %v15043_v60 = vld [vmem:[#allocation7 + $0xfa4] sm:$0xf]  ;;  %v12571_v57 = vor.u32 %v15077_v25, %v12568_v62  ;;  %v12635_v7 = vor.u32 %v15093_v46, %v12632_v18  ;;  %v15014_v25 = vld [vmem:[#allocation2 + $0x124] sm:$0xf]  ;;  %v15089_v46 = vld [vmem:[#allocation7 + $0x1114] sm:$0xf] }
 0x2c1   : > { %v17527_v27 = vadd.f32 %v5034_v5, %v5016_v15  ;;  %7064 = vmatpush.bf16.msrb.mxu1 %v12515_v31  ;;  %7083 = vmatpush.bf16.msrb.mxu2 %v12579_v40  ;;  %v12435_v5 = vor.u32 %v15043_v60, %v12432_v13  ;;  %v12563_v23 = vor.u32 %v15075_v24, %v12560_v12  ;;  %v15057_v31 = vld [vmem:[#allocation7 + $0x1014] sm:$0xf]  ;;  %v12552_v62 = vld [vmem:[#allocation7 + $0x1098] sm:$0xf0]  ;;  %v12340_v60 = vld [vmem:[#allocation2 + $0x15c] sm:$0xf0] }
 0x2c2   : > { %v5066_v1 = vadd.f32 %v5065_v51, %v5047_v34  ;;  %6974 = vmatmul.bf16.vlgmr.msra.gmra.mxu0 %v17520_v49  ;;  %6993 = vmatmul.bf16.vlgmr.msra.gmra.mxu1 %v17522_v6  ;;  %v12627_v51 = vor.u32 %v15091_v43, %v12624_v33  ;;  %v12488_v34 = vld [vmem:[#allocation7 + $0x1018] sm:$0xf0]  ;;  %v15073_v40 = vld [vmem:[#allocation7 + $0x1094] sm:$0xf]  ;;  %v15039_v13 = vld [vmem:[#allocation7 + $0xf84] sm:$0xf] }
 0x2c3   : > { %7012 = vmatmul.bf16.vlgmr.msra.gmra.mxu2 %v17524_v42  ;;  %v5103_v38 = vpop.f32.mrf.mxu3  ;;  %7102 = vmatpush.bf16.msrb.mxu3 %v12643_v61  ;;  %v12616_v18 = vld [vmem:[#allocation7 + $0x1118] sm:$0xf0]  ;;  %v12555_v24 = vor.u32 %v15073_v40, %v12552_v62  ;;  %v12544_v43 = vld [vmem:[#allocation7 + $0x1088] sm:$0xf0]  ;;  %v15087_v33 = vld [vmem:[#allocation7 + $0x1104] sm:$0xf] }
 0x2c4   : > { %7046 = vmatpush.bf16.msrb.mxu0 %v12443_v44  ;;  %v12427_v44 = vor.u32 %v15041_v37, %v12424_v36  ;;  %v12619_v12 = vor.u32 %v15089_v46, %v12616_v18  ;;  %v12608_v37 = vld [vmem:[#allocation7 + $0x1108] sm:$0xf0]  ;;  %v15117_v36 = vld [vmem:[#allocation7 + $0x11f4] sm:$0xf]  ;;  %v12483_v46 = vor.u32 %v15055_v63, %v12480_v4  ;;  %v15131_v4 = vld [vmem:[#allocation7 + $0x1264] sm:$0xf] }
 0x2c5   : > { %7065 = vmatpush.bf16.msrb.mxu1 %v12507_v53  ;;  %7084 = vmatpush.bf16.msrb.mxu2 %v12571_v57  ;;  %v12416_v53 = vld [vmem:[#allocation7 + $0xf88] sm:$0xf0]  ;;  %v15022_v57 = vld [vmem:[#allocation2 + $0x160] sm:$0xf0]  ;;  %v15165_v18 = vld [vmem:[#allocation7 + $0x1374] sm:$0xf] }
 0x2c6   : > { %v5084_v28 = vpop.f32.mrf.mxu2 }
 0x2c7   : > { %v5085_v32 = vadd.f32 %v5084_v28, %v5066_v1  ;;  %v5048_v0 = vpop.f32.mrf.mxu0  ;;  %v5067_v2 = vpop.f32.mrf.mxu1  ;;  %7103 = vmatpush.bf16.msrb.mxu3 %v12635_v7  ;;  %v12491_v7 = vor.u32 %v15057_v31, %v12488_v34  ;;  %v12419_v28 = vor.u32 %v15039_v13, %v12416_v53  ;;  %v12792_v31 = vld [vmem:[#allocation7 + $0x1278] sm:$0xf0]  ;;  %v15149_v34 = vld [vmem:[#allocation7 + $0x12f4] sm:$0xf] }
 0x2c8   : > { %v5049_v15 = vadd.f32 %v5048_v0, %v17511_v17  ;;  %7047 = vmatpush.bf16.msrb.mxu0 %v12435_v5  ;;  %v12346_v17 = vld [vmem:[#allocation2 + $0x128] sm:$0xf]  ;;  %v15071_v5 = vld [vmem:[#allocation7 + $0x1084] sm:$0xf]  ;;  %v12920_v13 = vld [vmem:[#allocation7 + $0x1378] sm:$0xf0] }
 0x2c9   : > { %v17534_v61 = vadd.f32 %v5103_v38, %v5085_v32  ;;  %7066 = vmatpush.bf16.msrb.mxu1 %v12499_v22  ;;  %7085 = vmatpush.bf16.msrb.mxu2 %v12563_v23  ;;  %v12728_v32 = vld [vmem:[#allocation7 + $0x11f8] sm:$0xf0]  ;;  %v17538_v22 = vor.u32 %v15014_v25, %v12340_v60  ;;  %v17540_v62 = vor.u32 %v15022_v57, %v12346_v17  ;;  %v15115_v17 = vld [vmem:[#allocation7 + $0x11e4] sm:$0xf]  ;;  %v12720_v57 = vld [vmem:[#allocation7 + $0x11e8] sm:$0xf0] }
 0x2ca   : > { %v5068_v1 = vadd.f32 %v5067_v2, %v5049_v15  ;;  %v17536_v2 = vor.u32 %v15021_v19, %v12338_v9  ;;  %v15133_v15 = vld [vmem:[#allocation7 + $0x1274] sm:$0xf]  ;;  %v12547_v9 = vor.u32 %v15071_v5, %v12544_v43  ;;  %v12611_v19 = vor.u32 %v15087_v33, %v12608_v37  ;;  %v12912_v5 = vld [vmem:[#allocation7 + $0x1368] sm:$0xf0] }
 0x2cb   : > { %v5105_v38 = vpop.f32.mrf.mxu3  ;;  %7104 = vmatpush.bf16.msrb.mxu3 %v12627_v51  ;;  %v12795_v60 = vor.u32 %v15133_v15, %v12792_v31  ;;  %v12723_v33 = vor.u32 %v15115_v17, %v12720_v57  ;;  %v15113_v37 = vld [vmem:[#allocation7 + $0x11d4] sm:$0xf] }
 0x2cc   : > { %7048 = vmatpush.bf16.msrb.mxu0 %v12427_v44  ;;  %v12856_v44 = vld [vmem:[#allocation7 + $0x12f8] sm:$0xf0]  ;;  %v15129_v31 = vld [vmem:[#allocation7 + $0x1254] sm:$0xf] }
 0x2cd   : > { %7067 = vmatpush.bf16.msrb.mxu1 %v12491_v7  ;;  %7086 = vmatpush.bf16.msrb.mxu2 %v12555_v24  ;;  %v12859_v63 = vor.u32 %v15149_v34, %v12856_v44  ;;  %v12784_v24 = vld [vmem:[#allocation7 + $0x1268] sm:$0xf0]  ;;  %v12776_v34 = vld [vmem:[#allocation7 + $0x1258] sm:$0xf0] }
 0x2ce   : > { %v5086_v0 = vpop.f32.mrf.mxu2  ;;  %v12840_v44 = vld [vmem:[#allocation7 + $0x12d8] sm:$0xf0] }
 0x2cf   : > { %v5087_v23 = vadd.f32 %v5086_v0, %v5068_v1  ;;  %v5051_v51 = vpop.f32.mrf.mxu0  ;;  %v5070_v40 = vpop.f32.mrf.mxu1  ;;  %7105 = vmatpush.bf16.msrb.mxu3 %v12619_v12  ;;  %v12731_v1 = vor.u32 %v15117_v36, %v12728_v32  ;;  %v15147_v12 = vld [vmem:[#allocation7 + $0x12e4] sm:$0xf]  ;;  %v12712_v36 = vld [vmem:[#allocation7 + $0x11d8] sm:$0xf0] }
 0x2d0   : > { %v5052_v53 = vadd.f32 %v5051_v51, %v17518_v21  ;;  %7036 = vmatmul.bf16.gmra.mxu3 %v17357_v54  ;;  %7049 = vmatpush.bf16.msrb.mxu0 %v12419_v28  ;;  %v12923_v21 = vor.u32 %v15165_v18, %v12920_v13  ;;  %v15163_v54 = vld [vmem:[#allocation7 + $0x1364] sm:$0xf]  ;;  %v12787_v28 = vor.u32 %v15131_v4, %v12784_v24  ;;  %v15161_v18 = vld [vmem:[#allocation7 + $0x1354] sm:$0xf]  ;;  %v12904_v13 = vld [vmem:[#allocation7 + $0x1358] sm:$0xf0] }
 0x2d1   : > { %v17543_v25 = vadd.f32 %v5105_v38, %v5087_v23  ;;  %7068 = vmatpush.bf16.msrb.mxu1 %v12483_v46  ;;  %v12848_v38 = vld [vmem:[#allocation7 + $0x12e8] sm:$0xf0]  ;;  %7087 = vmatpush.bf16.msrb.mxu2 %v12547_v9  ;;  %v12915_v15 = vor.u32 %v15163_v54, %v12912_v5  ;;  %v15145_v23 = vld [vmem:[#allocation7 + $0x12d4] sm:$0xf]  ;;  %v12907_v57 = vor.u32 %v15161_v18, %v12904_v13  ;;  %v15127_v4 = vld [vmem:[#allocation7 + $0x1244] sm:$0xf] }
 0x2d2   : > { %v5071_v7 = vadd.f32 %v5070_v40, %v5052_v53  ;;  %6979 = vmatmul.bf16.gmra.mxu0 %v17536_v2  ;;  %6998 = vmatmul.bf16.gmra.mxu1 %v17538_v22  ;;  %v12851_v0 = vor.u32 %v15147_v12, %v12848_v38  ;;  %v12843_v17 = vor.u32 %v15145_v23, %v12840_v44  ;;  %v12768_v24 = vld [vmem:[#allocation7 + $0x1248] sm:$0xf0]  ;;  %v15143_v12 = vld [vmem:[#allocation7 + $0x12c4] sm:$0xf]  ;;  %v15125_v23 = vld [vmem:[#allocation7 + $0x1234] sm:$0xf] }
 0x2d3   : > { %7017 = vmatmul.bf16.gmra.mxu2 %v17540_v62  ;;  %v5108_v43 = vpop.f32.mrf.mxu3  ;;  %7106 = vmatpush.bf16.msrb.mxu3 %v12611_v19  ;;  %v12715_v19 = vor.u32 %v15113_v37, %v12712_v36  ;;  %v12832_v38 = vld [vmem:[#allocation7 + $0x12c8] sm:$0xf0]  ;;  %v15159_v54 = vld [vmem:[#allocation7 + $0x1344] sm:$0xf]  ;;  %v12824_v18 = vld [vmem:[#allocation7 + $0x12b8] sm:$0xf0] }
 0x2d4   : > { %7118 = vmatpush.bf16.msra.mxu0 %v12731_v1  ;;  %v12779_v1 = vor.u32 %v15129_v31, %v12776_v34  ;;  %v12896_v5 = vld [vmem:[#allocation7 + $0x1348] sm:$0xf0]  ;;  %v12835_v31 = vor.u32 %v15143_v12, %v12832_v38  ;;  %v15157_v13 = vld [vmem:[#allocation7 + $0x1334] sm:$0xf]  ;;  %v12680_v38 = vld [vmem:[#allocation7 + $0x1198] sm:$0xf0] }
 0x2d5   : > { %7137 = vmatpush.bf16.msra.mxu1 %v12795_v60  ;;  %7156 = vmatpush.bf16.msra.mxu2 %v12859_v63  ;;  %v15111_v63 = vld [vmem:[#allocation7 + $0x11c4] sm:$0xf]  ;;  %v12899_v34 = vor.u32 %v15159_v54, %v12896_v5  ;;  %v12880_v12 = vld [vmem:[#allocation7 + $0x1328] sm:$0xf0] }
 0x2d6   : > { %v5089_v32 = vpop.f32.mrf.mxu2 }
 0x2d7   : > { %7175 = vmatpush.bf16.msra.mxu3 %v12923_v21  ;;  %v5090_v51 = vadd.f32 %v5089_v32, %v5071_v7  ;;  %v5053_v40 = vpop.f32.mrf.mxu0  ;;  %v5072_v46 = vpop.f32.mrf.mxu1  ;;  %v12704_v7 = vld [vmem:[#allocation7 + $0x11c8] sm:$0xf0] }
 0x2d8   : > { %v5054_v53 = vadd.f32 %v5053_v40, %v17527_v27  ;;  %7119 = vmatpush.bf16.msra.mxu0 %v12723_v33  ;;  %v12707_v27 = vor.u32 %v15111_v63, %v12704_v7  ;;  %v15109_v33 = vld [vmem:[#allocation7 + $0x11b4] sm:$0xf]  ;;  %v15123_v63 = vld [vmem:[#allocation7 + $0x1224] sm:$0xf]  ;;  %v12752_v7 = vld [vmem:[#allocation7 + $0x1228] sm:$0xf0] }
 0x2d9   : > { %v17550_v9 = vadd.f32 %v5108_v43, %v5090_v51  ;;  %7138 = vmatpush.bf16.msra.mxu1 %v12787_v28  ;;  %7157 = vmatpush.bf16.msra.mxu2 %v12851_v0  ;;  %v12696_v28 = vld [vmem:[#allocation7 + $0x11b8] sm:$0xf0]  ;;  %v12771_v0 = vor.u32 %v15127_v4, %v12768_v24  ;;  %v15141_v40 = vld [vmem:[#allocation7 + $0x12b4] sm:$0xf]  ;;  %v12816_v24 = vld [vmem:[#allocation7 + $0x12a8] sm:$0xf0] }
 0x2da   : > { %v5073_v60 = vadd.f32 %v5072_v46, %v5054_v53  ;;  %v12760_v51 = vld [vmem:[#allocation7 + $0x1238] sm:$0xf0]  ;;  %v12699_v44 = vor.u32 %v15109_v33, %v12696_v28 }
 0x2db   : > { %7176 = vmatpush.bf16.msra.mxu3 %v12915_v15  ;;  %v5110_v21 = vpop.f32.mrf.mxu3  ;;  %v12888_v53 = vld [vmem:[#allocation7 + $0x1338] sm:$0xf0] }
 0x2dc   : > { %7120 = vmatpush.bf16.msra.mxu0 %v12715_v19  ;;  %v15107_v19 = vld [vmem:[#allocation7 + $0x11a4] sm:$0xf] }
 0x2dd   : > { %7139 = vmatpush.bf16.msra.mxu1 %v12779_v1  ;;  %7158 = vmatpush.bf16.msra.mxu2 %v12843_v17  ;;  %v12688_v1 = vld [vmem:[#allocation7 + $0x11a8] sm:$0xf0] }
 0x2de   : > { %v5091_v43 = vpop.f32.mrf.mxu2  ;;  %v12691_v4 = vor.u32 %v15107_v19, %v12688_v1 }
 0x2df   : > { %7177 = vmatpush.bf16.msra.mxu3 %v12907_v57  ;;  %v5092_v37 = vadd.f32 %v5091_v43, %v5073_v60  ;;  %v6747_v36 = vpop.f32.mrf.mxu0  ;;  %v6766_v32 = vpop.f32.mrf.mxu1  ;;  %v12763_v60 = vor.u32 %v15125_v23, %v12760_v51  ;;  %v12827_v57 = vor.u32 %v15141_v40, %v12824_v18  ;;  %v12755_v43 = vor.u32 %v15123_v63, %v12752_v7  ;;  %v12808_v23 = vld [vmem:[#allocation7 + $0x1298] sm:$0xf0]  ;;  %v15153_v51 = vld [vmem:[#allocation7 + $0x1314] sm:$0xf]  ;;  %v12864_v7 = vld [vmem:[#allocation7 + $0x1308] sm:$0xf0] }
 0x2e0   : > { %v6767_v15 = vadd.f32 %v6766_v32, %v6747_v36  ;;  %7107 = vmatmul.bf16.vlgmr.msrb.gmra.mxu3 %v17394_v55  ;;  %7121 = vmatpush.bf16.msra.mxu0 %v12707_v27  ;;  %v12891_v55 = vor.u32 %v15157_v13, %v12888_v53  ;;  %v15105_v27 = vld [vmem:[#allocation7 + $0x1194] sm:$0xf]  ;;  %v12744_v32 = vld [vmem:[#allocation7 + $0x1218] sm:$0xf0]  ;;  %v15119_v13 = vld [vmem:[#allocation7 + $0x1204] sm:$0xf] }
 0x2e1   : > { %v17552_v46 = vadd.f32 %v5110_v21, %v5092_v37  ;;  %7140 = vmatpush.bf16.msra.mxu1 %v12771_v0  ;;  %7159 = vmatpush.bf16.msra.mxu2 %v12835_v31  ;;  %v15139_v21 = vld [vmem:[#allocation7 + $0x12a4] sm:$0xf]  ;;  %v15121_v36 = vld [vmem:[#allocation7 + $0x1214] sm:$0xf]  ;;  %v12872_v40 = vld [vmem:[#allocation7 + $0x1318] sm:$0xf0] }
 0x2e2   : > { %7050 = vmatmul.bf16.vlgmr.msrb.gmra.mxu0 %v17302_v11  ;;  %7069 = vmatmul.bf16.vlgmr.msrb.gmra.mxu1 %v17304_v20  ;;  %v15155_v11 = vld [vmem:[#allocation7 + $0x1324] sm:$0xf]  ;;  %v12819_v28 = vor.u32 %v15139_v21, %v12816_v24  ;;  %v15137_v0 = vld [vmem:[#allocation7 + $0x1294] sm:$0xf]  ;;  %v12747_v18 = vor.u32 %v15121_v36, %v12744_v32  ;;  %v12736_v53 = vld [vmem:[#allocation7 + $0x1208] sm:$0xf0] }
 0x2e3   : > { %7088 = vmatmul.bf16.vlgmr.msrb.gmra.mxu2 %v17298_v35  ;;  %v6804_v17 = vpop.f32.mrf.mxu3  ;;  %7178 = vmatpush.bf16.msra.mxu3 %v12899_v34  ;;  %v12883_v37 = vor.u32 %v15155_v11, %v12880_v12  ;;  %v12683_v34 = vor.u32 %v15105_v27, %v12680_v38  ;;  %v12811_v1 = vor.u32 %v15137_v0, %v12808_v23  ;;  %v15181_v21 = vld [vmem:[#allocation7 + $0x13f4] sm:$0xf]  ;;  %v13048_v12 = vld [vmem:[#allocation7 + $0x1478] sm:$0xf0] }
 0x2e4   : > { %7122 = vmatpush.bf16.msra.mxu0 %v12699_v44  ;;  %v12672_v44 = vld [vmem:[#allocation7 + $0x1188] sm:$0xf0]  ;;  %v15197_v11 = vld [vmem:[#allocation7 + $0x1474] sm:$0xf] }
 0x2e5   : > { %7141 = vmatpush.bf16.msra.mxu1 %v12763_v60  ;;  %7160 = vmatpush.bf16.msra.mxu2 %v12827_v57  ;;  %v12875_v60 = vor.u32 %v15153_v51, %v12872_v40  ;;  %v15135_v57 = vld [vmem:[#allocation7 + $0x1284] sm:$0xf]  ;;  %v13051_v23 = vor.u32 %v15197_v11, %v13048_v12  ;;  %v12976_v51 = vld [vmem:[#allocation7 + $0x13e8] sm:$0xf0]  ;;  %v13096_v12 = vld [vmem:[#allocation7 + $0x14d8] sm:$0xf0] }
 0x2e6   : > { %v6785_v20 = vpop.f32.mrf.mxu2 }
 0x2e7   : > { %v6786_v54 = vadd.f32 %v6785_v20, %v6767_v15  ;;  %v6749_v35 = vpop.f32.mrf.mxu0  ;;  %v6768_v5 = vpop.f32.mrf.mxu1  ;;  %7179 = vmatpush.bf16.msra.mxu3 %v12891_v55  ;;  %v15103_v15 = vld [vmem:[#allocation7 + $0x1184] sm:$0xf]  ;;  %v12800_v55 = vld [vmem:[#allocation7 + $0x1288] sm:$0xf0]  ;;  %v15213_v20 = vld [vmem:[#allocation7 + $0x14f4] sm:$0xf] }
 0x2e8   : > { %v6769_v33 = vadd.f32 %v6768_v5, %v6749_v35  ;;  %7123 = vmatpush.bf16.msra.mxu0 %v12691_v4  ;;  %v12675_v63 = vor.u32 %v15103_v15, %v12672_v44  ;;  %v12984_v4 = vld [vmem:[#allocation7 + $0x13f8] sm:$0xf0]  ;;  %v12739_v35 = vor.u32 %v15119_v13, %v12736_v53  ;;  %v12803_v36 = vor.u32 %v15135_v57, %v12800_v55  ;;  %v15195_v44 = vld [vmem:[#allocation7 + $0x1464] sm:$0xf]  ;;  %v13104_v53 = vld [vmem:[#allocation7 + $0x14e8] sm:$0xf0] }
 0x2e9   : > { %v17558_v31 = vadd.f32 %v6804_v17, %v6786_v54  ;;  %7142 = vmatpush.bf16.msra.mxu1 %v12755_v43  ;;  %7161 = vmatpush.bf16.msra.mxu2 %v12819_v28  ;;  %v15151_v17 = vld [vmem:[#allocation7 + $0x1304] sm:$0xf]  ;;  %v13112_v5 = vld [vmem:[#allocation7 + $0x14f8] sm:$0xf0]  ;;  %v15229_v43 = vld [vmem:[#allocation7 + $0x1574] sm:$0xf] }
 0x2ea   : > { %v13176_v28 = vld [vmem:[#allocation7 + $0x1578] sm:$0xf0]  ;;  %v12867_v32 = vor.u32 %v15151_v17, %v12864_v7  ;;  %v13115_v40 = vor.u32 %v15213_v20, %v13112_v5  ;;  %v15211_v13 = vld [vmem:[#allocation7 + $0x14e4] sm:$0xf]  ;;  %v15177_v57 = vld [vmem:[#allocation7 + $0x13d4] sm:$0xf] }
 0x2eb   : > { %v6806_v19 = vpop.f32.mrf.mxu3  ;;  %7180 = vmatpush.bf16.msra.mxu3 %v12883_v37  ;;  %v13179_v15 = vor.u32 %v15229_v43, %v13176_v28  ;;  %v13107_v17 = vor.u32 %v15211_v13, %v13104_v53  ;;  %v15193_v7 = vld [vmem:[#allocation7 + $0x1454] sm:$0xf]  ;;  %v12952_v53 = vld [vmem:[#allocation7 + $0x13b8] sm:$0xf0] }
 0x2ec   : > { %7124 = vmatpush.bf16.msra.mxu0 %v12683_v34  ;;  %v12987_v34 = vor.u32 %v15181_v21, %v12984_v4  ;;  %v15209_v21 = vld [vmem:[#allocation7 + $0x14d4] sm:$0xf] }
 0x2ed   : > { %7143 = vmatpush.bf16.msra.mxu1 %v12747_v18  ;;  %7162 = vmatpush.bf16.msra.mxu2 %v12811_v1  ;;  %v13040_v18 = vld [vmem:[#allocation7 + $0x1468] sm:$0xf0]  ;;  %v15225_v20 = vld [vmem:[#allocation7 + $0x1554] sm:$0xf]  ;;  %v13099_v43 = vor.u32 %v15209_v21, %v13096_v12  ;;  %v13080_v21 = vld [vmem:[#allocation7 + $0x14b8] sm:$0xf0] }
 0x2ee   : > { %v6787_v24 = vpop.f32.mrf.mxu2  ;;  %v15173_v13 = vld [vmem:[#allocation7 + $0x13b4] sm:$0xf]  ;;  %v12944_v12 = vld [vmem:[#allocation7 + $0x13a8] sm:$0xf0] }
 0x2ef   : > { %v6788_v27 = vadd.f32 %v6787_v24, %v6769_v33  ;;  %v6752_v38 = vpop.f32.mrf.mxu0  ;;  %v6771_v54 = vpop.f32.mrf.mxu1  ;;  %7181 = vmatpush.bf16.msra.mxu3 %v12875_v60  ;;  %v15179_v33 = vld [vmem:[#allocation7 + $0x13e4] sm:$0xf] }
 0x2f0   : > { %v6772_v37 = vadd.f32 %v6771_v54, %v6752_v38  ;;  %7112 = vmatmul.bf16.gmra.mxu3 %v17443_v10  ;;  %7125 = vmatpush.bf16.msra.mxu0 %v12675_v63  ;;  %v13168_v10 = vld [vmem:[#allocation7 + $0x1568] sm:$0xf0]  ;;  %v12979_v60 = vor.u32 %v15179_v33, %v12976_v51  ;;  %v15207_v33 = vld [vmem:[#allocation7 + $0x14c4] sm:$0xf] }
 0x2f1   : > { %v17560_v0 = vadd.f32 %v6806_v19, %v6788_v27  ;;  %7144 = vmatpush.bf16.msra.mxu1 %v12739_v35  ;;  %v15227_v19 = vld [vmem:[#allocation7 + $0x1564] sm:$0xf]  ;;  %7163 = vmatpush.bf16.msra.mxu2 %v12803_v36  ;;  %v13160_v27 = vld [vmem:[#allocation7 + $0x1558] sm:$0xf0] }
 0x2f2   : > { %7055 = vmatmul.bf16.gmra.mxu0 %v17361_v48  ;;  %7074 = vmatmul.bf16.gmra.mxu1 %v17363_v52  ;;  %v13043_v48 = vor.u32 %v15195_v44, %v13040_v18  ;;  %v12968_v52 = vld [vmem:[#allocation7 + $0x13d8] sm:$0xf0]  ;;  %v13171_v63 = vor.u32 %v15227_v19, %v13168_v10  ;;  %v13163_v28 = vor.u32 %v15225_v20, %v13160_v27  ;;  %v15175_v36 = vld [vmem:[#allocation7 + $0x13c4] sm:$0xf]  ;;  %v13152_v44 = vld [vmem:[#allocation7 + $0x1548] sm:$0xf0] }
 0x2f3   : > { %7093 = vmatmul.bf16.gmra.mxu2 %v17359_v56  ;;  %v6809_v1 = vpop.f32.mrf.mxu3  ;;  %7182 = vmatpush.bf16.msra.mxu3 %v12867_v32  ;;  %v13032_v56 = vld [vmem:[#allocation7 + $0x1458] sm:$0xf0]  ;;  %v12971_v35 = vor.u32 %v15177_v57, %v12968_v52  ;;  %v12960_v32 = vld [vmem:[#allocation7 + $0x13c8] sm:$0xf0] }
 0x2f4   : > { %7194 = vmatpush.bf16.msrb.mxu0 %v12987_v34  ;;  %v13035_v5 = vor.u32 %v15193_v7, %v13032_v56  ;;  %v12963_v51 = vor.u32 %v15175_v36, %v12960_v32  ;;  %v12955_v56 = vor.u32 %v15173_v13, %v12952_v53  ;;  %v13072_v36 = vld [vmem:[#allocation7 + $0x14a8] sm:$0xf0]  ;;  %v13000_v13 = vld [vmem:[#allocation7 + $0x1418] sm:$0xf0]  ;;  %v15201_v53 = vld [vmem:[#allocation7 + $0x1494] sm:$0xf] }
 0x2f5   : > { %7213 = vmatpush.bf16.msrb.mxu1 %v13051_v23  ;;  %7232 = vmatpush.bf16.msrb.mxu2 %v13115_v40  ;;  %v13024_v23 = vld [vmem:[#allocation7 + $0x1448] sm:$0xf0] }
 0x2f6   : > { %v6790_v55 = vpop.f32.mrf.mxu2  ;;  %v13088_v40 = vld [vmem:[#allocation7 + $0x14c8] sm:$0xf0] }
 0x2f7   : > { %7251 = vmatpush.bf16.msrb.mxu3 %v13179_v15  ;;  %v6791_v4 = vadd.f32 %v6790_v55, %v6772_v37  ;;  %v6754_v24 = vpop.f32.mrf.mxu0  ;;  %v6773_v11 = vpop.f32.mrf.mxu1  ;;  %v15191_v37 = vld [vmem:[#allocation7 + $0x1444] sm:$0xf]  ;;  %v13091_v57 = vor.u32 %v15207_v33, %v13088_v40  ;;  %v15189_v55 = vld [vmem:[#allocation7 + $0x1434] sm:$0xf]  ;;  %v13136_v32 = vld [vmem:[#allocation7 + $0x1528] sm:$0xf0] }
 0x2f8   : > { %v6774_v38 = vadd.f32 %v6773_v11, %v6754_v24  ;;  %7195 = vmatpush.bf16.msrb.mxu0 %v12979_v60  ;;  %v15223_v15 = vld [vmem:[#allocation7 + $0x1544] sm:$0xf]  ;;  %v13027_v60 = vor.u32 %v15191_v37, %v13024_v23  ;;  %v13144_v24 = vld [vmem:[#allocation7 + $0x1538] sm:$0xf0] }
 0x2f9   : > { %v17566_v54 = vadd.f32 %v6809_v1, %v6791_v4  ;;  %7214 = vmatpush.bf16.msrb.mxu1 %v13043_v48  ;;  %7233 = vmatpush.bf16.msrb.mxu2 %v13107_v17  ;;  %v13155_v52 = vor.u32 %v15223_v15, %v13152_v44  ;;  %v13016_v17 = vld [vmem:[#allocation7 + $0x1438] sm:$0xf0]  ;;  %v15221_v4 = vld [vmem:[#allocation7 + $0x1534] sm:$0xf] }
 0x2fa   : > { %v13019_v20 = vor.u32 %v15189_v55, %v13016_v17  ;;  %v12936_v37 = vld [vmem:[#allocation7 + $0x1398] sm:$0xf0]  ;;  %v12928_v55 = vld [vmem:[#allocation7 + $0x1388] sm:$0xf0]  ;;  %v15183_v17 = vld [vmem:[#allocation7 + $0x1404] sm:$0xf] }
 0x2fb   : > { %7252 = vmatpush.bf16.msrb.mxu3 %v13171_v63  ;;  %v6811_v34 = vpop.f32.mrf.mxu3  ;;  %v15205_v63 = vld [vmem:[#allocation7 + $0x14b4] sm:$0xf] }
 0x2fc   : > { %7196 = vmatpush.bf16.msrb.mxu0 %v12971_v35  ;;  %v15187_v35 = vld [vmem:[#allocation7 + $0x1424] sm:$0xf] }
 0x2fd   : > { %7215 = vmatpush.bf16.msrb.mxu1 %v13035_v5  ;;  %7234 = vmatpush.bf16.msrb.mxu2 %v13099_v43  ;;  %v13008_v5 = vld [vmem:[#allocation7 + $0x1428] sm:$0xf0]  ;;  %v15203_v43 = vld [vmem:[#allocation7 + $0x14a4] sm:$0xf] }
 0x2fe   : > { %v6792_v18 = vpop.f32.mrf.mxu2  ;;  %v13075_v15 = vor.u32 %v15203_v43, %v13072_v36 }
 0x2ff   : > { %7253 = vmatpush.bf16.msrb.mxu3 %v13163_v28  ;;  %v6793_v19 = vadd.f32 %v6792_v18, %v6774_v38  ;;  %v6823_v10 = vpop.f32.mrf.mxu0  ;;  %v6842_v1 = vpop.f32.mrf.mxu1  ;;  %v13147_v38 = vor.u32 %v15221_v4, %v13144_v24  ;;  %v15185_v18 = vld [vmem:[#allocation7 + $0x1414] sm:$0xf]  ;;  %v12992_v4 = vld [vmem:[#allocation7 + $0x1408] sm:$0xf0]  ;;  %v15199_v24 = vld [vmem:[#allocation7 + $0x1484] sm:$0xf] }
 0x300   : > { %v6824_v48 = vadd.f32 %v6823_v10, %v17558_v31  ;;  %7183 = vmatmul.bf16.vlgmr.msra.gmra.mxu3 %v17470_v16  ;;  %7197 = vmatpush.bf16.msrb.mxu0 %v12963_v51  ;;  %v15171_v31 = vld [vmem:[#allocation7 + $0x13a4] sm:$0xf]  ;;  %v13083_v16 = vor.u32 %v15205_v63, %v13080_v21  ;;  %v13011_v51 = vor.u32 %v15187_v35, %v13008_v5  ;;  %v15261_v35 = vld [vmem:[#allocation7 + $0x1674] sm:$0xf]  ;;  %v13304_v5 = vld [vmem:[#allocation7 + $0x1678] sm:$0xf0] }
 0x301   : > { %v17569_v7 = vadd.f32 %v6811_v34, %v6793_v19  ;;  %7216 = vmatpush.bf16.msrb.mxu1 %v13027_v60  ;;  %7235 = vmatpush.bf16.msrb.mxu2 %v13091_v57  ;;  %v12947_v28 = vor.u32 %v15171_v31, %v12944_v12  ;;  %v15169_v34 = vld [vmem:[#allocation7 + $0x1394] sm:$0xf]  ;;  %v15215_v12 = vld [vmem:[#allocation7 + $0x1504] sm:$0xf]  ;;  %v12995_v36 = vor.u32 %v15183_v17, %v12992_v4  ;;  %v13216_v17 = vld [vmem:[#allocation7 + $0x15c8] sm:$0xf0] }
 0x302   : > { %v6843_v11 = vadd.f32 %v6842_v1, %v6824_v48  ;;  %7126 = vmatmul.bf16.vlgmr.msra.gmra.mxu0 %v17396_v39  ;;  %7145 = vmatmul.bf16.vlgmr.msra.gmra.mxu1 %v17398_v47  ;;  %v15219_v39 = vld [vmem:[#allocation7 + $0x1524] sm:$0xf]  ;;  %v12939_v10 = vor.u32 %v15169_v34, %v12936_v37  ;;  %v13064_v1 = vld [vmem:[#allocation7 + $0x1498] sm:$0xf0]  ;;  %v15217_v60 = vld [vmem:[#allocation7 + $0x1514] sm:$0xf]  ;;  %v13307_v37 = vor.u32 %v15261_v35, %v13304_v5 }
 0x303   : > { %7164 = vmatmul.bf16.vlgmr.msra.gmra.mxu2 %v17392_v41  ;;  %v6880_v27 = vpop.f32.mrf.mxu3  ;;  %7254 = vmatpush.bf16.msrb.mxu3 %v13155_v52  ;;  %v13139_v44 = vor.u32 %v15219_v39, %v13136_v32  ;;  %v13128_v48 = vld [vmem:[#allocation7 + $0x1518] sm:$0xf0]  ;;  %v15167_v52 = vld [vmem:[#allocation7 + $0x1384] sm:$0xf]  ;;  %v13280_v4 = vld [vmem:[#allocation7 + $0x1648] sm:$0xf0] }
 0x304   : > { %7198 = vmatpush.bf16.msrb.mxu0 %v12955_v56  ;;  %v13067_v56 = vor.u32 %v15201_v53, %v13064_v1  ;;  %v13131_v21 = vor.u32 %v15217_v60, %v13128_v48  ;;  %v12931_v31 = vor.u32 %v15167_v52, %v12928_v55  ;;  %v15257_v53 = vld [vmem:[#allocation7 + $0x1654] sm:$0xf]  ;;  %v13272_v5 = vld [vmem:[#allocation7 + $0x1638] sm:$0xf0] }
 0x305   : > { %7217 = vmatpush.bf16.msrb.mxu1 %v13019_v20  ;;  %7236 = vmatpush.bf16.msrb.mxu2 %v13083_v16  ;;  %v13120_v20 = vld [vmem:[#allocation7 + $0x1508] sm:$0xf0]  ;;  %v15253_v35 = vld [vmem:[#allocation7 + $0x1634] sm:$0xf] }
 0x306   : > { %v6861_v47 = vpop.f32.mrf.mxu2 }
 0x307   : > { %v6862_v23 = vadd.f32 %v6861_v47, %v6843_v11  ;;  %v6825_v41 = vpop.f32.mrf.mxu0  ;;  %v6844_v33 = vpop.f32.mrf.mxu1  ;;  %7255 = vmatpush.bf16.msrb.mxu3 %v13147_v38  ;;  %v13056_v11 = vld [vmem:[#allocation7 + $0x1488] sm:$0xf0]  ;;  %v13240_v38 = vld [vmem:[#allocation7 + $0x15f8] sm:$0xf0]  ;;  %v13123_v47 = vor.u32 %v15215_v12, %v13120_v20 }
 0x308   : > { %v6826_v40 = vadd.f32 %v6825_v41, %v17560_v0  ;;  %7199 = vmatpush.bf16.msrb.mxu0 %v12947_v28  ;;  %v13003_v0 = vor.u32 %v15185_v18, %v13000_v13  ;;  %v13059_v32 = vor.u32 %v15199_v24, %v13056_v11  ;;  %v13224_v13 = vld [vmem:[#allocation7 + $0x15d8] sm:$0xf0] }
 0x309   : > { %v17576_v19 = vadd.f32 %v6880_v27, %v6862_v23  ;;  %7218 = vmatpush.bf16.msrb.mxu1 %v13011_v51  ;;  %7237 = vmatpush.bf16.msrb.mxu2 %v13075_v15  ;;  %v15245_v27 = vld [vmem:[#allocation7 + $0x15f4] sm:$0xf]  ;;  %v15243_v23 = vld [vmem:[#allocation7 + $0x15e4] sm:$0xf] }
 0x30a   : > { %v17578_v57 = vadd.f32 %v6844_v33, %v6826_v40  ;;  %v13243_v34 = vor.u32 %v15245_v27, %v13240_v38  ;;  %v13232_v33 = vld [vmem:[#allocation7 + $0x15e8] sm:$0xf0]  ;;  %v15259_v51 = vld [vmem:[#allocation7 + $0x1664] sm:$0xf] }
 0x30b   : > { %v17580_v63 = vpop.f32.mrf.mxu3  ;;  %7256 = vmatpush.bf16.msrb.mxu3 %v13139_v44  ;;  %v13296_v40 = vld [vmem:[#allocation7 + $0x1668] sm:$0xf0]  ;;  %v15241_v44 = vld [vmem:[#allocation7 + $0x15d4] sm:$0xf] }
 0x30c   : > { %7200 = vmatpush.bf16.msrb.mxu0 %v12939_v10  ;;  %v13299_v15 = vor.u32 %v15259_v51, %v13296_v40 }
 0x30d   : > { %7219 = vmatpush.bf16.msrb.mxu1 %v13003_v0  ;;  %7238 = vmatpush.bf16.msrb.mxu2 %v13067_v56  ;;  %v15239_v0 = vld [vmem:[#allocation7 + $0x15c4] sm:$0xf] }
 0x30e   : > { %v17582_v16 = vpop.f32.mrf.mxu2  ;;  %v13219_v24 = vor.u32 %v15239_v0, %v13216_v17 }
 0x30f   : > { %v6828_v43 = vpop.f32.mrf.mxu0  ;;  %v6847_v28 = vpop.f32.mrf.mxu1  ;;  %7257 = vmatpush.bf16.msrb.mxu3 %v13131_v21  ;;  %v15255_v21 = vld [vmem:[#allocation7 + $0x1644] sm:$0xf] }
 0x310   : > { %v6829_v39 = vadd.f32 %v6828_v43, %v17566_v54  ;;  %7188 = vmatmul.bf16.gmra.mxu3 %v17502_v3  ;;  %7201 = vmatpush.bf16.msrb.mxu0 %v12931_v31  ;;  %v13235_v3 = vor.u32 %v15243_v23, %v13232_v33  ;;  %v13208_v31 = vld [vmem:[#allocation7 + $0x15b8] sm:$0xf0]  ;;  %v13283_v27 = vor.u32 %v15255_v21, %v13280_v4 }
 0x311   : > { %7220 = vmatpush.bf16.msrb.mxu1 %v12995_v36  ;;  %7239 = vmatpush.bf16.msrb.mxu2 %v13059_v32  ;;  %v15235_v36 = vld [vmem:[#allocation7 + $0x15a4] sm:$0xf]  ;;  %v13275_v32 = vor.u32 %v15253_v35, %v13272_v5  ;;  %v6864_v4 = vadd.f32 %v17582_v16, %v17578_v57 }
 0x312   : > { %v6848_v41 = vadd.f32 %v6847_v28, %v6829_v39  ;;  %7131 = vmatmul.bf16.gmra.mxu0 %v17445_v45  ;;  %7150 = vmatmul.bf16.gmra.mxu1 %v17447_v50  ;;  %v13288_v45 = vld [vmem:[#allocation7 + $0x1658] sm:$0xf0]  ;;  %v13200_v39 = vld [vmem:[#allocation7 + $0x15a8] sm:$0xf0] }
 0x313   : > { %7169 = vmatmul.bf16.gmra.mxu2 %v17441_v8  ;;  %v6885_v54 = vpop.f32.mrf.mxu3  ;;  %7258 = vmatpush.bf16.msrb.mxu3 %v13123_v47  ;;  %v13227_v8 = vor.u32 %v15241_v44, %v13224_v13  ;;  %v13291_v52 = vor.u32 %v15257_v53, %v13288_v45  ;;  %v13184_v44 = vld [vmem:[#allocation7 + $0x1588] sm:$0xf0]  ;;  %v15247_v53 = vld [vmem:[#allocation7 + $0x1604] sm:$0xf] }
 0x314   : > { %7270 = vmatpush.bf16.msra.mxu0 %v13243_v34  ;;  %v15251_v34 = vld [vmem:[#allocation7 + $0x1624] sm:$0xf]  ;;  %v13248_v45 = vld [vmem:[#allocation7 + $0x1608] sm:$0xf0] }
 0x315   : > { %7289 = vmatpush.bf16.msra.mxu1 %v13307_v37  ;;  %v13203_v37 = vor.u32 %v15235_v36, %v13200_v39 }
 0x316   : > { %v6866_v18 = vpop.f32.mrf.mxu2 }
 0x317   : > { %v6867_v10 = vadd.f32 %v6866_v18, %v6848_v41  ;;  %v6830_v50 = vpop.f32.mrf.mxu0  ;;  %v6849_v1 = vpop.f32.mrf.mxu1  ;;  %v13192_v41 = vld [vmem:[#allocation7 + $0x1598] sm:$0xf0] }
 0x318   : > { %v6831_v60 = vadd.f32 %v6830_v50, %v17569_v7  ;;  %7271 = vmatpush.bf16.msra.mxu0 %v13235_v3  ;;  %v15237_v7 = vld [vmem:[#allocation7 + $0x15b4] sm:$0xf] }
 0x319   : > { %v17590_v48 = vadd.f32 %v6885_v54, %v6867_v10  ;;  %7290 = vmatpush.bf16.msra.mxu1 %v13299_v15  ;;  %v13211_v43 = vor.u32 %v15237_v7, %v13208_v31  ;;  %v13256_v54 = vld [vmem:[#allocation7 + $0x1618] sm:$0xf0]  ;;  %v15231_v15 = vld [vmem:[#allocation7 + $0x1584] sm:$0xf] }
 0x31a   : > { %v17592_v55 = vadd.f32 %v6849_v1, %v6831_v60  ;;  %v13187_v10 = vor.u32 %v15231_v15, %v13184_v44 }
 0x31b   : > { %v17594_v56 = vpop.f32.mrf.mxu3 }
 0x31c   : > { %7272 = vmatpush.bf16.msra.mxu0 %v13227_v8  ;;  %v13251_v8 = vor.u32 %v15247_v53, %v13248_v45 }
 0x31d   : > { %7291 = vmatpush.bf16.msra.mxu1 %v13291_v52 }
 0x31e   : > { %v17596_v11 = vpop.f32.mrf.mxu2 }
 0x31f   : > { %v6899_v12 = vpop.f32.mrf.mxu0  ;;  %v6918_v20 = vpop.f32.mrf.mxu1 }
 0x320   : > { %v6900_v38 = vadd.f32 %v6899_v12, %v17576_v19  ;;  %7259 = vmatmul.bf16.vlgmr.msrb.gmra.mxu3 %v17520_v49  ;;  %7273 = vmatpush.bf16.msra.mxu0 %v13219_v24  ;;  %v13264_v19 = vld [vmem:[#allocation7 + $0x1628] sm:$0xf0]  ;;  %v15233_v49 = vld [vmem:[#allocation7 + $0x1594] sm:$0xf] }
 0x321   : > { %7292 = vmatpush.bf16.msra.mxu1 %v13283_v27 }
 0x322   : > { %v6919_v28 = vadd.f32 %v6918_v20, %v6900_v38  ;;  %7202 = vmatmul.bf16.vlgmr.msrb.gmra.mxu0 %v17472_v30  ;;  %7221 = vmatmul.bf16.vlgmr.msrb.gmra.mxu1 %v17474_v26  ;;  %v13267_v30 = vor.u32 %v15251_v34, %v13264_v19  ;;  %v15249_v26 = vld [vmem:[#allocation7 + $0x1614] sm:$0xf] }
 0x323   : > { %7240 = vmatmul.bf16.vlgmr.msrb.gmra.mxu2 %v17468_v58  ;;  %v6956_v47 = vpop.f32.mrf.mxu3  ;;  %v13195_v58 = vor.u32 %v15233_v49, %v13192_v41  ;;  %v13259_v18 = vor.u32 %v15249_v26, %v13256_v54 }
 0x324   : > { %7274 = vmatpush.bf16.msra.mxu0 %v13211_v43  ;;  %v6869_v43 = vadd.f32 %v17596_v11, %v17592_v55  ;;  %v18705_v11 = vld [vmem:[#allocation23_spill] sm:$0xff] }
 0x325   : > { %7293 = vmatpush.bf16.msra.mxu1 %v13275_v32  ;;  %v18704_v32 = vld [vmem:[#allocation27_spill] sm:$0xff] }
 0x326   : > { %v6937_v23 = vpop.f32.mrf.mxu2  ;;  %v6888_v19 = vadd.f32 %v17594_v56, %v6869_v43 }
 0x327   : > { %v6938_v33 = vadd.f32 %v6937_v23, %v6919_v28  ;;  %v6901_v51 = vpop.f32.mrf.mxu0  ;;  %v6920_v40 = vpop.f32.mrf.mxu1 }
 0x328   : > { %7275 = vmatpush.bf16.msra.mxu0 %v13203_v37 }
 0x329   : > { %v6957_v3 = vadd.f32 %v6956_v47, %v6938_v33  ;;  %7294 = vmatpush.bf16.msra.mxu1 %v13267_v30 }
 0x32b   : > { %v6958_v13 = vpop.f32.mrf.mxu3 }
 0x32c   : > { %7276 = vmatpush.bf16.msra.mxu0 %v13195_v58 }
 0x32d   : > { %7295 = vmatpush.bf16.msra.mxu1 %v13259_v18  ;;  %v18706_v18 = vld [vmem:[#allocation24_spill] sm:$0xff] }
 0x32e   : > { %v6939_v50 = vpop.f32.mrf.mxu2 }
 0x32f   : > { %v6904_v1 = vpop.f32.mrf.mxu0  ;;  %v6923_v60 = vpop.f32.mrf.mxu1 }
 0x330   : > { %v6905_v52 = vadd.f32 %v6904_v1, %v17590_v48  ;;  %7264 = vmatmul.bf16.gmra.mxu3 %v17536_v2  ;;  %7277 = vmatpush.bf16.msra.mxu0 %v13187_v10  ;;  %v6883_v2 = vadd.f32 %v17580_v63, %v6864_v4 }
 0x331   : > { %7296 = vmatpush.bf16.msra.mxu1 %v13251_v8 }
 0x332   : > { %v6924_v0 = vadd.f32 %v6923_v60, %v6905_v52  ;;  %7207 = vmatmul.bf16.gmra.mxu0 %v17504_v14  ;;  %7226 = vmatmul.bf16.gmra.mxu1 %v17508_v59  ;;  %v6902_v20 = vadd.f32 %v6901_v51, %v6883_v2 }
 0x333   : > { %7245 = vmatmul.bf16.gmra.mxu2 %v17500_v29  ;;  %v6961_v17 = vpop.f32.mrf.mxu3 }
 0x334   : > { %v6921_v35 = vadd.f32 %v6920_v40, %v6902_v20 }
 0x336   : > { %v6942_v21 = vpop.f32.mrf.mxu2  ;;  %v6940_v5 = vadd.f32 %v6939_v50, %v6921_v35 }
 0x337   : > { %v6943_v24 = vadd.f32 %v6942_v21, %v6924_v0  ;;  %v6906_v7 = vpop.f32.mrf.mxu0  ;;  %v6925_v31 = vpop.f32.mrf.mxu1 }
 0x338   : > { %v6959_v28 = vadd.f32 %v6958_v13, %v6940_v5 }
 0x339   : > { %v6962_v48 = vadd.f32 %v6961_v17, %v6943_v24 }
 0x33b   : > { %v6963_v12 = vpop.f32.mrf.mxu3 }
 0x33e   : > { %v6944_v27 = vpop.f32.mrf.mxu2 }
 0x33f   : > { %v6975_v14 = vpop.f32.mrf.mxu0  ;;  %v6994_v38 = vpop.f32.mrf.mxu1 }
 0x340   : > { %v6976_v59 = vadd.f32 %v6975_v14, %v6957_v3 }
 0x342   : > { %v6995_v29 = vadd.f32 %v6994_v38, %v6976_v59  ;;  %7278 = vmatmul.bf16.vlgmr.msra.gmra.mxu0 %v17522_v6  ;;  %7297 = vmatmul.bf16.vlgmr.msra.gmra.mxu1 %v17524_v42  ;;  %v6907_v6 = vadd.f32 %v6906_v7, %v6888_v19 }
 0x343   : > { %v7032_v57 = vpop.f32.mrf.mxu3 }
 0x344   : > { %v6926_v55 = vadd.f32 %v6925_v31, %v6907_v6 }
 0x346   : > { %v7013_v16 = vpop.f32.mrf.mxu2  ;;  %v6945_v26 = vadd.f32 %v6944_v27, %v6926_v55 }
 0x347   : > { %v7014_v63 = vadd.f32 %v7013_v16, %v6995_v29  ;;  %v6977_v36 = vpop.f32.mrf.mxu0  ;;  %v6996_v39 = vpop.f32.mrf.mxu1 }
 0x348   : > { %v6978_v34 = vadd.f32 %v6977_v36, %v6959_v28  ;;  %v6964_v3 = vadd.f32 %v6963_v12, %v6945_v26  ;;  %v15404_v26 = vld [vmem:[#allocation12 + $0x464] sm:$0xf0] }
 0x349   : > { %v17616_v47 = vadd.f32 %v7014_v63, %v18704_v32 }
 0x34a   : > { %v6997_v42 = vadd.f32 %v6996_v39, %v6978_v34 }
 0x34b   : > { %v17619_v37 = vpop.f32.mrf.mxu3 }
 0x34e   : > { %v7015_v23 = vpop.f32.mrf.mxu2 }
 0x34f   : > { %v7016_v49 = vadd.f32 %v7015_v23, %v6997_v42  ;;  %v6980_v41 = vpop.f32.mrf.mxu0  ;;  %v6999_v33 = vpop.f32.mrf.mxu1  ;;  %v13494_v23 = vld [vmem:[#allocation12 + $0x470] sm:$0xf] }
 0x350   : > { %v6981_v51 = vadd.f32 %v6980_v41, %v6962_v48  ;;  %v13558_v41 = vld [vmem:[#allocation12 + $0x4f0] sm:$0xf] }
 0x351   : > { %v17622_v40 = vadd.f32 %v7016_v49, %v18705_v11  ;;  %v15406_v49 = vld [vmem:[#allocation12 + $0x474] sm:$0xf0] }
 0x352   : > { %v7000_v30 = vadd.f32 %v6999_v33, %v6981_v51  ;;  %7283 = vmatmul.bf16.gmra.mxu0 %v17538_v22  ;;  %7302 = vmatmul.bf16.gmra.mxu1 %v17540_v62  ;;  %v18707_v62 = vld [vmem:[#allocation28_spill] sm:$0xff]  ;;  %v13495_v33 = vor.u32 %v15406_v49, %v13494_v23 }
 0x353   : > { %v7037_v56 = vpop.f32.mrf.mxu3  ;;  %v15422_v51 = vld [vmem:[#allocation12 + $0x4f4] sm:$0xf0] }
 0x354   : > { %v13559_v55 = vor.u32 %v15422_v51, %v13558_v41  ;;  %8281 = vmatpush.bf16.msrb.mxu0 %v13495_v33  ;;  %v15418_v23 = vld [vmem:[#allocation12 + $0x4d4] sm:$0xf0]  ;;  %v13358_v33 = vld [vmem:[#allocation12 + $0x360] sm:$0xf]  ;;  %v15372_v51 = vld [vmem:[#allocation12 + $0x364] sm:$0xf0] }
 0x356   : > { %v7018_v54 = vpop.f32.mrf.mxu2  ;;  %8300 = vmatpush.bf16.msrb.mxu1 %v13559_v55  ;;  %v13359_v55 = vor.u32 %v15372_v51, %v13358_v33  ;;  %v15414_v33 = vld [vmem:[#allocation12 + $0x4b4] sm:$0xf0]  ;;  %v17703_v51 = vld [vmem:[#allocation10] sm:$0x3] }
 0x357   : > { %v7019_v58 = vadd.f32 %v7018_v54, %v7000_v30  ;;  %v6982_v15 = vpop.f32.mrf.mxu0  ;;  %v7001_v44 = vpop.f32.mrf.mxu1  ;;  %v13486_v30 = vld [vmem:[#allocation12 + $0x460] sm:$0xf] }
 0x358   : > { %v6983_v53 = vadd.f32 %v6982_v15, %v6964_v3  ;;  %v15420_v15 = vld [vmem:[#allocation12 + $0x4e4] sm:$0xf0] }
 0x359   : > { %v17627_v13 = vadd.f32 %v7019_v58, %v18706_v18  ;;  %v13487_v58 = vor.u32 %v15404_v26, %v13486_v30  ;;  %v13366_v18 = vld [vmem:[#allocation12 + $0x370] sm:$0xf]  ;;  %v15388_v30 = vld [vmem:[#allocation12 + $0x3e4] sm:$0xf0]  ;;  %v13470_v26 = vld [vmem:[#allocation12 + $0x440] sm:$0xf] }
 0x35a   : > { %v7002_v10 = vadd.f32 %v7001_v44, %v6983_v53  ;;  %v15374_v53 = vld [vmem:[#allocation12 + $0x374] sm:$0xf0] }
 0x35b   : > { %v17629_v45 = vpop.f32.mrf.mxu3  ;;  %8282 = vmatpush.bf16.msrb.mxu0 %v13487_v58 }
 0x35e   : > { %v7020_v50 = vpop.f32.mrf.mxu2 }
 0x35f   : > { %v7021_v1 = vadd.f32 %v7020_v50, %v7002_v10  ;;  %v7051_v60 = vpop.f32.mrf.mxu0  ;;  %v7070_v22 = vpop.f32.mrf.mxu1  ;;  %v13430_v10 = vld [vmem:[#allocation12 + $0x3f0] sm:$0xf] }
 0x360   : > { %v7052_v8 = vadd.f32 %v7051_v60, %v7032_v57  ;;  %v15390_v60 = vld [vmem:[#allocation12 + $0x3f4] sm:$0xf0] }
 0x361   : > { %v17632_v52 = vadd.f32 %v7021_v1, %v18707_v62  ;;  %v13367_v1 = vor.u32 %v15374_v53, %v13366_v18  ;;  %v15416_v18 = vld [vmem:[#allocation12 + $0x4c4] sm:$0xf0]  ;;  %v17697_v53 = vld [vmem:[#allocation9] sm:$0x3] }
 0x362   : > { %v7071_v0 = vadd.f32 %v7070_v22, %v7052_v8  ;;  %v13478_v22 = vld [vmem:[#allocation12 + $0x450] sm:$0xf]  ;;  %v15402_v8 = vld [vmem:[#allocation12 + $0x454] sm:$0xf0] }
 0x363   : > { %v17634_v17 = vpop.f32.mrf.mxu3  ;;  %8243 = vmatpush.bf16.msra.mxu2 %v13367_v1 }
 0x366   : > { %v7089_v21 = vpop.f32.mrf.mxu2 }
 0x367   : > { %v7053_v4 = vpop.f32.mrf.mxu0  ;;  %v17636_v24 = vpop.f32.mrf.mxu1  ;;  %v7090_v50 = vadd.f32 %v7089_v21, %v7071_v0  ;;  %v13422_v0 = vld [vmem:[#allocation12 + $0x3e0] sm:$0xf]  ;;  %8244 = vmatpush.bf16.msra.mxu2 %v13359_v55  ;;  %v17707_v55 = vperm.slane %v17697_v53, 0 }
 0x368   : > { %v7054_v62 = vadd.f32 %v7053_v4, %v17619_v37  ;;  %v13423_v58 = vor.u32 %v15388_v30, %v13422_v0 }
 0x369   : > { %v7109_v21 = vadd.f32 %v17634_v17, %v7090_v50 }
 0x36a   : > { %v7073_v37 = vadd.f32 %v17636_v24, %v7054_v62  ;;  %v13350_v24 = vld [vmem:[#allocation12 + $0x350] sm:$0xf] }
 0x36b   : > { %v17638_v7 = vpop.f32.mrf.mxu3 }
 0x36e   : > { %v17640_v31 = vpop.f32.mrf.mxu2 }
 0x36f   : > { %v7056_v48 = vpop.f32.mrf.mxu0  ;;  %v7075_v2 = vpop.f32.mrf.mxu1 }
 0x370   : > { %v7057_v12 = vadd.f32 %v7056_v48, %v7037_v56  ;;  %v13550_v56 = vld [vmem:[#allocation12 + $0x4e0] sm:$0xf]  ;;  %v13431_v48 = vor.u32 %v15390_v60, %v13430_v10  ;;  %v7092_v60 = vadd.f32 %v17640_v31, %v7073_v37  ;;  %v15368_v37 = vld [vmem:[#allocation12 + $0x344] sm:$0xf0] }
 0x371   : > { %v13551_v44 = vor.u32 %v15420_v15, %v13550_v56  ;;  %v15400_v15 = vld [vmem:[#allocation12 + $0x444] sm:$0xf0] }
 0x372   : > { %v17642_v20 = vadd.f32 %v7075_v2, %v7057_v12  ;;  %v13479_v2 = vor.u32 %v15402_v8, %v13478_v22  ;;  %v13542_v12 = vld [vmem:[#allocation12 + $0x4d0] sm:$0xf]  ;;  %8262 = vmatpush.bf16.msra.mxu3 %v13431_v48  ;;  %v13471_v17 = vor.u32 %v15400_v15, %v13470_v26  ;;  %v15370_v22 = vld [vmem:[#allocation12 + $0x354] sm:$0xf0]  ;;  %v7111_v30 = vadd.f32 %v17638_v7, %v7092_v60  ;;  %v13342_v26 = vld [vmem:[#allocation12 + $0x340] sm:$0xf] }
 0x373   : > { %v17646_v14 = vpop.f32.mrf.mxu3  ;;  %8301 = vmatpush.bf16.msrb.mxu1 %v13551_v44  ;;  %v13543_v41 = vor.u32 %v15418_v23, %v13542_v12  ;;  %v13534_v44 = vld [vmem:[#allocation12 + $0x4c0] sm:$0xf]  ;;  %v13414_v8 = vld [vmem:[#allocation12 + $0x3d0] sm:$0xf]  ;;  %v13351_v62 = vor.u32 %v15370_v22, %v13350_v24  ;;  %v15386_v48 = vld [vmem:[#allocation12 + $0x3d4] sm:$0xf0] }
 0x374   : > { %8283 = vmatpush.bf16.msrb.mxu0 %v13479_v2  ;;  %v13535_v50 = vor.u32 %v15416_v18, %v13534_v44  ;;  %v13462_v2 = vld [vmem:[#allocation12 + $0x430] sm:$0xf]  ;;  %v15398_v12 = vld [vmem:[#allocation12 + $0x434] sm:$0xf0]  ;;  %v13415_v23 = vor.u32 %v15386_v48, %v13414_v8  ;;  %v13406_v44 = vld [vmem:[#allocation12 + $0x3c0] sm:$0xf] }
 0x375   : > { %8245 = vmatpush.bf16.msra.mxu2 %v13351_v62  ;;  %v15384_v18 = vld [vmem:[#allocation12 + $0x3c4] sm:$0xf0]  ;;  %v13454_v60 = vld [vmem:[#allocation12 + $0x420] sm:$0xf] }
 0x376   : > { %v17644_v27 = vpop.f32.mrf.mxu2  ;;  %8263 = vmatpush.bf16.msra.mxu3 %v13423_v58  ;;  %v13407_v7 = vor.u32 %v15384_v18, %v13406_v44  ;;  %v15396_v24 = vld [vmem:[#allocation12 + $0x424] sm:$0xf0]  ;;  %v13518_v62 = vld [vmem:[#allocation12 + $0x4a0] sm:$0xf]  ;;  %v15394_v44 = vld [vmem:[#allocation12 + $0x414] sm:$0xf0] }
 0x377   : > { %v17648_v38 = vpop.f32.mrf.mxu0  ;;  %v17650_v59 = vpop.f32.mrf.mxu1  ;;  %8302 = vmatpush.bf16.msrb.mxu1 %v13543_v41  ;;  %v13463_v41 = vor.u32 %v15398_v12, %v13462_v2  ;;  %v7095_v22 = vadd.f32 %v17644_v27, %v17642_v20  ;;  %v13455_v8 = vor.u32 %v15396_v24, %v13454_v60  ;;  %v15412_v48 = vld [vmem:[#allocation12 + $0x4a4] sm:$0xf0]  ;;  %v17725_v2 = vperm.slane %v17703_v51, 0  ;;  %v13334_v27 = vld [vmem:[#allocation12 + $0x330] sm:$0xf] }
 0x378   : > { %8284 = vmatpush.bf16.msrb.mxu0 %v13471_v17  ;;  %v7324_v12 = vmul.f32 %v17707_v55, %v17622_v40  ;;  %v15366_v40 = vld [vmem:[#allocation12 + $0x334] sm:$0xf0] }
 0x37a   : > { %8264 = vmatpush.bf16.msra.mxu3 %v13415_v23 }
 0x37b   : > { %v17658_v57 = vpop.f32.mrf.mxu3  ;;  %8303 = vmatpush.bf16.msrb.mxu1 %v13535_v50 }
 0x37c   : > { %8285 = vmatpush.bf16.msrb.mxu0 %v13463_v41  ;;  %v7352_v41 = vlaneseq }
 0x37e   : > { %v17652_v35 = vpop.f32.mrf.mxu2  ;;  %8265 = vmatpush.bf16.msra.mxu3 %v13407_v7  ;;  %v17749_v18 = vshrl.u32 %v7352_v41, 7  ;;  %v13510_v7 = vld [vmem:[#allocation12 + $0x490] sm:$0xf]  ;;  %v15392_v41 = vld [vmem:[#allocation12 + $0x404] sm:$0xf0] }
 0x37f   : > { %v17654_v29 = vpop.f32.mrf.mxu0  ;;  %v17656_v5 = vpop.f32.mrf.mxu1 }
 0x380   : > { %v7128_v10 = vadd.f32 %v17654_v29, %v7109_v21  ;;  %v13526_v29 = vld [vmem:[#allocation12 + $0x4b0] sm:$0xf]  ;;  %v16001_v21 = vmov 0   ;;  %8286 = vmatpush.bf16.msrb.mxu0 %v13455_v8  ;;  %v15364_v8 = vld [vmem:[#allocation12 + $0x324] sm:$0xf0]  ;;  %vm7354_vm8 = vcmp.lt.s32.totalorder %v17749_v18, 4 }
 0x381   : > { %7369 = vst [vmem:[#allocation3 + $0x10] sm:$0xff] %v16001_v21  ;;  %v13527_v31 = vor.u32 %v15414_v33, %v13526_v29  ;;  %v7114_v29 = vadd.f32 %v17646_v14, %v7095_v22 }
 0x382   : > { %v7147_v0 = vadd.f32 %v17656_v5, %v7128_v10  ;;  %7379 = vst [vmem:[#allocation3 + $0x90] sm:$0xff] %v16001_v21  ;;  %v13343_v5 = vor.u32 %v15368_v37, %v13342_v26  ;;  %v15382_v26 = vld [vmem:[#allocation12 + $0x3b4] sm:$0xf0] }
 0x383   : > { %v17666_v63 = vpop.f32.mrf.mxu3  ;;  %8304 = vmatpush.bf16.msrb.mxu1 %v13527_v31  ;;  %7376 = vst [vmem:[#allocation3 + $0x78] sm:$0xff] %v16001_v21 }
 0x384   : > { %8246 = vmatpush.bf16.msra.mxu2 %v13343_v5  ;;  %7377 = vst [vmem:[#allocation3 + $0x80] sm:$0xff] %v16001_v21  ;;  %v13446_v5 = vld [vmem:[#allocation12 + $0x410] sm:$0xf] }
 0x385   : > { %7378 = vst [vmem:[#allocation3 + $0x88] sm:$0xff] %v16001_v21 }
 0x386   : > { %v17660_v16 = vpop.f32.mrf.mxu2 }
 0x387   : > { %v17662_v43 = vpop.f32.mrf.mxu0  ;;  %v17664_v28 = vpop.f32.mrf.mxu1  ;;  %v7166_v58 = vadd.f32 %v17660_v16, %v7147_v0  ;;  %v7059_v16 = vadd.f32 %v17648_v38, %v17629_v45  ;;  %v13519_v45 = vor.u32 %v15412_v48, %v13518_v62  ;;  %v17740_v0 = vadd.f32 %v17725_v2, %v7324_v12  ;;  %v13390_v12 = vld [vmem:[#allocation12 + $0x3a0] sm:$0xf] }
 0x388   : > { %v7130_v10 = vadd.f32 %v17662_v43, %v7111_v30  ;;  %v7322_v43 = vmul.f32 %v17707_v55, %v17616_v47  ;;  %v13398_v30 = vld [vmem:[#allocation12 + $0x3b0] sm:$0xf] }
 0x389   : > { %v7185_v23 = vadd.f32 %v17666_v63, %v7166_v58  ;;  %v7078_v47 = vadd.f32 %v17650_v59, %v7059_v16  ;;  %8305 = vmatpush.bf16.msrb.mxu1 %v13519_v45  ;;  %v7346_v60 = vmax.f32 %v17740_v0, 0.0  ;;  %v13326_v16 = vld [vmem:[#allocation12 + $0x320] sm:$0xf] }
 0x38a   : > { %v7149_v38 = vadd.f32 %v17664_v28, %v7130_v10  ;;  %v17737_v63 = vadd.f32 %v17725_v2, %v7322_v43  ;;  %v13335_v28 = vor.u32 %v15366_v40, %v13334_v27  ;;  %v13447_v10 = vor.u32 %v15394_v44, %v13446_v5  ;;  %v15362_v40 = vld [vmem:[#allocation12 + $0x314] sm:$0xf0]  ;;  %v15389_v5 = vld [vmem:[#allocation12 + $0x3f4] sm:$0xf] }
 0x38b   : > { %v17674_v34 = vpop.f32.mrf.mxu3  ;;  %v7097_v59 = vadd.f32 %v17652_v35, %v7078_v47  ;;  %v15410_v35 = vld [vmem:[#allocation12 + $0x494] sm:$0xf0]  ;;  %v13327_v43 = vor.u32 %v15364_v8, %v13326_v16  ;;  %v7326_v44 = vmul.f32 %v17707_v55, %v17627_v13  ;;  %v13374_v16 = vld [vmem:[#allocation12 + $0x380] sm:$0xf]  ;;  %v15376_v8 = vld [vmem:[#allocation12 + $0x384] sm:$0xf0] }
 0x38c   : > { %8247 = vmatpush.bf16.msra.mxu2 %v13335_v28  ;;  %v13511_v22 = vor.u32 %v15410_v35, %v13510_v7  ;;  %8287 = vmatpush.bf16.msrb.mxu0 %v13447_v10  ;;  %v13310_v35 = vld [vmem:[#allocation12 + $0x300] sm:$0xf] }
 0x38d   : > { %v7116_v62 = vadd.f32 %v17658_v57, %v7097_v59 }
 0x38e   : > { %v17672_v32 = vpop.f32.mrf.mxu2  ;;  %8306 = vmatpush.bf16.msrb.mxu1 %v13511_v22 }
 0x38f   : > { %v17668_v36 = vpop.f32.mrf.mxu0  ;;  %v17670_v39 = vpop.f32.mrf.mxu1  ;;  %v7168_v31 = vadd.f32 %v17672_v32, %v7149_v38  ;;  %v13438_v38 = vld [vmem:[#allocation12 + $0x400] sm:$0xf] }
 0x390   : > { %v7133_v14 = vadd.f32 %v17668_v36, %v7114_v29  ;;  %v7344_v36 = vmax.f32 %v17737_v63, 0.0  ;;  %8248 = vmatpush.bf16.msra.mxu2 %v13327_v43  ;;  %v15371_v43 = vld [vmem:[#allocation12 + $0x364] sm:$0xf] }
 0x391   : > { %v7187_v24 = vadd.f32 %v17674_v34, %v7168_v31  ;;  %v13502_v34 = vld [vmem:[#allocation12 + $0x480] sm:$0xf] }
 0x392   : > { %v7152_v48 = vadd.f32 %v17670_v39, %v7133_v14  ;;  %v13439_v39 = vor.u32 %v15392_v41, %v13438_v38  ;;  %v17767_v14 = vperm.slane %v17697_v53, 1  ;;  %v13432_v53 = vld [vmem:[#allocation12 + $0x3f8] sm:$0xf0]  ;;  %v13622_v38 = vld [vmem:[#allocation12 + $0x570] sm:$0xf] }
 0x393   : > { %v17682_v11 = vpop.f32.mrf.mxu3  ;;  %v13435_v13 = vor.u32 %v15389_v5, %v13432_v53  ;;  %v15438_v41 = vld [vmem:[#allocation12 + $0x574] sm:$0xf0]  ;;  %v13678_v5 = vld [vmem:[#allocation12 + $0x5e0] sm:$0xf]  ;;  %v13344_v53 = vld [vmem:[#allocation12 + $0x348] sm:$0xf0] }
 0x394   : > { %8288 = vmatpush.bf16.msrb.mxu0 %v13439_v39  ;;  %v13686_v39 = vld [vmem:[#allocation12 + $0x5f0] sm:$0xf] }
 0x396   : > { %v17680_v42 = vpop.f32.mrf.mxu2 }
 0x397   : > { %v17676_v19 = vpop.f32.mrf.mxu0  ;;  %v17678_v6 = vpop.f32.mrf.mxu1  ;;  %v7171_v47 = vadd.f32 %v17680_v42, %v7152_v48 }
 0x398   : > { %v7135_v29 = vadd.f32 %v17676_v19, %v7116_v62  ;;  %v17770_v19 = vperm.slane %v17703_v51, 1 }
 0x39a   : > { %v7154_v51 = vadd.f32 %v17678_v6, %v7135_v29  ;;  %v15387_v6 = vld [vmem:[#allocation12 + $0x3e4] sm:$0xf]  ;;  %v13623_v29 = vor.u32 %v15438_v41, %v13622_v38 }
 0x39b   : > { %v17700_v1 = vpop.f32.mrf.mxu3 }
 0x39e   : > { %v17689_v49 = vpop.f32.mrf.mxu2 }
 0x39f   : > { %v17684_v54 = vpop.f32.mrf.mxu0  ;;  %v17686_v3 = vpop.f32.mrf.mxu1 }
 0x3a0   : > { %v7204_v33 = vadd.f32 %v17684_v54, %v7185_v23  ;;  %v13399_v54 = vor.u32 %v15382_v26, %v13398_v30  ;;  %v15380_v23 = vld [vmem:[#allocation12 + $0x3a4] sm:$0xf0]  ;;  %v15378_v30 = vld [vmem:[#allocation12 + $0x394] sm:$0xf0]  ;;  %v15373_v26 = vld [vmem:[#allocation12 + $0x374] sm:$0xf] }
 0x3a1   : > { %v13391_v27 = vor.u32 %v15380_v23, %v13390_v12  ;;  %v13360_v12 = vld [vmem:[#allocation12 + $0x368] sm:$0xf0] }
 0x3a2   : > { %v7223_v32 = vadd.f32 %v17686_v3, %v7204_v33  ;;  %8266 = vmatpush.bf16.msra.mxu3 %v13399_v54  ;;  %v13318_v33 = vld [vmem:[#allocation12 + $0x310] sm:$0xf]  ;;  %v13368_v54 = vld [vmem:[#allocation12 + $0x378] sm:$0xf0] }
 0x3a3   : > { %v17730_v20 = vpop.f32.mrf.mxu3  ;;  %v13319_v28 = vor.u32 %v15362_v40, %v13318_v33  ;;  %v15369_v33 = vld [vmem:[#allocation12 + $0x354] sm:$0xf]  ;;  %v17782_v40 = vadd.f32 %v17725_v2, %v7326_v44 }
 0x3a5   : > { %8249 = vmatpush.bf16.msra.mxu2 %v13319_v28 }
 0x3a6   : > { %v17711_v15 = vpop.f32.mrf.mxu2  ;;  %8267 = vmatpush.bf16.msra.mxu3 %v13391_v27  ;;  %v13424_v27 = vld [vmem:[#allocation12 + $0x3e8] sm:$0xf0] }
 0x3a7   : > { %v17693_v4 = vpop.f32.mrf.mxu0  ;;  %v17695_v56 = vpop.f32.mrf.mxu1  ;;  %v7242_v3 = vadd.f32 %v17711_v15, %v7223_v32  ;;  %v15408_v15 = vld [vmem:[#allocation12 + $0x484] sm:$0xf0] }
 0x3a8   : > { %v7206_v45 = vadd.f32 %v17693_v4, %v7187_v24  ;;  %v13503_v31 = vor.u32 %v15408_v15, %v13502_v34  ;;  %v13382_v4 = vld [vmem:[#allocation12 + $0x390] sm:$0xf]  ;;  %v7190_v24 = vadd.f32 %v17682_v11, %v7171_v47  ;;  %v7173_v34 = vadd.f32 %v17689_v49, %v7154_v51  ;;  %v15454_v15 = vld [vmem:[#allocation12 + $0x5f4] sm:$0xf0] }
 0x3a9   : > { %v7261_v59 = vadd.f32 %v17730_v20, %v7242_v3  ;;  %v13383_v42 = vor.u32 %v15378_v30, %v13382_v4  ;;  %v13371_v20 = vor.u32 %v15373_v26, %v13368_v54  ;;  %v13375_v3 = vor.u32 %v15376_v8, %v13374_v16  ;;  %v13352_v4 = vld [vmem:[#allocation12 + $0x358] sm:$0xf0]  ;;  %v15385_v30 = vld [vmem:[#allocation12 + $0x3d4] sm:$0xf]  ;;  %v15436_v54 = vld [vmem:[#allocation12 + $0x564] sm:$0xf0] }
 0x3aa   : > { %v7225_v32 = vadd.f32 %v17695_v56, %v7206_v45  ;;  %8307 = vmatpush.bf16.msrb.mxu1 %v13503_v31  ;;  %v15360_v56 = vld [vmem:[#allocation12 + $0x304] sm:$0xf0]  ;;  %v13363_v45 = vor.u32 %v15371_v43, %v13360_v12  ;;  %v13687_v28 = vor.u32 %v15454_v15, %v13686_v39  ;;  %v13416_v26 = vld [vmem:[#allocation12 + $0x3d8] sm:$0xf0]  ;;  %v7328_v49 = vmul.f32 %v17707_v55, %v17632_v52  ;;  %v15381_v39 = vld [vmem:[#allocation12 + $0x3b4] sm:$0xf] }
 0x3ab   : > { %v17763_v57 = vpop.f32.mrf.mxu3  ;;  %8268 = vmatpush.bf16.msra.mxu3 %v13383_v42  ;;  %8357 = vmatpush.bf16.msra.mxu0 %v13371_v20  ;;  %v13311_v48 = vor.u32 %v15360_v56, %v13310_v35  ;;  %v13614_v42 = vld [vmem:[#allocation12 + $0x560] sm:$0xf]  ;;  %v15367_v20 = vld [vmem:[#allocation12 + $0x344] sm:$0xf]  ;;  %v7192_v52 = vadd.f32 %v17700_v1, %v7173_v34  ;;  %v13336_v34 = vld [vmem:[#allocation12 + $0x338] sm:$0xf0] }
 0x3ac   : > { %v17793_v16 = vadd.f32 %v17725_v2, %v7328_v49  ;;  %v13400_v15 = vld [vmem:[#allocation12 + $0x3b8] sm:$0xf0]  ;;  %v15432_v49 = vld [vmem:[#allocation12 + $0x544] sm:$0xf0] }
 0x3ad   : > { %8250 = vmatpush.bf16.msra.mxu2 %v13311_v48  ;;  %v15434_v48 = vld [vmem:[#allocation12 + $0x554] sm:$0xf0] }
 0x3ae   : > { %v17752_v21 = vpop.f32.mrf.mxu2  ;;  %8376 = vmatpush.bf16.msra.mxu1 %v13435_v13  ;;  %v7350_v0 = vmax.f32 %v17793_v16, 0.0 }
 0x3af   : > { %v17714_v17 = vpop.f32.mrf.mxu0  ;;  %v17716_v50 = vpop.f32.mrf.mxu1  ;;  %v7244_v62 = vadd.f32 %v17752_v21, %v7225_v32  ;;  %v13427_v21 = vor.u32 %v15387_v6, %v13424_v27  ;;  %8269 = vmatpush.bf16.msra.mxu3 %v13375_v3  ;;  %8358 = vmatpush.bf16.msra.mxu0 %v13363_v45  ;;  %v13670_v3 = vld [vmem:[#allocation12 + $0x5d0] sm:$0xf]  ;;  %v15365_v45 = vld [vmem:[#allocation12 + $0x334] sm:$0xf]  ;;  %v7348_v27 = vmax.f32 %v17782_v40, 0.0 }
 0x3b0   : > { %v7209_v47 = vadd.f32 %v17714_v17, %v7190_v24  ;;  %v15383_v24 = vld [vmem:[#allocation12 + $0x3c4] sm:$0xf]  ;;  %v17854_v16 = vsel %vm7354_vm8, %v7350_v0, 0.0  ;;  %v15428_v40 = vld [vmem:[#allocation12 + $0x524] sm:$0xf0] }
 0x3b1   : > { %v7263_v17 = vadd.f32 %v17763_v57, %v7244_v62  ;;  %8319 = vmatpush.bf16.msrb.mxu2 %v13623_v29  ;;  %v13606_v62 = vld [vmem:[#allocation12 + $0x550] sm:$0xf] }
 0x3b2   : > { %8377 = vmatpush.bf16.msra.mxu1 %v13427_v21  ;;  %v7228_v55 = vadd.f32 %v17716_v50, %v7209_v47  ;;  %v13347_v50 = vor.u32 %v15367_v20, %v13344_v53  ;;  %v17817_v47 = vsel %vm7354_vm8, %v7346_v60, 0.0 }
 0x3b3   : > { %v7265_v44 = vpop.f32.mrf.mxu3  ;;  %8338 = vmatpush.bf16.msrb.mxu3 %v13687_v28  ;;  %v13598_v28 = vld [vmem:[#allocation12 + $0x540] sm:$0xf] }
 0x3b4   : > { %v13599_v53 = vor.u32 %v15432_v49, %v13598_v28 }
 0x3b6   : > { %v7246_v23 = vpop.f32.mrf.mxu2 }
 0x3b7   : > { %v17745_v37 = vpop.f32.mrf.mxu0  ;;  %v17747_v58 = vpop.f32.mrf.mxu1  ;;  %v7247_v8 = vadd.f32 %v7246_v23, %v7228_v55  ;;  %v15450_v23 = vld [vmem:[#allocation12 + $0x5d4] sm:$0xf0]  ;;  %v13328_v55 = vld [vmem:[#allocation12 + $0x328] sm:$0xf0] }
 0x3b8   : > { %v7211_v1 = vadd.f32 %v17745_v37, %v7192_v52  ;;  %v7355_v37 = vsel %vm7354_vm8, %v7344_v36, 0.0  ;;  %v13671_v41 = vor.u32 %v15450_v23, %v13670_v3  ;;  %v15361_v23 = vld [vmem:[#allocation12 + $0x314] sm:$0xf] }
 0x3be   : > { %v7248_v63 = vpop.f32.mrf.mxu2 }
 0x3bf   : > { %v7279_v10 = vpop.f32.mrf.mxu0  ;;  %v7298_v7 = vpop.f32.mrf.mxu1 }
 0x3c0   : > { %v7280_v22 = vadd.f32 %v7279_v10, %v7261_v59  ;;  %v13355_v59 = vor.u32 %v15369_v33, %v13352_v4  ;;  %v13615_v10 = vor.u32 %v15436_v54, %v13614_v42  ;;  %v7230_v33 = vadd.f32 %v17747_v58, %v7211_v1  ;;  %v13662_v58 = vld [vmem:[#allocation12 + $0x5c0] sm:$0xf] }
 0x3c1   : > { %v7266_v4 = vadd.f32 %v7265_v44, %v7247_v8 }
 0x3c2   : > { %v7299_v11 = vadd.f32 %v7298_v7, %v7280_v22  ;;  %v15452_v7 = vld [vmem:[#allocation12 + $0x5e4] sm:$0xf0]  ;;  %v13408_v22 = vld [vmem:[#allocation12 + $0x3c8] sm:$0xf0]  ;;  %8359 = vmatpush.bf16.msra.mxu0 %v13355_v59  ;;  %8320 = vmatpush.bf16.msrb.mxu2 %v13615_v10  ;;  %v17841_v59 = vsel %vm7354_vm8, %v7348_v27, 0.0  ;;  %v7249_v42 = vadd.f32 %v7248_v63, %v7230_v33  ;;  %v7267_v10 = vpop.f32.mrf.mxu3 }
 0x3c3   : > { %v13679_v51 = vor.u32 %v15452_v7, %v13678_v5  ;;  %v13411_v2 = vor.u32 %v15383_v24, %v13408_v22  ;;  %v13582_v33 = vld [vmem:[#allocation12 + $0x520] sm:$0xf] }
 0x3c4   : > { %v7309_v31 = vadd.f32 %v7299_v11, %v17534_v61  ;;  %v13419_v61 = vor.u32 %v15385_v30, %v13416_v26  ;;  %v13607_v11 = vor.u32 %v15434_v48, %v13606_v62  ;;  %v7482_v30 = vld [vmem:[#allocation3 + $0x10] sm:$0x88]  ;;  %v13403_v26 = vor.u32 %v15381_v39, %v13400_v15  ;;  %v15430_v62 = vld [vmem:[#allocation12 + $0x534] sm:$0xf0]  ;;  %v13384_v39 = vld [vmem:[#allocation12 + $0x398] sm:$0xf0] }
 0x3c5   : > { %8339 = vmatpush.bf16.msrb.mxu3 %v13679_v51  ;;  %v13654_v48 = vld [vmem:[#allocation12 + $0x5b0] sm:$0xf]  ;;  %v7268_v3 = vadd.f32 %v7267_v10, %v7249_v42  ;;  %v15444_v42 = vld [vmem:[#allocation12 + $0x5a4] sm:$0xf0] }
 0x3c6   : > { %v7323_v32 = vmul.f32 %v17767_v14, %v7309_v31  ;;  %8378 = vmatpush.bf16.msra.mxu1 %v13419_v61  ;;  %8360 = vmatpush.bf16.msra.mxu0 %v13347_v50  ;;  %v13339_v31 = vor.u32 %v15365_v45, %v13336_v34  ;;  %v15363_v61 = vld [vmem:[#allocation12 + $0x324] sm:$0xf]  ;;  %v13320_v34 = vld [vmem:[#allocation12 + $0x318] sm:$0xf0] }
 0x3c7   : > { %v7281_v57 = vpop.f32.mrf.mxu0  ;;  %v7300_v35 = vpop.f32.mrf.mxu1  ;;  %8321 = vmatpush.bf16.msrb.mxu2 %v13607_v11  ;;  %v15446_v11 = vld [vmem:[#allocation12 + $0x5b4] sm:$0xf0] }
 0x3c8   : > { %v7337_v13 = vadd.f32 %v17770_v19, %v7323_v32  ;;  %v7282_v56 = vadd.f32 %v7281_v57, %v7263_v17  ;;  %v15448_v17 = vld [vmem:[#allocation12 + $0x5c4] sm:$0xf0]  ;;  %v15379_v57 = vld [vmem:[#allocation12 + $0x3a4] sm:$0xf] }
 0x3c9   : > { %8340 = vmatpush.bf16.msrb.mxu3 %v13671_v41  ;;  %v13663_v52 = vor.u32 %v15448_v17, %v13662_v58  ;;  %v13655_v41 = vor.u32 %v15446_v11, %v13654_v48  ;;  %v13583_v17 = vor.u32 %v15428_v40, %v13582_v33  ;;  %v15424_v40 = vld [vmem:[#allocation12 + $0x504] sm:$0xf0] }
 0x3ca   : > { %v7345_v43 = vmax.f32 %v7337_v13, 0.0  ;;  %v7301_v6 = vadd.f32 %v7300_v35, %v7282_v56  ;;  %8379 = vmatpush.bf16.msra.mxu1 %v13411_v2  ;;  %v13392_v35 = vld [vmem:[#allocation12 + $0x3a8] sm:$0xf0]  ;;  %8361 = vmatpush.bf16.msra.mxu0 %v13339_v31  ;;  %v13331_v13 = vor.u32 %v15363_v61, %v13328_v55  ;;  %v13590_v56 = vld [vmem:[#allocation12 + $0x530] sm:$0xf] }
 0x3cb   : > { %8322 = vmatpush.bf16.msrb.mxu2 %v13599_v53  ;;  %v13395_v50 = vor.u32 %v15379_v57, %v13392_v35  ;;  %v13591_v27 = vor.u32 %v15430_v62, %v13590_v56  ;;  %v15375_v35 = vld [vmem:[#allocation12 + $0x384] sm:$0xf] }
 0x3cc   : > { %v7356_v36 = vsel %vm7354_vm8, %v7345_v43, 0.0  ;;  %v7311_v29 = vadd.f32 %v7301_v6, %v17543_v25 }
 0x3cd   : > { %v17830_v60 = vpack.c.bf16 %v7356_v36, %v7355_v37  ;;  %8341 = vmatpush.bf16.msrb.mxu3 %v13663_v52  ;;  %v13323_v36 = vor.u32 %v15361_v23, %v13320_v34 }
 0x3ce   : > { %v7325_v25 = vmul.f32 %v17767_v14, %v7311_v29  ;;  %8380 = vmatpush.bf16.msra.mxu1 %v13403_v26  ;;  %8362 = vmatpush.bf16.msra.mxu0 %v13331_v13  ;;  %v15377_v29 = vld [vmem:[#allocation12 + $0x394] sm:$0xf] }
 0x3cf   : > { %v7386_v54 = vshrl.u32 %v17830_v60, 16  ;;  %v7389_v5 = vshll.u32 %v17830_v60, 16  ;;  %v7284_v44 = vpop.f32.mrf.mxu0  ;;  %v7303_v32 = vpop.f32.mrf.mxu1  ;;  %v7717_v63 = vunpack.c.l.b16 %v17830_v60  ;;  %v7718_v0 = vunpack.c.h.b16 %v17830_v60  ;;  %8323 = vmatpush.bf16.msrb.mxu2 %v13591_v27  ;;  %v15437_v27 = vld [vmem:[#allocation12 + $0x574] sm:$0xf] }
 0x3d0   : > { %v7339_v7 = vadd.f32 %v17770_v19, %v7325_v25  ;;  %v7285_v20 = vadd.f32 %v7284_v44, %v7266_v4  ;;  %v13387_v21 = vor.u32 %v15377_v29, %v13384_v39  ;;  %v13646_v25 = vld [vmem:[#allocation12 + $0x5a0] sm:$0xf]  ;;  %v15417_v13 = vld [vmem:[#allocation12 + $0x4d4] sm:$0xf] }
 0x3d1   : > { %v17850_v51 = vrot.slane %v7386_v54, 7  ;;  %v7451_v24 = vrot.slane %v7389_v5, 5  ;;  %v7452_v22 = vrot.slane %v7386_v54, 4  ;;  %8342 = vmatpush.bf16.msrb.mxu3 %v13655_v41  ;;  %v15359_v54 = vld [vmem:[#allocation12 + $0x304] sm:$0xf]  ;;  %v13647_v57 = vor.u32 %v15444_v42, %v13646_v25 }
 0x3d2   : > { %v7347_v8 = vmax.f32 %v7339_v7, 0.0  ;;  %v7304_v1 = vadd.f32 %v7303_v32, %v7285_v20  ;;  %8381 = vmatpush.bf16.msra.mxu1 %v13395_v50  ;;  %8363 = vmatpush.bf16.msra.mxu0 %v13323_v36  ;;  %v13312_v7 = vld [vmem:[#allocation12 + $0x308] sm:$0xf0]  ;;  %v15426_v50 = vld [vmem:[#allocation12 + $0x514] sm:$0xf0] }
 0x3d3   : > { %v7391_v43 = vor.u32 %v7389_v5, %v17850_v51  ;;  %v7453_v6 = vor.u32 %v7452_v22, %v7451_v24  ;;  %v7483_v2 = vsel %vm7481_vm5, %v7451_v24, %v7482_v30  ;;  %8324 = vmatpush.bf16.msrb.mxu2 %v13583_v17  ;;  %v15453_v41 = vld [vmem:[#allocation12 + $0x5f4] sm:$0xf] }
 0x3d4   : > { %7484 = vst [vmem:[#allocation3 + $0x10] sm:$0x88] %v7483_v2  ;;  %v7358_v45 = vsel %vm7354_vm8, %v7347_v8, 0.0  ;;  %v7313_v37 = vadd.f32 %v7304_v1, %v17550_v9  ;;  %v7392_v9 = vrot.slane %v17850_v51, 4  ;;  %v13376_v51 = vld [vmem:[#allocation12 + $0x388] sm:$0xf0] }
 0x3d5   : > { %v17874_v12 = vsel %vm7431_vm9, %v7391_v43, 0  ;;  %v17877_v38 = vpack.c.bf16 %v7358_v45, %v17817_v47  ;;  %v7454_v26 = vrot.slane %v7453_v6, 4  ;;  %v13574_v1 = vld [vmem:[#allocation12 + $0x510] sm:$0xf]  ;;  %8343 = vmatpush.bf16.msrb.mxu3 %v13647_v57  ;;  %v13315_v43 = vor.u32 %v15359_v54, %v13312_v7  ;;  %v15442_v2 = vld [vmem:[#allocation12 + $0x594] sm:$0xf0] }
 0x3d6   : > { %v7327_v15 = vmul.f32 %v17767_v14, %v7313_v37  ;;  %8382 = vmatpush.bf16.msra.mxu1 %v13387_v21  ;;  %v13638_v6 = vld [vmem:[#allocation12 + $0x590] sm:$0xf]  ;;  %v7716_v45 = vunpack.c.h.b16 %v17874_v12  ;;  %v13379_v37 = vor.u32 %v15375_v35, %v13376_v51  ;;  %v13575_v39 = vor.u32 %v15426_v50, %v13574_v1  ;;  %v13680_v57 = vld [vmem:[#allocation12 + $0x5e8] sm:$0xf0]  ;;  %v15405_v50 = vld [vmem:[#allocation12 + $0x474] sm:$0xf] }
 0x3d7   : > { %v7394_v47 = vshrl.u32 %v17877_v38, 16  ;;  %v7397_v31 = vshll.u32 %v17877_v38, 16  ;;  %7448 = vst [vmem:[#allocation3 + $0x38] sm:$0xff] %v17877_v38  ;;  %v7286_v28 = vpop.f32.mrf.mxu0  ;;  %v7723_v4 = vunpack.c.l.b16 %v17877_v38  ;;  %v7724_v30 = vunpack.c.h.b16 %v17877_v38  ;;  %v7305_v61 = vpop.f32.mrf.mxu1  ;;  %8364 = vmatpush.bf16.msra.mxu0 %v13315_v43  ;;  %v15445_v20 = vld [vmem:[#allocation12 + $0x5b4] sm:$0xf] }
 0x3d8   : > { %v7341_v49 = vadd.f32 %v17770_v19, %v7327_v15  ;;  %v7287_v58 = vadd.f32 %v7286_v28, %v7268_v3  ;;  %v7715_v3 = vunpack.c.l.b16 %v17874_v12  ;;  %v13566_v15 = vld [vmem:[#allocation12 + $0x500] sm:$0xf]  ;;  %8325 = vmatpush.bf16.msrb.mxu2 %v13575_v39  ;;  %v13639_v25 = vor.u32 %v15442_v2, %v13638_v6  ;;  %v13560_v39 = vld [vmem:[#allocation12 + $0x4f8] sm:$0xf0] }
 0x3d9   : > { %v17889_v5 = vrot.slane %v7394_v47, 7  ;;  %v7455_v44 = vrot.slane %v7397_v31, 5  ;;  %v7457_v32 = vrot.slane %v7394_v47, 4  ;;  %v17895_v10 = vpack.c.b16 %v7723_v4, %v7717_v63  ;;  %v13640_v38 = vld [vmem:[#allocation12 + $0x598] sm:$0xf0] }
 0x3da   : > { %v7349_v53 = vmax.f32 %v7341_v49, 0.0  ;;  %v7306_v52 = vadd.f32 %v7305_v61, %v7287_v58  ;;  %v17907_v55 = vpack.c.b16 %v7724_v30, %v7718_v0  ;;  %8383 = vmatpush.bf16.msra.mxu1 %v13379_v37  ;;  %v15440_v49 = vld [vmem:[#allocation12 + $0x584] sm:$0xf0]  ;;  %v15435_v58 = vld [vmem:[#allocation12 + $0x564] sm:$0xf]  ;;  %v13567_v7 = vor.u32 %v15424_v40, %v13566_v15  ;;  %8344 = vmatpush.bf16.msrb.mxu3 %v13639_v25 }
 0x3db   : > { %v7399_v24 = vor.u32 %v7397_v31, %v17889_v5  ;;  %v7401_v22 = vrot.slane %v17889_v5, 4  ;;  %v17913_v56 = vsel %vm16425_vm2, %v7454_v26, %v7455_v44  ;;  %v7458_v8 = vor.u32 %v7457_v32, %v7455_v44  ;;  %8289 = vmatmul.bf16.vlgmr.msrb.gmra.mxu0 %v17895_v10  ;;  %v13630_v26 = vld [vmem:[#allocation12 + $0x580] sm:$0xf]  ;;  %v13616_v44 = vld [vmem:[#allocation12 + $0x568] sm:$0xf0] }
 0x3dc   : > { %v7360_v62 = vsel %vm7354_vm8, %v7349_v53, 0.0  ;;  %v7315_v48 = vadd.f32 %v7306_v52, %v17552_v46  ;;  %8308 = vmatmul.bf16.vlgmr.msrb.gmra.mxu1 %v17907_v55  ;;  %v13624_v46 = vld [vmem:[#allocation12 + $0x578] sm:$0xf0]  ;;  %v18552_v47 = vunpack.c.l.b16 %v17913_v56  ;;  %v13631_v53 = vor.u32 %v15440_v49, %v13630_v26  ;;  %v15451_v52 = vld [vmem:[#allocation12 + $0x5e4] sm:$0xf]  ;;  %8326 = vmatpush.bf16.msrb.mxu2 %v13567_v7 }
 0x3dd   : > { %v17923_v11 = vsel %vm17899_vm12, %v7392_v9, %v7399_v24  ;;  %v17926_v23 = vpack.c.bf16 %v7360_v62, %v17841_v59  ;;  %v13688_v9 = vld [vmem:[#allocation12 + $0x5f8] sm:$0xf0]  ;;  %v7459_v59 = vrot.slane %v7458_v8, 4  ;;  %v13627_v54 = vor.u32 %v15437_v27, %v13624_v46  ;;  %v15421_v27 = vld [vmem:[#allocation12 + $0x4f4] sm:$0xf] }
 0x3de   : > { %7435 = vst [vmem:[#allocation3 + $0x30] sm:$0xff] %v17923_v11  ;;  %v7329_v34 = vmul.f32 %v17767_v14, %v7315_v48  ;;  %v7721_v36 = vunpack.c.l.b16 %v17923_v11  ;;  %v7722_v29 = vunpack.c.h.b16 %v17923_v11  ;;  %v13691_v61 = vor.u32 %v15453_v41, %v13688_v9  ;;  %v13496_v37 = vld [vmem:[#allocation12 + $0x478] sm:$0xf0]  ;;  %v15433_v9 = vld [vmem:[#allocation12 + $0x554] sm:$0xf]  ;;  %8345 = vmatpush.bf16.msrb.mxu3 %v13631_v53 }
 0x3df   : > { %v7403_v21 = vshrl.u32 %v17926_v23, 16  ;;  %v7406_v33 = vshll.u32 %v17926_v23, 16  ;;  %7449 = vst [vmem:[#allocation3 + $0x50] sm:$0xff] %v17926_v23  ;;  %8433 = vmatpush.bf16.msrb.mxu0 %v13627_v54  ;;  %v13619_v43 = vor.u32 %v15435_v58, %v13616_v44  ;;  %v13683_v6 = vor.u32 %v15451_v52, %v13680_v57  ;;  %v13608_v15 = vld [vmem:[#allocation12 + $0x558] sm:$0xf0] }
 0x3e0   : > { %v7343_v14 = vadd.f32 %v17770_v19, %v7329_v34  ;;  %v17942_v31 = vpack.c.b16 %v7721_v36, %v7715_v3  ;;  %v17948_v28 = vpack.c.b16 %v7722_v29, %v7716_v45  ;;  %8452 = vmatpush.bf16.msrb.mxu1 %v13691_v61  ;;  %v7729_v34 = vunpack.c.l.b16 %v17926_v23  ;;  %v13672_v40 = vld [vmem:[#allocation12 + $0x5d8] sm:$0xf0]  ;;  %v13488_v7 = vld [vmem:[#allocation12 + $0x468] sm:$0xf0]  ;;  %v15419_v52 = vld [vmem:[#allocation12 + $0x4e4] sm:$0xf] }
 0x3e1   : > { %v17950_v17 = vrot.slane %v7403_v21, 7  ;;  %v7460_v19 = vrot.slane %v7406_v33, 5  ;;  %v7462_v42 = vrot.slane %v7403_v21, 4  ;;  %v7730_v18 = vunpack.c.h.b16 %v17926_v23  ;;  %v13552_v57 = vld [vmem:[#allocation12 + $0x4e8] sm:$0xf0] }
 0x3e2   : > { %v7351_v32 = vmax.f32 %v7343_v14, 0.0  ;;  %8251 = vmatmul.bf16.vlgmr.msra.gmra.mxu2 %v17942_v31  ;;  %8270 = vmatmul.bf16.vlgmr.msra.gmra.mxu3 %v17948_v28  ;;  %v13499_v44 = vor.u32 %v15405_v50, %v13496_v37  ;;  %v13611_v61 = vor.u32 %v15433_v9, %v13608_v15 }
 0x3e3   : > { %v7408_v51 = vor.u32 %v7406_v33, %v17950_v17  ;;  %v7410_v24 = vrot.slane %v17950_v17, 4  ;;  %v17964_v8 = vsel %vm16425_vm2, %v7459_v59, %v7460_v19  ;;  %v7463_v1 = vor.u32 %v7462_v42, %v7460_v19  ;;  %v15449_v33 = vld [vmem:[#allocation12 + $0x5d4] sm:$0xf]  ;;  %8434 = vmatpush.bf16.msrb.mxu0 %v13619_v43  ;;  %v15403_v19 = vld [vmem:[#allocation12 + $0x464] sm:$0xf] }
 0x3e4   : > { %7486 = vst [vmem:[#allocation3 + $0x40] sm:$0xff] %v17964_v8  ;;  %v7362_v48 = vsel %vm7354_vm8, %v7351_v32, 0.0  ;;  %v7725_v2 = vunpack.c.l.b16 %v17964_v8  ;;  %v7726_v21 = vunpack.c.h.b16 %v17964_v8  ;;  %vm18002_vm8 = vmand %vm7428_vm13, %vm7489_vm1  ;;  %v7444_v42 = vld [vmem:[#allocation3 + $0x78] sm:$0x11]  ;;  %8453 = vmatpush.bf16.msrb.mxu1 %v13683_v6  ;;  %v13563_v32 = vor.u32 %v15421_v27, %v13560_v39  ;;  %v15431_v43 = vld [vmem:[#allocation12 + $0x544] sm:$0xf]  ;;  %8395 = vmatpush.bf16.msra.mxu2 %v13499_v44 }
 0x3e5   : > { %v17980_v46 = vsel %vm17899_vm12, %v7401_v22, %v7408_v51  ;;  %v7366_v41 = vpack.c.bf16 %v7362_v48, %v17854_v16  ;;  %v7464_v59 = vrot.slane %v7463_v1, 4  ;;  %v18551_v22 = vunpack.c.h.b16 %v17913_v56  ;;  %v13600_v27 = vld [vmem:[#allocation12 + $0x548] sm:$0xf0]  ;;  %vm7491_vm13 = vmor %vm18002_vm8, %vm17956_vm3 }
 0x3e6   : > { %7436 = vst [vmem:[#allocation3 + $0x48] sm:$0xff] %v17980_v46  ;;  %v17996_v16 = vpack.c.b16 %v7725_v2, %v18552_v47  ;;  %8414 = vmatpush.bf16.msra.mxu3 %v13563_v32  ;;  %v13675_v6 = vor.u32 %v15449_v33, %v13672_v40  ;;  %v13491_v37 = vor.u32 %v15403_v19, %v13488_v7  ;;  %v13664_v39 = vld [vmem:[#allocation12 + $0x5c8] sm:$0xf0]  ;;  %v13480_v47 = vld [vmem:[#allocation12 + $0x458] sm:$0xf0]  ;;  %v7727_v7 = vunpack.c.l.b16 %v17980_v46 }
 0x3e7   : > { %v7412_v25 = vshrl.u32 %v7366_v41, 16  ;;  %v7415_v26 = vshll.u32 %v7366_v41, 16  ;;  %7450 = vst [vmem:[#allocation3 + $0x68] sm:$0xff] %v7366_v41  ;;  %v7735_v49 = vunpack.c.l.b16 %v7366_v41  ;;  %v7736_v58 = vunpack.c.h.b16 %v7366_v41  ;;  %v15447_v41 = vld [vmem:[#allocation12 + $0x5c4] sm:$0xf]  ;;  %8435 = vmatpush.bf16.msrb.mxu0 %v13611_v61 }
 0x3e8   : > { %v18010_v54 = vpack.c.b16 %v7726_v21, %v18551_v22  ;;  %v15401_v22 = vld [vmem:[#allocation12 + $0x454] sm:$0xf]  ;;  %v13555_v33 = vor.u32 %v15419_v52, %v13552_v57  ;;  %v13603_v40 = vor.u32 %v15431_v43, %v13600_v27  ;;  %8454 = vmatpush.bf16.msrb.mxu1 %v13675_v6  ;;  %v13667_v44 = vor.u32 %v15447_v41, %v13664_v39  ;;  %v13592_v61 = vld [vmem:[#allocation12 + $0x538] sm:$0xf0]  ;;  %v15415_v6 = vld [vmem:[#allocation12 + $0x4c4] sm:$0xf] }
 0x3e9   : > { %v7414_v51 = vrot.slane %v7412_v25, 7  ;;  %v7465_v53 = vrot.slane %v7415_v26, 5  ;;  %v7467_v1 = vrot.slane %v7412_v25, 4  ;;  %v18018_v48 = vpack.c.b16 %v7735_v49, %v7729_v34  ;;  %v15429_v32 = vld [vmem:[#allocation12 + $0x534] sm:$0xf]  ;;  %8396 = vmatpush.bf16.msra.mxu2 %v13491_v37 }
 0x3ea   : > { %v18022_v50 = vpack.c.b16 %v7736_v58, %v7730_v18  ;;  %v7728_v17 = vunpack.c.h.b16 %v17980_v46  ;;  %8415 = vmatpush.bf16.msra.mxu3 %v13555_v33  ;;  %v13483_v5 = vor.u32 %v15401_v22, %v13480_v47  ;;  %v13536_v37 = vld [vmem:[#allocation12 + $0x4c8] sm:$0xf0]  ;;  %v15427_v41 = vld [vmem:[#allocation12 + $0x524] sm:$0xf]  ;;  %v18065_v33 = vpack.c.b16 %v7729_v34, %v7723_v4 }
 0x3eb   : > { %v7417_v9 = vor.u32 %v7415_v26, %v7414_v51  ;;  %v7419_v15 = vrot.slane %v7414_v51, 4  ;;  %v18026_v25 = vsel %vm16425_vm2, %v7464_v59, %v7465_v53  ;;  %v7468_v49 = vor.u32 %v7467_v1, %v7465_v53  ;;  %8294 = vmatmul.bf16.gmra.mxu0 %v18018_v48  ;;  %v13544_v59 = vld [vmem:[#allocation12 + $0x4d8] sm:$0xf0]  ;;  %v15399_v53 = vld [vmem:[#allocation12 + $0x444] sm:$0xf] }
 0x3ec   : > { %7487 = vst [vmem:[#allocation3 + $0x58] sm:$0xff] %v18026_v25  ;;  %8313 = vmatmul.bf16.gmra.mxu1 %v18022_v50  ;;  %v13595_v51 = vor.u32 %v15429_v32, %v13592_v61  ;;  %v13472_v1 = vld [vmem:[#allocation12 + $0x448] sm:$0xf0]  ;;  %8436 = vmatpush.bf16.msrb.mxu0 %v13603_v40  ;;  %v7731_v27 = vunpack.c.l.b16 %v18026_v25  ;;  %v7732_v47 = vunpack.c.h.b16 %v18026_v25  ;;  %v18077_v4 = vpack.c.b16 %v7727_v7, %v7721_v36  ;;  %v15413_v32 = vld [vmem:[#allocation12 + $0x4b4] sm:$0xf] }
 0x3ed   : > { %v7418_v26 = vsel %vm17899_vm12, %v7410_v24, %v7417_v9  ;;  %v7445_v58 = vsel %vm7443_vm11, %v7419_v15, %v7444_v42  ;;  %v7469_v19 = vrot.slane %v7468_v49, 4  ;;  %v13656_v24 = vld [vmem:[#allocation12 + $0x5b8] sm:$0xf0]  ;;  %v13547_v42 = vor.u32 %v15417_v13, %v13544_v59  ;;  %8455 = vmatpush.bf16.msrb.mxu1 %v13667_v44  ;;  %v13584_v39 = vld [vmem:[#allocation12 + $0x528] sm:$0xf0]  ;;  %8397 = vmatpush.bf16.msra.mxu2 %v13483_v5 }
 0x3ee   : > { %7437 = vst [vmem:[#allocation3 + $0x60] sm:$0xff] %v7418_v26  ;;  %v7733_v52 = vunpack.c.l.b16 %v7418_v26  ;;  %v7734_v57 = vunpack.c.h.b16 %v7418_v26  ;;  %v13659_v35 = vor.u32 %v15445_v20, %v13656_v24  ;;  %v15443_v9 = vld [vmem:[#allocation12 + $0x5a4] sm:$0xf]  ;;  %v13648_v15 = vld [vmem:[#allocation12 + $0x5a8] sm:$0xf0]  ;;  %v13475_v40 = vor.u32 %v15399_v53, %v13472_v1 }
 0x3ef   : > { %7446 = vst [vmem:[#allocation3 + $0x78] sm:$0x11] %v7445_v58  ;;  %v7493_v62 = vsel %vm7491_vm13, %v7469_v19, 0  ;;  %8416 = vmatpush.bf16.msra.mxu3 %v13547_v42  ;;  %v13539_v13 = vor.u32 %v15415_v6, %v13536_v37  ;;  %v13587_v59 = vor.u32 %v15427_v41, %v13584_v39  ;;  %v15397_v26 = vld [vmem:[#allocation12 + $0x434] sm:$0xf]  ;;  %v18073_v19 = vpack.c.b16 %v7730_v18, %v7724_v30 }
 0x3f0   : > { %7494 = vst [vmem:[#allocation3 + $0x70] sm:$0xff] %v7493_v62  ;;  %v18051_v43 = vpack.c.b16 %v7733_v52, %v7727_v7  ;;  %v18053_v46 = vpack.c.b16 %v7734_v57, %v7728_v17  ;;  %v7737_v14 = vunpack.c.l.b16 %v7493_v62  ;;  %v7738_v22 = vunpack.c.h.b16 %v7493_v62  ;;  %8437 = vmatpush.bf16.msrb.mxu0 %v13595_v51  ;;  %v13464_v58 = vld [vmem:[#allocation12 + $0x438] sm:$0xf0]  ;;  %v15425_v52 = vld [vmem:[#allocation12 + $0x514] sm:$0xf] }
 0x3f1   : > { %v18081_v34 = vpack.c.b16 %v7728_v17, %v7722_v29  ;;  %8456 = vmatpush.bf16.msrb.mxu1 %v13659_v35  ;;  %v13651_v44 = vor.u32 %v15443_v9, %v13648_v15  ;;  %v13528_v61 = vld [vmem:[#allocation12 + $0x4b8] sm:$0xf0]  ;;  %v15441_v20 = vld [vmem:[#allocation12 + $0x594] sm:$0xf]  ;;  %v18085_v30 = vpack.c.b16 %v7731_v27, %v7725_v2  ;;  %v18089_v23 = vpack.c.b16 %v7732_v47, %v7726_v21  ;;  %v15395_v29 = vld [vmem:[#allocation12 + $0x424] sm:$0xf] }
 0x3f2   : > { %8256 = vmatmul.bf16.gmra.mxu2 %v18051_v43  ;;  %8275 = vmatmul.bf16.gmra.mxu3 %v18053_v46  ;;  %v18059_v49 = vpack.c.b16 %v7737_v14, %v7731_v27  ;;  %v18067_v25 = vpack.c.b16 %v7738_v22, %v7732_v47  ;;  %v13576_v57 = vld [vmem:[#allocation12 + $0x518] sm:$0xf0]  ;;  %v13467_v11 = vor.u32 %v15397_v26, %v13464_v58  ;;  %v13456_v18 = vld [vmem:[#allocation12 + $0x428] sm:$0xf0]  ;;  %v15411_v24 = vld [vmem:[#allocation12 + $0x4a4] sm:$0xf] }
 0x3f3   : > { %8398 = vmatpush.bf16.msra.mxu2 %v13475_v40  ;;  %8417 = vmatpush.bf16.msra.mxu3 %v13539_v13  ;;  %v13531_v36 = vor.u32 %v15413_v32, %v13528_v61  ;;  %v13579_v7 = vor.u32 %v15425_v52, %v13576_v57  ;;  %v13643_v17 = vor.u32 %v15441_v20, %v13640_v38  ;;  %v13520_v62 = vld [vmem:[#allocation12 + $0x4a8] sm:$0xf0]  ;;  %v15423_v5 = vld [vmem:[#allocation12 + $0x504] sm:$0xf]  ;;  %v15393_v21 = vld [vmem:[#allocation12 + $0x414] sm:$0xf] }
 0x3f4   : > { %8438 = vmatpush.bf16.msrb.mxu0 %v13587_v59  ;;  %v13568_v42 = vld [vmem:[#allocation12 + $0x508] sm:$0xf0]  ;;  %v15439_v2 = vld [vmem:[#allocation12 + $0x584] sm:$0xf]  ;;  %v13459_v8 = vor.u32 %v15395_v29, %v13456_v18  ;;  %v13448_v53 = vld [vmem:[#allocation12 + $0x418] sm:$0xf0]  ;;  %v13523_v1 = vor.u32 %v15411_v24, %v13520_v62 }
 0x3f5   : > { %8457 = vmatpush.bf16.msrb.mxu1 %v13651_v44  ;;  %v13632_v51 = vld [vmem:[#allocation12 + $0x588] sm:$0xf0]  ;;  %v15409_v6 = vld [vmem:[#allocation12 + $0x494] sm:$0xf]  ;;  %v13878_v37 = vld [vmem:[#allocation12 + $0x170] sm:$0xf]  ;;  %v13571_v14 = vor.u32 %v15423_v5, %v13568_v42 }
 0x3f6   : > { %v15310_v27 = vld [vmem:[#allocation12 + $0x174] sm:$0xf0]  ;;  %v13635_v35 = vor.u32 %v15439_v2, %v13632_v51  ;;  %v13512_v41 = vld [vmem:[#allocation12 + $0x498] sm:$0xf0]  ;;  %v13942_v39 = vld [vmem:[#allocation12 + $0x1f0] sm:$0xf] }
 0x3f7   : > { %8399 = vmatpush.bf16.msra.mxu2 %v13467_v11  ;;  %8418 = vmatpush.bf16.msra.mxu3 %v13531_v36  ;;  %v15326_v47 = vld [vmem:[#allocation12 + $0x1f4] sm:$0xf0]  ;;  %v13879_v22 = vor.u32 %v15310_v27, %v13878_v37  ;;  %v15391_v9 = vld [vmem:[#allocation12 + $0x404] sm:$0xf]  ;;  %v13440_v15 = vld [vmem:[#allocation12 + $0x408] sm:$0xf0]  ;;  %v13515_v40 = vor.u32 %v15409_v6, %v13512_v41 }
 0x3f8   : > { %8439 = vmatpush.bf16.msrb.mxu0 %v13579_v7  ;;  %v15407_v13 = vld [vmem:[#allocation12 + $0x484] sm:$0xf]  ;;  %v13870_v59 = vld [vmem:[#allocation12 + $0x160] sm:$0xf]  ;;  %v15308_v26 = vld [vmem:[#allocation12 + $0x164] sm:$0xf0]  ;;  %v13443_v20 = vor.u32 %v15391_v9, %v13440_v15 }
 0x3f9   : > { %8458 = vmatpush.bf16.msrb.mxu1 %v13643_v17  ;;  %v13504_v58 = vld [vmem:[#allocation12 + $0x488] sm:$0xf0]  ;;  %v13934_v44 = vld [vmem:[#allocation12 + $0x1e0] sm:$0xf]  ;;  %v15324_v32 = vld [vmem:[#allocation12 + $0x1e4] sm:$0xf0]  ;;  %v13871_v38 = vor.u32 %v15308_v26, %v13870_v59 }
 0x3fa   : > { %v13750_v61 = vld [vmem:[#allocation12 + $0x70] sm:$0xf]  ;;  %v15278_v52 = vld [vmem:[#allocation12 + $0x74] sm:$0xf0]  ;;  %v13507_v36 = vor.u32 %v15407_v13, %v13504_v58  ;;  %v13935_v29 = vor.u32 %v15324_v32, %v13934_v44  ;;  %v13742_v42 = vld [vmem:[#allocation12 + $0x60] sm:$0xf] }
 0x3fb   : > { %8365 = vmatmul.bf16.vlgmr.msra.gmra.mxu0 %v17942_v31  ;;  %8400 = vmatpush.bf16.msra.mxu2 %v13459_v8  ;;  %v13451_v31 = vor.u32 %v15393_v21, %v13448_v53  ;;  %v13814_v57 = vld [vmem:[#allocation12 + $0xf0] sm:$0xf]  ;;  %v15294_v11 = vld [vmem:[#allocation12 + $0xf4] sm:$0xf0]  ;;  %v13751_v18 = vor.u32 %v15278_v52, %v13750_v61  ;;  %v15276_v2 = vld [vmem:[#allocation12 + $0x64] sm:$0xf0] }
 0x3fc   : > { %8384 = vmatmul.bf16.vlgmr.msra.gmra.mxu1 %v17948_v28  ;;  %8419 = vmatpush.bf16.msra.mxu3 %v13523_v1  ;;  %v13943_v28 = vor.u32 %v15326_v47, %v13942_v39  ;;  %v13815_v7 = vor.u32 %v15294_v11, %v13814_v57  ;;  %v13862_v17 = vld [vmem:[#allocation12 + $0x150] sm:$0xf]  ;;  %v15306_v24 = vld [vmem:[#allocation12 + $0x154] sm:$0xf0]  ;;  %v13806_v51 = vld [vmem:[#allocation12 + $0xe0] sm:$0xf]  ;;  %v13743_v1 = vor.u32 %v15276_v2, %v13742_v42 }
 0x3fd   : > { %8440 = vmatpush.bf16.msrb.mxu0 %v13571_v14  ;;  %8459 = vmatpush.bf16.msrb.mxu1 %v13635_v35  ;;  %v13926_v62 = vld [vmem:[#allocation12 + $0x1d0] sm:$0xf]  ;;  %v15322_v5 = vld [vmem:[#allocation12 + $0x1d4] sm:$0xf0]  ;;  %v15292_v8 = vld [vmem:[#allocation12 + $0xe4] sm:$0xf0]  ;;  %v13863_v21 = vor.u32 %v15306_v24, %v13862_v17 }
 0x3fe   : > { %v13927_v53 = vor.u32 %v15322_v5, %v13926_v62  ;;  %v13854_v6 = vld [vmem:[#allocation12 + $0x140] sm:$0xf]  ;;  %v15304_v37 = vld [vmem:[#allocation12 + $0x144] sm:$0xf0]  ;;  %v13807_v14 = vor.u32 %v15292_v8, %v13806_v51  ;;  %v13734_v41 = vld [vmem:[#allocation12 + $0x50] sm:$0xf] }
 0x3ff   : > { %8401 = vmatpush.bf16.msra.mxu2 %v13451_v31  ;;  %v13918_v27 = vld [vmem:[#allocation12 + $0x1c0] sm:$0xf]  ;;  %v15320_v35 = vld [vmem:[#allocation12 + $0x1c4] sm:$0xf0]  ;;  %v15274_v39 = vld [vmem:[#allocation12 + $0x54] sm:$0xf0]  ;;  %v13855_v47 = vor.u32 %v15304_v37, %v13854_v6 }
 0x400   : > { %8420 = vmatpush.bf16.msra.mxu3 %v13515_v40  ;;  %v13798_v31 = vld [vmem:[#allocation12 + $0xd0] sm:$0xf]  ;;  %v13919_v9 = vor.u32 %v15320_v35, %v13918_v27  ;;  %v13735_v15 = vor.u32 %v15274_v39, %v13734_v41  ;;  %v15318_v59 = vld [vmem:[#allocation12 + $0x1b4] sm:$0xf0]  ;;  %v13726_v26 = vld [vmem:[#allocation12 + $0x40] sm:$0xf] }
 0x401   : > { %9022 = vmatpush.bf16.msra.mxu0 %v13879_v22  ;;  %9041 = vmatpush.bf16.msra.mxu1 %v13943_v28  ;;  %v15290_v22 = vld [vmem:[#allocation12 + $0xd4] sm:$0xf0]  ;;  %v13846_v40 = vld [vmem:[#allocation12 + $0x130] sm:$0xf]  ;;  %v15272_v58 = vld [vmem:[#allocation12 + $0x44] sm:$0xf0] }
 0x402   : > { %8327 = vmatmul.bf16.vlgmr.msrb.gmra.mxu2 %v17996_v16  ;;  %8346 = vmatmul.bf16.vlgmr.msrb.gmra.mxu3 %v18010_v54  ;;  %v15302_v28 = vld [vmem:[#allocation12 + $0x134] sm:$0xf0]  ;;  %v13910_v13 = vld [vmem:[#allocation12 + $0x1b0] sm:$0xf]  ;;  %v13799_v44 = vor.u32 %v15290_v22, %v13798_v31  ;;  %v13790_v32 = vld [vmem:[#allocation12 + $0xc0] sm:$0xf]  ;;  %v13727_v52 = vor.u32 %v15272_v58, %v13726_v26 }
 0x403   : > { %8402 = vmatpush.bf16.msra.mxu2 %v13443_v20  ;;  %v13911_v61 = vor.u32 %v15318_v59, %v13910_v13  ;;  %v13838_v57 = vld [vmem:[#allocation12 + $0x120] sm:$0xf]  ;;  %v15300_v20 = vld [vmem:[#allocation12 + $0x124] sm:$0xf0]  ;;  %v13782_v17 = vld [vmem:[#allocation12 + $0xb0] sm:$0xf] }
 0x404   : > { %8421 = vmatpush.bf16.msra.mxu3 %v13507_v36  ;;  %v15316_v11 = vld [vmem:[#allocation12 + $0x1a4] sm:$0xf0]  ;;  %v13718_v36 = vld [vmem:[#allocation12 + $0x30] sm:$0xf]  ;;  %v15286_v24 = vld [vmem:[#allocation12 + $0xb4] sm:$0xf0] }
 0x405   : > { %9023 = vmatpush.bf16.msra.mxu0 %v13871_v38  ;;  %9042 = vmatpush.bf16.msra.mxu1 %v13935_v29  ;;  %v13902_v38 = vld [vmem:[#allocation12 + $0x1a0] sm:$0xf]  ;;  %v15270_v29 = vld [vmem:[#allocation12 + $0x34] sm:$0xf0]  ;;  %v13830_v42 = vld [vmem:[#allocation12 + $0x110] sm:$0xf] }
 0x406   : > { %v13903_v62 = vor.u32 %v15316_v11, %v13902_v38  ;;  %v13719_v5 = vor.u32 %v15270_v29, %v13718_v36  ;;  %v15298_v2 = vld [vmem:[#allocation12 + $0x114] sm:$0xf0]  ;;  %v13894_v51 = vld [vmem:[#allocation12 + $0x190] sm:$0xf]  ;;  %v13774_v37 = vld [vmem:[#allocation12 + $0xa0] sm:$0xf] }
 0x407   : > { %8984 = vmatpush.bf16.msrb.mxu2 %v13751_v18  ;;  %v15314_v8 = vld [vmem:[#allocation12 + $0x194] sm:$0xf0]  ;;  %v13831_v6 = vor.u32 %v15298_v2, %v13830_v42  ;;  %v15284_v27 = vld [vmem:[#allocation12 + $0xa4] sm:$0xf0]  ;;  %v13822_v41 = vld [vmem:[#allocation12 + $0x100] sm:$0xf] }
 0x408   : > { %9003 = vmatpush.bf16.msrb.mxu3 %v13815_v7  ;;  %v13839_v7 = vor.u32 %v15300_v20, %v13838_v57  ;;  %v15296_v39 = vld [vmem:[#allocation12 + $0x104] sm:$0xf0]  ;;  %v13702_v22 = vld [vmem:[#allocation12 + $0x10] sm:$0xf]  ;;  %v15282_v13 = vld [vmem:[#allocation12 + $0x94] sm:$0xf0] }
 0x409   : > { %9024 = vmatpush.bf16.msra.mxu0 %v13863_v21  ;;  %9043 = vmatpush.bf16.msra.mxu1 %v13927_v53  ;;  %v13710_v21 = vld [vmem:[#allocation12 + $0x20] sm:$0xf]  ;;  %v15268_v53 = vld [vmem:[#allocation12 + $0x24] sm:$0xf0]  ;;  %v15277_v59 = vld [vmem:[#allocation12 + $0x74] sm:$0xf] }
 0x40a   : > { %v13711_v35 = vor.u32 %v15268_v53, %v13710_v21  ;;  %v15312_v31 = vld [vmem:[#allocation12 + $0x184] sm:$0xf0]  ;;  %v13752_v26 = vld [vmem:[#allocation12 + $0x78] sm:$0xf0]  ;;  %v13758_v57 = vld [vmem:[#allocation12 + $0x80] sm:$0xf] }
 0x40b   : > { %8370 = vmatmul.bf16.gmra.mxu0 %v18051_v43  ;;  %8985 = vmatpush.bf16.msrb.mxu2 %v13743_v1  ;;  %v13847_v43 = vor.u32 %v15302_v28, %v13846_v40  ;;  %v13783_v1 = vor.u32 %v15286_v24, %v13782_v17  ;;  %v13766_v40 = vld [vmem:[#allocation12 + $0x90] sm:$0xf]  ;;  %v13823_v28 = vor.u32 %v15296_v39, %v13822_v41  ;;  %v15275_v38 = vld [vmem:[#allocation12 + $0x64] sm:$0xf]  ;;  %v13744_v11 = vld [vmem:[#allocation12 + $0x68] sm:$0xf0] }
 0x40c   : > { %8389 = vmatmul.bf16.gmra.mxu1 %v18053_v46  ;;  %9004 = vmatpush.bf16.msrb.mxu3 %v13807_v14  ;;  %v15288_v46 = vld [vmem:[#allocation12 + $0xc4] sm:$0xf0]  ;;  %v13895_v14 = vor.u32 %v15314_v8, %v13894_v51  ;;  %v15291_v29 = vld [vmem:[#allocation12 + $0xe4] sm:$0xf]  ;;  %v15342_v17 = vld [vmem:[#allocation12 + $0x274] sm:$0xf0] }
 0x40d   : > { %9025 = vmatpush.bf16.msra.mxu0 %v13855_v47  ;;  %9044 = vmatpush.bf16.msra.mxu1 %v13919_v9  ;;  %v13791_v18 = vor.u32 %v15288_v46, %v13790_v32  ;;  %v13886_v47 = vld [vmem:[#allocation12 + $0x180] sm:$0xf]  ;;  %v15266_v9 = vld [vmem:[#allocation12 + $0x14] sm:$0xf0]  ;;  %v13816_v32 = vld [vmem:[#allocation12 + $0xf8] sm:$0xf0] }
 0x40e   : > { %v13887_v58 = vor.u32 %v15312_v31, %v13886_v47  ;;  %v13694_v46 = vld [vmem:[#allocation12] sm:$0xf]  ;;  %v14070_v24 = vld [vmem:[#allocation12 + $0x2f0] sm:$0xf]  ;;  %v15358_v2 = vld [vmem:[#allocation12 + $0x2f4] sm:$0xf0] }
 0x40f   : > { %8986 = vmatpush.bf16.msrb.mxu2 %v13735_v15  ;;  %v13775_v15 = vor.u32 %v15284_v27, %v13774_v37  ;;  %v14071_v8 = vor.u32 %v15358_v2, %v14070_v24  ;;  %v15273_v21 = vld [vmem:[#allocation12 + $0x54] sm:$0xf]  ;;  %v13998_v53 = vld [vmem:[#allocation12 + $0x260] sm:$0xf]  ;;  %v15338_v41 = vld [vmem:[#allocation12 + $0x254] sm:$0xf0] }
 0x410   : > { %9005 = vmatpush.bf16.msrb.mxu3 %v13799_v44  ;;  %v13703_v44 = vor.u32 %v15266_v9, %v13702_v22  ;;  %v14062_v27 = vld [vmem:[#allocation12 + $0x2e0] sm:$0xf]  ;;  %v15271_v22 = vld [vmem:[#allocation12 + $0x44] sm:$0xf]  ;;  %v13728_v9 = vld [vmem:[#allocation12 + $0x48] sm:$0xf0] }
 0x411   : > { %9026 = vmatpush.bf16.msra.mxu0 %v13847_v43  ;;  %9045 = vmatpush.bf16.msra.mxu1 %v13911_v61  ;;  %v15293_v43 = vld [vmem:[#allocation12 + $0xf4] sm:$0xf]  ;;  %v15264_v61 = vld [vmem:[#allocation12 + $0x4] sm:$0xf0]  ;;  %v14038_v24 = vld [vmem:[#allocation12 + $0x2b0] sm:$0xf] }
 0x412   : > { %8332 = vmatmul.bf16.gmra.mxu2 %v18059_v49  ;;  %8351 = vmatmul.bf16.gmra.mxu3 %v18067_v25  ;;  %v13819_v20 = vor.u32 %v15293_v43, %v13816_v32  ;;  %v13695_v36 = vor.u32 %v15264_v61, %v13694_v46  ;;  %v13720_v32 = vld [vmem:[#allocation12 + $0x38] sm:$0xf0]  ;;  %v15285_v46 = vld [vmem:[#allocation12 + $0xb4] sm:$0xf] }
 0x413   : > { %8987 = vmatpush.bf16.msrb.mxu2 %v13727_v52  ;;  %v13755_v52 = vor.u32 %v15277_v59, %v13752_v26  ;;  %v14054_v59 = vld [vmem:[#allocation12 + $0x2d0] sm:$0xf]  ;;  %v15354_v26 = vld [vmem:[#allocation12 + $0x2d4] sm:$0xf0]  ;;  %v13784_v61 = vld [vmem:[#allocation12 + $0xb8] sm:$0xf0] }
 0x414   : > { %9006 = vmatpush.bf16.msrb.mxu3 %v13791_v18  ;;  %v13808_v18 = vld [vmem:[#allocation12 + $0xe8] sm:$0xf0]  ;;  %v14055_v43 = vor.u32 %v15354_v26, %v14054_v59  ;;  %v15265_v2 = vld [vmem:[#allocation12 + $0x14] sm:$0xf]  ;;  %v15346_v26 = vld [vmem:[#allocation12 + $0x294] sm:$0xf0] }
 0x415   : > { %9027 = vmatpush.bf16.msra.mxu0 %v13839_v7  ;;  %9046 = vmatpush.bf16.msra.mxu1 %v13903_v62  ;;  %v14006_v7 = vld [vmem:[#allocation12 + $0x270] sm:$0xf]  ;;  %v13811_v51 = vor.u32 %v15291_v29, %v13808_v18  ;;  %v15283_v29 = vld [vmem:[#allocation12 + $0xa4] sm:$0xf]  ;;  %v13776_v18 = vld [vmem:[#allocation12 + $0xa8] sm:$0xf0] }
 0x416   : > { %v14007_v42 = vor.u32 %v15342_v17, %v14006_v7  ;;  %v13974_v7 = vld [vmem:[#allocation12 + $0x230] sm:$0xf]  ;;  %v15334_v17 = vld [vmem:[#allocation12 + $0x234] sm:$0xf0] }
 0x417   : > { %8988 = vmatpush.bf16.msrb.mxu2 %v13719_v5  ;;  %v13747_v5 = vor.u32 %v15275_v38, %v13744_v11  ;;  %v13787_v38 = vor.u32 %v15285_v46, %v13784_v61  ;;  %v14072_v46 = vld [vmem:[#allocation12 + $0x2f8] sm:$0xf0]  ;;  %v13950_v61 = vld [vmem:[#allocation12 + $0x200] sm:$0xf] }
 0x418   : > { %9007 = vmatpush.bf16.msrb.mxu3 %v13783_v1  ;;  %v13736_v1 = vld [vmem:[#allocation12 + $0x58] sm:$0xf0] }
 0x419   : > { %9028 = vmatpush.bf16.msra.mxu0 %v13831_v6  ;;  %9047 = vmatpush.bf16.msra.mxu1 %v13895_v14  ;;  %v15289_v6 = vld [vmem:[#allocation12 + $0xd4] sm:$0xf]  ;;  %v15356_v14 = vld [vmem:[#allocation12 + $0x2e4] sm:$0xf0]  ;;  %v13739_v39 = vor.u32 %v15273_v21, %v13736_v1 }
 0x41a   : > { %v14063_v31 = vor.u32 %v15356_v14, %v14062_v27  ;;  %v15348_v27 = vld [vmem:[#allocation12 + $0x2a4] sm:$0xf0] }
 0x41b   : > { %8441 = vmatmul.bf16.vlgmr.msrb.gmra.mxu0 %v17996_v16  ;;  %8989 = vmatpush.bf16.msrb.mxu2 %v13711_v35  ;;  %v13767_v16 = vor.u32 %v15282_v13, %v13766_v40  ;;  %v13990_v35 = vld [vmem:[#allocation12 + $0x250] sm:$0xf]  ;;  %v13792_v40 = vld [vmem:[#allocation12 + $0xc8] sm:$0xf0]  ;;  %v13731_v13 = vor.u32 %v15271_v22, %v13728_v9  ;;  %v15279_v9 = vld [vmem:[#allocation12 + $0x84] sm:$0xf] }
 0x41c   : > { %8460 = vmatmul.bf16.vlgmr.msrb.gmra.mxu1 %v18010_v54  ;;  %9008 = vmatpush.bf16.msrb.mxu3 %v13775_v15  ;;  %v15280_v54 = vld [vmem:[#allocation12 + $0x84] sm:$0xf0]  ;;  %v15287_v15 = vld [vmem:[#allocation12 + $0xc4] sm:$0xf]  ;;  %v13696_v22 = vld [vmem:[#allocation12 + $0x8] sm:$0xf0] }
 0x41d   : > { %9029 = vmatpush.bf16.msra.mxu0 %v13823_v28  ;;  %9048 = vmatpush.bf16.msra.mxu1 %v13887_v58  ;;  %v13759_v62 = vor.u32 %v15280_v54, %v13758_v57  ;;  %v13991_v28 = vor.u32 %v15338_v41, %v13990_v35  ;;  %v15269_v58 = vld [vmem:[#allocation12 + $0x34] sm:$0xf]  ;;  %v14046_v57 = vld [vmem:[#allocation12 + $0x2c0] sm:$0xf]  ;;  %v15267_v54 = vld [vmem:[#allocation12 + $0x24] sm:$0xf] }
 0x41f   : > { %8990 = vmatpush.bf16.msrb.mxu2 %v13703_v44  ;;  %v13795_v44 = vor.u32 %v15287_v15, %v13792_v40  ;;  %v13760_v40 = vld [vmem:[#allocation12 + $0x88] sm:$0xf0] }
 0x420   : > { %9009 = vmatpush.bf16.msrb.mxu3 %v13767_v16  ;;  %v13982_v16 = vld [vmem:[#allocation12 + $0x240] sm:$0xf]  ;;  %v13763_v60 = vor.u32 %v15279_v9, %v13760_v40  ;;  %v15321_v40 = vld [vmem:[#allocation12 + $0x1d4] sm:$0xf] }
 0x421   : > { %9098 = vmatpush.bf16.msrb.mxu0 %v13755_v52  ;;  %9117 = vmatpush.bf16.msrb.mxu1 %v13819_v20  ;;  %v15336_v52 = vld [vmem:[#allocation12 + $0x244] sm:$0xf0] }
 0x422   : > { %8403 = vmatmul.bf16.vlgmr.msra.gmra.mxu2 %v17895_v10  ;;  %8422 = vmatmul.bf16.vlgmr.msra.gmra.mxu3 %v17907_v55  ;;  %v15340_v10 = vld [vmem:[#allocation12 + $0x264] sm:$0xf0]  ;;  %v13800_v55 = vld [vmem:[#allocation12 + $0xd8] sm:$0xf0]  ;;  %v13983_v20 = vor.u32 %v15336_v52, %v13982_v16  ;;  %v14014_v52 = vld [vmem:[#allocation12 + $0x280] sm:$0xf] }
 0x423   : > { %8991 = vmatpush.bf16.msrb.mxu2 %v13695_v36  ;;  %v13999_v37 = vor.u32 %v15340_v10, %v13998_v53  ;;  %v13803_v47 = vor.u32 %v15289_v6, %v13800_v55  ;;  %v13712_v36 = vld [vmem:[#allocation12 + $0x28] sm:$0xf0]  ;;  %v13779_v53 = vor.u32 %v15283_v29, %v13776_v18  ;;  %v13704_v6 = vld [vmem:[#allocation12 + $0x18] sm:$0xf0]  ;;  %v15332_v10 = vld [vmem:[#allocation12 + $0x224] sm:$0xf0] }
 0x424   : > { %9010 = vmatpush.bf16.msrb.mxu3 %v13759_v62  ;;  %v13975_v62 = vor.u32 %v15334_v17, %v13974_v7  ;;  %v13768_v55 = vld [vmem:[#allocation12 + $0x98] sm:$0xf0]  ;;  %v13707_v35 = vor.u32 %v15265_v2, %v13704_v6  ;;  %v15328_v16 = vld [vmem:[#allocation12 + $0x204] sm:$0xf0]  ;;  %v14000_v29 = vld [vmem:[#allocation12 + $0x268] sm:$0xf0] }
 0x425   : > { %9099 = vmatpush.bf16.msrb.mxu0 %v13747_v5  ;;  %9118 = vmatpush.bf16.msrb.mxu1 %v13811_v51  ;;  %v15350_v5 = vld [vmem:[#allocation12 + $0x2b4] sm:$0xf0]  ;;  %v13966_v51 = vld [vmem:[#allocation12 + $0x220] sm:$0xf]  ;;  %v15355_v18 = vld [vmem:[#allocation12 + $0x2e4] sm:$0xf] }
 0x426   : > { %v14039_v1 = vor.u32 %v15350_v5, %v14038_v24  ;;  %v13967_v14 = vor.u32 %v15332_v10, %v13966_v51  ;;  %v14064_v7 = vld [vmem:[#allocation12 + $0x2e8] sm:$0xf0]  ;;  %v15309_v17 = vld [vmem:[#allocation12 + $0x174] sm:$0xf]  ;;  %v13944_v5 = vld [vmem:[#allocation12 + $0x1f8] sm:$0xf0] }
 0x427   : > { %9060 = vmatpush.bf16.msra.mxu2 %v14007_v42  ;;  %v13715_v42 = vor.u32 %v15267_v54, %v13712_v36  ;;  %v15339_v36 = vld [vmem:[#allocation12 + $0x264] sm:$0xf]  ;;  %v15353_v2 = vld [vmem:[#allocation12 + $0x2d4] sm:$0xf]  ;;  %v14056_v51 = vld [vmem:[#allocation12 + $0x2d8] sm:$0xf0] }
 0x428   : > { %9079 = vmatpush.bf16.msra.mxu3 %v14071_v8  ;;  %v15700_v8 = vld [vmem:[#allocation3 + $0x90] sm:$0xff]  ;;  %v14003_v12 = vor.u32 %v15339_v36, %v14000_v29  ;;  %v15307_v6 = vld [vmem:[#allocation12 + $0x164] sm:$0xf]  ;;  %v13848_v29 = vld [vmem:[#allocation12 + $0x138] sm:$0xf0] }
 0x429   : > { %9100 = vmatpush.bf16.msrb.mxu0 %v13739_v39  ;;  %9119 = vmatpush.bf16.msrb.mxu1 %v13803_v47  ;;  %v8476_v21 = vunpack.c.l.b16 %v15700_v8  ;;  %v15323_v10 = vld [vmem:[#allocation12 + $0x1e4] sm:$0xf] }
 0x42b   : > { %9061 = vmatpush.bf16.msra.mxu2 %v13999_v37  ;;  %8446 = vmatmul.bf16.gmra.mxu0 %v18059_v49  ;;  %v15352_v49 = vld [vmem:[#allocation12 + $0x2c4] sm:$0xf0]  ;;  %v14030_v37 = vld [vmem:[#allocation12 + $0x2a0] sm:$0xf]  ;;  %v18109_v41 = vpack.c.b16 %v7717_v63, %v8476_v21  ;;  %v14022_v63 = vld [vmem:[#allocation12 + $0x290] sm:$0xf] }
 0x42c   : > { %8465 = vmatmul.bf16.gmra.mxu1 %v18067_v25  ;;  %9080 = vmatpush.bf16.msra.mxu3 %v14063_v31  ;;  %v13723_v25 = vor.u32 %v15269_v58, %v13720_v32  ;;  %v14047_v11 = vor.u32 %v15352_v49, %v14046_v57  ;;  %v14031_v47 = vor.u32 %v15348_v27, %v14030_v37  ;;  %v15263_v31 = vld [vmem:[#allocation12 + $0x4] sm:$0xf]  ;;  %v15357_v32 = vld [vmem:[#allocation12 + $0x2f4] sm:$0xf]  ;;  %v15344_v57 = vld [vmem:[#allocation12 + $0x284] sm:$0xf0] }
 0x42d   : > { %9101 = vmatpush.bf16.msrb.mxu0 %v13731_v13  ;;  %9120 = vmatpush.bf16.msrb.mxu1 %v13795_v44  ;;  %v15330_v13 = vld [vmem:[#allocation12 + $0x214] sm:$0xf0]  ;;  %v13699_v58 = vor.u32 %v15263_v31, %v13696_v22  ;;  %v15341_v44 = vld [vmem:[#allocation12 + $0x274] sm:$0xf]  ;;  %v14075_v49 = vor.u32 %v15357_v32, %v14072_v46  ;;  %v15335_v37 = vld [vmem:[#allocation12 + $0x244] sm:$0xf] }
 0x42e   : > { %v13984_v27 = vld [vmem:[#allocation12 + $0x248] sm:$0xf0]  ;;  %v13864_v22 = vld [vmem:[#allocation12 + $0x158] sm:$0xf0]  ;;  %v15319_v46 = vld [vmem:[#allocation12 + $0x1c4] sm:$0xf] }
 0x42f   : > { %9062 = vmatpush.bf16.msra.mxu2 %v13991_v28  ;;  %v13958_v28 = vld [vmem:[#allocation12 + $0x210] sm:$0xf]  ;;  %v13987_v9 = vor.u32 %v15335_v37, %v13984_v27  ;;  %v13952_v37 = vld [vmem:[#allocation12 + $0x208] sm:$0xf0]  ;;  %v15343_v27 = vld [vmem:[#allocation12 + $0x284] sm:$0xf] }
 0x430   : > { %9081 = vmatpush.bf16.msra.mxu3 %v14055_v43  ;;  %v13959_v59 = vor.u32 %v15330_v13, %v13958_v28  ;;  %v14008_v43 = vld [vmem:[#allocation12 + $0x278] sm:$0xf0]  ;;  %v15333_v13 = vld [vmem:[#allocation12 + $0x234] sm:$0xf] }
 0x431   : > { %9102 = vmatpush.bf16.msrb.mxu0 %v13723_v25  ;;  %9121 = vmatpush.bf16.msrb.mxu1 %v13787_v38  ;;  %v18119_v25 = vpack.c.b16 %v7715_v3, %v8476_v21  ;;  %v13951_v38 = vor.u32 %v15328_v16, %v13950_v61  ;;  %v13880_v3 = vld [vmem:[#allocation12 + $0x178] sm:$0xf0]  ;;  %v13920_v16 = vld [vmem:[#allocation12 + $0x1c8] sm:$0xf0] }
 0x432   : > { %8408 = vmatmul.bf16.gmra.mxu2 %v18018_v48  ;;  %8427 = vmatmul.bf16.gmra.mxu3 %v18022_v50  ;;  %v15281_v48 = vld [vmem:[#allocation12 + $0x94] sm:$0xf]  ;;  %v8477_v50 = vunpack.c.h.b16 %v15700_v8  ;;  %v13883_v24 = vor.u32 %v15309_v17, %v13880_v3  ;;  %v13992_v21 = vld [vmem:[#allocation12 + $0x258] sm:$0xf0] }
 0x433   : > { %9063 = vmatpush.bf16.msra.mxu2 %v13983_v20  ;;  %v13771_v39 = vor.u32 %v15281_v48, %v13768_v55  ;;  %v14011_v20 = vor.u32 %v15341_v44, %v14008_v43  ;;  %v15337_v8 = vld [vmem:[#allocation12 + $0x254] sm:$0xf]  ;;  %v13872_v48 = vld [vmem:[#allocation12 + $0x168] sm:$0xf0]  ;;  %v13928_v28 = vld [vmem:[#allocation12 + $0x1d8] sm:$0xf0] }
 0x434   : > { %9082 = vmatpush.bf16.msra.mxu3 %v14047_v11  ;;  %v18113_v15 = vpack.c.b16 %v7718_v0, %v8477_v50  ;;  %v14023_v0 = vor.u32 %v15346_v26, %v14022_v63  ;;  %v18123_v54 = vpack.c.b16 %v7716_v45, %v8477_v50  ;;  %v14015_v11 = vor.u32 %v15344_v57, %v14014_v52  ;;  %v13936_v55 = vld [vmem:[#allocation12 + $0x1e8] sm:$0xf0]  ;;  %v13976_v26 = vld [vmem:[#allocation12 + $0x238] sm:$0xf0]  ;;  %v15331_v52 = vld [vmem:[#allocation12 + $0x224] sm:$0xf] }
 0x435   : > { %9103 = vmatpush.bf16.msrb.mxu0 %v13715_v42  ;;  %9122 = vmatpush.bf16.msrb.mxu1 %v13779_v53  ;;  %v14067_v45 = vor.u32 %v15355_v18, %v14064_v7  ;;  %v14059_v53 = vor.u32 %v15353_v2, %v14056_v51  ;;  %v13875_v50 = vor.u32 %v15307_v6, %v13872_v48  ;;  %v14040_v44 = vld [vmem:[#allocation12 + $0x2b8] sm:$0xf0]  ;;  %v13968_v57 = vld [vmem:[#allocation12 + $0x228] sm:$0xf0]  ;;  %v15317_v18 = vld [vmem:[#allocation12 + $0x1b4] sm:$0xf] }
 0x436   : > { %v13931_v63 = vor.u32 %v15321_v40, %v13928_v28  ;;  %v13979_v32 = vor.u32 %v15333_v13, %v13976_v26  ;;  %v13912_v7 = vld [vmem:[#allocation12 + $0x1b8] sm:$0xf0]  ;;  %v13971_v17 = vor.u32 %v15331_v52, %v13968_v57  ;;  %v15345_v3 = vld [vmem:[#allocation12 + $0x294] sm:$0xf]  ;;  %v7497_v6 = vld [vmem:[#allocation3 + $0x10] sm:$0xff] }
 0x437   : > { %9064 = vmatpush.bf16.msra.mxu2 %v13975_v62  ;;  %v15325_v62 = vld [vmem:[#allocation12 + $0x1f4] sm:$0xf]  ;;  %v13896_v28 = vld [vmem:[#allocation12 + $0x198] sm:$0xf0]  ;;  %v14310_v13 = vld [vmem:[#allocation12 + $0x770] sm:$0xf] }
 0x438   : > { %9083 = vmatpush.bf16.msra.mxu3 %v14039_v1  ;;  %v13947_v42 = vor.u32 %v15325_v62, %v13944_v5  ;;  %v13995_v1 = vor.u32 %v15337_v8, %v13992_v21  ;;  %v13960_v62 = vld [vmem:[#allocation12 + $0x218] sm:$0xf0]  ;;  %v15299_v8 = vld [vmem:[#allocation12 + $0x124] sm:$0xf]  ;;  %v13840_v21 = vld [vmem:[#allocation12 + $0x128] sm:$0xf0] }
 0x439   : > { %9104 = vmatpush.bf16.msrb.mxu0 %v13707_v35  ;;  %9123 = vmatpush.bf16.msrb.mxu1 %v13771_v39  ;;  %v15351_v35 = vld [vmem:[#allocation12 + $0x2c4] sm:$0xf]  ;;  %v14048_v39 = vld [vmem:[#allocation12 + $0x2c8] sm:$0xf0]  ;;  %v14024_v5 = vld [vmem:[#allocation12 + $0x298] sm:$0xf0]  ;;  %v13843_v48 = vor.u32 %v15299_v8, %v13840_v21 }
 0x43a   : > { %v14051_v31 = vor.u32 %v15351_v35, %v14048_v39  ;;  %v15297_v35 = vld [vmem:[#allocation12 + $0x114] sm:$0xf]  ;;  %v13832_v39 = vld [vmem:[#allocation12 + $0x118] sm:$0xf0]  ;;  %v15514_v26 = vld [vmem:[#allocation12 + $0x774] sm:$0xf0] }
 0x43b   : > { %9030 = vmatmul.bf16.vlgmr.msra.gmra.mxu0 %v18109_v41  ;;  %9065 = vmatpush.bf16.msra.mxu2 %v13967_v14  ;;  %v13939_v14 = vor.u32 %v15323_v10, %v13936_v55  ;;  %v13904_v10 = vld [vmem:[#allocation12 + $0x1a8] sm:$0xf0]  ;;  %v15327_v55 = vld [vmem:[#allocation12 + $0x204] sm:$0xf]  ;;  %v15313_v40 = vld [vmem:[#allocation12 + $0x194] sm:$0xf] }
 0x43c   : > { %9049 = vmatmul.bf16.vlgmr.msra.gmra.mxu1 %v18113_v15  ;;  %9084 = vmatpush.bf16.msra.mxu3 %v14031_v47  ;;  %v15305_v47 = vld [vmem:[#allocation12 + $0x154] sm:$0xf]  ;;  %v15311_v52 = vld [vmem:[#allocation12 + $0x184] sm:$0xf]  ;;  %v15510_v8 = vld [vmem:[#allocation12 + $0x754] sm:$0xf0] }
 0x43d   : > { %9105 = vmatpush.bf16.msrb.mxu0 %v13699_v58  ;;  %9124 = vmatpush.bf16.msrb.mxu1 %v13763_v60  ;;  %v15349_v58 = vld [vmem:[#allocation12 + $0x2b4] sm:$0xf]  ;;  %v15303_v60 = vld [vmem:[#allocation12 + $0x144] sm:$0xf]  ;;  %v14358_v21 = vld [vmem:[#allocation12 + $0x7d0] sm:$0xf] }
 0x43e   : > { %v14043_v43 = vor.u32 %v15349_v58, %v14040_v44  ;;  %v15530_v58 = vld [vmem:[#allocation12 + $0x7f4] sm:$0xf0] }
 0x43f   : > { %9066 = vmatpush.bf16.msra.mxu2 %v13959_v59  ;;  %v13867_v59 = vor.u32 %v15305_v47, %v13864_v22  ;;  %v8478_v47 = vunpack.c.l.b16 %v7497_v6  ;;  %v13955_v22 = vor.u32 %v15327_v55, %v13952_v37  ;;  %v14174_v37 = vld [vmem:[#allocation12 + $0x660] sm:$0xf] }
 0x440   : > { %9085 = vmatpush.bf16.msra.mxu3 %v14023_v0  ;;  %v13856_v0 = vld [vmem:[#allocation12 + $0x148] sm:$0xf0] }
 0x441   : > { %9174 = vmatpush.bf16.msra.mxu0 %v14011_v20  ;;  %9193 = vmatpush.bf16.msra.mxu1 %v14075_v49  ;;  %v13859_v61 = vor.u32 %v15303_v60, %v13856_v0  ;;  %v13923_v20 = vor.u32 %v15319_v46, %v13920_v16  ;;  %v15347_v49 = vld [vmem:[#allocation12 + $0x2a4] sm:$0xf]  ;;  %v18728_v0 = vunpack.c.h.b16 %v17913_v56  ;;  %v13824_v16 = vld [vmem:[#allocation12 + $0x108] sm:$0xf0] }
 0x442   : > { %8992 = vmatmul.bf16.vlgmr.msrb.gmra.mxu2 %v18119_v25  ;;  %9011 = vmatmul.bf16.vlgmr.msrb.gmra.mxu3 %v18123_v54 }
 0x443   : > { %9067 = vmatpush.bf16.msra.mxu2 %v13951_v38  ;;  %v14032_v38 = vld [vmem:[#allocation12 + $0x2a8] sm:$0xf0] }
 0x444   : > { %9086 = vmatpush.bf16.msra.mxu3 %v14015_v11  ;;  %v15301_v11 = vld [vmem:[#allocation12 + $0x134] sm:$0xf]  ;;  %v14035_v36 = vor.u32 %v15347_v49, %v14032_v38  ;;  %v13888_v49 = vld [vmem:[#allocation12 + $0x188] sm:$0xf0] }
 0x445   : > { %9175 = vmatpush.bf16.msra.mxu0 %v14003_v12  ;;  %9194 = vmatpush.bf16.msra.mxu1 %v14067_v45  ;;  %v13851_v12 = vor.u32 %v15301_v11, %v13848_v29  ;;  %v13915_v45 = vor.u32 %v15317_v18, %v13912_v7  ;;  %v13891_v38 = vor.u32 %v15311_v52, %v13888_v49  ;;  %v14302_v11 = vld [vmem:[#allocation12 + $0x760] sm:$0xf]  ;;  %v15528_v18 = vld [vmem:[#allocation12 + $0x7e4] sm:$0xf0]  ;;  %v14182_v7 = vld [vmem:[#allocation12 + $0x670] sm:$0xf] }
 0x447   : > { %9136 = vmatpush.bf16.msrb.mxu2 %v13883_v24  ;;  %v15329_v24 = vld [vmem:[#allocation12 + $0x214] sm:$0xf] }
 0x448   : > { %9155 = vmatpush.bf16.msrb.mxu3 %v13947_v42  ;;  %v14027_v42 = vor.u32 %v15345_v3, %v14024_v5  ;;  %v13963_v51 = vor.u32 %v15329_v24, %v13960_v62  ;;  %v15498_v24 = vld [vmem:[#allocation12 + $0x6f4] sm:$0xf0]  ;;  %v14294_v62 = vld [vmem:[#allocation12 + $0x750] sm:$0xf] }
 0x449   : > { %9195 = vmatpush.bf16.msra.mxu1 %v14059_v53  ;;  %9176 = vmatpush.bf16.msra.mxu0 %v13995_v1  ;;  %v15315_v53 = vld [vmem:[#allocation12 + $0x1a4] sm:$0xf]  ;;  %v14295_v55 = vor.u32 %v15510_v8, %v14294_v62  ;;  %v14150_v62 = vld [vmem:[#allocation12 + $0x630] sm:$0xf] }
 0x44b   : > { %9035 = vmatmul.bf16.gmra.mxu0 %v18065_v33  ;;  %9137 = vmatpush.bf16.msrb.mxu2 %v13875_v50  ;;  %v13907_v50 = vor.u32 %v15315_v53, %v13904_v10  ;;  %v15526_v53 = vld [vmem:[#allocation12 + $0x7d4] sm:$0xf0] }
 0x44c   : > { %9054 = vmatmul.bf16.gmra.mxu1 %v18073_v19  ;;  %9156 = vmatpush.bf16.msrb.mxu3 %v13939_v14  ;;  %v14016_v14 = vld [vmem:[#allocation12 + $0x288] sm:$0xf0] }
 0x44d   : > { %9196 = vmatpush.bf16.msra.mxu1 %v14051_v31  ;;  %9177 = vmatpush.bf16.msra.mxu0 %v13987_v9  ;;  %v8479_v31 = vunpack.c.h.b16 %v7497_v6  ;;  %v14019_v9 = vor.u32 %v15343_v27, %v14016_v14  ;;  %v15480_v27 = vld [vmem:[#allocation12 + $0x664] sm:$0xf0]  ;;  %v14238_v14 = vld [vmem:[#allocation12 + $0x6e0] sm:$0xf] }
 0x44f   : > { %9138 = vmatpush.bf16.msrb.mxu2 %v13867_v59  ;;  %v13835_v59 = vor.u32 %v15297_v35, %v13832_v39  ;;  %v18145_v46 = vpack.c.b16 %v18728_v0, %v8479_v31  ;;  %v14175_v39 = vor.u32 %v15480_v27, %v14174_v37  ;;  %v14326_v37 = vld [vmem:[#allocation12 + $0x790] sm:$0xf]  ;;  %v15518_v27 = vld [vmem:[#allocation12 + $0x794] sm:$0xf0] }
 0x450   : > { %9157 = vmatpush.bf16.msrb.mxu3 %v13931_v63  ;;  %v13899_v63 = vor.u32 %v15313_v40, %v13896_v28  ;;  %v15508_v40 = vld [vmem:[#allocation12 + $0x744] sm:$0xf0]  ;;  %v14350_v28 = vld [vmem:[#allocation12 + $0x7c0] sm:$0xf] }
 0x451   : > { %9197 = vmatpush.bf16.msra.mxu1 %v14043_v43  ;;  %9178 = vmatpush.bf16.msra.mxu0 %v13979_v32  ;;  %v14311_v43 = vor.u32 %v15514_v26, %v14310_v13  ;;  %v14166_v13 = vld [vmem:[#allocation12 + $0x650] sm:$0xf] }
 0x452   : > { %8997 = vmatmul.bf16.gmra.mxu2 %v18077_v4  ;;  %9016 = vmatmul.bf16.gmra.mxu3 %v18081_v34 }
 0x453   : > { %9139 = vmatpush.bf16.msrb.mxu2 %v13859_v61  ;;  %v15295_v61 = vld [vmem:[#allocation12 + $0x104] sm:$0xf] }
 0x454   : > { %9158 = vmatpush.bf16.msrb.mxu3 %v13923_v20  ;;  %v13827_v20 = vor.u32 %v15295_v61, %v13824_v16  ;;  %v15506_v61 = vld [vmem:[#allocation12 + $0x734] sm:$0xf0]  ;;  %v14342_v16 = vld [vmem:[#allocation12 + $0x7b0] sm:$0xf] }
 0x455   : > { %9198 = vmatpush.bf16.msra.mxu1 %v14035_v36  ;;  %9179 = vmatpush.bf16.msra.mxu0 %v13971_v17  ;;  %v14366_v36 = vld [vmem:[#allocation12 + $0x7e0] sm:$0xf]  ;;  %v15482_v17 = vld [vmem:[#allocation12 + $0x674] sm:$0xf0] }
 0x456   : > { %v14367_v3 = vor.u32 %v15528_v18, %v14366_v36  ;;  %v14222_v36 = vld [vmem:[#allocation12 + $0x6c0] sm:$0xf] }
 0x457   : > { %9140 = vmatpush.bf16.msrb.mxu2 %v13851_v12  ;;  %v14183_v12 = vor.u32 %v15482_v17, %v14182_v7  ;;  %v15492_v7 = vld [vmem:[#allocation12 + $0x6c4] sm:$0xf0] }
 0x458   : > { %v18131_v2 = vpop.f32.mrf.mxu0  ;;  %9159 = vmatpush.bf16.msrb.mxu3 %v13915_v45  ;;  %v14246_v45 = vld [vmem:[#allocation12 + $0x6f0] sm:$0xf] }
 0x459   : > { %v18133_v1 = vpop.f32.mrf.mxu1  ;;  %9199 = vmatpush.bf16.msra.mxu1 %v14027_v42  ;;  %9180 = vmatpush.bf16.msra.mxu0 %v13963_v51  ;;  %v14247_v51 = vor.u32 %v15498_v24, %v14246_v45  ;;  %v14334_v45 = vld [vmem:[#allocation12 + $0x7a0] sm:$0xf]  ;;  %v15520_v24 = vld [vmem:[#allocation12 + $0x7a4] sm:$0xf0] }
 0x45b   : > { %9106 = vmatmul.bf16.vlgmr.msrb.gmra.mxu0 %v18119_v25  ;;  %9141 = vmatpush.bf16.msrb.mxu2 %v13843_v48  ;;  %v14374_v25 = vld [vmem:[#allocation12 + $0x7f0] sm:$0xf]  ;;  %v14359_v48 = vor.u32 %v15526_v53, %v14358_v21  ;;  %v15490_v53 = vld [vmem:[#allocation12 + $0x6b4] sm:$0xf0] }
 0x45c   : > { %9125 = vmatmul.bf16.vlgmr.msrb.gmra.mxu1 %v18123_v54  ;;  %9160 = vmatpush.bf16.msrb.mxu3 %v13907_v50  ;;  %v14375_v44 = vor.u32 %v15530_v58, %v14374_v25  ;;  %v18727_v54 = vunpack.c.l.b16 %v17913_v56  ;;  %v15512_v56 = vld [vmem:[#allocation12 + $0x764] sm:$0xf0]  ;;  %v14230_v58 = vld [vmem:[#allocation12 + $0x6d0] sm:$0xf] }
 0x45d   : > { %9200 = vmatpush.bf16.msra.mxu1 %v14019_v9  ;;  %9181 = vmatpush.bf16.msra.mxu0 %v13955_v22  ;;  %v14303_v29 = vor.u32 %v15512_v56, %v14302_v11  ;;  %v14286_v9 = vld [vmem:[#allocation12 + $0x740] sm:$0xf]  ;;  %v15476_v56 = vld [vmem:[#allocation12 + $0x644] sm:$0xf0]  ;;  %v14214_v21 = vld [vmem:[#allocation12 + $0x6b0] sm:$0xf] }
 0x45e   : > { %v18141_v60 = vpack.c.b16 %v18727_v54, %v8478_v47  ;;  %v15496_v47 = vld [vmem:[#allocation12 + $0x6e4] sm:$0xf0]  ;;  %v14158_v11 = vld [vmem:[#allocation12 + $0x640] sm:$0xf] }
 0x45f   : > { %9142 = vmatpush.bf16.msrb.mxu2 %v13835_v59  ;;  %v14239_v22 = vor.u32 %v15496_v47, %v14238_v14  ;;  %v15478_v59 = vld [vmem:[#allocation12 + $0x654] sm:$0xf0]  ;;  %v14159_v18 = vor.u32 %v15476_v56, %v14158_v11 }
 0x460   : > { %v18137_v32 = vpop.f32.mrf.mxu0  ;;  %9161 = vmatpush.bf16.msrb.mxu3 %v13899_v63  ;;  %v14287_v63 = vor.u32 %v15508_v40, %v14286_v9  ;;  %v14167_v25 = vor.u32 %v15478_v59, %v14166_v13  ;;  %v14142_v40 = vld [vmem:[#allocation12 + $0x620] sm:$0xf] }
 0x461   : > { %9918 = vmatpush.bf16.msrb.mxu1 %v14375_v44  ;;  %v18147_v57 = vpop.f32.mrf.mxu1  ;;  %9899 = vmatpush.bf16.msrb.mxu0 %v14311_v43  ;;  %v15494_v44 = vld [vmem:[#allocation12 + $0x6d4] sm:$0xf0] }
 0x462   : > { %9068 = vmatmul.bf16.vlgmr.msra.gmra.mxu2 %v18141_v60  ;;  %9087 = vmatmul.bf16.vlgmr.msra.gmra.mxu3 %v18145_v46  ;;  %v14231_v0 = vor.u32 %v15494_v44, %v14230_v58 }
 0x463   : > { %9143 = vmatpush.bf16.msrb.mxu2 %v13827_v20 }
 0x464   : > { %9162 = vmatpush.bf16.msrb.mxu3 %v13891_v38 }
 0x465   : > { %v8252_v5 = vpop.f32.mrf.mxu2  ;;  %v8271_v42 = vpop.f32.mrf.mxu3  ;;  %9919 = vmatpush.bf16.msrb.mxu1 %v14367_v3  ;;  %9900 = vmatpush.bf16.msrb.mxu0 %v14303_v29  ;;  %v14270_v3 = vld [vmem:[#allocation12 + $0x720] sm:$0xf] }
 0x466   : > { %v8272_v6 = vadd.f32 %v8271_v42, %v8252_v5  ;;  %v15474_v5 = vld [vmem:[#allocation12 + $0x634] sm:$0xf0] }
 0x467   : > { %9861 = vmatpush.bf16.msra.mxu2 %v14183_v12  ;;  %v15504_v12 = vld [vmem:[#allocation12 + $0x724] sm:$0xf0]  ;;  %v14151_v8 = vor.u32 %v15474_v5, %v14150_v62 }
 0x468   : > { %9880 = vmatpush.bf16.msra.mxu3 %v14247_v51  ;;  %v8291_v10 = vadd.f32 %v18131_v2, %v8272_v6  ;;  %v18152_v50 = vpop.f32.mrf.mxu0  ;;  %v15524_v2 = vld [vmem:[#allocation12 + $0x7c4] sm:$0xf0]  ;;  %v14271_v42 = vor.u32 %v15504_v12, %v14270_v3  ;;  %v14335_v51 = vor.u32 %v15520_v24, %v14334_v45  ;;  %v14262_v6 = vld [vmem:[#allocation12 + $0x710] sm:$0xf]  ;;  %v14190_v24 = vld [vmem:[#allocation12 + $0x680] sm:$0xf] }
 0x469   : > { %v18154_v35 = vpop.f32.mrf.mxu1  ;;  %9920 = vmatpush.bf16.msrb.mxu1 %v14359_v48  ;;  %9901 = vmatpush.bf16.msrb.mxu0 %v14295_v55  ;;  %v14351_v26 = vor.u32 %v15524_v2, %v14350_v28  ;;  %v15502_v55 = vld [vmem:[#allocation12 + $0x714] sm:$0xf0]  ;;  %v15472_v28 = vld [vmem:[#allocation12 + $0x624] sm:$0xf0]  ;;  %v14206_v2 = vld [vmem:[#allocation12 + $0x6a0] sm:$0xf] }
 0x46a   : > { %v18157_v31 = vadd.f32 %v18133_v1, %v8291_v10  ;;  %v14278_v1 = vld [vmem:[#allocation12 + $0x730] sm:$0xf]  ;;  %v14263_v9 = vor.u32 %v15502_v55, %v14262_v6  ;;  %v14143_v59 = vor.u32 %v15472_v28, %v14142_v40  ;;  %v15468_v45 = vld [vmem:[#allocation12 + $0x604] sm:$0xf0]  ;;  %v15495_v6 = vld [vmem:[#allocation12 + $0x6e4] sm:$0xf] }
 0x46b   : > { %9111 = vmatmul.bf16.gmra.mxu0 %v18077_v4  ;;  %9862 = vmatpush.bf16.msra.mxu2 %v14175_v39  ;;  %v15522_v4 = vld [vmem:[#allocation12 + $0x7b4] sm:$0xf0]  ;;  %v14279_v38 = vor.u32 %v15506_v61, %v14278_v1  ;;  %v14327_v39 = vor.u32 %v15518_v27, %v14326_v37  ;;  %v14502_v27 = vld [vmem:[#allocation12 + $0x8f0] sm:$0xf]  ;;  %v14232_v40 = vld [vmem:[#allocation12 + $0x6d8] sm:$0xf0] }
 0x46c   : > { %9130 = vmatmul.bf16.gmra.mxu1 %v18081_v34  ;;  %9881 = vmatpush.bf16.msra.mxu3 %v14239_v22  ;;  %v14343_v20 = vor.u32 %v15522_v4, %v14342_v16  ;;  %v15470_v61 = vld [vmem:[#allocation12 + $0x614] sm:$0xf0]  ;;  %v14198_v16 = vld [vmem:[#allocation12 + $0x690] sm:$0xf] }
 0x46d   : > { %v8254_v43 = vpop.f32.mrf.mxu2  ;;  %v8273_v54 = vpop.f32.mrf.mxu3  ;;  %9921 = vmatpush.bf16.msrb.mxu1 %v14351_v26  ;;  %9902 = vmatpush.bf16.msrb.mxu0 %v14287_v63  ;;  %v15488_v63 = vld [vmem:[#allocation12 + $0x6a4] sm:$0xf0]  ;;  %v14254_v26 = vld [vmem:[#allocation12 + $0x700] sm:$0xf]  ;;  %v15486_v4 = vld [vmem:[#allocation12 + $0x694] sm:$0xf0] }
 0x46e   : > { %v8274_v52 = vadd.f32 %v8273_v54, %v8254_v43  ;;  %v14207_v1 = vor.u32 %v15488_v63, %v14206_v2  ;;  %v14318_v43 = vld [vmem:[#allocation12 + $0x780] sm:$0xf]  ;;  %v14134_v54 = vld [vmem:[#allocation12 + $0x610] sm:$0xf]  ;;  %v15546_v37 = vld [vmem:[#allocation12 + $0x874] sm:$0xf0] }
 0x46f   : > { %9863 = vmatpush.bf16.msra.mxu2 %v14167_v25  ;;  %v15500_v25 = vld [vmem:[#allocation12 + $0x704] sm:$0xf0]  ;;  %v14135_v56 = vor.u32 %v15470_v61, %v14134_v54  ;;  %v14160_v61 = vld [vmem:[#allocation12 + $0x648] sm:$0xf0] }
 0x470   : > { %v8293_v34 = vadd.f32 %v18137_v32, %v8274_v52  ;;  %v18162_v49 = vpop.f32.mrf.mxu0  ;;  %9882 = vmatpush.bf16.msra.mxu3 %v14231_v0  ;;  %v14223_v32 = vor.u32 %v15492_v7, %v14222_v36  ;;  %v14255_v52 = vor.u32 %v15500_v25, %v14254_v26  ;;  %v14199_v36 = vor.u32 %v15486_v4, %v14198_v16 }
 0x471   : > { %v18164_v29 = vpop.f32.mrf.mxu1  ;;  %9922 = vmatpush.bf16.msrb.mxu1 %v14343_v20  ;;  %9903 = vmatpush.bf16.msrb.mxu0 %v14279_v38  ;;  %v15481_v20 = vld [vmem:[#allocation12 + $0x674] sm:$0xf] }
 0x472   : > { %9073 = vmatmul.bf16.gmra.mxu2 %v18085_v30  ;;  %9092 = vmatmul.bf16.gmra.mxu3 %v18089_v23  ;;  %v18169_v17 = vadd.f32 %v18147_v57, %v8293_v34  ;;  %v14215_v57 = vor.u32 %v15490_v53, %v14214_v21  ;;  %v14184_v34 = vld [vmem:[#allocation12 + $0x678] sm:$0xf0]  ;;  %v15497_v38 = vld [vmem:[#allocation12 + $0x6f4] sm:$0xf] }
 0x473   : > { %9864 = vmatpush.bf16.msra.mxu2 %v14159_v18  ;;  %v14248_v18 = vld [vmem:[#allocation12 + $0x6f8] sm:$0xf0] }
 0x474   : > { %9883 = vmatpush.bf16.msra.mxu3 %v14223_v32  ;;  %v14251_v7 = vor.u32 %v15497_v38, %v14248_v18  ;;  %v14187_v32 = vor.u32 %v15481_v20, %v14184_v34  ;;  %v14224_v20 = vld [vmem:[#allocation12 + $0x6c8] sm:$0xf0]  ;;  %v14422_v34 = vld [vmem:[#allocation12 + $0x850] sm:$0xf]  ;;  %v15558_v18 = vld [vmem:[#allocation12 + $0x8d4] sm:$0xf0] }
 0x475   : > { %v8257_v48 = vpop.f32.mrf.mxu2  ;;  %v8276_v10 = vpop.f32.mrf.mxu3  ;;  %9923 = vmatpush.bf16.msrb.mxu1 %v14335_v51  ;;  %9904 = vmatpush.bf16.msrb.mxu0 %v14271_v42  ;;  %v15484_v42 = vld [vmem:[#allocation12 + $0x684] sm:$0xf0]  ;;  %v15479_v51 = vld [vmem:[#allocation12 + $0x664] sm:$0xf] }
 0x476   : > { %v8277_v14 = vadd.f32 %v8276_v10, %v8257_v48  ;;  %v14191_v53 = vor.u32 %v15484_v42, %v14190_v24  ;;  %v14240_v48 = vld [vmem:[#allocation12 + $0x6e8] sm:$0xf0]  ;;  %v14438_v10 = vld [vmem:[#allocation12 + $0x870] sm:$0xf] }
 0x477   : > { %9865 = vmatpush.bf16.msra.mxu2 %v14151_v8  ;;  %v14176_v8 = vld [vmem:[#allocation12 + $0x668] sm:$0xf0]  ;;  %v14243_v55 = vor.u32 %v15495_v6, %v14240_v48  ;;  %v15556_v6 = vld [vmem:[#allocation12 + $0x8c4] sm:$0xf0]  ;;  %v15471_v48 = vld [vmem:[#allocation12 + $0x624] sm:$0xf] }
 0x478   : > { %v8296_v47 = vadd.f32 %v18152_v50, %v8277_v14  ;;  %v8366_v22 = vpop.f32.mrf.mxu0  ;;  %9884 = vmatpush.bf16.msra.mxu3 %v14215_v57  ;;  %v15516_v50 = vld [vmem:[#allocation12 + $0x784] sm:$0xf0]  ;;  %v14179_v57 = vor.u32 %v15479_v51, %v14176_v8  ;;  %v15562_v14 = vld [vmem:[#allocation12 + $0x8f4] sm:$0xf0]  ;;  %v14478_v8 = vld [vmem:[#allocation12 + $0x8c0] sm:$0xf] }
 0x479   : > { %v8385_v13 = vpop.f32.mrf.mxu1  ;;  %9924 = vmatpush.bf16.msrb.mxu1 %v14327_v39  ;;  %v14319_v0 = vor.u32 %v15516_v50, %v14318_v43  ;;  %9905 = vmatpush.bf16.msrb.mxu0 %v14263_v9  ;;  %v14439_v39 = vor.u32 %v15546_v37, %v14438_v10  ;;  %v15544_v43 = vld [vmem:[#allocation12 + $0x864] sm:$0xf0]  ;;  %v14494_v50 = vld [vmem:[#allocation12 + $0x8e0] sm:$0xf]  ;;  %v14144_v10 = vld [vmem:[#allocation12 + $0x628] sm:$0xf0] }
 0x47a   : > { %v18172_v58 = vadd.f32 %v8385_v13, %v8366_v22  ;;  %v18175_v44 = vadd.f32 %v18154_v35, %v8296_v47  ;;  %v14503_v47 = vor.u32 %v15562_v14, %v14502_v27  ;;  %v15493_v22 = vld [vmem:[#allocation12 + $0x6d4] sm:$0xf]  ;;  %v15540_v51 = vld [vmem:[#allocation12 + $0x844] sm:$0xf0]  ;;  %v14147_v37 = vor.u32 %v15471_v48, %v14144_v10  ;;  %v15487_v27 = vld [vmem:[#allocation12 + $0x6a4] sm:$0xf] }
 0x47b   : > { %9182 = vmatmul.bf16.vlgmr.msra.gmra.mxu0 %v18141_v60  ;;  %9866 = vmatpush.bf16.msra.mxu2 %v14143_v59  ;;  %v14235_v2 = vor.u32 %v15493_v22, %v14232_v40  ;;  %v14208_v14 = vld [vmem:[#allocation12 + $0x6a8] sm:$0xf0]  ;;  %v15538_v22 = vld [vmem:[#allocation12 + $0x834] sm:$0xf0]  ;;  %v15469_v40 = vld [vmem:[#allocation12 + $0x614] sm:$0xf] }
 0x47c   : > { %9201 = vmatmul.bf16.vlgmr.msra.gmra.mxu1 %v18145_v46  ;;  %9885 = vmatpush.bf16.msra.mxu3 %v14207_v1  ;;  %v14126_v46 = vld [vmem:[#allocation12 + $0x600] sm:$0xf]  ;;  %v15455_v48 = vld [vmem:[#allocation3 + $0x34] sm:$0xf] }
 0x47d   : > { %v8259_v35 = vpop.f32.mrf.mxu2  ;;  %v8278_v11 = vpop.f32.mrf.mxu3  ;;  %9925 = vmatpush.bf16.msrb.mxu1 %v14319_v0  ;;  %9906 = vmatpush.bf16.msrb.mxu0 %v14255_v52  ;;  %v14127_v5 = vor.u32 %v15468_v45, %v14126_v46  ;;  %v14430_v1 = vld [vmem:[#allocation12 + $0x860] sm:$0xf]  ;;  %v15475_v0 = vld [vmem:[#allocation12 + $0x644] sm:$0xf] }
 0x47e   : > { %v8279_v60 = vadd.f32 %v8278_v11, %v8259_v35  ;;  %v14431_v54 = vor.u32 %v15544_v43, %v14430_v1  ;;  %v14163_v4 = vor.u32 %v15475_v0, %v14160_v61  ;;  %v15491_v52 = vld [vmem:[#allocation12 + $0x6c4] sm:$0xf] }
 0x47f   : > { %9867 = vmatpush.bf16.msra.mxu2 %v14135_v56  ;;  %v14227_v11 = vor.u32 %v15491_v52, %v14224_v20  ;;  %v15542_v56 = vld [vmem:[#allocation12 + $0x854] sm:$0xf0]  ;;  %v15536_v52 = vld [vmem:[#allocation12 + $0x824] sm:$0xf0]  ;;  %v14462_v20 = vld [vmem:[#allocation12 + $0x8a0] sm:$0xf] }
 0x480   : > { %v8298_v3 = vadd.f32 %v18162_v49, %v8279_v60  ;;  %v8368_v12 = vpop.f32.mrf.mxu0  ;;  %9886 = vmatpush.bf16.msra.mxu3 %v14199_v36  ;;  %v14486_v36 = vld [vmem:[#allocation12 + $0x8d0] sm:$0xf]  ;;  %v14423_v60 = vor.u32 %v15542_v56, %v14422_v34  ;;  %v15458_v34 = vld [vmem:[#allocation3 + $0x44] sm:$0xf0] }
 0x481   : > { %9994 = vmatpush.bf16.msra.mxu1 %v14251_v7  ;;  %v8387_v62 = vpop.f32.mrf.mxu1  ;;  %9975 = vmatpush.bf16.msra.mxu0 %v14187_v32  ;;  %v15473_v7 = vld [vmem:[#allocation12 + $0x634] sm:$0xf]  ;;  %v14152_v32 = vld [vmem:[#allocation12 + $0x638] sm:$0xf0]  ;;  %v15467_v56 = vld [vmem:[#allocation12 + $0x604] sm:$0xf] }
 0x482   : > { %v18180_v21 = vadd.f32 %v8387_v62, %v8368_v12  ;;  %9144 = vmatmul.bf16.vlgmr.msrb.gmra.mxu2 %v18109_v41  ;;  %9163 = vmatmul.bf16.vlgmr.msrb.gmra.mxu3 %v18113_v15  ;;  %v18185_v49 = vadd.f32 %v18164_v29, %v8298_v3  ;;  %v15477_v15 = vld [vmem:[#allocation12 + $0x654] sm:$0xf]  ;;  %v14168_v29 = vld [vmem:[#allocation12 + $0x658] sm:$0xf0]  ;;  %v14487_v3 = vor.u32 %v15558_v18, %v14486_v36  ;;  %v14128_v36 = vld [vmem:[#allocation12 + $0x608] sm:$0xf0] }
 0x483   : > { %9868 = vmatpush.bf16.msra.mxu2 %v14127_v5  ;;  %v14171_v63 = vor.u32 %v15477_v15, %v14168_v29  ;;  %v14216_v12 = vld [vmem:[#allocation12 + $0x6b8] sm:$0xf0]  ;;  %v14155_v24 = vor.u32 %v15473_v7, %v14152_v32  ;;  %v14192_v7 = vld [vmem:[#allocation12 + $0x688] sm:$0xf0]  ;;  %v14390_v32 = vld [vmem:[#allocation12 + $0x810] sm:$0xf] }
 0x484   : > { %9887 = vmatpush.bf16.msra.mxu3 %v14191_v53 }
 0x485   : > { %v8328_v9 = vpop.f32.mrf.mxu2  ;;  %v8347_v41 = vpop.f32.mrf.mxu3  ;;  %9995 = vmatpush.bf16.msra.mxu1 %v14243_v55  ;;  %9976 = vmatpush.bf16.msra.mxu0 %v14179_v57  ;;  %v15459_v57 = vld [vmem:[#allocation3 + $0x4c] sm:$0xf0]  ;;  %v14479_v55 = vor.u32 %v15556_v6, %v14478_v8  ;;  %v14440_v8 = vld [vmem:[#allocation12 + $0x878] sm:$0xf0] }
 0x486   : > { %v8329_v28 = vadd.f32 %v8328_v9, %v18157_v31  ;;  %v15560_v31 = vld [vmem:[#allocation12 + $0x8e4] sm:$0xf0]  ;;  %v14470_v9 = vld [vmem:[#allocation12 + $0x8b0] sm:$0xf]  ;;  %v14078_v6 = vld [vmem:[#allocation3 + $0x30] sm:$0xf] }
 0x487   : > { %9937 = vmatpush.bf16.msrb.mxu2 %v14439_v39  ;;  %v14495_v16 = vor.u32 %v15560_v31, %v14494_v50  ;;  %v14406_v39 = vld [vmem:[#allocation12 + $0x830] sm:$0xf]  ;;  %v14086_v50 = vld [vmem:[#allocation3 + $0x38] sm:$0xf] }
 0x488   : > { %9956 = vmatpush.bf16.msrb.mxu3 %v14503_v47  ;;  %v18188_v13 = vadd.f32 %v8347_v41, %v8329_v28  ;;  %v8371_v59 = vpop.f32.mrf.mxu0  ;;  %v15554_v41 = vld [vmem:[#allocation12 + $0x8b4] sm:$0xf0]  ;;  %v14407_v29 = vor.u32 %v15538_v22, %v14406_v39  ;;  %v14136_v28 = vld [vmem:[#allocation12 + $0x618] sm:$0xf0]  ;;  %v18208_v0 = vor.u32 %v15459_v57, %v14086_v50  ;;  %v14446_v22 = vld [vmem:[#allocation12 + $0x880] sm:$0xf] }
 0x489   : > { %v8390_v26 = vpop.f32.mrf.mxu1  ;;  %9996 = vmatpush.bf16.msra.mxu1 %v14235_v2  ;;  %9977 = vmatpush.bf16.msra.mxu0 %v14171_v63  ;;  %v15485_v2 = vld [vmem:[#allocation12 + $0x694] sm:$0xf]  ;;  %v14471_v63 = vor.u32 %v15554_v41, %v14470_v9  ;;  %v15548_v41 = vld [vmem:[#allocation12 + $0x884] sm:$0xf0] }
 0x48a   : > { %v18190_v25 = vadd.f32 %v8390_v26, %v8371_v59  ;;  %v14088_v59 = vld [vmem:[#allocation3 + $0x50] sm:$0xf0]  ;;  %v14200_v26 = vld [vmem:[#allocation12 + $0x698] sm:$0xf0]  ;;  %v15513_v50 = vld [vmem:[#allocation12 + $0x774] sm:$0xf] }
 0x48b   : > { %9187 = vmatmul.bf16.gmra.mxu0 %v18085_v30  ;;  %9938 = vmatpush.bf16.msrb.mxu2 %v14431_v54  ;;  %v14139_v54 = vor.u32 %v15469_v40, %v14136_v28  ;;  %v14203_v61 = vor.u32 %v15485_v2, %v14200_v26  ;;  %v14110_v40 = vld [vmem:[#allocation3 + $0x68] sm:$0xf]  ;;  %v15465_v28 = vld [vmem:[#allocation3 + $0x7c] sm:$0xf0]  ;;  %v14447_v2 = vor.u32 %v15548_v41, %v14446_v22  ;;  %v14496_v26 = vld [vmem:[#allocation12 + $0x8e8] sm:$0xf0] }
 0x48c   : > { %9206 = vmatmul.bf16.gmra.mxu1 %v18089_v23  ;;  %9957 = vmatpush.bf16.msrb.mxu3 %v14495_v16  ;;  %v15489_v23 = vld [vmem:[#allocation12 + $0x6b4] sm:$0xf]  ;;  %v15555_v22 = vld [vmem:[#allocation12 + $0x8c4] sm:$0xf] }
 0x48d   : > { %v8330_v38 = vpop.f32.mrf.mxu2  ;;  %v8349_v35 = vpop.f32.mrf.mxu3  ;;  %9997 = vmatpush.bf16.msra.mxu1 %v14227_v11  ;;  %9978 = vmatpush.bf16.msra.mxu0 %v14163_v4  ;;  %v14219_v62 = vor.u32 %v15489_v23, %v14216_v12  ;;  %v14398_v4 = vld [vmem:[#allocation12 + $0x820] sm:$0xf]  ;;  %v15552_v11 = vld [vmem:[#allocation12 + $0x8a4] sm:$0xf0]  ;;  %v15509_v41 = vld [vmem:[#allocation12 + $0x754] sm:$0xf] }
 0x48e   : > { %v8331_v30 = vadd.f32 %v8330_v38, %v18169_v17  ;;  %v14414_v17 = vld [vmem:[#allocation12 + $0x840] sm:$0xf]  ;;  %v14080_v38 = vld [vmem:[#allocation3 + $0x48] sm:$0xf0]  ;;  %v14463_v18 = vor.u32 %v15552_v11, %v14462_v20  ;;  %v14376_v20 = vld [vmem:[#allocation12 + $0x7f8] sm:$0xf0] }
 0x48f   : > { %9939 = vmatpush.bf16.msrb.mxu2 %v14423_v60  ;;  %v14415_v53 = vor.u32 %v15540_v51, %v14414_v17  ;;  %v15483_v60 = vld [vmem:[#allocation12 + $0x684] sm:$0xf]  ;;  %v15545_v51 = vld [vmem:[#allocation12 + $0x874] sm:$0xf]  ;;  %v18223_v39 = vor.u32 %v15455_v48, %v14080_v38 }
 0x490   : > { %v18195_v46 = vadd.f32 %v8349_v35, %v8331_v30  ;;  %v8373_v45 = vpop.f32.mrf.mxu0  ;;  %9958 = vmatpush.bf16.msrb.mxu3 %v14487_v3  ;;  %v14399_v35 = vor.u32 %v15536_v52, %v14398_v4  ;;  %v14131_v30 = vor.u32 %v15467_v56, %v14128_v36  ;;  %v14195_v12 = vor.u32 %v15483_v60, %v14192_v7  ;;  %v14312_v4 = vld [vmem:[#allocation12 + $0x778] sm:$0xf0]  ;;  %v15529_v52 = vld [vmem:[#allocation12 + $0x7f4] sm:$0xf] }
 0x491   : > { %v8392_v5 = vpop.f32.mrf.mxu1  ;;  %9998 = vmatpush.bf16.msra.mxu1 %v14219_v62  ;;  %9979 = vmatpush.bf16.msra.mxu0 %v14155_v24  ;;  %v14454_v24 = vld [vmem:[#allocation12 + $0x890] sm:$0xf]  ;;  %v15550_v62 = vld [vmem:[#allocation12 + $0x894] sm:$0xf0]  ;;  %v18215_v57 = vor.u32 %v15545_v51, %v14440_v8  ;;  %v14315_v38 = vor.u32 %v15513_v50, %v14312_v4  ;;  %v15541_v11 = vld [vmem:[#allocation12 + $0x854] sm:$0xf] }
 0x492   : > { %v18197_v42 = vadd.f32 %v8392_v5, %v8373_v45  ;;  %9149 = vmatmul.bf16.gmra.mxu2 %v18065_v33  ;;  %9168 = vmatmul.bf16.gmra.mxu3 %v18073_v19  ;;  %v14211_v19 = vor.u32 %v15487_v27, %v14208_v14  ;;  %v15534_v45 = vld [vmem:[#allocation12 + $0x814] sm:$0xf0]  ;;  %v14455_v10 = vor.u32 %v15550_v62, %v14454_v24  ;;  %v14424_v56 = vld [vmem:[#allocation12 + $0x858] sm:$0xf0]  ;;  %v15557_v36 = vld [vmem:[#allocation12 + $0x8d4] sm:$0xf] }
 0x493   : > { %9940 = vmatpush.bf16.msrb.mxu2 %v14415_v53  ;;  %v14391_v17 = vor.u32 %v15534_v45, %v14390_v32  ;;  %v15561_v53 = vld [vmem:[#allocation12 + $0x8f4] sm:$0xf]  ;;  %v18221_v14 = vor.u32 %v15458_v34, %v14078_v6  ;;  %v14488_v60 = vld [vmem:[#allocation12 + $0x8d8] sm:$0xf0]  ;;  %v15511_v62 = vld [vmem:[#allocation12 + $0x764] sm:$0xf] }
 0x494   : > { %9959 = vmatpush.bf16.msrb.mxu3 %v14479_v55  ;;  %v14504_v55 = vld [vmem:[#allocation12 + $0x8f8] sm:$0xf0]  ;;  %v15464_v8 = vld [vmem:[#allocation3 + $0x74] sm:$0xf0]  ;;  %v14104_v6 = vld [vmem:[#allocation3 + $0x78] sm:$0xf0] }
 0x495   : > { %v8333_v47 = vpop.f32.mrf.mxu2  ;;  %v8352_v33 = vpop.f32.mrf.mxu3  ;;  %9999 = vmatpush.bf16.msra.mxu1 %v14211_v19  ;;  %9980 = vmatpush.bf16.msra.mxu0 %v14147_v37  ;;  %v15532_v19 = vld [vmem:[#allocation12 + $0x804] sm:$0xf0]  ;;  %v14102_v51 = vld [vmem:[#allocation3 + $0x60] sm:$0xf] }
 0x496   : > { %v8334_v15 = vadd.f32 %v8333_v47, %v18175_v44  ;;  %v15456_v44 = vld [vmem:[#allocation3 + $0x3c] sm:$0xf]  ;;  %v14408_v4 = vld [vmem:[#allocation12 + $0x838] sm:$0xf0] }
 0x497   : > { %9941 = vmatpush.bf16.msrb.mxu2 %v14407_v29  ;;  %v18210_v16 = vor.u32 %v15456_v44, %v14088_v59  ;;  %v14432_v29 = vld [vmem:[#allocation12 + $0x868] sm:$0xf0] }
 0x498   : > { %v18202_v1 = vadd.f32 %v8352_v33, %v8334_v15  ;;  %v18204_v43 = vpop.f32.mrf.mxu0  ;;  %9960 = vmatpush.bf16.msrb.mxu3 %v14471_v63  ;;  %v14382_v33 = vld [vmem:[#allocation12 + $0x800] sm:$0xf]  ;;  %v15543_v15 = vld [vmem:[#allocation12 + $0x864] sm:$0xf] }
 0x499   : > { %v18206_v31 = vpop.f32.mrf.mxu1  ;;  %9981 = vmatpush.bf16.msra.mxu0 %v14139_v54  ;;  %10000 = vmatpush.bf16.msra.mxu1 %v14203_v61  ;;  %v14383_v9 = vor.u32 %v15532_v19, %v14382_v33  ;;  %v18233_v59 = vor.u32 %v15543_v15, %v14432_v29  ;;  %v15559_v63 = vld [vmem:[#allocation12 + $0x8e4] sm:$0xf]  ;;  %v14416_v33 = vld [vmem:[#allocation12 + $0x848] sm:$0xf0] }
 0x49a   : > { %v18235_v61 = vor.u32 %v15559_v63, %v14496_v26  ;;  %v15525_v63 = vld [vmem:[#allocation12 + $0x7d4] sm:$0xf]  ;;  %v14360_v26 = vld [vmem:[#allocation12 + $0x7d8] sm:$0xf0] }
 0x49b   : > { %9907 = vmatmul.bf16.vlgmr.msrb.gmra.mxu0 %v18208_v0  ;;  %9942 = vmatpush.bf16.msrb.mxu2 %v14399_v35  ;;  %v14379_v35 = vor.u32 %v15529_v52, %v14376_v20  ;;  %v15553_v52 = vld [vmem:[#allocation12 + $0x8b4] sm:$0xf]  ;;  %v14363_v20 = vor.u32 %v15525_v63, %v14360_v26 }
 0x49c   : > { %9926 = vmatmul.bf16.vlgmr.msrb.gmra.mxu1 %v18210_v16  ;;  %9961 = vmatpush.bf16.msrb.mxu3 %v14463_v18  ;;  %v15462_v18 = vld [vmem:[#allocation3 + $0x6c] sm:$0xf]  ;;  %v15549_v63 = vld [vmem:[#allocation12 + $0x894] sm:$0xf] }
 0x49d   : > { %v8335_v23 = vpop.f32.mrf.mxu2  ;;  %v8354_v3 = vpop.f32.mrf.mxu3  ;;  %9982 = vmatpush.bf16.msra.mxu0 %v14131_v30  ;;  %10001 = vmatpush.bf16.msra.mxu1 %v14195_v12  ;;  %v14112_v30 = vld [vmem:[#allocation3 + $0x80] sm:$0xf0]  ;;  %v18248_v12 = vor.u32 %v15557_v36, %v14488_v60  ;;  %v14288_v60 = vld [vmem:[#allocation12 + $0x748] sm:$0xf0] }
 0x49e   : > { %v8336_v5 = vadd.f32 %v8335_v23, %v18185_v49  ;;  %v18225_v49 = vor.u32 %v15561_v53, %v14504_v55  ;;  %v18242_v23 = vor.u32 %v15541_v11, %v14424_v56  ;;  %v18251_v24 = vor.u32 %v15462_v18, %v14112_v30  ;;  %v15461_v53 = vld [vmem:[#allocation3 + $0x64] sm:$0xf]  ;;  %v15539_v55 = vld [vmem:[#allocation12 + $0x844] sm:$0xf] }
 0x49f   : > { %9943 = vmatpush.bf16.msrb.mxu2 %v14391_v17  ;;  %v15527_v17 = vld [vmem:[#allocation12 + $0x7e4] sm:$0xf]  ;;  %v18256_v19 = vor.u32 %v15539_v55, %v14416_v33  ;;  %v18269_v11 = vor.u32 %v15461_v53, %v14104_v6  ;;  %v14464_v6 = vld [vmem:[#allocation12 + $0x8a8] sm:$0xf0] }
 0x4a0   : > { %v18217_v37 = vadd.f32 %v8354_v3, %v8336_v5  ;;  %v18219_v27 = vpop.f32.mrf.mxu0  ;;  %9962 = vmatpush.bf16.msrb.mxu3 %v14455_v10  ;;  %v18246_v3 = vor.u32 %v15465_v28, %v14110_v40  ;;  %v14304_v5 = vld [vmem:[#allocation12 + $0x768] sm:$0xf0]  ;;  %v15507_v30 = vld [vmem:[#allocation12 + $0x744] sm:$0xf] }
 0x4a1   : > { %v18227_v47 = vpop.f32.mrf.mxu1  ;;  %10051 = vmatpush.bf16.msrb.mxu0 %v18215_v57  ;;  %10070 = vmatpush.bf16.msrb.mxu1 %v18225_v49  ;;  %v14307_v48 = vor.u32 %v15511_v62, %v14304_v5  ;;  %v14368_v10 = vld [vmem:[#allocation12 + $0x7e8] sm:$0xf0]  ;;  %v15535_v5 = vld [vmem:[#allocation12 + $0x824] sm:$0xf] }
 0x4a2   : > { %9869 = vmatmul.bf16.vlgmr.msra.gmra.mxu2 %v18221_v14  ;;  %9888 = vmatmul.bf16.vlgmr.msra.gmra.mxu3 %v18223_v39  ;;  %v14352_v62 = vld [vmem:[#allocation12 + $0x7c8] sm:$0xf0]  ;;  %v15551_v53 = vld [vmem:[#allocation12 + $0x8a4] sm:$0xf] }
 0x4a3   : > { %9944 = vmatpush.bf16.msrb.mxu2 %v14383_v9  ;;  %v14480_v9 = vld [vmem:[#allocation12 + $0x8c8] sm:$0xf0]  ;;  %v18289_v33 = vor.u32 %v15551_v53, %v14464_v6  ;;  %v15501_v53 = vld [vmem:[#allocation12 + $0x714] sm:$0xf] }
 0x4a4   : > { %9963 = vmatpush.bf16.msrb.mxu3 %v14447_v2  ;;  %v18262_v28 = vor.u32 %v15555_v22, %v14480_v9  ;;  %v14296_v2 = vld [vmem:[#allocation12 + $0x758] sm:$0xf0]  ;;  %v15521_v22 = vld [vmem:[#allocation12 + $0x7b4] sm:$0xf] }
 0x4a5   : > { %v8404_v54 = vpop.f32.mrf.mxu2  ;;  %v8423_v44 = vpop.f32.mrf.mxu3  ;;  %10052 = vmatpush.bf16.msrb.mxu0 %v18233_v59  ;;  %10071 = vmatpush.bf16.msrb.mxu1 %v18235_v61  ;;  %v14344_v9 = vld [vmem:[#allocation12 + $0x7b8] sm:$0xf0] }
 0x4a6   : > { %v8405_v34 = vadd.f32 %v8404_v54, %v18172_v58  ;;  %v14299_v54 = vor.u32 %v15509_v41, %v14296_v2  ;;  %v14392_v2 = vld [vmem:[#allocation12 + $0x818] sm:$0xf0]  ;;  %v14347_v26 = vor.u32 %v15521_v22, %v14344_v9 }
 0x4a7   : > { %10013 = vmatpush.bf16.msra.mxu2 %v14315_v38 }
 0x4a8   : > { %v8424_v7 = vadd.f32 %v8423_v44, %v8405_v34  ;;  %v18239_v32 = vpop.f32.mrf.mxu0  ;;  %10032 = vmatpush.bf16.msra.mxu3 %v14379_v35  ;;  %v15537_v44 = vld [vmem:[#allocation12 + $0x834] sm:$0xf]  ;;  %v18267_v35 = vor.u32 %v15464_v8, %v14102_v51 }
 0x4a9   : > { %v18244_v58 = vpop.f32.mrf.mxu1  ;;  %10053 = vmatpush.bf16.msrb.mxu0 %v18242_v23  ;;  %10072 = vmatpush.bf16.msrb.mxu1 %v18248_v12  ;;  %v18272_v56 = vor.u32 %v15537_v44, %v14408_v4 }
 0x4aa   : > { %v8443_v45 = vadd.f32 %v18204_v43, %v8424_v7  ;;  %v14371_v43 = vor.u32 %v15527_v17, %v14368_v10  ;;  %v15523_v7 = vld [vmem:[#allocation12 + $0x7c4] sm:$0xf]  ;;  %v14400_v17 = vld [vmem:[#allocation12 + $0x828] sm:$0xf0] }
 0x4ab   : > { %9912 = vmatmul.bf16.gmra.mxu0 %v18246_v3  ;;  %10014 = vmatpush.bf16.msra.mxu2 %v14307_v48  ;;  %v14355_v51 = vor.u32 %v15523_v7, %v14352_v62  ;;  %v18283_v8 = vor.u32 %v15535_v5, %v14400_v17  ;;  %v14336_v7 = vld [vmem:[#allocation12 + $0x7a8] sm:$0xf0] }
 0x4ac   : > { %9931 = vmatmul.bf16.gmra.mxu1 %v18251_v24  ;;  %v18259_v15 = vadd.f32 %v18206_v31, %v8443_v45  ;;  %10033 = vmatpush.bf16.msra.mxu3 %v14371_v43  ;;  %v14472_v31 = vld [vmem:[#allocation12 + $0x8b8] sm:$0xf0]  ;;  %v14291_v45 = vor.u32 %v15507_v30, %v14288_v60  ;;  %v14096_v30 = vld [vmem:[#allocation3 + $0x58] sm:$0xf0]  ;;  %v14384_v62 = vld [vmem:[#allocation12 + $0x808] sm:$0xf0] }
 0x4ad   : > { %v8406_v29 = vpop.f32.mrf.mxu2  ;;  %v8425_v40 = vpop.f32.mrf.mxu3  ;;  %10054 = vmatpush.bf16.msrb.mxu0 %v18256_v19  ;;  %10073 = vmatpush.bf16.msrb.mxu1 %v18262_v28  ;;  %v14280_v43 = vld [vmem:[#allocation12 + $0x738] sm:$0xf0] }
 0x4ae   : > { %v8407_v50 = vadd.f32 %v8406_v29, %v18180_v21  ;;  %v18277_v21 = vor.u32 %v15553_v52, %v14472_v31  ;;  %v14272_v31 = vld [vmem:[#allocation12 + $0x728] sm:$0xf0] }
 0x4af   : > { %10015 = vmatpush.bf16.msra.mxu2 %v14299_v54 }
 0x4b0   : > { %v8426_v34 = vadd.f32 %v8425_v40, %v8407_v50  ;;  %v18265_v38 = vpop.f32.mrf.mxu0  ;;  %10034 = vmatpush.bf16.msra.mxu3 %v14363_v20  ;;  %v15533_v40 = vld [vmem:[#allocation12 + $0x814] sm:$0xf]  ;;  %v15503_v20 = vld [vmem:[#allocation12 + $0x724] sm:$0xf] }
 0x4b1   : > { %v18274_v36 = vpop.f32.mrf.mxu1  ;;  %10055 = vmatpush.bf16.msrb.mxu0 %v18272_v56  ;;  %10074 = vmatpush.bf16.msrb.mxu1 %v18277_v21  ;;  %v18295_v44 = vor.u32 %v15533_v40, %v14392_v2  ;;  %v14275_v60 = vor.u32 %v15503_v20, %v14272_v31  ;;  %v15515_v20 = vld [vmem:[#allocation12 + $0x784] sm:$0xf] }
 0x4b2   : > { %v8445_v18 = vadd.f32 %v18219_v27, %v8426_v34  ;;  %9874 = vmatmul.bf16.gmra.mxu2 %v18267_v35  ;;  %9893 = vmatmul.bf16.gmra.mxu3 %v18269_v11  ;;  %v15505_v27 = vld [vmem:[#allocation12 + $0x734] sm:$0xf]  ;;  %v15519_v34 = vld [vmem:[#allocation12 + $0x7a4] sm:$0xf] }
 0x4b3   : > { %10016 = vmatpush.bf16.msra.mxu2 %v14291_v45  ;;  %v14283_v29 = vor.u32 %v15505_v27, %v14280_v43  ;;  %v15531_v45 = vld [vmem:[#allocation12 + $0x804] sm:$0xf]  ;;  %v14339_v5 = vor.u32 %v15519_v34, %v14336_v7  ;;  %v14328_v43 = vld [vmem:[#allocation12 + $0x798] sm:$0xf0]  ;;  %v14320_v34 = vld [vmem:[#allocation12 + $0x788] sm:$0xf0] }
 0x4b4   : > { %v18286_v48 = vadd.f32 %v18227_v47, %v8445_v18  ;;  %10035 = vmatpush.bf16.msra.mxu3 %v14355_v51  ;;  %v14456_v47 = vld [vmem:[#allocation12 + $0x898] sm:$0xf0]  ;;  %v15460_v18 = vld [vmem:[#allocation3 + $0x54] sm:$0xf0]  ;;  %v18306_v17 = vor.u32 %v15531_v45, %v14384_v62  ;;  %v14448_v51 = vld [vmem:[#allocation12 + $0x888] sm:$0xf0] }
 0x4b5   : > { %v8409_v10 = vpop.f32.mrf.mxu2  ;;  %v8428_v55 = vpop.f32.mrf.mxu3  ;;  %10056 = vmatpush.bf16.msrb.mxu0 %v18283_v8  ;;  %10075 = vmatpush.bf16.msrb.mxu1 %v18289_v33 }
 0x4b6   : > { %v8410_v41 = vadd.f32 %v8409_v10, %v18190_v25  ;;  %v18300_v25 = vor.u32 %v15549_v63, %v14456_v47 }
 0x4b7   : > { %10017 = vmatpush.bf16.msra.mxu2 %v14283_v29  ;;  %v15457_v29 = vld [vmem:[#allocation3 + $0x44] sm:$0xf] }
 0x4b8   : > { %v8429_v50 = vadd.f32 %v8428_v55, %v8410_v41  ;;  %v18292_v54 = vpop.f32.mrf.mxu0  ;;  %10036 = vmatpush.bf16.msra.mxu3 %v14347_v26  ;;  %v14264_v55 = vld [vmem:[#allocation12 + $0x718] sm:$0xf0]  ;;  %v18317_v26 = vor.u32 %v15457_v29, %v14096_v30 }
 0x4b9   : > { %v18297_v4 = vpop.f32.mrf.mxu1  ;;  %10057 = vmatpush.bf16.msrb.mxu0 %v18295_v44  ;;  %10076 = vmatpush.bf16.msrb.mxu1 %v18300_v25  ;;  %v14267_v9 = vor.u32 %v15501_v53, %v14264_v55  ;;  %v14094_v41 = vld [vmem:[#allocation3 + $0x40] sm:$0xf]  ;;  %v15466_v53 = vld [vmem:[#allocation3 + $0x84] sm:$0xf0] }
 0x4ba   : > { %v8448_v52 = vadd.f32 %v18239_v32, %v8429_v50  ;;  %v15547_v32 = vld [vmem:[#allocation12 + $0x884] sm:$0xf]  ;;  %v18315_v63 = vor.u32 %v15460_v18, %v14094_v41  ;;  %v14323_v18 = vor.u32 %v15515_v20, %v14320_v34 }
 0x4bb   : > { %9983 = vmatmul.bf16.vlgmr.msra.gmra.mxu0 %v18221_v14  ;;  %10018 = vmatpush.bf16.msra.mxu2 %v14275_v60  ;;  %v18312_v10 = vor.u32 %v15547_v32, %v14448_v51 }
 0x4bc   : > { %10002 = vmatmul.bf16.vlgmr.msra.gmra.mxu1 %v18223_v39  ;;  %v18309_v6 = vadd.f32 %v18244_v58, %v8448_v52  ;;  %v15517_v39 = vld [vmem:[#allocation12 + $0x794] sm:$0xf]  ;;  %10037 = vmatpush.bf16.msra.mxu3 %v14339_v5  ;;  %v14256_v52 = vld [vmem:[#allocation12 + $0x708] sm:$0xf0] }
 0x4bd   : > { %v8411_v14 = vpop.f32.mrf.mxu2  ;;  %v8430_v27 = vpop.f32.mrf.mxu3  ;;  %v14331_v40 = vor.u32 %v15517_v39, %v14328_v43  ;;  %10058 = vmatpush.bf16.msrb.mxu0 %v18306_v17  ;;  %10077 = vmatpush.bf16.msrb.mxu1 %v18312_v10 }
 0x4be   : > { %v8412_v22 = vadd.f32 %v8411_v14, %v18197_v42  ;;  %v15499_v42 = vld [vmem:[#allocation12 + $0x704] sm:$0xf]  ;;  %v15463_v14 = vld [vmem:[#allocation3 + $0x74] sm:$0xf] }
 0x4bf   : > { %10019 = vmatpush.bf16.msra.mxu2 %v14267_v9  ;;  %v14259_v31 = vor.u32 %v15499_v42, %v14256_v52 }
 0x4c0   : > { %v8431_v2 = vadd.f32 %v8430_v27, %v8412_v22  ;;  %v9033_v58 = vpop.f32.mrf.mxu0  ;;  %10038 = vmatpush.bf16.msra.mxu3 %v14331_v40  ;;  %v14120_v27 = vld [vmem:[#allocation3 + $0x88] sm:$0xf0] }
 0x4c1   : > { %v9052_v47 = vpop.f32.mrf.mxu1 }
 0x4c2   : > { %v8450_v50 = vadd.f32 %v18265_v38, %v8431_v2  ;;  %9945 = vmatmul.bf16.vlgmr.msrb.gmra.mxu2 %v18315_v63  ;;  %9964 = vmatmul.bf16.vlgmr.msrb.gmra.mxu3 %v18317_v26 }
 0x4c3   : > { %10020 = vmatpush.bf16.msra.mxu2 %v14259_v31 }
 0x4c4   : > { %v18325_v30 = vadd.f32 %v18274_v36, %v8450_v50  ;;  %10039 = vmatpush.bf16.msra.mxu3 %v14323_v18  ;;  %v14118_v36 = vld [vmem:[#allocation3 + $0x70] sm:$0xf] }
 0x4c5   : > { %v8993_v60 = vpop.f32.mrf.mxu2  ;;  %v9012_v7 = vpop.f32.mrf.mxu3  ;;  %v18338_v55 = vor.u32 %v15466_v53, %v14118_v36 }
 0x4c6   : > { %v8994_v45 = vadd.f32 %v8993_v60, %v18188_v13 }
 0x4c7   : > { %15564 = vmatpush.bf16.msrb.mxu2 %v18215_v57 }
 0x4c8   : > { %v9013_v38 = vadd.f32 %v9012_v7, %v8994_v45  ;;  %v9036_v62 = vpop.f32.mrf.mxu0  ;;  %15572 = vmatpush.bf16.msrb.mxu3 %v18225_v49 }
 0x4c9   : > { %v9055_v5 = vpop.f32.mrf.mxu1 }
 0x4ca   : > { %v9032_v32 = vadd.f32 %v18292_v54, %v9013_v38 }
 0x4cb   : > { %15565 = vmatpush.bf16.msrb.mxu2 %v18233_v59  ;;  %9988 = vmatmul.bf16.gmra.mxu0 %v18267_v35  ;;  %v18340_v35 = vor.u32 %v15463_v14, %v14120_v27 }
 0x4cc   : > { %10007 = vmatmul.bf16.gmra.mxu1 %v18269_v11  ;;  %v9051_v51 = vadd.f32 %v18297_v4, %v9032_v32  ;;  %15573 = vmatpush.bf16.msrb.mxu3 %v18235_v61 }
 0x4cd   : > { %v8995_v13 = vpop.f32.mrf.mxu2  ;;  %v9014_v57 = vpop.f32.mrf.mxu3 }
 0x4ce   : > { %v8996_v49 = vadd.f32 %v8995_v13, %v18195_v46 }
 0x4cf   : > { %15566 = vmatpush.bf16.msrb.mxu2 %v18242_v23 }
 0x4d0   : > { %v9015_v54 = vadd.f32 %v9014_v57, %v8996_v49  ;;  %v9038_v59 = vpop.f32.mrf.mxu0  ;;  %15574 = vmatpush.bf16.msrb.mxu3 %v18248_v12 }
 0x4d1   : > { %v9057_v11 = vpop.f32.mrf.mxu1 }
 0x4d2   : > { %v9034_v4 = vadd.f32 %v9033_v58, %v9015_v54  ;;  %9950 = vmatmul.bf16.gmra.mxu2 %v18338_v55  ;;  %9969 = vmatmul.bf16.gmra.mxu3 %v18340_v35 }
 0x4d3   : > { %15567 = vmatpush.bf16.msrb.mxu2 %v18256_v19 }
 0x4d4   : > { %v9053_v61 = vadd.f32 %v9052_v47, %v9034_v4  ;;  %15575 = vmatpush.bf16.msrb.mxu3 %v18262_v28 }
 0x4d5   : > { %v8998_v46 = vpop.f32.mrf.mxu2  ;;  %v9017_v23 = vpop.f32.mrf.mxu3 }
 0x4d6   : > { %v8999_v39 = vadd.f32 %v8998_v46, %v18202_v1 }
 0x4d7   : > { %15568 = vmatpush.bf16.msrb.mxu2 %v18272_v56 }
 0x4d8   : > { %v9018_v43 = vadd.f32 %v9017_v23, %v8999_v39  ;;  %v9107_v22 = vpop.f32.mrf.mxu0  ;;  %15576 = vmatpush.bf16.msrb.mxu3 %v18277_v21 }
 0x4d9   : > { %v9108_v12 = vadd.f32 %v9107_v22, %v18259_v15  ;;  %v9126_v9 = vpop.f32.mrf.mxu1 }
 0x4da   : > { %v9037_v41 = vadd.f32 %v9036_v62, %v9018_v43 }
 0x4db   : > { %v9127_v29 = vadd.f32 %v9126_v9, %v9108_v12  ;;  %10059 = vmatmul.bf16.vlgmr.msrb.gmra.mxu0 %v18315_v63  ;;  %15569 = vmatpush.bf16.msrb.mxu2 %v18283_v8 }
 0x4dc   : > { %10078 = vmatmul.bf16.vlgmr.msrb.gmra.mxu1 %v18317_v26  ;;  %v9056_v19 = vadd.f32 %v9055_v5, %v9037_v41  ;;  %15577 = vmatpush.bf16.msrb.mxu3 %v18289_v33 }
 0x4dd   : > { %v9000_v1 = vpop.f32.mrf.mxu2  ;;  %v9019_v28 = vpop.f32.mrf.mxu3 }
 0x4de   : > { %v9001_v56 = vadd.f32 %v9000_v1, %v18217_v37 }
 0x4df   : > { %15570 = vmatpush.bf16.msrb.mxu2 %v18295_v44 }
 0x4e0   : > { %v9020_v21 = vadd.f32 %v9019_v28, %v9001_v56  ;;  %v9109_v15 = vpop.f32.mrf.mxu0  ;;  %15578 = vmatpush.bf16.msrb.mxu3 %v18300_v25 }
 0x4e1   : > { %v9110_v40 = vadd.f32 %v9109_v15, %v18286_v48  ;;  %v9128_v2 = vpop.f32.mrf.mxu1 }
 0x4e2   : > { %v9039_v58 = vadd.f32 %v9038_v59, %v9020_v21  ;;  %10021 = vmatmul.bf16.vlgmr.msra.gmra.mxu2 %v18208_v0  ;;  %10040 = vmatmul.bf16.vlgmr.msra.gmra.mxu3 %v18210_v16 }
 0x4e3   : > { %v9129_v8 = vadd.f32 %v9128_v2, %v9110_v40  ;;  %15571 = vmatpush.bf16.msrb.mxu2 %v18306_v17 }
 0x4e4   : > { %v9058_v33 = vadd.f32 %v9057_v11, %v9039_v58  ;;  %15579 = vmatpush.bf16.msrb.mxu3 %v18312_v10 }
 0x4e5   : > { %v9069_v37 = vpop.f32.mrf.mxu2  ;;  %v9088_v44 = vpop.f32.mrf.mxu3 }
 0x4e6   : > { %v9070_v63 = vadd.f32 %v9069_v37, %v9051_v51 }
 0x4e8   : > { %v18363_v26 = vadd.f32 %v9088_v44, %v9070_v63  ;;  %v9112_v25 = vpop.f32.mrf.mxu0 }
 0x4e9   : > { %v9113_v48 = vadd.f32 %v9112_v25, %v18309_v6  ;;  %v9131_v47 = vpop.f32.mrf.mxu1 }
 0x4eb   : > { %v9132_v50 = vadd.f32 %v9131_v47, %v9113_v48 }
 0x4ed   : > { %v9071_v42 = vpop.f32.mrf.mxu2  ;;  %v9090_v0 = vpop.f32.mrf.mxu3 }
 0x4ee   : > { %v9072_v52 = vadd.f32 %v9071_v42, %v9053_v61 }
 0x4f0   : > { %v18366_v16 = vadd.f32 %v9090_v0, %v9072_v52  ;;  %v9114_v20 = vpop.f32.mrf.mxu0 }
 0x4f1   : > { %v9115_v17 = vadd.f32 %v9114_v20, %v18325_v30  ;;  %v9133_v31 = vpop.f32.mrf.mxu1 }
 0x4f2   : > { %10026 = vmatmul.bf16.gmra.mxu2 %v18246_v3  ;;  %10045 = vmatmul.bf16.gmra.mxu3 %v18251_v24 }
 0x4f3   : > { %v9134_v10 = vadd.f32 %v9133_v31, %v9115_v17 }
 0x4f5   : > { %v9074_v34 = vpop.f32.mrf.mxu2  ;;  %v9093_v18 = vpop.f32.mrf.mxu3 }
 0x4f6   : > { %v9075_v60 = vadd.f32 %v9074_v34, %v9056_v19 }
 0x4f8   : > { %v18371_v6 = vadd.f32 %v9093_v18, %v9075_v60  ;;  %v9183_v7 = vpop.f32.mrf.mxu0 }
 0x4f9   : > { %v9202_v45 = vpop.f32.mrf.mxu1 }
 0x4fd   : > { %v9076_v38 = vpop.f32.mrf.mxu2  ;;  %v9095_v62 = vpop.f32.mrf.mxu3 }
 0x4fe   : > { %v9077_v5 = vadd.f32 %v9076_v38, %v9058_v33 }
 0x500   : > { %v18373_v32 = vadd.f32 %v9095_v62, %v9077_v5  ;;  %v9185_v36 = vpop.f32.mrf.mxu0 }
 0x501   : > { %v9204_v30 = vpop.f32.mrf.mxu1 }
 0x502   : > { %10064 = vmatmul.bf16.vlgmr.msrb.gmra.mxu2 %v18338_v55  ;;  %10083 = vmatmul.bf16.vlgmr.msrb.gmra.mxu3 %v18340_v35 }
 0x505   : > { %v9145_v3 = vpop.f32.mrf.mxu2  ;;  %v9164_v24 = vpop.f32.mrf.mxu3 }
 0x506   : > { %v9146_v51 = vadd.f32 %v9145_v3, %v9127_v29 }
 0x508   : > { %v9165_v13 = vadd.f32 %v9164_v24, %v9146_v51  ;;  %v9188_v57 = vpop.f32.mrf.mxu0 }
 0x509   : > { %v9207_v53 = vpop.f32.mrf.mxu1 }
 0x50a   : > { %v9184_v14 = vadd.f32 %v9183_v7, %v9165_v13 }
 0x50c   : > { %v18377_v27 = vadd.f32 %v9202_v45, %v9184_v14 }
 0x50d   : > { %v9147_v49 = vpop.f32.mrf.mxu2  ;;  %v9166_v54 = vpop.f32.mrf.mxu3 }
 0x50e   : > { %v9148_v59 = vadd.f32 %v9147_v49, %v9129_v8 }
 0x510   : > { %v9167_v11 = vadd.f32 %v9166_v54, %v9148_v59  ;;  %v9190_v4 = vpop.f32.mrf.mxu0 }
 0x511   : > { %v9209_v61 = vpop.f32.mrf.mxu1 }
 0x512   : > { %v9186_v46 = vadd.f32 %v9185_v36, %v9167_v11 }
 0x514   : > { %v18379_v23 = vadd.f32 %v9204_v30, %v9186_v46 }
 0x515   : > { %v9150_v55 = vpop.f32.mrf.mxu2  ;;  %v9169_v35 = vpop.f32.mrf.mxu3 }
 0x516   : > { %v9151_v39 = vadd.f32 %v9150_v55, %v9132_v50 }
 0x518   : > { %v9170_v43 = vadd.f32 %v9169_v35, %v9151_v39  ;;  %v9908_v22 = vpop.f32.mrf.mxu0 }
 0x519   : > { %v9927_v12 = vpop.f32.mrf.mxu1 }
 0x51a   : > { %v9189_v9 = vadd.f32 %v9188_v57, %v9170_v43 }
 0x51c   : > { %v18381_v41 = vadd.f32 %v9207_v53, %v9189_v9 }
 0x51d   : > { %v9152_v29 = vpop.f32.mrf.mxu2  ;;  %v9171_v19 = vpop.f32.mrf.mxu3 }
 0x51e   : > { %v9153_v1 = vadd.f32 %v9152_v29, %v9134_v10  ;;  %v10097_v29 = vld [vmem:[#allocation13] sm:$0x3] }
 0x520   : > { %v9172_v28 = vadd.f32 %v9171_v19, %v9153_v1  ;;  %v9910_v56 = vpop.f32.mrf.mxu0 }
 0x521   : > { %v9929_v15 = vpop.f32.mrf.mxu1 }
 0x522   : > { %v9191_v21 = vadd.f32 %v9190_v4, %v9172_v28 }
 0x524   : > { %v18383_v40 = vadd.f32 %v9209_v61, %v9191_v21 }
 0x525   : > { %v9870_v2 = vpop.f32.mrf.mxu2  ;;  %v9889_v58 = vpop.f32.mrf.mxu3 }
 0x526   : > { %v9890_v51 = vadd.f32 %v9889_v58, %v9870_v2  ;;  %v10111_v58 = vld [vmem:[#allocation15] sm:$0x3] }
 0x528   : > { %v9913_v8 = vpop.f32.mrf.mxu0  ;;  %v9909_v53 = vadd.f32 %v9908_v22, %v9890_v51 }
 0x529   : > { %v9932_v33 = vpop.f32.mrf.mxu1 }
 0x52a   : > { %v9928_v4 = vadd.f32 %v9927_v12, %v9909_v53  ;;  %v18400_v12 = vperm.slane %v10097_v29, 0 }
 0x52d   : > { %v9872_v37 = vpop.f32.mrf.mxu2  ;;  %v9891_v44 = vpop.f32.mrf.mxu3 }
 0x52e   : > { %v9892_v11 = vadd.f32 %v9891_v44, %v9872_v37 }
 0x530   : > { %v9915_v63 = vpop.f32.mrf.mxu0  ;;  %v9911_v39 = vadd.f32 %v9910_v56, %v9892_v11 }
 0x531   : > { %v9934_v47 = vpop.f32.mrf.mxu1 }
 0x532   : > { %v9930_v1 = vadd.f32 %v9929_v15, %v9911_v39  ;;  %v10100_v15 = vperm.slane %v10097_v29, 1 }
 0x535   : > { %v9875_v25 = vpop.f32.mrf.mxu2  ;;  %v9894_v48 = vpop.f32.mrf.mxu3 }
 0x536   : > { %v9895_v50 = vadd.f32 %v9894_v48, %v9875_v25 }
 0x538   : > { %v9914_v42 = vadd.f32 %v9913_v8, %v9895_v50  ;;  %v9984_v17 = vpop.f32.mrf.mxu0 }
 0x539   : > { %v10003_v10 = vpop.f32.mrf.mxu1 }
 0x53a   : > { %v9933_v0 = vadd.f32 %v9932_v33, %v9914_v42  ;;  %v10004_v9 = vadd.f32 %v10003_v10, %v9984_v17  ;;  %v10114_v42 = vperm.slane %v10111_v58, 1 }
 0x53d   : > { %v9877_v52 = vpop.f32.mrf.mxu2  ;;  %v9896_v20 = vpop.f32.mrf.mxu3 }
 0x53e   : > { %v9897_v31 = vadd.f32 %v9896_v20, %v9877_v52 }
 0x540   : > { %v9916_v34 = vadd.f32 %v9915_v63, %v9897_v31  ;;  %v9986_v45 = vpop.f32.mrf.mxu0 }
 0x541   : > { %v10005_v38 = vpop.f32.mrf.mxu1 }
 0x542   : > { %v9935_v18 = vadd.f32 %v9934_v47, %v9916_v34  ;;  %v10006_v44 = vadd.f32 %v10005_v38, %v9986_v45 }
 0x545   : > { %v9946_v60 = vpop.f32.mrf.mxu2  ;;  %v9965_v7 = vpop.f32.mrf.mxu3 }
 0x546   : > { %v9947_v55 = vadd.f32 %v9946_v60, %v9928_v4 }
 0x548   : > { %v18385_v36 = vpop.f32.mrf.mxu0  ;;  %v9966_v22 = vadd.f32 %v9965_v7, %v9947_v55 }
 0x549   : > { %v18387_v30 = vpop.f32.mrf.mxu1 }
 0x54a   : > { %v10089_v2 = vadd.f32 %v9966_v22, %v18363_v26  ;;  %v10009_v11 = vadd.f32 %v18387_v30, %v18385_v36 }
 0x54c   : > { %v10103_v63 = vmul.f32 %v18400_v12, %v10089_v2 }
 0x54d   : > { %v9948_v62 = vpop.f32.mrf.mxu2  ;;  %v9967_v5 = vpop.f32.mrf.mxu3 }
 0x54e   : > { %v9949_v8 = vadd.f32 %v9948_v62, %v9930_v1 }
 0x550   : > { %v18392_v49 = vpop.f32.mrf.mxu0  ;;  %v9968_v25 = vadd.f32 %v9967_v5, %v9949_v8 }
 0x551   : > { %v18394_v46 = vpop.f32.mrf.mxu1 }
 0x552   : > { %v10091_v20 = vadd.f32 %v9968_v25, %v18366_v16  ;;  %v10011_v39 = vadd.f32 %v18394_v46, %v18392_v49 }
 0x554   : > { %v10105_v45 = vmul.f32 %v18400_v12, %v10091_v20 }
 0x555   : > { %v9951_v3 = vpop.f32.mrf.mxu2  ;;  %v9970_v24 = vpop.f32.mrf.mxu3 }
 0x556   : > { %v9952_v13 = vadd.f32 %v9951_v3, %v9933_v0 }
 0x558   : > { %v9971_v57 = vadd.f32 %v9970_v24, %v9952_v13  ;;  %v10060_v21 = vpop.f32.mrf.mxu0 }
 0x559   : > { %v10079_v37 = vpop.f32.mrf.mxu1 }
 0x55a   : > { %v18390_v14 = vadd.f32 %v9971_v57, %v18371_v6 }
 0x55c   : > { %v10107_v22 = vmul.f32 %v18400_v12, %v18390_v14 }
 0x55d   : > { %v9953_v54 = vpop.f32.mrf.mxu2  ;;  %v9972_v59 = vpop.f32.mrf.mxu3 }
 0x55e   : > { %v9954_v61 = vadd.f32 %v9953_v54, %v9935_v18 }
 0x560   : > { %v9973_v35 = vadd.f32 %v9972_v59, %v9954_v61  ;;  %v10062_v10 = vpop.f32.mrf.mxu0 }
 0x561   : > { %v10081_v60 = vpop.f32.mrf.mxu1 }
 0x562   : > { %v18397_v43 = vadd.f32 %v9973_v35, %v18373_v32  ;;  %v18402_v32 = vperm.slane %v10111_v58, 0 }
 0x564   : > { %v10117_v52 = vadd.f32 %v18402_v32, %v10103_v63  ;;  %v10119_v51 = vadd.f32 %v18402_v32, %v10105_v45  ;;  %v10121_v36 = vadd.f32 %v18402_v32, %v10107_v22  ;;  %v10109_v46 = vmul.f32 %v18400_v12, %v18397_v43 }
 0x565   : > { %v10022_v6 = vpop.f32.mrf.mxu2  ;;  %v10041_v19 = vpop.f32.mrf.mxu3 }
 0x566   : > { %v10023_v28 = vadd.f32 %v10022_v6, %v10004_v9  ;;  %v10125_v7 = vmax.f32 %v10117_v52, 0.0  ;;  %v10127_v57 = vmax.f32 %v10119_v51, 0.0  ;;  %v10129_v49 = vmax.f32 %v10121_v36, 0.0 }
 0x568   : > { %v10042_v33 = vadd.f32 %v10041_v19, %v10023_v28 }
 0x56a   : > { %v10061_v56 = vadd.f32 %v10060_v21, %v10042_v33 }
 0x56c   : > { %v10080_v48 = vadd.f32 %v10079_v37, %v10061_v56  ;;  %v10123_v37 = vadd.f32 %v18402_v32, %v10109_v46 }
 0x56d   : > { %v10024_v47 = vpop.f32.mrf.mxu2  ;;  %v10043_v50 = vpop.f32.mrf.mxu3 }
 0x56e   : > { %v10090_v26 = vadd.f32 %v10080_v48, %v18377_v27  ;;  %v10025_v0 = vadd.f32 %v10024_v47, %v10006_v44  ;;  %v10131_v43 = vmax.f32 %v10123_v37, 0.0 }
 0x570   : > { %v10104_v17 = vmul.f32 %v10100_v15, %v10090_v26  ;;  %v10044_v31 = vadd.f32 %v10043_v50, %v10025_v0 }
 0x572   : > { %v10118_v34 = vadd.f32 %v10114_v42, %v10104_v17  ;;  %v10063_v18 = vadd.f32 %v10062_v10, %v10044_v31 }
 0x574   : > { %v10126_v38 = vmax.f32 %v10118_v34, 0.0  ;;  %v10082_v62 = vadd.f32 %v10081_v60, %v10063_v18 }
 0x575   : > { %v10027_v5 = vpop.f32.mrf.mxu2  ;;  %v10046_v27 = vpop.f32.mrf.mxu3 }
 0x576   : > { %v10133_v3 = vpack.c.bf16 %v10126_v38, %v10125_v7  ;;  %v10092_v24 = vadd.f32 %v10082_v62, %v18379_v23  ;;  %v10028_v61 = vadd.f32 %v10027_v5, %v10009_v11 }
 0x578   : > { %10137 = vst [vmem:[%s18412_s22] sm:$0xff] %v10133_v3  ;;  %v10106_v16 = vmul.f32 %v10100_v15, %v10092_v24  ;;  %v10047_v23 = vadd.f32 %v10046_v27, %v10028_v61 }
 0x57a   : > { %v10120_v13 = vadd.f32 %v10114_v42, %v10106_v16 }
 0x57c   : > { %v10128_v53 = vmax.f32 %v10120_v13, 0.0 }
 0x57d   : > { %v10029_v54 = vpop.f32.mrf.mxu2  ;;  %v10048_v59 = vpop.f32.mrf.mxu3 }
 0x57e   : > { %v10134_v4 = vpack.c.bf16 %v10128_v53, %v10127_v57  ;;  %v10030_v29 = vadd.f32 %v10029_v54, %v10011_v39 }
 0x580   : > { %10138 = vst [vmem:[%s18412_s22 + $0x8] sm:$0xff] %v10134_v4  ;;  %v10049_v30 = vadd.f32 %v10048_v59, %v10030_v29 }
 0x585   : > { %v10065_v55 = vpop.f32.mrf.mxu2  ;;  %v10084_v35 = vpop.f32.mrf.mxu3 }
 0x586   : > { %v10066_v9 = vadd.f32 %v10065_v55, %v10047_v23 }
 0x588   : > { %v10085_v6 = vadd.f32 %v10084_v35, %v10066_v9 }
 0x58a   : > { %v10094_v19 = vadd.f32 %v10085_v6, %v18381_v41 }
 0x58c   : > { %v10108_v1 = vmul.f32 %v10100_v15, %v10094_v19 }
 0x58d   : > { %v10067_v28 = vpop.f32.mrf.mxu2  ;;  %v10086_v58 = vpop.f32.mrf.mxu3 }
 0x58e   : > { %v10122_v21 = vadd.f32 %v10114_v42, %v10108_v1  ;;  %v10068_v2 = vadd.f32 %v10067_v28, %v10049_v30 }
 0x590   : > { %v10130_v8 = vmax.f32 %v10122_v21, 0.0  ;;  %v10087_v14 = vadd.f32 %v10086_v58, %v10068_v2 }
 0x592   : > { %v10135_v41 = vpack.c.bf16 %v10130_v8, %v10129_v49  ;;  %v10096_v33 = vadd.f32 %v10087_v14, %v18383_v40 }
 0x594   : > { %10139 = vst [vmem:[%s18412_s22 + $0x10] sm:$0xff] %v10135_v41  ;;  %v10110_v56 = vmul.f32 %v10100_v15, %v10096_v33 }
 0x596   : > { %v10124_v44 = vadd.f32 %v10114_v42, %v10110_v56 }
 0x598   : > { %v10132_v12 = vmax.f32 %v10124_v44, 0.0 }
 0x59a   : > { %v10136_v63 = vpack.c.bf16 %v10132_v12, %v10131_v43 }
 0x59c   : > { %10140 = vst [vmem:[%s18412_s22 + $0x18] sm:$0xff] %v10136_v63 }
 0x59d   : > { %15938 = shalt.err (!%p15935_p9)
}
 0x59e   : > { %s16002_s2 = smov 128   ;;  %s16003_s1 = smov 8  }
 0x59f   : > { %15609 = dma.vmem_to_hbm [thread:$0]  (%p16137_p4), %s10155_s13, 512, %s10157_s16, %s10142_s8, %s16002_s2, %s16002_s2, %s16003_s1  }
 0x5a0 PF: > { %s10171_s9 = sand.u32 1, %s15977_s24   ;;  %p18729_p10 = scmp.ge.s32.totalorder %s15989_s27, 2 }
 0x5a1   : > { %s10172_s22 = scalar_lea.sflag [#allocation6], %s10171_s9 }
 0x5a2   : > { %p15635_p11 = pnand %p18729_p10, %p16141_p6 }
 0x5a4   : > { %p15636_p13 = pneg %p15635_p11 }
 0x5a6   : > { %15972 = dma.done.wait (%p15636_p13), %s10172_s22, 512  }
 0x5a7   : > { %15974 = vsyncadd (%p15636_p13), %s10172_s22, 4294966784  ;;  %p23_p0 = scmp.ge.s32.totalorder %s16115_s12, 4   ;;  %s18730_s24 = smov %s15981_s25 }
 0x5a8   : > { %s18731_s25 = smov %s15985_s26  ;;  %s18732_s26 = smov %s16126_s21 }
 0x5a9   : > { %s18733_s27 = smov %s16115_s12  ;;  %25 = sbr.rel (!%p23_p0) target bundleno = 12 (0xc), region = 121 }
 0x5ae   :  { %10178 = vsyncpa [#allocation5], 1 }
 0x5af   :  { %10180 = vsyncpa [#allocation5 + $0x1], 1 }
 0x5b0   :  { %10181 = vsyncpa [#allocation8], 1 }
 0x5b1   :  { %10182 = vsyncpa [#allocation11], 1 }
 0x5b2   :  { %10183 = vsyncpa [#allocation14], 1 }
 0x5b3   :  { %10184 = vsyncpa [#allocation6], 1 }
 0x5b4   :  { %10186 = vsyncpa [#allocation6 + $0x1], 1 }

</bundles_post_ra>
